<compile_context>
chip_gen: v7x
topology: tpu7x:2x2x1
jax: 0.10.0
libtpu: 0.0.40
codegen_flags: <defaults>
</compile_context>

<pallas_src>
import math

import jax
import jax.numpy as jnp
from jax.experimental import pallas as pl
from jax.experimental.pallas import tpu as pltpu

# ----------------------------- configuration -----------------------------
C_S = 32          # single-rep channels
C_Z = 16          # pair-rep channels
C_HIDDEN = 16     # per-head hidden
NO_HEADS = 4
NO_QK_POINTS = 4
NO_V_POINTS = 8
INF = 1e5
EPS = 1e-8
N_RES = 16
BATCH = 2

CZ4 = C_Z // 4
PKV = NO_QK_POINTS + NO_V_POINTS
# fused s-projection width: [q | kv | q_pts | kv_pts]
D_PROJ = NO_HEADS * C_HIDDEN + 2 * NO_HEADS * C_HIDDEN \
         + NO_HEADS * NO_QK_POINTS * 3 + NO_HEADS * PKV * 3          # 384
# concatenated attention-output feature width (input of linear_out)
D_FEAT = NO_HEADS * (C_HIDDEN + NO_V_POINTS * 4 + CZ4)               # 208
# fused per-head logit features: [scalar | 3*Pq point coords | 2 aux] (+ zero pad)
D_QK_FUSED = C_HIDDEN + 3 * NO_QK_POINTS + 2                         # 30
D_QK_PAD = 32
D_VALL = C_HIDDEN + 3 * NO_V_POINTS                                  # 40

SCALE_QK = math.sqrt(1.0 / (3.0 * C_HIDDEN))
SQRT_SCALE_QK = math.sqrt(SCALE_QK)
SCALE_B = math.sqrt(1.0 / 3.0)
PT_SCALE = math.sqrt(1.0 / (3.0 * (NO_QK_POINTS * 9.0 / 2.0)))


# ----------------------------- fused Pallas kernel -----------------------------
def _ipa_fused_kernel(s_ref, z_ref, rig_ref, mb_ref,
                      ws_t_ref, bs_ref, wb_ref, bb_ref, wdz_t_ref, bdz_ref,
                      hw_ref, wout_t_ref, bout_ref,
                      out_ref,
                      qf_ref, kf_ref, vall_ref, feat_ref):
    N = N_RES
    H, C, Pq, Pv = NO_HEADS, C_HIDDEN, NO_QK_POINTS, NO_V_POINTS

    # ---- fused projection of the single representation: one MXU matmul ----
    proj = jnp.dot(s_ref[...], ws_t_ref[...],
                   preferred_element_type=jnp.float32) + bs_ref[...]      # [N, 384]

    off_kv = H * C                      # 64
    off_qp = off_kv + 2 * H * C         # 192
    off_kvp = off_qp + H * Pq * 3       # 240
    HPq = H * Pq                        # 16
    HPkv = H * PKV                      # 48

    # ---- rigid frames (row-major 3x3 + translation), applied on the VPU ----
    rig = rig_ref[...]                                                    # [N, 12]
    r = [rig[:, i:i + 1] for i in range(9)]                               # [N, 1] each
    t = [rig[:, 9 + i:10 + i] for i in range(3)]

    def to_global(px, py, pz):
        gx = r[0] * px + r[1] * py + r[2] * pz + t[0]
        gy = r[3] * px + r[4] * py + r[5] * pz + t[1]
        gz = r[6] * px + r[7] * py + r[8] * pz + t[2]
        return gx, gy, gz

    qgx, qgy, qgz = to_global(proj[:, off_qp:off_qp + HPq],
                              proj[:, off_qp + HPq:off_qp + 2 * HPq],
                              proj[:, off_qp + 2 * HPq:off_qp + 3 * HPq])   # [N, H*Pq]
    kgx, kgy, kgz = to_global(proj[:, off_kvp:off_kvp + HPkv],
                              proj[:, off_kvp + HPkv:off_kvp + 2 * HPkv],
                              proj[:, off_kvp + 2 * HPkv:off_kvp + 3 * HPkv])  # [N, H*PKV]

    z3 = z_ref[...]                                                       # [N, N, C_Z]
    mb = mb_ref[...]                                                      # [N, N]
    wdz_t = wdz_t_ref[...]                                                # [C_Z, CZ4]
    bdz = bdz_ref[...]                                                    # [1, CZ4]

    # constant columns of the fused logit features (written once per grid step)
    ones_col = jnp.ones((N, 1), jnp.float32)
    zeros_pad = jnp.zeros((N, D_QK_PAD - D_QK_FUSED), jnp.float32)
    aux0 = C + 3 * Pq                     # 28
    qf_ref[:, aux0:aux0 + 1] = ones_col
    kf_ref[:, aux0 + 1:aux0 + 2] = ones_col
    qf_ref[:, D_QK_FUSED:D_QK_PAD] = zeros_pad
    kf_ref[:, D_QK_FUSED:D_QK_PAD] = zeros_pad

    for h in range(H):
        # per-head slices of the fused projection
        q_h = proj[:, h * C:(h + 1) * C]                                  # [N, C]
        k_h = proj[:, off_kv + h * 2 * C:off_kv + h * 2 * C + C]
        v_h = proj[:, off_kv + h * 2 * C + C:off_kv + (h + 1) * 2 * C]

        qx = qgx[:, h * Pq:(h + 1) * Pq]                                  # [N, Pq]
        qy = qgy[:, h * Pq:(h + 1) * Pq]
        qz = qgz[:, h * Pq:(h + 1) * Pq]
        kx = kgx[:, h * PKV:h * PKV + Pq]
        ky = kgy[:, h * PKV:h * PKV + Pq]
        kz = kgz[:, h * PKV:h * PKV + Pq]
        vx = kgx[:, h * PKV + Pq:(h + 1) * PKV]                           # [N, Pv]
        vy = kgy[:, h * PKV + Pq:(h + 1) * PKV]
        vz = kgz[:, h * PKV + Pq:(h + 1) * PKV]

        hw = hw_ref[:, h:h + 1]                                           # [1, 1]
        sqrt_hw = jnp.sqrt(hw)
        neg_half_hw = -0.5 * hw

        qsq = jnp.sum(qx * qx + qy * qy + qz * qz, axis=-1, keepdims=True)   # [N, 1]
        ksq = jnp.sum(kx * kx + ky * ky + kz * kz, axis=-1, keepdims=True)

        # fused logit features: one MXU contraction covers scalar-QK, point cross term
        # and both squared-norm terms.
        qf_ref[:, 0:C] = q_h * SQRT_SCALE_QK
        qf_ref[:, C:C + Pq] = qx * sqrt_hw
        qf_ref[:, C + Pq:C + 2 * Pq] = qy * sqrt_hw
        qf_ref[:, C + 2 * Pq:C + 3 * Pq] = qz * sqrt_hw
        qf_ref[:, aux0 + 1:aux0 + 2] = neg_half_hw * qsq
        kf_ref[:, 0:C] = k_h * SQRT_SCALE_QK
        kf_ref[:, C:C + Pq] = kx * sqrt_hw
        kf_ref[:, C + Pq:C + 2 * Pq] = ky * sqrt_hw
        kf_ref[:, C + 2 * Pq:C + 3 * Pq] = kz * sqrt_hw
        kf_ref[:, aux0:aux0 + 1] = neg_half_hw * ksq

        att = jax.lax.dot_general(qf_ref[...], kf_ref[...],
                                  (((1,), (1,)), ((), ())),
                                  preferred_element_type=jnp.float32)     # [N, N]

        # pair bias for this head, computed from raw z in VMEM
        wb_row = wb_ref[h:h + 1, :]                                       # [1, C_Z]
        b_h = jnp.sum(z3 * wb_row[None, :, :], axis=-1) + bb_ref[:, h:h + 1]  # [N, N]
        att = att + SCALE_B * b_h + mb

        # softmax over keys (reciprocal goes to the EUP slot)
        att = att - jnp.max(att, axis=-1, keepdims=True)
        p = jnp.exp(att)
        denom = jnp.sum(p, axis=-1, keepdims=True)
        p = p * pl.reciprocal(denom, approx=True)                         # [N, N]

        # fused value aggregation: scalar values + three point-coordinate planes
        vall_ref[:, 0:C] = v_h
        vall_ref[:, C:C + Pv] = vx
        vall_ref[:, C + Pv:C + 2 * Pv] = vy
        vall_ref[:, C + 2 * Pv:C + 3 * Pv] = vz
        o_all = jnp.dot(p, vall_ref[...], preferred_element_type=jnp.float32)  # [N, 40]
        o_h = o_all[:, 0:C]
        ogx = o_all[:, C:C + Pv]
        ogy = o_all[:, C + Pv:C + 2 * Pv]
        ogz = o_all[:, C + 2 * Pv:C + 3 * Pv]

        # pair-rep aggregation:  (sum_k p * z) @ down_z^T  + bias * rowsum(p)
        mz = jnp.sum(p[:, :, None] * z3, axis=1)                          # [N, C_Z]
        psum = jnp.sum(p, axis=-1, keepdims=True)                         # [N, 1]
        o_pair = jnp.dot(mz, wdz_t, preferred_element_type=jnp.float32) + bdz * psum

        # back to the local frame: R^T (x - t), then point norms
        dx = ogx - t[0]
        dy = ogy - t[1]
        dz = ogz - t[2]
        lx = r[0] * dx + r[3] * dy + r[6] * dz
        ly = r[1] * dx + r[4] * dy + r[7] * dz
        lz = r[2] * dx + r[5] * dy + r[8] * dz
        norm = jnp.sqrt(lx * lx + ly * ly + lz * lz + EPS)                # [N, Pv]

        # assemble this head's slice of the concatenated output features
        feat_ref[:, h * C:(h + 1) * C] = o_h
        base = H * C
        feat_ref[:, base + h * Pv:base + (h + 1) * Pv] = lx
        base += H * Pv
        feat_ref[:, base + h * Pv:base + (h + 1) * Pv] = ly
        base += H * Pv
        feat_ref[:, base + h * Pv:base + (h + 1) * Pv] = lz
        base += H * Pv
        feat_ref[:, base + h * Pv:base + (h + 1) * Pv] = norm
        base += H * Pv
        feat_ref[:, base + h * CZ4:base + (h + 1) * CZ4] = o_pair

    # final output projection: one [N, 208] @ [208, C_s] matmul
    out_ref[...] = jnp.dot(feat_ref[...], wout_t_ref[...],
                           preferred_element_type=jnp.float32) + bout_ref[...]


# ----------------------------- forward (Pallas) -----------------------------
def ipa_forward_pallas(fused, s, z, rot, trans, mask):
    """s: [B,N,C_s], z: [B,N,N,C_z], rot: [B,N,3,3], trans: [B,N,3], mask: [B,N]."""
    B, N = s.shape[0], s.shape[1]
    rig = jnp.concatenate([rot.reshape(B, N, 9), trans], axis=-1)         # [B, N, 12]
    mask_bias = INF * (mask[:, :, None] * mask[:, None, :] - 1.0)         # [B, N, N]

    def batched(*shape):
        nd = len(shape)
        return pl.BlockSpec((None,) + shape, lambda b: (b,) + (0,) * nd)

    def const(*shape):
        nd = len(shape)
        return pl.BlockSpec(shape, lambda b: (0,) * nd)

    return pl.pallas_call(
        _ipa_fused_kernel,
        grid=(B,),
        in_specs=[
            batched(N, C_S),
            batched(N, N, C_Z),
            batched(N, 12),
            batched(N, N),
            const(C_S, D_PROJ),
            const(1, D_PROJ),
            const(NO_HEADS, C_Z),
            const(1, NO_HEADS),
            const(C_Z, CZ4),
            const(1, CZ4),
            const(1, NO_HEADS),
            const(D_FEAT, C_S),
            const(1, C_S),
        ],
        out_specs=batched(N, C_S),
        out_shape=jax.ShapeDtypeStruct((B, N, C_S), jnp.float32),
        scratch_shapes=[
            pltpu.VMEM((N, D_QK_PAD), jnp.float32),   # fused q features
            pltpu.VMEM((N, D_QK_PAD), jnp.float32),   # fused k features
            pltpu.VMEM((N, D_VALL), jnp.float32),     # fused [v | vpt_x | vpt_y | vpt_z]
            pltpu.VMEM((N, D_FEAT), jnp.float32),     # concatenated output features
        ],
        compiler_params=pltpu.CompilerParams(
            dimension_semantics=("parallel",)),
    )(s, z, rig, mask_bias,
      fused['ws_t'], fused['bs'], fused['wb'], fused['bb'],
      fused['wdz_t'], fused['bdz'], fused['hw'],
      fused['wout_t'], fused['bout'])


def prepare_fused_params(params):
    """Fuse the s-projection weights, pre-transpose weights, precompute head weights."""
    ws = jnp.concatenate([params['w_q'], params['w_kv'],
                          params['w_qp'], params['w_kvp']], axis=0)       # [384, C_S]
    bs = jnp.concatenate([params['b_q'], params['b_kv'],
                          params['b_qp'], params['b_kvp']], axis=0)       # [384]
    hw = jax.nn.softplus(params['head_weights']) * PT_SCALE
    return {
        'ws_t': jnp.transpose(ws),                         # [C_S, 384]
        'bs': bs.reshape(1, -1),
        'wb': params['w_b'],                               # [H, C_Z]
        'bb': params['b_b'].reshape(1, -1),
        'wdz_t': jnp.transpose(params['w_dz']),            # [C_Z, C_Z//4]
        'bdz': params['b_dz'].reshape(1, -1),
        'hw': hw.reshape(1, -1),                           # [1, H]
        'wout_t': jnp.transpose(params['w_out']),          # [208, C_S]
        'bout': params['b_out'].reshape(1, -1),
    }


# ----------------------------- pure-JAX reference -----------------------------
def ipa_forward_reference(params, s, z, rot, trans, mask):
    N = s.shape[0]
    H, C, Pq, Pv = NO_HEADS, C_HIDDEN, NO_QK_POINTS, NO_V_POINTS

    def lin(x, w, b):
        return x @ w.T + b

    q = lin(s, params['w_q'], params['b_q']).reshape(N, H, C)
    kv = lin(s, params['w_kv'], params['b_kv']).reshape(N, H, 2 * C)
    k, v = kv[..., :C], kv[..., C:]

    def pts(raw, n_pts):
        px, py, pz = jnp.split(raw, 3, axis=-1)
        p = jnp.stack([px, py, pz], axis=-1)
        p = jnp.einsum('nij,npj->npi', rot, p) + trans[:, None, :]
        return p.reshape(N, H, n_pts, 3)

    q_pts = pts(lin(s, params['w_qp'], params['b_qp']), Pq)
    kv_pts = pts(lin(s, params['w_kvp'], params['b_kvp']), Pq + Pv)
    k_pts, v_pts = kv_pts[:, :, :Pq], kv_pts[:, :, Pq:]

    b = lin(z, params['w_b'], params['b_b'])                              # [N, N, H]
    a = jnp.einsum('qhc,khc->hqk', q, k) * SCALE_QK
    a = a + SCALE_B * jnp.transpose(b, (2, 0, 1))

    disp = q_pts[:, None, :, :, :] - k_pts[None, :, :, :, :]              # [Nq,Nk,H,Pq,3]
    pt_att = jnp.sum(disp ** 2, axis=-1)
    hw = jax.nn.softplus(params['head_weights']) * PT_SCALE
    pt_att = jnp.sum(pt_att * hw[None, None, :, None], axis=-1) * (-0.5)
    a = a + jnp.transpose(pt_att, (2, 0, 1))
    a = a + (INF * (mask[:, None] * mask[None, :] - 1.0))[None, :, :]
    a = jax.nn.softmax(a, axis=-1)                                        # [H, Nq, Nk]

    o = jnp.einsum('hqk,khc->qhc', a, v).reshape(N, H * C)
    o_pt = jnp.einsum('hqk,khpd->qhpd', a, v_pts)                         # [N, H, Pv, 3]
    o_pt = jnp.einsum('nji,nhpj->nhpi', rot, o_pt - trans[:, None, None, :])
    o_pt_norm = jnp.sqrt(jnp.sum(o_pt ** 2, -1) + EPS).reshape(N, H * Pv)
    o_pt_flat = o_pt.reshape(N, H * Pv, 3)

    pair_z = lin(z, params['w_dz'], params['b_dz'])                       # [N, N, Cz4]
    o_pair = jnp.einsum('hqk,qkc->qhc', a, pair_z).reshape(N, H * CZ4)

    o_feats = jnp.concatenate(
        [o, o_pt_flat[..., 0], o_pt_flat[..., 1], o_pt_flat[..., 2],
         o_pt_norm, o_pair], axis=-1)
    return lin(o_feats, params['w_out'], params['b_out'])


# ----------------------------- setup helpers -----------------------------
def _init_linear(key, out_dim, in_dim, scale=0.1):
    kw, kb = jax.random.split(key)
    w = scale * jax.random.normal(kw, (out_dim, in_dim), jnp.float32)
    b = scale * jax.random.normal(kb, (out_dim,), jnp.float32)
    return w, b


def make_params(key):
    H, C, Pq, Pv = NO_HEADS, C_HIDDEN, NO_QK_POINTS, NO_V_POINTS
    concat_out_dim = C_Z // 4 + C + Pv * 4
    ks = jax.random.split(key, 7)
    p = {}
    p['w_q'], p['b_q'] = _init_linear(ks[0], H * C, C_S)
    p['w_kv'], p['b_kv'] = _init_linear(ks[1], 2 * H * C, C_S)
    p['w_qp'], p['b_qp'] = _init_linear(ks[2], H * Pq * 3, C_S)
    p['w_kvp'], p['b_kvp'] = _init_linear(ks[3], H * (Pq + Pv) * 3, C_S)
    p['w_b'], p['b_b'] = _init_linear(ks[4], H, C_Z)
    p['w_dz'], p['b_dz'] = _init_linear(ks[5], C_Z // 4, C_Z)
    p['w_out'], p['b_out'] = _init_linear(ks[6], C_S, H * concat_out_dim)
    # ipa_point_weights_init_: fill with softplus^{-1}(1)
    p['head_weights'] = jnp.full((H,), 0.541324854612918, dtype=jnp.float32)
    return p


def quat_to_rot(q):
    # q: [M, 4] (normalized)  ->  [M, 3, 3]
    w, x, y, z = q[:, 0], q[:, 1], q[:, 2], q[:, 3]
    r = jnp.stack([
        1 - 2 * (y * y + z * z), 2 * (x * y - w * z), 2 * (x * z + w * y),
        2 * (x * y + w * z), 1 - 2 * (x * x + z * z), 2 * (y * z - w * x),
        2 * (x * z - w * y), 2 * (y * z + w * x), 1 - 2 * (x * x + y * y),
    ], axis=-1)
    return r.reshape(-1, 3, 3)


# ----------------------------- main -----------------------------
if __name__ == "__main__":
    key = jax.random.PRNGKey(0)
    k_par, k_s, k_z, k_q, k_t = jax.random.split(key, 5)

    params = make_params(k_par)
    fused = prepare_fused_params(params)

    s_in = jax.random.normal(k_s, (BATCH, N_RES, C_S), jnp.float32)
    z_in = jax.random.normal(k_z, (BATCH, N_RES, N_RES, C_Z), jnp.float32)
    quat = jax.random.normal(k_q, (BATCH, N_RES, 4), jnp.float32)
    quat = quat / jnp.linalg.norm(quat, axis=-1, keepdims=True)
    rot_in = quat_to_rot(quat.reshape(-1, 4)).reshape(BATCH, N_RES, 3, 3)
    trans_in = jax.random.normal(k_t, (BATCH, N_RES, 3), jnp.float32)
    mask_in = jnp.broadcast_to(
        jnp.concatenate([jnp.ones(N_RES - 4), jnp.zeros(4)]).astype(jnp.float32),
        (BATCH, N_RES))

    fwd = jax.jit(ipa_forward_pallas)
    out = jax.block_until_ready(fwd(fused, s_in, z_in, rot_in, trans_in, mask_in))
    assert out.shape == (BATCH, N_RES, C_S) and out.dtype == jnp.float32

    ref = jax.jit(jax.vmap(ipa_forward_reference, in_axes=(None, 0, 0, 0, 0, 0)))
    out_ref = jax.block_until_ready(
        ref(params, s_in, z_in, rot_in, trans_in, mask_in))
    err = float(jnp.max(jnp.abs(out - out_ref)))
    if not (err < 5e-2):
        raise AssertionError(f"Pallas/Reference mismatch, max abs err = {err}")

    print("KERNEL_OK")
</pallas_src>

<mosaic_0001>
module attributes {stable_mosaic.version = 11 : i64} {
  func.func @_ipa_fused_kernel(%arg0: i32, %arg1: memref<1x16x32xf32, #tpu.memory_space<vmem>>, %arg2: memref<1x16x16x16xf32, #tpu.memory_space<vmem>>, %arg3: memref<1x16x12xf32, #tpu.memory_space<vmem>>, %arg4: memref<1x16x16xf32, #tpu.memory_space<vmem>>, %arg5: memref<32x384xf32, #tpu.memory_space<vmem>>, %arg6: memref<1x384xf32, #tpu.memory_space<vmem>>, %arg7: memref<4x16xf32, #tpu.memory_space<vmem>>, %arg8: memref<1x4xf32, #tpu.memory_space<vmem>>, %arg9: memref<16x4xf32, #tpu.memory_space<vmem>>, %arg10: memref<1x4xf32, #tpu.memory_space<vmem>>, %arg11: memref<1x4xf32, #tpu.memory_space<vmem>>, %arg12: memref<208x32xf32, #tpu.memory_space<vmem>>, %arg13: memref<1x32xf32, #tpu.memory_space<vmem>>, %arg14: memref<1x16x32xf32, #tpu.memory_space<vmem>>, %arg15: memref<16x32xf32, #tpu.memory_space<vmem>>, %arg16: memref<16x32xf32, #tpu.memory_space<vmem>>, %arg17: memref<16x40xf32, #tpu.memory_space<vmem>>, %arg18: memref<16x208xf32, #tpu.memory_space<vmem>>) attributes {dimension_semantics = [#tpu.dimension_semantics<parallel>], iteration_bounds = array<i64: 2>, scalar_prefetch = 0 : i64, scratch_operands = 4 : i64, tpu.core_type = #tpu.core_type<tc>, window_params = [{transform_indices = @transform_0, window_bounds = array<i64: 1, 16, 32>}, {transform_indices = @transform_1, window_bounds = array<i64: 1, 16, 16, 16>}, {transform_indices = @transform_2, window_bounds = array<i64: 1, 16, 12>}, {transform_indices = @transform_3, window_bounds = array<i64: 1, 16, 16>}, {pipeline_mode = #tpu.pipeline_mode<synchronous>, transform_indices = @transform_4, window_bounds = array<i64: 32, 384>}, {pipeline_mode = #tpu.pipeline_mode<synchronous>, transform_indices = @transform_5, window_bounds = array<i64: 1, 384>}, {pipeline_mode = #tpu.pipeline_mode<synchronous>, transform_indices = @transform_6, window_bounds = array<i64: 4, 16>}, {pipeline_mode = #tpu.pipeline_mode<synchronous>, transform_indices = @transform_7, window_bounds = array<i64: 1, 4>}, {pipeline_mode = #tpu.pipeline_mode<synchronous>, transform_indices = @transform_8, window_bounds = array<i64: 16, 4>}, {pipeline_mode = #tpu.pipeline_mode<synchronous>, transform_indices = @transform_9, window_bounds = array<i64: 1, 4>}, {pipeline_mode = #tpu.pipeline_mode<synchronous>, transform_indices = @transform_10, window_bounds = array<i64: 1, 4>}, {pipeline_mode = #tpu.pipeline_mode<synchronous>, transform_indices = @transform_11, window_bounds = array<i64: 208, 32>}, {pipeline_mode = #tpu.pipeline_mode<synchronous>, transform_indices = @transform_12, window_bounds = array<i64: 1, 32>}, {transform_indices = @transform_13, window_bounds = array<i64: 1, 16, 32>}]} {
    %c0 = arith.constant 0 : index
    %c0_0 = arith.constant 0 : index
    %c0_1 = arith.constant 0 : index
    %0 = vector.load %arg1[%c0, %c0_0, %c0_1] : memref<1x16x32xf32, #tpu.memory_space<vmem>>, vector<1x16x32xf32>
    %1 = vector.shape_cast %0 : vector<1x16x32xf32> to vector<16x32xf32>
    %c0_2 = arith.constant 0 : index
    %c0_3 = arith.constant 0 : index
    %2 = vector.load %arg5[%c0_2, %c0_3] : memref<32x384xf32, #tpu.memory_space<vmem>>, vector<32x384xf32>
    %cst = arith.constant dense<0.000000e+00> : vector<16x384xf32>
    %3 = tpu.matmul %1, %2, %cst {dimension_numbers = #tpu.dot_dimension_numbers<[1], [0], [0], [1], [0, 0, 1, 1], [], []>} : vector<16x32xf32>, vector<32x384xf32>, vector<16x384xf32> -> vector<16x384xf32>
    %c0_4 = arith.constant 0 : index
    %c0_5 = arith.constant 0 : index
    %4 = vector.load %arg6[%c0_4, %c0_5] : memref<1x384xf32, #tpu.memory_space<vmem>>, vector<1x384xf32>
    %5 = vector.broadcast %4 : vector<1x384xf32> to vector<16x384xf32>
    %6 = arith.addf %3, %5 : vector<16x384xf32>
    %c0_6 = arith.constant 0 : index
    %c0_7 = arith.constant 0 : index
    %c0_8 = arith.constant 0 : index
    %7 = vector.load %arg3[%c0_6, %c0_7, %c0_8] : memref<1x16x12xf32, #tpu.memory_space<vmem>>, vector<1x16x12xf32>
    %8 = vector.shape_cast %7 : vector<1x16x12xf32> to vector<16x12xf32>
    %9 = vector.extract_strided_slice %8 {offsets = [0, 0], sizes = [16, 1], strides = [1, 1]} : vector<16x12xf32> to vector<16x1xf32>
    %10 = vector.extract_strided_slice %8 {offsets = [0, 1], sizes = [16, 1], strides = [1, 1]} : vector<16x12xf32> to vector<16x1xf32>
    %11 = vector.extract_strided_slice %8 {offsets = [0, 2], sizes = [16, 1], strides = [1, 1]} : vector<16x12xf32> to vector<16x1xf32>
    %12 = vector.extract_strided_slice %8 {offsets = [0, 3], sizes = [16, 1], strides = [1, 1]} : vector<16x12xf32> to vector<16x1xf32>
    %13 = vector.extract_strided_slice %8 {offsets = [0, 4], sizes = [16, 1], strides = [1, 1]} : vector<16x12xf32> to vector<16x1xf32>
    %14 = vector.extract_strided_slice %8 {offsets = [0, 5], sizes = [16, 1], strides = [1, 1]} : vector<16x12xf32> to vector<16x1xf32>
    %15 = vector.extract_strided_slice %8 {offsets = [0, 6], sizes = [16, 1], strides = [1, 1]} : vector<16x12xf32> to vector<16x1xf32>
    %16 = vector.extract_strided_slice %8 {offsets = [0, 7], sizes = [16, 1], strides = [1, 1]} : vector<16x12xf32> to vector<16x1xf32>
    %17 = vector.extract_strided_slice %8 {offsets = [0, 8], sizes = [16, 1], strides = [1, 1]} : vector<16x12xf32> to vector<16x1xf32>
    %18 = vector.extract_strided_slice %8 {offsets = [0, 9], sizes = [16, 1], strides = [1, 1]} : vector<16x12xf32> to vector<16x1xf32>
    %19 = vector.extract_strided_slice %8 {offsets = [0, 10], sizes = [16, 1], strides = [1, 1]} : vector<16x12xf32> to vector<16x1xf32>
    %20 = vector.extract_strided_slice %8 {offsets = [0, 11], sizes = [16, 1], strides = [1, 1]} : vector<16x12xf32> to vector<16x1xf32>
    %21 = vector.extract_strided_slice %6 {offsets = [0, 192], sizes = [16, 16], strides = [1, 1]} : vector<16x384xf32> to vector<16x16xf32>
    %22 = vector.extract_strided_slice %6 {offsets = [0, 208], sizes = [16, 16], strides = [1, 1]} : vector<16x384xf32> to vector<16x16xf32>
    %23 = vector.extract_strided_slice %6 {offsets = [0, 224], sizes = [16, 16], strides = [1, 1]} : vector<16x384xf32> to vector<16x16xf32>
    %24 = vector.broadcast %9 : vector<16x1xf32> to vector<16x16xf32>
    %25 = arith.mulf %24, %21 : vector<16x16xf32>
    %26 = vector.broadcast %10 : vector<16x1xf32> to vector<16x16xf32>
    %27 = arith.mulf %26, %22 : vector<16x16xf32>
    %28 = arith.addf %25, %27 : vector<16x16xf32>
    %29 = vector.broadcast %11 : vector<16x1xf32> to vector<16x16xf32>
    %30 = arith.mulf %29, %23 : vector<16x16xf32>
    %31 = arith.addf %28, %30 : vector<16x16xf32>
    %32 = vector.broadcast %18 : vector<16x1xf32> to vector<16x16xf32>
    %33 = arith.addf %31, %32 : vector<16x16xf32>
    %34 = vector.broadcast %12 : vector<16x1xf32> to vector<16x16xf32>
    %35 = arith.mulf %34, %21 : vector<16x16xf32>
    %36 = vector.broadcast %13 : vector<16x1xf32> to vector<16x16xf32>
    %37 = arith.mulf %36, %22 : vector<16x16xf32>
    %38 = arith.addf %35, %37 : vector<16x16xf32>
    %39 = vector.broadcast %14 : vector<16x1xf32> to vector<16x16xf32>
    %40 = arith.mulf %39, %23 : vector<16x16xf32>
    %41 = arith.addf %38, %40 : vector<16x16xf32>
    %42 = vector.broadcast %19 : vector<16x1xf32> to vector<16x16xf32>
    %43 = arith.addf %41, %42 : vector<16x16xf32>
    %44 = vector.broadcast %15 : vector<16x1xf32> to vector<16x16xf32>
    %45 = arith.mulf %44, %21 : vector<16x16xf32>
    %46 = vector.broadcast %16 : vector<16x1xf32> to vector<16x16xf32>
    %47 = arith.mulf %46, %22 : vector<16x16xf32>
    %48 = arith.addf %45, %47 : vector<16x16xf32>
    %49 = vector.broadcast %17 : vector<16x1xf32> to vector<16x16xf32>
    %50 = arith.mulf %49, %23 : vector<16x16xf32>
    %51 = arith.addf %48, %50 : vector<16x16xf32>
    %52 = vector.broadcast %20 : vector<16x1xf32> to vector<16x16xf32>
    %53 = arith.addf %51, %52 : vector<16x16xf32>
    %54 = vector.extract_strided_slice %6 {offsets = [0, 240], sizes = [16, 48], strides = [1, 1]} : vector<16x384xf32> to vector<16x48xf32>
    %55 = vector.extract_strided_slice %6 {offsets = [0, 288], sizes = [16, 48], strides = [1, 1]} : vector<16x384xf32> to vector<16x48xf32>
    %56 = vector.extract_strided_slice %6 {offsets = [0, 336], sizes = [16, 48], strides = [1, 1]} : vector<16x384xf32> to vector<16x48xf32>
    %57 = vector.broadcast %9 : vector<16x1xf32> to vector<16x48xf32>
    %58 = arith.mulf %57, %54 : vector<16x48xf32>
    %59 = vector.broadcast %10 : vector<16x1xf32> to vector<16x48xf32>
    %60 = arith.mulf %59, %55 : vector<16x48xf32>
    %61 = arith.addf %58, %60 : vector<16x48xf32>
    %62 = vector.broadcast %11 : vector<16x1xf32> to vector<16x48xf32>
    %63 = arith.mulf %62, %56 : vector<16x48xf32>
    %64 = arith.addf %61, %63 : vector<16x48xf32>
    %65 = vector.broadcast %18 : vector<16x1xf32> to vector<16x48xf32>
    %66 = arith.addf %64, %65 : vector<16x48xf32>
    %67 = vector.broadcast %12 : vector<16x1xf32> to vector<16x48xf32>
    %68 = arith.mulf %67, %54 : vector<16x48xf32>
    %69 = vector.broadcast %13 : vector<16x1xf32> to vector<16x48xf32>
    %70 = arith.mulf %69, %55 : vector<16x48xf32>
    %71 = arith.addf %68, %70 : vector<16x48xf32>
    %72 = vector.broadcast %14 : vector<16x1xf32> to vector<16x48xf32>
    %73 = arith.mulf %72, %56 : vector<16x48xf32>
    %74 = arith.addf %71, %73 : vector<16x48xf32>
    %75 = vector.broadcast %19 : vector<16x1xf32> to vector<16x48xf32>
    %76 = arith.addf %74, %75 : vector<16x48xf32>
    %77 = vector.broadcast %15 : vector<16x1xf32> to vector<16x48xf32>
    %78 = arith.mulf %77, %54 : vector<16x48xf32>
    %79 = vector.broadcast %16 : vector<16x1xf32> to vector<16x48xf32>
    %80 = arith.mulf %79, %55 : vector<16x48xf32>
    %81 = arith.addf %78, %80 : vector<16x48xf32>
    %82 = vector.broadcast %17 : vector<16x1xf32> to vector<16x48xf32>
    %83 = arith.mulf %82, %56 : vector<16x48xf32>
    %84 = arith.addf %81, %83 : vector<16x48xf32>
    %85 = vector.broadcast %20 : vector<16x1xf32> to vector<16x48xf32>
    %86 = arith.addf %84, %85 : vector<16x48xf32>
    %c0_9 = arith.constant 0 : index
    %c0_10 = arith.constant 0 : index
    %c0_11 = arith.constant 0 : index
    %c0_12 = arith.constant 0 : index
    %87 = vector.load %arg2[%c0_9, %c0_10, %c0_11, %c0_12] : memref<1x16x16x16xf32, #tpu.memory_space<vmem>>, vector<1x16x16x16xf32>
    %88 = vector.shape_cast %87 : vector<1x16x16x16xf32> to vector<16x16x16xf32>
    %c0_13 = arith.constant 0 : index
    %c0_14 = arith.constant 0 : index
    %c0_15 = arith.constant 0 : index
    %89 = vector.load %arg4[%c0_13, %c0_14, %c0_15] : memref<1x16x16xf32, #tpu.memory_space<vmem>>, vector<1x16x16xf32>
    %90 = vector.shape_cast %89 : vector<1x16x16xf32> to vector<16x16xf32>
    %c0_16 = arith.constant 0 : index
    %c0_17 = arith.constant 0 : index
    %91 = vector.load %arg9[%c0_16, %c0_17] : memref<16x4xf32, #tpu.memory_space<vmem>>, vector<16x4xf32>
    %c0_18 = arith.constant 0 : index
    %c0_19 = arith.constant 0 : index
    %92 = vector.load %arg10[%c0_18, %c0_19] : memref<1x4xf32, #tpu.memory_space<vmem>>, vector<1x4xf32>
    %cst_20 = arith.constant 1.000000e+00 : f32
    %93 = vector.broadcast %cst_20 : f32 to vector<16x1xf32>
    %cst_21 = arith.constant 0.000000e+00 : f32
    %94 = vector.broadcast %cst_21 : f32 to vector<16x2xf32>
    %c0_22 = arith.constant 0 : index
    %c28 = arith.constant 28 : index
    %95 = vector.load %arg15[%c0_22, %c28] : memref<16x32xf32, #tpu.memory_space<vmem>>, vector<16x1xf32>
    tpu.vector_store %arg15[%c0_22, %c28], %93 {strides = array<i32>} : memref<16x32xf32, #tpu.memory_space<vmem>>, vector<16x1xf32>,
    %c0_23 = arith.constant 0 : index
    %c29 = arith.constant 29 : index
    %96 = vector.load %arg16[%c0_23, %c29] : memref<16x32xf32, #tpu.memory_space<vmem>>, vector<16x1xf32>
    tpu.vector_store %arg16[%c0_23, %c29], %93 {strides = array<i32>} : memref<16x32xf32, #tpu.memory_space<vmem>>, vector<16x1xf32>,
    %c0_24 = arith.constant 0 : index
    %c30 = arith.constant 30 : index
    %97 = vector.load %arg15[%c0_24, %c30] : memref<16x32xf32, #tpu.memory_space<vmem>>, vector<16x2xf32>
    tpu.vector_store %arg15[%c0_24, %c30], %94 {strides = array<i32>} : memref<16x32xf32, #tpu.memory_space<vmem>>, vector<16x2xf32>,
    %c0_25 = arith.constant 0 : index
    %c30_26 = arith.constant 30 : index
    %98 = vector.load %arg16[%c0_25, %c30_26] : memref<16x32xf32, #tpu.memory_space<vmem>>, vector<16x2xf32>
    tpu.vector_store %arg16[%c0_25, %c30_26], %94 {strides = array<i32>} : memref<16x32xf32, #tpu.memory_space<vmem>>, vector<16x2xf32>,
    %99 = vector.extract_strided_slice %6 {offsets = [0, 0], sizes = [16, 16], strides = [1, 1]} : vector<16x384xf32> to vector<16x16xf32>
    %100 = vector.extract_strided_slice %6 {offsets = [0, 64], sizes = [16, 16], strides = [1, 1]} : vector<16x384xf32> to vector<16x16xf32>
    %101 = vector.extract_strided_slice %6 {offsets = [0, 80], sizes = [16, 16], strides = [1, 1]} : vector<16x384xf32> to vector<16x16xf32>
    %102 = vector.extract_strided_slice %33 {offsets = [0, 0], sizes = [16, 4], strides = [1, 1]} : vector<16x16xf32> to vector<16x4xf32>
    %103 = vector.extract_strided_slice %43 {offsets = [0, 0], sizes = [16, 4], strides = [1, 1]} : vector<16x16xf32> to vector<16x4xf32>
    %104 = vector.extract_strided_slice %53 {offsets = [0, 0], sizes = [16, 4], strides = [1, 1]} : vector<16x16xf32> to vector<16x4xf32>
    %105 = vector.extract_strided_slice %66 {offsets = [0, 0], sizes = [16, 4], strides = [1, 1]} : vector<16x48xf32> to vector<16x4xf32>
    %106 = vector.extract_strided_slice %76 {offsets = [0, 0], sizes = [16, 4], strides = [1, 1]} : vector<16x48xf32> to vector<16x4xf32>
    %107 = vector.extract_strided_slice %86 {offsets = [0, 0], sizes = [16, 4], strides = [1, 1]} : vector<16x48xf32> to vector<16x4xf32>
    %108 = vector.extract_strided_slice %66 {offsets = [0, 4], sizes = [16, 8], strides = [1, 1]} : vector<16x48xf32> to vector<16x8xf32>
    %109 = vector.extract_strided_slice %76 {offsets = [0, 4], sizes = [16, 8], strides = [1, 1]} : vector<16x48xf32> to vector<16x8xf32>
    %110 = vector.extract_strided_slice %86 {offsets = [0, 4], sizes = [16, 8], strides = [1, 1]} : vector<16x48xf32> to vector<16x8xf32>
    %c0_27 = arith.constant 0 : index
    %c0_28 = arith.constant 0 : index
    %111 = vector.load %arg11[%c0_27, %c0_28] : memref<1x4xf32, #tpu.memory_space<vmem>>, vector<1x1xf32>
    %112 = math.sqrt %111 : vector<1x1xf32>
    %cst_29 = arith.constant -5.000000e-01 : f32
    %113 = vector.broadcast %cst_29 : f32 to vector<1x1xf32>
    %114 = arith.mulf %113, %111 : vector<1x1xf32>
    %115 = arith.mulf %102, %102 : vector<16x4xf32>
    %116 = arith.mulf %103, %103 : vector<16x4xf32>
    %117 = arith.addf %115, %116 : vector<16x4xf32>
    %118 = arith.mulf %104, %104 : vector<16x4xf32>
    %119 = arith.addf %117, %118 : vector<16x4xf32>
    %cst_30 = arith.constant dense<0.000000e+00> : vector<16xf32>
    %120 = vector.multi_reduction <add>, %119, %cst_30 [1] : vector<16x4xf32> to vector<16xf32>
    %121 = vector.shape_cast %120 : vector<16xf32> to vector<16x1xf32>
    %122 = arith.mulf %105, %105 : vector<16x4xf32>
    %123 = arith.mulf %106, %106 : vector<16x4xf32>
    %124 = arith.addf %122, %123 : vector<16x4xf32>
    %125 = arith.mulf %107, %107 : vector<16x4xf32>
    %126 = arith.addf %124, %125 : vector<16x4xf32>
    %cst_31 = arith.constant dense<0.000000e+00> : vector<16xf32>
    %127 = vector.multi_reduction <add>, %126, %cst_31 [1] : vector<16x4xf32> to vector<16xf32>
    %128 = vector.shape_cast %127 : vector<16xf32> to vector<16x1xf32>
    %cst_32 = arith.constant 0.37991783 : f32
    %129 = vector.broadcast %cst_32 : f32 to vector<16x16xf32>
    %130 = arith.mulf %99, %129 : vector<16x16xf32>
    %c0_33 = arith.constant 0 : index
    %c0_34 = arith.constant 0 : index
    %131 = vector.load %arg15[%c0_33, %c0_34] : memref<16x32xf32, #tpu.memory_space<vmem>>, vector<16x16xf32>
    tpu.vector_store %arg15[%c0_33, %c0_34], %130 {strides = array<i32>} : memref<16x32xf32, #tpu.memory_space<vmem>>, vector<16x16xf32>,
    %132 = vector.broadcast %112 : vector<1x1xf32> to vector<16x4xf32>
    %133 = arith.mulf %102, %132 : vector<16x4xf32>
    %c0_35 = arith.constant 0 : index
    %c16 = arith.constant 16 : index
    %134 = vector.load %arg15[%c0_35, %c16] : memref<16x32xf32, #tpu.memory_space<vmem>>, vector<16x4xf32>
    tpu.vector_store %arg15[%c0_35, %c16], %133 {strides = array<i32>} : memref<16x32xf32, #tpu.memory_space<vmem>>, vector<16x4xf32>,
    %135 = vector.broadcast %112 : vector<1x1xf32> to vector<16x4xf32>
    %136 = arith.mulf %103, %135 : vector<16x4xf32>
    %c0_36 = arith.constant 0 : index
    %c20 = arith.constant 20 : index
    %137 = vector.load %arg15[%c0_36, %c20] : memref<16x32xf32, #tpu.memory_space<vmem>>, vector<16x4xf32>
    tpu.vector_store %arg15[%c0_36, %c20], %136 {strides = array<i32>} : memref<16x32xf32, #tpu.memory_space<vmem>>, vector<16x4xf32>,
    %138 = vector.broadcast %112 : vector<1x1xf32> to vector<16x4xf32>
    %139 = arith.mulf %104, %138 : vector<16x4xf32>
    %c0_37 = arith.constant 0 : index
    %c24 = arith.constant 24 : index
    %140 = vector.load %arg15[%c0_37, %c24] : memref<16x32xf32, #tpu.memory_space<vmem>>, vector<16x4xf32>
    tpu.vector_store %arg15[%c0_37, %c24], %139 {strides = array<i32>} : memref<16x32xf32, #tpu.memory_space<vmem>>, vector<16x4xf32>,
    %141 = vector.broadcast %114 : vector<1x1xf32> to vector<16x1xf32>
    %142 = arith.mulf %141, %121 : vector<16x1xf32>
    %c0_38 = arith.constant 0 : index
    %c29_39 = arith.constant 29 : index
    %143 = vector.load %arg15[%c0_38, %c29_39] : memref<16x32xf32, #tpu.memory_space<vmem>>, vector<16x1xf32>
    tpu.vector_store %arg15[%c0_38, %c29_39], %142 {strides = array<i32>} : memref<16x32xf32, #tpu.memory_space<vmem>>, vector<16x1xf32>,
    %cst_40 = arith.constant 0.37991783 : f32
    %144 = vector.broadcast %cst_40 : f32 to vector<16x16xf32>
    %145 = arith.mulf %100, %144 : vector<16x16xf32>
    %c0_41 = arith.constant 0 : index
    %c0_42 = arith.constant 0 : index
    %146 = vector.load %arg16[%c0_41, %c0_42] : memref<16x32xf32, #tpu.memory_space<vmem>>, vector<16x16xf32>
    tpu.vector_store %arg16[%c0_41, %c0_42], %145 {strides = array<i32>} : memref<16x32xf32, #tpu.memory_space<vmem>>, vector<16x16xf32>,
    %147 = vector.broadcast %112 : vector<1x1xf32> to vector<16x4xf32>
    %148 = arith.mulf %105, %147 : vector<16x4xf32>
    %c0_43 = arith.constant 0 : index
    %c16_44 = arith.constant 16 : index
    %149 = vector.load %arg16[%c0_43, %c16_44] : memref<16x32xf32, #tpu.memory_space<vmem>>, vector<16x4xf32>
    tpu.vector_store %arg16[%c0_43, %c16_44], %148 {strides = array<i32>} : memref<16x32xf32, #tpu.memory_space<vmem>>, vector<16x4xf32>,
    %150 = vector.broadcast %112 : vector<1x1xf32> to vector<16x4xf32>
    %151 = arith.mulf %106, %150 : vector<16x4xf32>
    %c0_45 = arith.constant 0 : index
    %c20_46 = arith.constant 20 : index
    %152 = vector.load %arg16[%c0_45, %c20_46] : memref<16x32xf32, #tpu.memory_space<vmem>>, vector<16x4xf32>
    tpu.vector_store %arg16[%c0_45, %c20_46], %151 {strides = array<i32>} : memref<16x32xf32, #tpu.memory_space<vmem>>, vector<16x4xf32>,
    %153 = vector.broadcast %112 : vector<1x1xf32> to vector<16x4xf32>
    %154 = arith.mulf %107, %153 : vector<16x4xf32>
    %c0_47 = arith.constant 0 : index
    %c24_48 = arith.constant 24 : index
    %155 = vector.load %arg16[%c0_47, %c24_48] : memref<16x32xf32, #tpu.memory_space<vmem>>, vector<16x4xf32>
    tpu.vector_store %arg16[%c0_47, %c24_48], %154 {strides = array<i32>} : memref<16x32xf32, #tpu.memory_space<vmem>>, vector<16x4xf32>,
    %156 = vector.broadcast %114 : vector<1x1xf32> to vector<16x1xf32>
    %157 = arith.mulf %156, %128 : vector<16x1xf32>
    %c0_49 = arith.constant 0 : index
    %c28_50 = arith.constant 28 : index
    %158 = vector.load %arg16[%c0_49, %c28_50] : memref<16x32xf32, #tpu.memory_space<vmem>>, vector<16x1xf32>
    tpu.vector_store %arg16[%c0_49, %c28_50], %157 {strides = array<i32>} : memref<16x32xf32, #tpu.memory_space<vmem>>, vector<16x1xf32>,
    %c0_51 = arith.constant 0 : index
    %c0_52 = arith.constant 0 : index
    %159 = vector.load %arg15[%c0_51, %c0_52] : memref<16x32xf32, #tpu.memory_space<vmem>>, vector<16x32xf32>
    %c0_53 = arith.constant 0 : index
    %c0_54 = arith.constant 0 : index
    %160 = vector.load %arg16[%c0_53, %c0_54] : memref<16x32xf32, #tpu.memory_space<vmem>>, vector<16x32xf32>
    %cst_55 = arith.constant dense<0.000000e+00> : vector<16x16xf32>
    %161 = tpu.matmul %159, %160, %cst_55 {dimension_numbers = #tpu.dot_dimension_numbers<[1], [1], [0], [0], [0, 0, 1, 0], [], []>} : vector<16x32xf32>, vector<16x32xf32>, vector<16x16xf32> -> vector<16x16xf32>
    %c0_56 = arith.constant 0 : index
    %c0_57 = arith.constant 0 : index
    %162 = vector.load %arg7[%c0_56, %c0_57] : memref<4x16xf32, #tpu.memory_space<vmem>>, vector<1x16xf32>
    %163 = vector.shape_cast %162 : vector<1x16xf32> to vector<1x1x16xf32>
    %164 = vector.broadcast %163 : vector<1x1x16xf32> to vector<16x16x16xf32>
    %165 = arith.mulf %88, %164 : vector<16x16x16xf32>
    %cst_58 = arith.constant dense<0.000000e+00> : vector<16x16xf32>
    %166 = vector.multi_reduction <add>, %165, %cst_58 [2] : vector<16x16x16xf32> to vector<16x16xf32>
    %c0_59 = arith.constant 0 : index
    %c0_60 = arith.constant 0 : index
    %167 = vector.load %arg8[%c0_59, %c0_60] : memref<1x4xf32, #tpu.memory_space<vmem>>, vector<1x1xf32>
    %168 = vector.broadcast %167 : vector<1x1xf32> to vector<16x16xf32>
    %169 = arith.addf %166, %168 : vector<16x16xf32>
    %cst_61 = arith.constant 0.577350259 : f32
    %170 = vector.broadcast %cst_61 : f32 to vector<16x16xf32>
    %171 = arith.mulf %170, %169 : vector<16x16xf32>
    %172 = arith.addf %161, %171 : vector<16x16xf32>
    %173 = arith.addf %172, %90 : vector<16x16xf32>
    %cst_62 = arith.constant dense<0xFF800000> : vector<16xf32>
    %174 = vector.multi_reduction <maximumf>, %173, %cst_62 [1] : vector<16x16xf32> to vector<16xf32>
    %175 = vector.shape_cast %174 : vector<16xf32> to vector<16x1xf32>
    %176 = vector.broadcast %175 : vector<16x1xf32> to vector<16x16xf32>
    %177 = arith.subf %173, %176 : vector<16x16xf32>
    %178 = math.exp %177 : vector<16x16xf32>
    %cst_63 = arith.constant dense<0.000000e+00> : vector<16xf32>
    %179 = vector.multi_reduction <add>, %178, %cst_63 [1] : vector<16x16xf32> to vector<16xf32>
    %180 = vector.shape_cast %179 : vector<16xf32> to vector<16x1xf32>
    %181 = tpu.reciprocal %180 {approx = true} : vector<16x1xf32> -> vector<16x1xf32>
    %182 = vector.broadcast %181 : vector<16x1xf32> to vector<16x16xf32>
    %183 = arith.mulf %178, %182 : vector<16x16xf32>
    %c0_64 = arith.constant 0 : index
    %c0_65 = arith.constant 0 : index
    %184 = vector.load %arg17[%c0_64, %c0_65] : memref<16x40xf32, #tpu.memory_space<vmem>>, vector<16x16xf32>
    tpu.vector_store %arg17[%c0_64, %c0_65], %101 {strides = array<i32>} : memref<16x40xf32, #tpu.memory_space<vmem>>, vector<16x16xf32>,
    %c0_66 = arith.constant 0 : index
    %c16_67 = arith.constant 16 : index
    %185 = vector.load %arg17[%c0_66, %c16_67] : memref<16x40xf32, #tpu.memory_space<vmem>>, vector<16x8xf32>
    tpu.vector_store %arg17[%c0_66, %c16_67], %108 {strides = array<i32>} : memref<16x40xf32, #tpu.memory_space<vmem>>, vector<16x8xf32>,
    %c0_68 = arith.constant 0 : index
    %c24_69 = arith.constant 24 : index
    %186 = vector.load %arg17[%c0_68, %c24_69] : memref<16x40xf32, #tpu.memory_space<vmem>>, vector<16x8xf32>
    tpu.vector_store %arg17[%c0_68, %c24_69], %109 {strides = array<i32>} : memref<16x40xf32, #tpu.memory_space<vmem>>, vector<16x8xf32>,
    %c0_70 = arith.constant 0 : index
    %c32 = arith.constant 32 : index
    %187 = vector.load %arg17[%c0_70, %c32] : memref<16x40xf32, #tpu.memory_space<vmem>>, vector<16x8xf32>
    tpu.vector_store %arg17[%c0_70, %c32], %110 {strides = array<i32>} : memref<16x40xf32, #tpu.memory_space<vmem>>, vector<16x8xf32>,
    %c0_71 = arith.constant 0 : index
    %c0_72 = arith.constant 0 : index
    %188 = vector.load %arg17[%c0_71, %c0_72] : memref<16x40xf32, #tpu.memory_space<vmem>>, vector<16x40xf32>
    %cst_73 = arith.constant dense<0.000000e+00> : vector<16x40xf32>
    %189 = tpu.matmul %183, %188, %cst_73 {dimension_numbers = #tpu.dot_dimension_numbers<[1], [0], [0], [1], [0, 0, 1, 1], [], []>} : vector<16x16xf32>, vector<16x40xf32>, vector<16x40xf32> -> vector<16x40xf32>
    %190 = vector.extract_strided_slice %189 {offsets = [0, 0], sizes = [16, 16], strides = [1, 1]} : vector<16x40xf32> to vector<16x16xf32>
    %191 = vector.extract_strided_slice %189 {offsets = [0, 16], sizes = [16, 8], strides = [1, 1]} : vector<16x40xf32> to vector<16x8xf32>
    %192 = vector.extract_strided_slice %189 {offsets = [0, 24], sizes = [16, 8], strides = [1, 1]} : vector<16x40xf32> to vector<16x8xf32>
    %193 = vector.extract_strided_slice %189 {offsets = [0, 32], sizes = [16, 8], strides = [1, 1]} : vector<16x40xf32> to vector<16x8xf32>
    %194 = vector.shape_cast %183 : vector<16x16xf32> to vector<16x16x1xf32>
    %195 = vector.broadcast %194 : vector<16x16x1xf32> to vector<16x16x16xf32>
    %196 = arith.mulf %195, %88 : vector<16x16x16xf32>
    %cst_74 = arith.constant dense<0.000000e+00> : vector<16x16xf32>
    %197 = vector.multi_reduction <add>, %196, %cst_74 [1] : vector<16x16x16xf32> to vector<16x16xf32>
    %cst_75 = arith.constant dense<0.000000e+00> : vector<16xf32>
    %198 = vector.multi_reduction <add>, %183, %cst_75 [1] : vector<16x16xf32> to vector<16xf32>
    %199 = vector.shape_cast %198 : vector<16xf32> to vector<16x1xf32>
    %cst_76 = arith.constant dense<0.000000e+00> : vector<16x4xf32>
    %200 = tpu.matmul %197, %91, %cst_76 {dimension_numbers = #tpu.dot_dimension_numbers<[1], [0], [0], [1], [0, 0, 1, 1], [], []>} : vector<16x16xf32>, vector<16x4xf32>, vector<16x4xf32> -> vector<16x4xf32>
    %201 = vector.broadcast %92 : vector<1x4xf32> to vector<16x4xf32>
    %202 = vector.broadcast %199 : vector<16x1xf32> to vector<16x4xf32>
    %203 = arith.mulf %201, %202 : vector<16x4xf32>
    %204 = arith.addf %200, %203 : vector<16x4xf32>
    %205 = vector.broadcast %18 : vector<16x1xf32> to vector<16x8xf32>
    %206 = arith.subf %191, %205 : vector<16x8xf32>
    %207 = vector.broadcast %19 : vector<16x1xf32> to vector<16x8xf32>
    %208 = arith.subf %192, %207 : vector<16x8xf32>
    %209 = vector.broadcast %20 : vector<16x1xf32> to vector<16x8xf32>
    %210 = arith.subf %193, %209 : vector<16x8xf32>
    %211 = vector.broadcast %9 : vector<16x1xf32> to vector<16x8xf32>
    %212 = arith.mulf %211, %206 : vector<16x8xf32>
    %213 = vector.broadcast %12 : vector<16x1xf32> to vector<16x8xf32>
    %214 = arith.mulf %213, %208 : vector<16x8xf32>
    %215 = arith.addf %212, %214 : vector<16x8xf32>
    %216 = vector.broadcast %15 : vector<16x1xf32> to vector<16x8xf32>
    %217 = arith.mulf %216, %210 : vector<16x8xf32>
    %218 = arith.addf %215, %217 : vector<16x8xf32>
    %219 = vector.broadcast %10 : vector<16x1xf32> to vector<16x8xf32>
    %220 = arith.mulf %219, %206 : vector<16x8xf32>
    %221 = vector.broadcast %13 : vector<16x1xf32> to vector<16x8xf32>
    %222 = arith.mulf %221, %208 : vector<16x8xf32>
    %223 = arith.addf %220, %222 : vector<16x8xf32>
    %224 = vector.broadcast %16 : vector<16x1xf32> to vector<16x8xf32>
    %225 = arith.mulf %224, %210 : vector<16x8xf32>
    %226 = arith.addf %223, %225 : vector<16x8xf32>
    %227 = vector.broadcast %11 : vector<16x1xf32> to vector<16x8xf32>
    %228 = arith.mulf %227, %206 : vector<16x8xf32>
    %229 = vector.broadcast %14 : vector<16x1xf32> to vector<16x8xf32>
    %230 = arith.mulf %229, %208 : vector<16x8xf32>
    %231 = arith.addf %228, %230 : vector<16x8xf32>
    %232 = vector.broadcast %17 : vector<16x1xf32> to vector<16x8xf32>
    %233 = arith.mulf %232, %210 : vector<16x8xf32>
    %234 = arith.addf %231, %233 : vector<16x8xf32>
    %235 = arith.mulf %218, %218 : vector<16x8xf32>
    %236 = arith.mulf %226, %226 : vector<16x8xf32>
    %237 = arith.addf %235, %236 : vector<16x8xf32>
    %238 = arith.mulf %234, %234 : vector<16x8xf32>
    %239 = arith.addf %237, %238 : vector<16x8xf32>
    %cst_77 = arith.constant 9.99999993E-9 : f32
    %240 = vector.broadcast %cst_77 : f32 to vector<16x8xf32>
    %241 = arith.addf %239, %240 : vector<16x8xf32>
    %242 = math.sqrt %241 : vector<16x8xf32>
    %c0_78 = arith.constant 0 : index
    %c0_79 = arith.constant 0 : index
    %243 = vector.load %arg18[%c0_78, %c0_79] : memref<16x208xf32, #tpu.memory_space<vmem>>, vector<16x16xf32>
    tpu.vector_store %arg18[%c0_78, %c0_79], %190 {strides = array<i32>} : memref<16x208xf32, #tpu.memory_space<vmem>>, vector<16x16xf32>,
    %c0_80 = arith.constant 0 : index
    %c64 = arith.constant 64 : index
    %244 = vector.load %arg18[%c0_80, %c64] : memref<16x208xf32, #tpu.memory_space<vmem>>, vector<16x8xf32>
    tpu.vector_store %arg18[%c0_80, %c64], %218 {strides = array<i32>} : memref<16x208xf32, #tpu.memory_space<vmem>>, vector<16x8xf32>,
    %c0_81 = arith.constant 0 : index
    %c96 = arith.constant 96 : index
    %245 = vector.load %arg18[%c0_81, %c96] : memref<16x208xf32, #tpu.memory_space<vmem>>, vector<16x8xf32>
    tpu.vector_store %arg18[%c0_81, %c96], %226 {strides = array<i32>} : memref<16x208xf32, #tpu.memory_space<vmem>>, vector<16x8xf32>,
    %c0_82 = arith.constant 0 : index
    %c128 = arith.constant 128 : index
    %246 = vector.load %arg18[%c0_82, %c128] : memref<16x208xf32, #tpu.memory_space<vmem>>, vector<16x8xf32>
    tpu.vector_store %arg18[%c0_82, %c128], %234 {strides = array<i32>} : memref<16x208xf32, #tpu.memory_space<vmem>>, vector<16x8xf32>,
    %c0_83 = arith.constant 0 : index
    %c160 = arith.constant 160 : index
    %247 = vector.load %arg18[%c0_83, %c160] : memref<16x208xf32, #tpu.memory_space<vmem>>, vector<16x8xf32>
    tpu.vector_store %arg18[%c0_83, %c160], %242 {strides = array<i32>} : memref<16x208xf32, #tpu.memory_space<vmem>>, vector<16x8xf32>,
    %c0_84 = arith.constant 0 : index
    %c192 = arith.constant 192 : index
    %248 = vector.load %arg18[%c0_84, %c192] : memref<16x208xf32, #tpu.memory_space<vmem>>, vector<16x4xf32>
    tpu.vector_store %arg18[%c0_84, %c192], %204 {strides = array<i32>} : memref<16x208xf32, #tpu.memory_space<vmem>>, vector<16x4xf32>,
    %249 = vector.extract_strided_slice %6 {offsets = [0, 16], sizes = [16, 16], strides = [1, 1]} : vector<16x384xf32> to vector<16x16xf32>
    %250 = vector.extract_strided_slice %6 {offsets = [0, 96], sizes = [16, 16], strides = [1, 1]} : vector<16x384xf32> to vector<16x16xf32>
    %251 = vector.extract_strided_slice %6 {offsets = [0, 112], sizes = [16, 16], strides = [1, 1]} : vector<16x384xf32> to vector<16x16xf32>
    %252 = vector.extract_strided_slice %33 {offsets = [0, 4], sizes = [16, 4], strides = [1, 1]} : vector<16x16xf32> to vector<16x4xf32>
    %253 = vector.extract_strided_slice %43 {offsets = [0, 4], sizes = [16, 4], strides = [1, 1]} : vector<16x16xf32> to vector<16x4xf32>
    %254 = vector.extract_strided_slice %53 {offsets = [0, 4], sizes = [16, 4], strides = [1, 1]} : vector<16x16xf32> to vector<16x4xf32>
    %255 = vector.extract_strided_slice %66 {offsets = [0, 12], sizes = [16, 4], strides = [1, 1]} : vector<16x48xf32> to vector<16x4xf32>
    %256 = vector.extract_strided_slice %76 {offsets = [0, 12], sizes = [16, 4], strides = [1, 1]} : vector<16x48xf32> to vector<16x4xf32>
    %257 = vector.extract_strided_slice %86 {offsets = [0, 12], sizes = [16, 4], strides = [1, 1]} : vector<16x48xf32> to vector<16x4xf32>
    %258 = vector.extract_strided_slice %66 {offsets = [0, 16], sizes = [16, 8], strides = [1, 1]} : vector<16x48xf32> to vector<16x8xf32>
    %259 = vector.extract_strided_slice %76 {offsets = [0, 16], sizes = [16, 8], strides = [1, 1]} : vector<16x48xf32> to vector<16x8xf32>
    %260 = vector.extract_strided_slice %86 {offsets = [0, 16], sizes = [16, 8], strides = [1, 1]} : vector<16x48xf32> to vector<16x8xf32>
    %c0_85 = arith.constant 0 : index
    %c1 = arith.constant 1 : index
    %261 = vector.load %arg11[%c0_85, %c1] : memref<1x4xf32, #tpu.memory_space<vmem>>, vector<1x1xf32>
    %262 = math.sqrt %261 : vector<1x1xf32>
    %cst_86 = arith.constant -5.000000e-01 : f32
    %263 = vector.broadcast %cst_86 : f32 to vector<1x1xf32>
    %264 = arith.mulf %263, %261 : vector<1x1xf32>
    %265 = arith.mulf %252, %252 : vector<16x4xf32>
    %266 = arith.mulf %253, %253 : vector<16x4xf32>
    %267 = arith.addf %265, %266 : vector<16x4xf32>
    %268 = arith.mulf %254, %254 : vector<16x4xf32>
    %269 = arith.addf %267, %268 : vector<16x4xf32>
    %cst_87 = arith.constant dense<0.000000e+00> : vector<16xf32>
    %270 = vector.multi_reduction <add>, %269, %cst_87 [1] : vector<16x4xf32> to vector<16xf32>
    %271 = vector.shape_cast %270 : vector<16xf32> to vector<16x1xf32>
    %272 = arith.mulf %255, %255 : vector<16x4xf32>
    %273 = arith.mulf %256, %256 : vector<16x4xf32>
    %274 = arith.addf %272, %273 : vector<16x4xf32>
    %275 = arith.mulf %257, %257 : vector<16x4xf32>
    %276 = arith.addf %274, %275 : vector<16x4xf32>
    %cst_88 = arith.constant dense<0.000000e+00> : vector<16xf32>
    %277 = vector.multi_reduction <add>, %276, %cst_88 [1] : vector<16x4xf32> to vector<16xf32>
    %278 = vector.shape_cast %277 : vector<16xf32> to vector<16x1xf32>
    %cst_89 = arith.constant 0.37991783 : f32
    %279 = vector.broadcast %cst_89 : f32 to vector<16x16xf32>
    %280 = arith.mulf %249, %279 : vector<16x16xf32>
    %c0_90 = arith.constant 0 : index
    %c0_91 = arith.constant 0 : index
    %281 = vector.load %arg15[%c0_90, %c0_91] : memref<16x32xf32, #tpu.memory_space<vmem>>, vector<16x16xf32>
    tpu.vector_store %arg15[%c0_90, %c0_91], %280 {strides = array<i32>} : memref<16x32xf32, #tpu.memory_space<vmem>>, vector<16x16xf32>,
    %282 = vector.broadcast %262 : vector<1x1xf32> to vector<16x4xf32>
    %283 = arith.mulf %252, %282 : vector<16x4xf32>
    %c0_92 = arith.constant 0 : index
    %c16_93 = arith.constant 16 : index
    %284 = vector.load %arg15[%c0_92, %c16_93] : memref<16x32xf32, #tpu.memory_space<vmem>>, vector<16x4xf32>
    tpu.vector_store %arg15[%c0_92, %c16_93], %283 {strides = array<i32>} : memref<16x32xf32, #tpu.memory_space<vmem>>, vector<16x4xf32>,
    %285 = vector.broadcast %262 : vector<1x1xf32> to vector<16x4xf32>
    %286 = arith.mulf %253, %285 : vector<16x4xf32>
    %c0_94 = arith.constant 0 : index
    %c20_95 = arith.constant 20 : index
    %287 = vector.load %arg15[%c0_94, %c20_95] : memref<16x32xf32, #tpu.memory_space<vmem>>, vector<16x4xf32>
    tpu.vector_store %arg15[%c0_94, %c20_95], %286 {strides = array<i32>} : memref<16x32xf32, #tpu.memory_space<vmem>>, vector<16x4xf32>,
    %288 = vector.broadcast %262 : vector<1x1xf32> to vector<16x4xf32>
    %289 = arith.mulf %254, %288 : vector<16x4xf32>
    %c0_96 = arith.constant 0 : index
    %c24_97 = arith.constant 24 : index
    %290 = vector.load %arg15[%c0_96, %c24_97] : memref<16x32xf32, #tpu.memory_space<vmem>>, vector<16x4xf32>
    tpu.vector_store %arg15[%c0_96, %c24_97], %289 {strides = array<i32>} : memref<16x32xf32, #tpu.memory_space<vmem>>, vector<16x4xf32>,
    %291 = vector.broadcast %264 : vector<1x1xf32> to vector<16x1xf32>
    %292 = arith.mulf %291, %271 : vector<16x1xf32>
    %c0_98 = arith.constant 0 : index
    %c29_99 = arith.constant 29 : index
    %293 = vector.load %arg15[%c0_98, %c29_99] : memref<16x32xf32, #tpu.memory_space<vmem>>, vector<16x1xf32>
    tpu.vector_store %arg15[%c0_98, %c29_99], %292 {strides = array<i32>} : memref<16x32xf32, #tpu.memory_space<vmem>>, vector<16x1xf32>,
    %cst_100 = arith.constant 0.37991783 : f32
    %294 = vector.broadcast %cst_100 : f32 to vector<16x16xf32>
    %295 = arith.mulf %250, %294 : vector<16x16xf32>
    %c0_101 = arith.constant 0 : index
    %c0_102 = arith.constant 0 : index
    %296 = vector.load %arg16[%c0_101, %c0_102] : memref<16x32xf32, #tpu.memory_space<vmem>>, vector<16x16xf32>
    tpu.vector_store %arg16[%c0_101, %c0_102], %295 {strides = array<i32>} : memref<16x32xf32, #tpu.memory_space<vmem>>, vector<16x16xf32>,
    %297 = vector.broadcast %262 : vector<1x1xf32> to vector<16x4xf32>
    %298 = arith.mulf %255, %297 : vector<16x4xf32>
    %c0_103 = arith.constant 0 : index
    %c16_104 = arith.constant 16 : index
    %299 = vector.load %arg16[%c0_103, %c16_104] : memref<16x32xf32, #tpu.memory_space<vmem>>, vector<16x4xf32>
    tpu.vector_store %arg16[%c0_103, %c16_104], %298 {strides = array<i32>} : memref<16x32xf32, #tpu.memory_space<vmem>>, vector<16x4xf32>,
    %300 = vector.broadcast %262 : vector<1x1xf32> to vector<16x4xf32>
    %301 = arith.mulf %256, %300 : vector<16x4xf32>
    %c0_105 = arith.constant 0 : index
    %c20_106 = arith.constant 20 : index
    %302 = vector.load %arg16[%c0_105, %c20_106] : memref<16x32xf32, #tpu.memory_space<vmem>>, vector<16x4xf32>
    tpu.vector_store %arg16[%c0_105, %c20_106], %301 {strides = array<i32>} : memref<16x32xf32, #tpu.memory_space<vmem>>, vector<16x4xf32>,
    %303 = vector.broadcast %262 : vector<1x1xf32> to vector<16x4xf32>
    %304 = arith.mulf %257, %303 : vector<16x4xf32>
    %c0_107 = arith.constant 0 : index
    %c24_108 = arith.constant 24 : index
    %305 = vector.load %arg16[%c0_107, %c24_108] : memref<16x32xf32, #tpu.memory_space<vmem>>, vector<16x4xf32>
    tpu.vector_store %arg16[%c0_107, %c24_108], %304 {strides = array<i32>} : memref<16x32xf32, #tpu.memory_space<vmem>>, vector<16x4xf32>,
    %306 = vector.broadcast %264 : vector<1x1xf32> to vector<16x1xf32>
    %307 = arith.mulf %306, %278 : vector<16x1xf32>
    %c0_109 = arith.constant 0 : index
    %c28_110 = arith.constant 28 : index
    %308 = vector.load %arg16[%c0_109, %c28_110] : memref<16x32xf32, #tpu.memory_space<vmem>>, vector<16x1xf32>
    tpu.vector_store %arg16[%c0_109, %c28_110], %307 {strides = array<i32>} : memref<16x32xf32, #tpu.memory_space<vmem>>, vector<16x1xf32>,
    %c0_111 = arith.constant 0 : index
    %c0_112 = arith.constant 0 : index
    %309 = vector.load %arg15[%c0_111, %c0_112] : memref<16x32xf32, #tpu.memory_space<vmem>>, vector<16x32xf32>
    %c0_113 = arith.constant 0 : index
    %c0_114 = arith.constant 0 : index
    %310 = vector.load %arg16[%c0_113, %c0_114] : memref<16x32xf32, #tpu.memory_space<vmem>>, vector<16x32xf32>
    %cst_115 = arith.constant dense<0.000000e+00> : vector<16x16xf32>
    %311 = tpu.matmul %309, %310, %cst_115 {dimension_numbers = #tpu.dot_dimension_numbers<[1], [1], [0], [0], [0, 0, 1, 0], [], []>} : vector<16x32xf32>, vector<16x32xf32>, vector<16x16xf32> -> vector<16x16xf32>
    %c1_116 = arith.constant 1 : index
    %c0_117 = arith.constant 0 : index
    %312 = vector.load %arg7[%c1_116, %c0_117] : memref<4x16xf32, #tpu.memory_space<vmem>>, vector<1x16xf32>
    %313 = vector.shape_cast %312 : vector<1x16xf32> to vector<1x1x16xf32>
    %314 = vector.broadcast %313 : vector<1x1x16xf32> to vector<16x16x16xf32>
    %315 = arith.mulf %88, %314 : vector<16x16x16xf32>
    %cst_118 = arith.constant dense<0.000000e+00> : vector<16x16xf32>
    %316 = vector.multi_reduction <add>, %315, %cst_118 [2] : vector<16x16x16xf32> to vector<16x16xf32>
    %c0_119 = arith.constant 0 : index
    %c1_120 = arith.constant 1 : index
    %317 = vector.load %arg8[%c0_119, %c1_120] : memref<1x4xf32, #tpu.memory_space<vmem>>, vector<1x1xf32>
    %318 = vector.broadcast %317 : vector<1x1xf32> to vector<16x16xf32>
    %319 = arith.addf %316, %318 : vector<16x16xf32>
    %cst_121 = arith.constant 0.577350259 : f32
    %320 = vector.broadcast %cst_121 : f32 to vector<16x16xf32>
    %321 = arith.mulf %320, %319 : vector<16x16xf32>
    %322 = arith.addf %311, %321 : vector<16x16xf32>
    %323 = arith.addf %322, %90 : vector<16x16xf32>
    %cst_122 = arith.constant dense<0xFF800000> : vector<16xf32>
    %324 = vector.multi_reduction <maximumf>, %323, %cst_122 [1] : vector<16x16xf32> to vector<16xf32>
    %325 = vector.shape_cast %324 : vector<16xf32> to vector<16x1xf32>
    %326 = vector.broadcast %325 : vector<16x1xf32> to vector<16x16xf32>
    %327 = arith.subf %323, %326 : vector<16x16xf32>
    %328 = math.exp %327 : vector<16x16xf32>
    %cst_123 = arith.constant dense<0.000000e+00> : vector<16xf32>
    %329 = vector.multi_reduction <add>, %328, %cst_123 [1] : vector<16x16xf32> to vector<16xf32>
    %330 = vector.shape_cast %329 : vector<16xf32> to vector<16x1xf32>
    %331 = tpu.reciprocal %330 {approx = true} : vector<16x1xf32> -> vector<16x1xf32>
    %332 = vector.broadcast %331 : vector<16x1xf32> to vector<16x16xf32>
    %333 = arith.mulf %328, %332 : vector<16x16xf32>
    %c0_124 = arith.constant 0 : index
    %c0_125 = arith.constant 0 : index
    %334 = vector.load %arg17[%c0_124, %c0_125] : memref<16x40xf32, #tpu.memory_space<vmem>>, vector<16x16xf32>
    tpu.vector_store %arg17[%c0_124, %c0_125], %251 {strides = array<i32>} : memref<16x40xf32, #tpu.memory_space<vmem>>, vector<16x16xf32>,
    %c0_126 = arith.constant 0 : index
    %c16_127 = arith.constant 16 : index
    %335 = vector.load %arg17[%c0_126, %c16_127] : memref<16x40xf32, #tpu.memory_space<vmem>>, vector<16x8xf32>
    tpu.vector_store %arg17[%c0_126, %c16_127], %258 {strides = array<i32>} : memref<16x40xf32, #tpu.memory_space<vmem>>, vector<16x8xf32>,
    %c0_128 = arith.constant 0 : index
    %c24_129 = arith.constant 24 : index
    %336 = vector.load %arg17[%c0_128, %c24_129] : memref<16x40xf32, #tpu.memory_space<vmem>>, vector<16x8xf32>
    tpu.vector_store %arg17[%c0_128, %c24_129], %259 {strides = array<i32>} : memref<16x40xf32, #tpu.memory_space<vmem>>, vector<16x8xf32>,
    %c0_130 = arith.constant 0 : index
    %c32_131 = arith.constant 32 : index
    %337 = vector.load %arg17[%c0_130, %c32_131] : memref<16x40xf32, #tpu.memory_space<vmem>>, vector<16x8xf32>
    tpu.vector_store %arg17[%c0_130, %c32_131], %260 {strides = array<i32>} : memref<16x40xf32, #tpu.memory_space<vmem>>, vector<16x8xf32>,
    %c0_132 = arith.constant 0 : index
    %c0_133 = arith.constant 0 : index
    %338 = vector.load %arg17[%c0_132, %c0_133] : memref<16x40xf32, #tpu.memory_space<vmem>>, vector<16x40xf32>
    %cst_134 = arith.constant dense<0.000000e+00> : vector<16x40xf32>
    %339 = tpu.matmul %333, %338, %cst_134 {dimension_numbers = #tpu.dot_dimension_numbers<[1], [0], [0], [1], [0, 0, 1, 1], [], []>} : vector<16x16xf32>, vector<16x40xf32>, vector<16x40xf32> -> vector<16x40xf32>
    %340 = vector.extract_strided_slice %339 {offsets = [0, 0], sizes = [16, 16], strides = [1, 1]} : vector<16x40xf32> to vector<16x16xf32>
    %341 = vector.extract_strided_slice %339 {offsets = [0, 16], sizes = [16, 8], strides = [1, 1]} : vector<16x40xf32> to vector<16x8xf32>
    %342 = vector.extract_strided_slice %339 {offsets = [0, 24], sizes = [16, 8], strides = [1, 1]} : vector<16x40xf32> to vector<16x8xf32>
    %343 = vector.extract_strided_slice %339 {offsets = [0, 32], sizes = [16, 8], strides = [1, 1]} : vector<16x40xf32> to vector<16x8xf32>
    %344 = vector.shape_cast %333 : vector<16x16xf32> to vector<16x16x1xf32>
    %345 = vector.broadcast %344 : vector<16x16x1xf32> to vector<16x16x16xf32>
    %346 = arith.mulf %345, %88 : vector<16x16x16xf32>
    %cst_135 = arith.constant dense<0.000000e+00> : vector<16x16xf32>
    %347 = vector.multi_reduction <add>, %346, %cst_135 [1] : vector<16x16x16xf32> to vector<16x16xf32>
    %cst_136 = arith.constant dense<0.000000e+00> : vector<16xf32>
    %348 = vector.multi_reduction <add>, %333, %cst_136 [1] : vector<16x16xf32> to vector<16xf32>
    %349 = vector.shape_cast %348 : vector<16xf32> to vector<16x1xf32>
    %cst_137 = arith.constant dense<0.000000e+00> : vector<16x4xf32>
    %350 = tpu.matmul %347, %91, %cst_137 {dimension_numbers = #tpu.dot_dimension_numbers<[1], [0], [0], [1], [0, 0, 1, 1], [], []>} : vector<16x16xf32>, vector<16x4xf32>, vector<16x4xf32> -> vector<16x4xf32>
    %351 = vector.broadcast %92 : vector<1x4xf32> to vector<16x4xf32>
    %352 = vector.broadcast %349 : vector<16x1xf32> to vector<16x4xf32>
    %353 = arith.mulf %351, %352 : vector<16x4xf32>
    %354 = arith.addf %350, %353 : vector<16x4xf32>
    %355 = vector.broadcast %18 : vector<16x1xf32> to vector<16x8xf32>
    %356 = arith.subf %341, %355 : vector<16x8xf32>
    %357 = vector.broadcast %19 : vector<16x1xf32> to vector<16x8xf32>
    %358 = arith.subf %342, %357 : vector<16x8xf32>
    %359 = vector.broadcast %20 : vector<16x1xf32> to vector<16x8xf32>
    %360 = arith.subf %343, %359 : vector<16x8xf32>
    %361 = vector.broadcast %9 : vector<16x1xf32> to vector<16x8xf32>
    %362 = arith.mulf %361, %356 : vector<16x8xf32>
    %363 = vector.broadcast %12 : vector<16x1xf32> to vector<16x8xf32>
    %364 = arith.mulf %363, %358 : vector<16x8xf32>
    %365 = arith.addf %362, %364 : vector<16x8xf32>
    %366 = vector.broadcast %15 : vector<16x1xf32> to vector<16x8xf32>
    %367 = arith.mulf %366, %360 : vector<16x8xf32>
    %368 = arith.addf %365, %367 : vector<16x8xf32>
    %369 = vector.broadcast %10 : vector<16x1xf32> to vector<16x8xf32>
    %370 = arith.mulf %369, %356 : vector<16x8xf32>
    %371 = vector.broadcast %13 : vector<16x1xf32> to vector<16x8xf32>
    %372 = arith.mulf %371, %358 : vector<16x8xf32>
    %373 = arith.addf %370, %372 : vector<16x8xf32>
    %374 = vector.broadcast %16 : vector<16x1xf32> to vector<16x8xf32>
    %375 = arith.mulf %374, %360 : vector<16x8xf32>
    %376 = arith.addf %373, %375 : vector<16x8xf32>
    %377 = vector.broadcast %11 : vector<16x1xf32> to vector<16x8xf32>
    %378 = arith.mulf %377, %356 : vector<16x8xf32>
    %379 = vector.broadcast %14 : vector<16x1xf32> to vector<16x8xf32>
    %380 = arith.mulf %379, %358 : vector<16x8xf32>
    %381 = arith.addf %378, %380 : vector<16x8xf32>
    %382 = vector.broadcast %17 : vector<16x1xf32> to vector<16x8xf32>
    %383 = arith.mulf %382, %360 : vector<16x8xf32>
    %384 = arith.addf %381, %383 : vector<16x8xf32>
    %385 = arith.mulf %368, %368 : vector<16x8xf32>
    %386 = arith.mulf %376, %376 : vector<16x8xf32>
    %387 = arith.addf %385, %386 : vector<16x8xf32>
    %388 = arith.mulf %384, %384 : vector<16x8xf32>
    %389 = arith.addf %387, %388 : vector<16x8xf32>
    %cst_138 = arith.constant 9.99999993E-9 : f32
    %390 = vector.broadcast %cst_138 : f32 to vector<16x8xf32>
    %391 = arith.addf %389, %390 : vector<16x8xf32>
    %392 = math.sqrt %391 : vector<16x8xf32>
    %c0_139 = arith.constant 0 : index
    %c16_140 = arith.constant 16 : index
    %393 = vector.load %arg18[%c0_139, %c16_140] : memref<16x208xf32, #tpu.memory_space<vmem>>, vector<16x16xf32>
    tpu.vector_store %arg18[%c0_139, %c16_140], %340 {strides = array<i32>} : memref<16x208xf32, #tpu.memory_space<vmem>>, vector<16x16xf32>,
    %c0_141 = arith.constant 0 : index
    %c72 = arith.constant 72 : index
    %394 = vector.load %arg18[%c0_141, %c72] : memref<16x208xf32, #tpu.memory_space<vmem>>, vector<16x8xf32>
    tpu.vector_store %arg18[%c0_141, %c72], %368 {strides = array<i32>} : memref<16x208xf32, #tpu.memory_space<vmem>>, vector<16x8xf32>,
    %c0_142 = arith.constant 0 : index
    %c104 = arith.constant 104 : index
    %395 = vector.load %arg18[%c0_142, %c104] : memref<16x208xf32, #tpu.memory_space<vmem>>, vector<16x8xf32>
    tpu.vector_store %arg18[%c0_142, %c104], %376 {strides = array<i32>} : memref<16x208xf32, #tpu.memory_space<vmem>>, vector<16x8xf32>,
    %c0_143 = arith.constant 0 : index
    %c136 = arith.constant 136 : index
    %396 = vector.load %arg18[%c0_143, %c136] : memref<16x208xf32, #tpu.memory_space<vmem>>, vector<16x8xf32>
    tpu.vector_store %arg18[%c0_143, %c136], %384 {strides = array<i32>} : memref<16x208xf32, #tpu.memory_space<vmem>>, vector<16x8xf32>,
    %c0_144 = arith.constant 0 : index
    %c168 = arith.constant 168 : index
    %397 = vector.load %arg18[%c0_144, %c168] : memref<16x208xf32, #tpu.memory_space<vmem>>, vector<16x8xf32>
    tpu.vector_store %arg18[%c0_144, %c168], %392 {strides = array<i32>} : memref<16x208xf32, #tpu.memory_space<vmem>>, vector<16x8xf32>,
    %c0_145 = arith.constant 0 : index
    %c196 = arith.constant 196 : index
    %398 = vector.load %arg18[%c0_145, %c196] : memref<16x208xf32, #tpu.memory_space<vmem>>, vector<16x4xf32>
    tpu.vector_store %arg18[%c0_145, %c196], %354 {strides = array<i32>} : memref<16x208xf32, #tpu.memory_space<vmem>>, vector<16x4xf32>,
    %399 = vector.extract_strided_slice %6 {offsets = [0, 32], sizes = [16, 16], strides = [1, 1]} : vector<16x384xf32> to vector<16x16xf32>
    %400 = vector.extract_strided_slice %6 {offsets = [0, 128], sizes = [16, 16], strides = [1, 1]} : vector<16x384xf32> to vector<16x16xf32>
    %401 = vector.extract_strided_slice %6 {offsets = [0, 144], sizes = [16, 16], strides = [1, 1]} : vector<16x384xf32> to vector<16x16xf32>
    %402 = vector.extract_strided_slice %33 {offsets = [0, 8], sizes = [16, 4], strides = [1, 1]} : vector<16x16xf32> to vector<16x4xf32>
    %403 = vector.extract_strided_slice %43 {offsets = [0, 8], sizes = [16, 4], strides = [1, 1]} : vector<16x16xf32> to vector<16x4xf32>
    %404 = vector.extract_strided_slice %53 {offsets = [0, 8], sizes = [16, 4], strides = [1, 1]} : vector<16x16xf32> to vector<16x4xf32>
    %405 = vector.extract_strided_slice %66 {offsets = [0, 24], sizes = [16, 4], strides = [1, 1]} : vector<16x48xf32> to vector<16x4xf32>
    %406 = vector.extract_strided_slice %76 {offsets = [0, 24], sizes = [16, 4], strides = [1, 1]} : vector<16x48xf32> to vector<16x4xf32>
    %407 = vector.extract_strided_slice %86 {offsets = [0, 24], sizes = [16, 4], strides = [1, 1]} : vector<16x48xf32> to vector<16x4xf32>
    %408 = vector.extract_strided_slice %66 {offsets = [0, 28], sizes = [16, 8], strides = [1, 1]} : vector<16x48xf32> to vector<16x8xf32>
    %409 = vector.extract_strided_slice %76 {offsets = [0, 28], sizes = [16, 8], strides = [1, 1]} : vector<16x48xf32> to vector<16x8xf32>
    %410 = vector.extract_strided_slice %86 {offsets = [0, 28], sizes = [16, 8], strides = [1, 1]} : vector<16x48xf32> to vector<16x8xf32>
    %c0_146 = arith.constant 0 : index
    %c2 = arith.constant 2 : index
    %411 = vector.load %arg11[%c0_146, %c2] : memref<1x4xf32, #tpu.memory_space<vmem>>, vector<1x1xf32>
    %412 = math.sqrt %411 : vector<1x1xf32>
    %cst_147 = arith.constant -5.000000e-01 : f32
    %413 = vector.broadcast %cst_147 : f32 to vector<1x1xf32>
    %414 = arith.mulf %413, %411 : vector<1x1xf32>
    %415 = arith.mulf %402, %402 : vector<16x4xf32>
    %416 = arith.mulf %403, %403 : vector<16x4xf32>
    %417 = arith.addf %415, %416 : vector<16x4xf32>
    %418 = arith.mulf %404, %404 : vector<16x4xf32>
    %419 = arith.addf %417, %418 : vector<16x4xf32>
    %cst_148 = arith.constant dense<0.000000e+00> : vector<16xf32>
    %420 = vector.multi_reduction <add>, %419, %cst_148 [1] : vector<16x4xf32> to vector<16xf32>
    %421 = vector.shape_cast %420 : vector<16xf32> to vector<16x1xf32>
    %422 = arith.mulf %405, %405 : vector<16x4xf32>
    %423 = arith.mulf %406, %406 : vector<16x4xf32>
    %424 = arith.addf %422, %423 : vector<16x4xf32>
    %425 = arith.mulf %407, %407 : vector<16x4xf32>
    %426 = arith.addf %424, %425 : vector<16x4xf32>
    %cst_149 = arith.constant dense<0.000000e+00> : vector<16xf32>
    %427 = vector.multi_reduction <add>, %426, %cst_149 [1] : vector<16x4xf32> to vector<16xf32>
    %428 = vector.shape_cast %427 : vector<16xf32> to vector<16x1xf32>
    %cst_150 = arith.constant 0.37991783 : f32
    %429 = vector.broadcast %cst_150 : f32 to vector<16x16xf32>
    %430 = arith.mulf %399, %429 : vector<16x16xf32>
    %c0_151 = arith.constant 0 : index
    %c0_152 = arith.constant 0 : index
    %431 = vector.load %arg15[%c0_151, %c0_152] : memref<16x32xf32, #tpu.memory_space<vmem>>, vector<16x16xf32>
    tpu.vector_store %arg15[%c0_151, %c0_152], %430 {strides = array<i32>} : memref<16x32xf32, #tpu.memory_space<vmem>>, vector<16x16xf32>,
    %432 = vector.broadcast %412 : vector<1x1xf32> to vector<16x4xf32>
    %433 = arith.mulf %402, %432 : vector<16x4xf32>
    %c0_153 = arith.constant 0 : index
    %c16_154 = arith.constant 16 : index
    %434 = vector.load %arg15[%c0_153, %c16_154] : memref<16x32xf32, #tpu.memory_space<vmem>>, vector<16x4xf32>
    tpu.vector_store %arg15[%c0_153, %c16_154], %433 {strides = array<i32>} : memref<16x32xf32, #tpu.memory_space<vmem>>, vector<16x4xf32>,
    %435 = vector.broadcast %412 : vector<1x1xf32> to vector<16x4xf32>
    %436 = arith.mulf %403, %435 : vector<16x4xf32>
    %c0_155 = arith.constant 0 : index
    %c20_156 = arith.constant 20 : index
    %437 = vector.load %arg15[%c0_155, %c20_156] : memref<16x32xf32, #tpu.memory_space<vmem>>, vector<16x4xf32>
    tpu.vector_store %arg15[%c0_155, %c20_156], %436 {strides = array<i32>} : memref<16x32xf32, #tpu.memory_space<vmem>>, vector<16x4xf32>,
    %438 = vector.broadcast %412 : vector<1x1xf32> to vector<16x4xf32>
    %439 = arith.mulf %404, %438 : vector<16x4xf32>
    %c0_157 = arith.constant 0 : index
    %c24_158 = arith.constant 24 : index
    %440 = vector.load %arg15[%c0_157, %c24_158] : memref<16x32xf32, #tpu.memory_space<vmem>>, vector<16x4xf32>
    tpu.vector_store %arg15[%c0_157, %c24_158], %439 {strides = array<i32>} : memref<16x32xf32, #tpu.memory_space<vmem>>, vector<16x4xf32>,
    %441 = vector.broadcast %414 : vector<1x1xf32> to vector<16x1xf32>
    %442 = arith.mulf %441, %421 : vector<16x1xf32>
    %c0_159 = arith.constant 0 : index
    %c29_160 = arith.constant 29 : index
    %443 = vector.load %arg15[%c0_159, %c29_160] : memref<16x32xf32, #tpu.memory_space<vmem>>, vector<16x1xf32>
    tpu.vector_store %arg15[%c0_159, %c29_160], %442 {strides = array<i32>} : memref<16x32xf32, #tpu.memory_space<vmem>>, vector<16x1xf32>,
    %cst_161 = arith.constant 0.37991783 : f32
    %444 = vector.broadcast %cst_161 : f32 to vector<16x16xf32>
    %445 = arith.mulf %400, %444 : vector<16x16xf32>
    %c0_162 = arith.constant 0 : index
    %c0_163 = arith.constant 0 : index
    %446 = vector.load %arg16[%c0_162, %c0_163] : memref<16x32xf32, #tpu.memory_space<vmem>>, vector<16x16xf32>
    tpu.vector_store %arg16[%c0_162, %c0_163], %445 {strides = array<i32>} : memref<16x32xf32, #tpu.memory_space<vmem>>, vector<16x16xf32>,
    %447 = vector.broadcast %412 : vector<1x1xf32> to vector<16x4xf32>
    %448 = arith.mulf %405, %447 : vector<16x4xf32>
    %c0_164 = arith.constant 0 : index
    %c16_165 = arith.constant 16 : index
    %449 = vector.load %arg16[%c0_164, %c16_165] : memref<16x32xf32, #tpu.memory_space<vmem>>, vector<16x4xf32>
    tpu.vector_store %arg16[%c0_164, %c16_165], %448 {strides = array<i32>} : memref<16x32xf32, #tpu.memory_space<vmem>>, vector<16x4xf32>,
    %450 = vector.broadcast %412 : vector<1x1xf32> to vector<16x4xf32>
    %451 = arith.mulf %406, %450 : vector<16x4xf32>
    %c0_166 = arith.constant 0 : index
    %c20_167 = arith.constant 20 : index
    %452 = vector.load %arg16[%c0_166, %c20_167] : memref<16x32xf32, #tpu.memory_space<vmem>>, vector<16x4xf32>
    tpu.vector_store %arg16[%c0_166, %c20_167], %451 {strides = array<i32>} : memref<16x32xf32, #tpu.memory_space<vmem>>, vector<16x4xf32>,
    %453 = vector.broadcast %412 : vector<1x1xf32> to vector<16x4xf32>
    %454 = arith.mulf %407, %453 : vector<16x4xf32>
    %c0_168 = arith.constant 0 : index
    %c24_169 = arith.constant 24 : index
    %455 = vector.load %arg16[%c0_168, %c24_169] : memref<16x32xf32, #tpu.memory_space<vmem>>, vector<16x4xf32>
    tpu.vector_store %arg16[%c0_168, %c24_169], %454 {strides = array<i32>} : memref<16x32xf32, #tpu.memory_space<vmem>>, vector<16x4xf32>,
    %456 = vector.broadcast %414 : vector<1x1xf32> to vector<16x1xf32>
    %457 = arith.mulf %456, %428 : vector<16x1xf32>
    %c0_170 = arith.constant 0 : index
    %c28_171 = arith.constant 28 : index
    %458 = vector.load %arg16[%c0_170, %c28_171] : memref<16x32xf32, #tpu.memory_space<vmem>>, vector<16x1xf32>
    tpu.vector_store %arg16[%c0_170, %c28_171], %457 {strides = array<i32>} : memref<16x32xf32, #tpu.memory_space<vmem>>, vector<16x1xf32>,
    %c0_172 = arith.constant 0 : index
    %c0_173 = arith.constant 0 : index
    %459 = vector.load %arg15[%c0_172, %c0_173] : memref<16x32xf32, #tpu.memory_space<vmem>>, vector<16x32xf32>
    %c0_174 = arith.constant 0 : index
    %c0_175 = arith.constant 0 : index
    %460 = vector.load %arg16[%c0_174, %c0_175] : memref<16x32xf32, #tpu.memory_space<vmem>>, vector<16x32xf32>
    %cst_176 = arith.constant dense<0.000000e+00> : vector<16x16xf32>
    %461 = tpu.matmul %459, %460, %cst_176 {dimension_numbers = #tpu.dot_dimension_numbers<[1], [1], [0], [0], [0, 0, 1, 0], [], []>} : vector<16x32xf32>, vector<16x32xf32>, vector<16x16xf32> -> vector<16x16xf32>
    %c2_177 = arith.constant 2 : index
    %c0_178 = arith.constant 0 : index
    %462 = vector.load %arg7[%c2_177, %c0_178] : memref<4x16xf32, #tpu.memory_space<vmem>>, vector<1x16xf32>
    %463 = vector.shape_cast %462 : vector<1x16xf32> to vector<1x1x16xf32>
    %464 = vector.broadcast %463 : vector<1x1x16xf32> to vector<16x16x16xf32>
    %465 = arith.mulf %88, %464 : vector<16x16x16xf32>
    %cst_179 = arith.constant dense<0.000000e+00> : vector<16x16xf32>
    %466 = vector.multi_reduction <add>, %465, %cst_179 [2] : vector<16x16x16xf32> to vector<16x16xf32>
    %c0_180 = arith.constant 0 : index
    %c2_181 = arith.constant 2 : index
    %467 = vector.load %arg8[%c0_180, %c2_181] : memref<1x4xf32, #tpu.memory_space<vmem>>, vector<1x1xf32>
    %468 = vector.broadcast %467 : vector<1x1xf32> to vector<16x16xf32>
    %469 = arith.addf %466, %468 : vector<16x16xf32>
    %cst_182 = arith.constant 0.577350259 : f32
    %470 = vector.broadcast %cst_182 : f32 to vector<16x16xf32>
    %471 = arith.mulf %470, %469 : vector<16x16xf32>
    %472 = arith.addf %461, %471 : vector<16x16xf32>
    %473 = arith.addf %472, %90 : vector<16x16xf32>
    %cst_183 = arith.constant dense<0xFF800000> : vector<16xf32>
    %474 = vector.multi_reduction <maximumf>, %473, %cst_183 [1] : vector<16x16xf32> to vector<16xf32>
    %475 = vector.shape_cast %474 : vector<16xf32> to vector<16x1xf32>
    %476 = vector.broadcast %475 : vector<16x1xf32> to vector<16x16xf32>
    %477 = arith.subf %473, %476 : vector<16x16xf32>
    %478 = math.exp %477 : vector<16x16xf32>
    %cst_184 = arith.constant dense<0.000000e+00> : vector<16xf32>
    %479 = vector.multi_reduction <add>, %478, %cst_184 [1] : vector<16x16xf32> to vector<16xf32>
    %480 = vector.shape_cast %479 : vector<16xf32> to vector<16x1xf32>
    %481 = tpu.reciprocal %480 {approx = true} : vector<16x1xf32> -> vector<16x1xf32>
    %482 = vector.broadcast %481 : vector<16x1xf32> to vector<16x16xf32>
    %483 = arith.mulf %478, %482 : vector<16x16xf32>
    %c0_185 = arith.constant 0 : index
    %c0_186 = arith.constant 0 : index
    %484 = vector.load %arg17[%c0_185, %c0_186] : memref<16x40xf32, #tpu.memory_space<vmem>>, vector<16x16xf32>
    tpu.vector_store %arg17[%c0_185, %c0_186], %401 {strides = array<i32>} : memref<16x40xf32, #tpu.memory_space<vmem>>, vector<16x16xf32>,
    %c0_187 = arith.constant 0 : index
    %c16_188 = arith.constant 16 : index
    %485 = vector.load %arg17[%c0_187, %c16_188] : memref<16x40xf32, #tpu.memory_space<vmem>>, vector<16x8xf32>
    tpu.vector_store %arg17[%c0_187, %c16_188], %408 {strides = array<i32>} : memref<16x40xf32, #tpu.memory_space<vmem>>, vector<16x8xf32>,
    %c0_189 = arith.constant 0 : index
    %c24_190 = arith.constant 24 : index
    %486 = vector.load %arg17[%c0_189, %c24_190] : memref<16x40xf32, #tpu.memory_space<vmem>>, vector<16x8xf32>
    tpu.vector_store %arg17[%c0_189, %c24_190], %409 {strides = array<i32>} : memref<16x40xf32, #tpu.memory_space<vmem>>, vector<16x8xf32>,
    %c0_191 = arith.constant 0 : index
    %c32_192 = arith.constant 32 : index
    %487 = vector.load %arg17[%c0_191, %c32_192] : memref<16x40xf32, #tpu.memory_space<vmem>>, vector<16x8xf32>
    tpu.vector_store %arg17[%c0_191, %c32_192], %410 {strides = array<i32>} : memref<16x40xf32, #tpu.memory_space<vmem>>, vector<16x8xf32>,
    %c0_193 = arith.constant 0 : index
    %c0_194 = arith.constant 0 : index
    %488 = vector.load %arg17[%c0_193, %c0_194] : memref<16x40xf32, #tpu.memory_space<vmem>>, vector<16x40xf32>
    %cst_195 = arith.constant dense<0.000000e+00> : vector<16x40xf32>
    %489 = tpu.matmul %483, %488, %cst_195 {dimension_numbers = #tpu.dot_dimension_numbers<[1], [0], [0], [1], [0, 0, 1, 1], [], []>} : vector<16x16xf32>, vector<16x40xf32>, vector<16x40xf32> -> vector<16x40xf32>
    %490 = vector.extract_strided_slice %489 {offsets = [0, 0], sizes = [16, 16], strides = [1, 1]} : vector<16x40xf32> to vector<16x16xf32>
    %491 = vector.extract_strided_slice %489 {offsets = [0, 16], sizes = [16, 8], strides = [1, 1]} : vector<16x40xf32> to vector<16x8xf32>
    %492 = vector.extract_strided_slice %489 {offsets = [0, 24], sizes = [16, 8], strides = [1, 1]} : vector<16x40xf32> to vector<16x8xf32>
    %493 = vector.extract_strided_slice %489 {offsets = [0, 32], sizes = [16, 8], strides = [1, 1]} : vector<16x40xf32> to vector<16x8xf32>
    %494 = vector.shape_cast %483 : vector<16x16xf32> to vector<16x16x1xf32>
    %495 = vector.broadcast %494 : vector<16x16x1xf32> to vector<16x16x16xf32>
    %496 = arith.mulf %495, %88 : vector<16x16x16xf32>
    %cst_196 = arith.constant dense<0.000000e+00> : vector<16x16xf32>
    %497 = vector.multi_reduction <add>, %496, %cst_196 [1] : vector<16x16x16xf32> to vector<16x16xf32>
    %cst_197 = arith.constant dense<0.000000e+00> : vector<16xf32>
    %498 = vector.multi_reduction <add>, %483, %cst_197 [1] : vector<16x16xf32> to vector<16xf32>
    %499 = vector.shape_cast %498 : vector<16xf32> to vector<16x1xf32>
    %cst_198 = arith.constant dense<0.000000e+00> : vector<16x4xf32>
    %500 = tpu.matmul %497, %91, %cst_198 {dimension_numbers = #tpu.dot_dimension_numbers<[1], [0], [0], [1], [0, 0, 1, 1], [], []>} : vector<16x16xf32>, vector<16x4xf32>, vector<16x4xf32> -> vector<16x4xf32>
    %501 = vector.broadcast %92 : vector<1x4xf32> to vector<16x4xf32>
    %502 = vector.broadcast %499 : vector<16x1xf32> to vector<16x4xf32>
    %503 = arith.mulf %501, %502 : vector<16x4xf32>
    %504 = arith.addf %500, %503 : vector<16x4xf32>
    %505 = vector.broadcast %18 : vector<16x1xf32> to vector<16x8xf32>
    %506 = arith.subf %491, %505 : vector<16x8xf32>
    %507 = vector.broadcast %19 : vector<16x1xf32> to vector<16x8xf32>
    %508 = arith.subf %492, %507 : vector<16x8xf32>
    %509 = vector.broadcast %20 : vector<16x1xf32> to vector<16x8xf32>
    %510 = arith.subf %493, %509 : vector<16x8xf32>
    %511 = vector.broadcast %9 : vector<16x1xf32> to vector<16x8xf32>
    %512 = arith.mulf %511, %506 : vector<16x8xf32>
    %513 = vector.broadcast %12 : vector<16x1xf32> to vector<16x8xf32>
    %514 = arith.mulf %513, %508 : vector<16x8xf32>
    %515 = arith.addf %512, %514 : vector<16x8xf32>
    %516 = vector.broadcast %15 : vector<16x1xf32> to vector<16x8xf32>
    %517 = arith.mulf %516, %510 : vector<16x8xf32>
    %518 = arith.addf %515, %517 : vector<16x8xf32>
    %519 = vector.broadcast %10 : vector<16x1xf32> to vector<16x8xf32>
    %520 = arith.mulf %519, %506 : vector<16x8xf32>
    %521 = vector.broadcast %13 : vector<16x1xf32> to vector<16x8xf32>
    %522 = arith.mulf %521, %508 : vector<16x8xf32>
    %523 = arith.addf %520, %522 : vector<16x8xf32>
    %524 = vector.broadcast %16 : vector<16x1xf32> to vector<16x8xf32>
    %525 = arith.mulf %524, %510 : vector<16x8xf32>
    %526 = arith.addf %523, %525 : vector<16x8xf32>
    %527 = vector.broadcast %11 : vector<16x1xf32> to vector<16x8xf32>
    %528 = arith.mulf %527, %506 : vector<16x8xf32>
    %529 = vector.broadcast %14 : vector<16x1xf32> to vector<16x8xf32>
    %530 = arith.mulf %529, %508 : vector<16x8xf32>
    %531 = arith.addf %528, %530 : vector<16x8xf32>
    %532 = vector.broadcast %17 : vector<16x1xf32> to vector<16x8xf32>
    %533 = arith.mulf %532, %510 : vector<16x8xf32>
    %534 = arith.addf %531, %533 : vector<16x8xf32>
    %535 = arith.mulf %518, %518 : vector<16x8xf32>
    %536 = arith.mulf %526, %526 : vector<16x8xf32>
    %537 = arith.addf %535, %536 : vector<16x8xf32>
    %538 = arith.mulf %534, %534 : vector<16x8xf32>
    %539 = arith.addf %537, %538 : vector<16x8xf32>
    %cst_199 = arith.constant 9.99999993E-9 : f32
    %540 = vector.broadcast %cst_199 : f32 to vector<16x8xf32>
    %541 = arith.addf %539, %540 : vector<16x8xf32>
    %542 = math.sqrt %541 : vector<16x8xf32>
    %c0_200 = arith.constant 0 : index
    %c32_201 = arith.constant 32 : index
    %543 = vector.load %arg18[%c0_200, %c32_201] : memref<16x208xf32, #tpu.memory_space<vmem>>, vector<16x16xf32>
    tpu.vector_store %arg18[%c0_200, %c32_201], %490 {strides = array<i32>} : memref<16x208xf32, #tpu.memory_space<vmem>>, vector<16x16xf32>,
    %c0_202 = arith.constant 0 : index
    %c80 = arith.constant 80 : index
    %544 = vector.load %arg18[%c0_202, %c80] : memref<16x208xf32, #tpu.memory_space<vmem>>, vector<16x8xf32>
    tpu.vector_store %arg18[%c0_202, %c80], %518 {strides = array<i32>} : memref<16x208xf32, #tpu.memory_space<vmem>>, vector<16x8xf32>,
    %c0_203 = arith.constant 0 : index
    %c112 = arith.constant 112 : index
    %545 = vector.load %arg18[%c0_203, %c112] : memref<16x208xf32, #tpu.memory_space<vmem>>, vector<16x8xf32>
    tpu.vector_store %arg18[%c0_203, %c112], %526 {strides = array<i32>} : memref<16x208xf32, #tpu.memory_space<vmem>>, vector<16x8xf32>,
    %c0_204 = arith.constant 0 : index
    %c144 = arith.constant 144 : index
    %546 = vector.load %arg18[%c0_204, %c144] : memref<16x208xf32, #tpu.memory_space<vmem>>, vector<16x8xf32>
    tpu.vector_store %arg18[%c0_204, %c144], %534 {strides = array<i32>} : memref<16x208xf32, #tpu.memory_space<vmem>>, vector<16x8xf32>,
    %c0_205 = arith.constant 0 : index
    %c176 = arith.constant 176 : index
    %547 = vector.load %arg18[%c0_205, %c176] : memref<16x208xf32, #tpu.memory_space<vmem>>, vector<16x8xf32>
    tpu.vector_store %arg18[%c0_205, %c176], %542 {strides = array<i32>} : memref<16x208xf32, #tpu.memory_space<vmem>>, vector<16x8xf32>,
    %c0_206 = arith.constant 0 : index
    %c200 = arith.constant 200 : index
    %548 = vector.load %arg18[%c0_206, %c200] : memref<16x208xf32, #tpu.memory_space<vmem>>, vector<16x4xf32>
    tpu.vector_store %arg18[%c0_206, %c200], %504 {strides = array<i32>} : memref<16x208xf32, #tpu.memory_space<vmem>>, vector<16x4xf32>,
    %549 = vector.extract_strided_slice %6 {offsets = [0, 48], sizes = [16, 16], strides = [1, 1]} : vector<16x384xf32> to vector<16x16xf32>
    %550 = vector.extract_strided_slice %6 {offsets = [0, 160], sizes = [16, 16], strides = [1, 1]} : vector<16x384xf32> to vector<16x16xf32>
    %551 = vector.extract_strided_slice %6 {offsets = [0, 176], sizes = [16, 16], strides = [1, 1]} : vector<16x384xf32> to vector<16x16xf32>
    %552 = vector.extract_strided_slice %33 {offsets = [0, 12], sizes = [16, 4], strides = [1, 1]} : vector<16x16xf32> to vector<16x4xf32>
    %553 = vector.extract_strided_slice %43 {offsets = [0, 12], sizes = [16, 4], strides = [1, 1]} : vector<16x16xf32> to vector<16x4xf32>
    %554 = vector.extract_strided_slice %53 {offsets = [0, 12], sizes = [16, 4], strides = [1, 1]} : vector<16x16xf32> to vector<16x4xf32>
    %555 = vector.extract_strided_slice %66 {offsets = [0, 36], sizes = [16, 4], strides = [1, 1]} : vector<16x48xf32> to vector<16x4xf32>
    %556 = vector.extract_strided_slice %76 {offsets = [0, 36], sizes = [16, 4], strides = [1, 1]} : vector<16x48xf32> to vector<16x4xf32>
    %557 = vector.extract_strided_slice %86 {offsets = [0, 36], sizes = [16, 4], strides = [1, 1]} : vector<16x48xf32> to vector<16x4xf32>
    %558 = vector.extract_strided_slice %66 {offsets = [0, 40], sizes = [16, 8], strides = [1, 1]} : vector<16x48xf32> to vector<16x8xf32>
    %559 = vector.extract_strided_slice %76 {offsets = [0, 40], sizes = [16, 8], strides = [1, 1]} : vector<16x48xf32> to vector<16x8xf32>
    %560 = vector.extract_strided_slice %86 {offsets = [0, 40], sizes = [16, 8], strides = [1, 1]} : vector<16x48xf32> to vector<16x8xf32>
    %c0_207 = arith.constant 0 : index
    %c3 = arith.constant 3 : index
    %561 = vector.load %arg11[%c0_207, %c3] : memref<1x4xf32, #tpu.memory_space<vmem>>, vector<1x1xf32>
    %562 = math.sqrt %561 : vector<1x1xf32>
    %cst_208 = arith.constant -5.000000e-01 : f32
    %563 = vector.broadcast %cst_208 : f32 to vector<1x1xf32>
    %564 = arith.mulf %563, %561 : vector<1x1xf32>
    %565 = arith.mulf %552, %552 : vector<16x4xf32>
    %566 = arith.mulf %553, %553 : vector<16x4xf32>
    %567 = arith.addf %565, %566 : vector<16x4xf32>
    %568 = arith.mulf %554, %554 : vector<16x4xf32>
    %569 = arith.addf %567, %568 : vector<16x4xf32>
    %cst_209 = arith.constant dense<0.000000e+00> : vector<16xf32>
    %570 = vector.multi_reduction <add>, %569, %cst_209 [1] : vector<16x4xf32> to vector<16xf32>
    %571 = vector.shape_cast %570 : vector<16xf32> to vector<16x1xf32>
    %572 = arith.mulf %555, %555 : vector<16x4xf32>
    %573 = arith.mulf %556, %556 : vector<16x4xf32>
    %574 = arith.addf %572, %573 : vector<16x4xf32>
    %575 = arith.mulf %557, %557 : vector<16x4xf32>
    %576 = arith.addf %574, %575 : vector<16x4xf32>
    %cst_210 = arith.constant dense<0.000000e+00> : vector<16xf32>
    %577 = vector.multi_reduction <add>, %576, %cst_210 [1] : vector<16x4xf32> to vector<16xf32>
    %578 = vector.shape_cast %577 : vector<16xf32> to vector<16x1xf32>
    %cst_211 = arith.constant 0.37991783 : f32
    %579 = vector.broadcast %cst_211 : f32 to vector<16x16xf32>
    %580 = arith.mulf %549, %579 : vector<16x16xf32>
    %c0_212 = arith.constant 0 : index
    %c0_213 = arith.constant 0 : index
    %581 = vector.load %arg15[%c0_212, %c0_213] : memref<16x32xf32, #tpu.memory_space<vmem>>, vector<16x16xf32>
    tpu.vector_store %arg15[%c0_212, %c0_213], %580 {strides = array<i32>} : memref<16x32xf32, #tpu.memory_space<vmem>>, vector<16x16xf32>,
    %582 = vector.broadcast %562 : vector<1x1xf32> to vector<16x4xf32>
    %583 = arith.mulf %552, %582 : vector<16x4xf32>
    %c0_214 = arith.constant 0 : index
    %c16_215 = arith.constant 16 : index
    %584 = vector.load %arg15[%c0_214, %c16_215] : memref<16x32xf32, #tpu.memory_space<vmem>>, vector<16x4xf32>
    tpu.vector_store %arg15[%c0_214, %c16_215], %583 {strides = array<i32>} : memref<16x32xf32, #tpu.memory_space<vmem>>, vector<16x4xf32>,
    %585 = vector.broadcast %562 : vector<1x1xf32> to vector<16x4xf32>
    %586 = arith.mulf %553, %585 : vector<16x4xf32>
    %c0_216 = arith.constant 0 : index
    %c20_217 = arith.constant 20 : index
    %587 = vector.load %arg15[%c0_216, %c20_217] : memref<16x32xf32, #tpu.memory_space<vmem>>, vector<16x4xf32>
    tpu.vector_store %arg15[%c0_216, %c20_217], %586 {strides = array<i32>} : memref<16x32xf32, #tpu.memory_space<vmem>>, vector<16x4xf32>,
    %588 = vector.broadcast %562 : vector<1x1xf32> to vector<16x4xf32>
    %589 = arith.mulf %554, %588 : vector<16x4xf32>
    %c0_218 = arith.constant 0 : index
    %c24_219 = arith.constant 24 : index
    %590 = vector.load %arg15[%c0_218, %c24_219] : memref<16x32xf32, #tpu.memory_space<vmem>>, vector<16x4xf32>
    tpu.vector_store %arg15[%c0_218, %c24_219], %589 {strides = array<i32>} : memref<16x32xf32, #tpu.memory_space<vmem>>, vector<16x4xf32>,
    %591 = vector.broadcast %564 : vector<1x1xf32> to vector<16x1xf32>
    %592 = arith.mulf %591, %571 : vector<16x1xf32>
    %c0_220 = arith.constant 0 : index
    %c29_221 = arith.constant 29 : index
    %593 = vector.load %arg15[%c0_220, %c29_221] : memref<16x32xf32, #tpu.memory_space<vmem>>, vector<16x1xf32>
    tpu.vector_store %arg15[%c0_220, %c29_221], %592 {strides = array<i32>} : memref<16x32xf32, #tpu.memory_space<vmem>>, vector<16x1xf32>,
    %cst_222 = arith.constant 0.37991783 : f32
    %594 = vector.broadcast %cst_222 : f32 to vector<16x16xf32>
    %595 = arith.mulf %550, %594 : vector<16x16xf32>
    %c0_223 = arith.constant 0 : index
    %c0_224 = arith.constant 0 : index
    %596 = vector.load %arg16[%c0_223, %c0_224] : memref<16x32xf32, #tpu.memory_space<vmem>>, vector<16x16xf32>
    tpu.vector_store %arg16[%c0_223, %c0_224], %595 {strides = array<i32>} : memref<16x32xf32, #tpu.memory_space<vmem>>, vector<16x16xf32>,
    %597 = vector.broadcast %562 : vector<1x1xf32> to vector<16x4xf32>
    %598 = arith.mulf %555, %597 : vector<16x4xf32>
    %c0_225 = arith.constant 0 : index
    %c16_226 = arith.constant 16 : index
    %599 = vector.load %arg16[%c0_225, %c16_226] : memref<16x32xf32, #tpu.memory_space<vmem>>, vector<16x4xf32>
    tpu.vector_store %arg16[%c0_225, %c16_226], %598 {strides = array<i32>} : memref<16x32xf32, #tpu.memory_space<vmem>>, vector<16x4xf32>,
    %600 = vector.broadcast %562 : vector<1x1xf32> to vector<16x4xf32>
    %601 = arith.mulf %556, %600 : vector<16x4xf32>
    %c0_227 = arith.constant 0 : index
    %c20_228 = arith.constant 20 : index
    %602 = vector.load %arg16[%c0_227, %c20_228] : memref<16x32xf32, #tpu.memory_space<vmem>>, vector<16x4xf32>
    tpu.vector_store %arg16[%c0_227, %c20_228], %601 {strides = array<i32>} : memref<16x32xf32, #tpu.memory_space<vmem>>, vector<16x4xf32>,
    %603 = vector.broadcast %562 : vector<1x1xf32> to vector<16x4xf32>
    %604 = arith.mulf %557, %603 : vector<16x4xf32>
    %c0_229 = arith.constant 0 : index
    %c24_230 = arith.constant 24 : index
    %605 = vector.load %arg16[%c0_229, %c24_230] : memref<16x32xf32, #tpu.memory_space<vmem>>, vector<16x4xf32>
    tpu.vector_store %arg16[%c0_229, %c24_230], %604 {strides = array<i32>} : memref<16x32xf32, #tpu.memory_space<vmem>>, vector<16x4xf32>,
    %606 = vector.broadcast %564 : vector<1x1xf32> to vector<16x1xf32>
    %607 = arith.mulf %606, %578 : vector<16x1xf32>
    %c0_231 = arith.constant 0 : index
    %c28_232 = arith.constant 28 : index
    %608 = vector.load %arg16[%c0_231, %c28_232] : memref<16x32xf32, #tpu.memory_space<vmem>>, vector<16x1xf32>
    tpu.vector_store %arg16[%c0_231, %c28_232], %607 {strides = array<i32>} : memref<16x32xf32, #tpu.memory_space<vmem>>, vector<16x1xf32>,
    %c0_233 = arith.constant 0 : index
    %c0_234 = arith.constant 0 : index
    %609 = vector.load %arg15[%c0_233, %c0_234] : memref<16x32xf32, #tpu.memory_space<vmem>>, vector<16x32xf32>
    %c0_235 = arith.constant 0 : index
    %c0_236 = arith.constant 0 : index
    %610 = vector.load %arg16[%c0_235, %c0_236] : memref<16x32xf32, #tpu.memory_space<vmem>>, vector<16x32xf32>
    %cst_237 = arith.constant dense<0.000000e+00> : vector<16x16xf32>
    %611 = tpu.matmul %609, %610, %cst_237 {dimension_numbers = #tpu.dot_dimension_numbers<[1], [1], [0], [0], [0, 0, 1, 0], [], []>} : vector<16x32xf32>, vector<16x32xf32>, vector<16x16xf32> -> vector<16x16xf32>
    %c3_238 = arith.constant 3 : index
    %c0_239 = arith.constant 0 : index
    %612 = vector.load %arg7[%c3_238, %c0_239] : memref<4x16xf32, #tpu.memory_space<vmem>>, vector<1x16xf32>
    %613 = vector.shape_cast %612 : vector<1x16xf32> to vector<1x1x16xf32>
    %614 = vector.broadcast %613 : vector<1x1x16xf32> to vector<16x16x16xf32>
    %615 = arith.mulf %88, %614 : vector<16x16x16xf32>
    %cst_240 = arith.constant dense<0.000000e+00> : vector<16x16xf32>
    %616 = vector.multi_reduction <add>, %615, %cst_240 [2] : vector<16x16x16xf32> to vector<16x16xf32>
    %c0_241 = arith.constant 0 : index
    %c3_242 = arith.constant 3 : index
    %617 = vector.load %arg8[%c0_241, %c3_242] : memref<1x4xf32, #tpu.memory_space<vmem>>, vector<1x1xf32>
    %618 = vector.broadcast %617 : vector<1x1xf32> to vector<16x16xf32>
    %619 = arith.addf %616, %618 : vector<16x16xf32>
    %cst_243 = arith.constant 0.577350259 : f32
    %620 = vector.broadcast %cst_243 : f32 to vector<16x16xf32>
    %621 = arith.mulf %620, %619 : vector<16x16xf32>
    %622 = arith.addf %611, %621 : vector<16x16xf32>
    %623 = arith.addf %622, %90 : vector<16x16xf32>
    %cst_244 = arith.constant dense<0xFF800000> : vector<16xf32>
    %624 = vector.multi_reduction <maximumf>, %623, %cst_244 [1] : vector<16x16xf32> to vector<16xf32>
    %625 = vector.shape_cast %624 : vector<16xf32> to vector<16x1xf32>
    %626 = vector.broadcast %625 : vector<16x1xf32> to vector<16x16xf32>
    %627 = arith.subf %623, %626 : vector<16x16xf32>
    %628 = math.exp %627 : vector<16x16xf32>
    %cst_245 = arith.constant dense<0.000000e+00> : vector<16xf32>
    %629 = vector.multi_reduction <add>, %628, %cst_245 [1] : vector<16x16xf32> to vector<16xf32>
    %630 = vector.shape_cast %629 : vector<16xf32> to vector<16x1xf32>
    %631 = tpu.reciprocal %630 {approx = true} : vector<16x1xf32> -> vector<16x1xf32>
    %632 = vector.broadcast %631 : vector<16x1xf32> to vector<16x16xf32>
    %633 = arith.mulf %628, %632 : vector<16x16xf32>
    %c0_246 = arith.constant 0 : index
    %c0_247 = arith.constant 0 : index
    %634 = vector.load %arg17[%c0_246, %c0_247] : memref<16x40xf32, #tpu.memory_space<vmem>>, vector<16x16xf32>
    tpu.vector_store %arg17[%c0_246, %c0_247], %551 {strides = array<i32>} : memref<16x40xf32, #tpu.memory_space<vmem>>, vector<16x16xf32>,
    %c0_248 = arith.constant 0 : index
    %c16_249 = arith.constant 16 : index
    %635 = vector.load %arg17[%c0_248, %c16_249] : memref<16x40xf32, #tpu.memory_space<vmem>>, vector<16x8xf32>
    tpu.vector_store %arg17[%c0_248, %c16_249], %558 {strides = array<i32>} : memref<16x40xf32, #tpu.memory_space<vmem>>, vector<16x8xf32>,
    %c0_250 = arith.constant 0 : index
    %c24_251 = arith.constant 24 : index
    %636 = vector.load %arg17[%c0_250, %c24_251] : memref<16x40xf32, #tpu.memory_space<vmem>>, vector<16x8xf32>
    tpu.vector_store %arg17[%c0_250, %c24_251], %559 {strides = array<i32>} : memref<16x40xf32, #tpu.memory_space<vmem>>, vector<16x8xf32>,
    %c0_252 = arith.constant 0 : index
    %c32_253 = arith.constant 32 : index
    %637 = vector.load %arg17[%c0_252, %c32_253] : memref<16x40xf32, #tpu.memory_space<vmem>>, vector<16x8xf32>
    tpu.vector_store %arg17[%c0_252, %c32_253], %560 {strides = array<i32>} : memref<16x40xf32, #tpu.memory_space<vmem>>, vector<16x8xf32>,
    %c0_254 = arith.constant 0 : index
    %c0_255 = arith.constant 0 : index
    %638 = vector.load %arg17[%c0_254, %c0_255] : memref<16x40xf32, #tpu.memory_space<vmem>>, vector<16x40xf32>
    %cst_256 = arith.constant dense<0.000000e+00> : vector<16x40xf32>
    %639 = tpu.matmul %633, %638, %cst_256 {dimension_numbers = #tpu.dot_dimension_numbers<[1], [0], [0], [1], [0, 0, 1, 1], [], []>} : vector<16x16xf32>, vector<16x40xf32>, vector<16x40xf32> -> vector<16x40xf32>
    %640 = vector.extract_strided_slice %639 {offsets = [0, 0], sizes = [16, 16], strides = [1, 1]} : vector<16x40xf32> to vector<16x16xf32>
    %641 = vector.extract_strided_slice %639 {offsets = [0, 16], sizes = [16, 8], strides = [1, 1]} : vector<16x40xf32> to vector<16x8xf32>
    %642 = vector.extract_strided_slice %639 {offsets = [0, 24], sizes = [16, 8], strides = [1, 1]} : vector<16x40xf32> to vector<16x8xf32>
    %643 = vector.extract_strided_slice %639 {offsets = [0, 32], sizes = [16, 8], strides = [1, 1]} : vector<16x40xf32> to vector<16x8xf32>
    %644 = vector.shape_cast %633 : vector<16x16xf32> to vector<16x16x1xf32>
    %645 = vector.broadcast %644 : vector<16x16x1xf32> to vector<16x16x16xf32>
    %646 = arith.mulf %645, %88 : vector<16x16x16xf32>
    %cst_257 = arith.constant dense<0.000000e+00> : vector<16x16xf32>
    %647 = vector.multi_reduction <add>, %646, %cst_257 [1] : vector<16x16x16xf32> to vector<16x16xf32>
    %cst_258 = arith.constant dense<0.000000e+00> : vector<16xf32>
    %648 = vector.multi_reduction <add>, %633, %cst_258 [1] : vector<16x16xf32> to vector<16xf32>
    %649 = vector.shape_cast %648 : vector<16xf32> to vector<16x1xf32>
    %cst_259 = arith.constant dense<0.000000e+00> : vector<16x4xf32>
    %650 = tpu.matmul %647, %91, %cst_259 {dimension_numbers = #tpu.dot_dimension_numbers<[1], [0], [0], [1], [0, 0, 1, 1], [], []>} : vector<16x16xf32>, vector<16x4xf32>, vector<16x4xf32> -> vector<16x4xf32>
    %651 = vector.broadcast %92 : vector<1x4xf32> to vector<16x4xf32>
    %652 = vector.broadcast %649 : vector<16x1xf32> to vector<16x4xf32>
    %653 = arith.mulf %651, %652 : vector<16x4xf32>
    %654 = arith.addf %650, %653 : vector<16x4xf32>
    %655 = vector.broadcast %18 : vector<16x1xf32> to vector<16x8xf32>
    %656 = arith.subf %641, %655 : vector<16x8xf32>
    %657 = vector.broadcast %19 : vector<16x1xf32> to vector<16x8xf32>
    %658 = arith.subf %642, %657 : vector<16x8xf32>
    %659 = vector.broadcast %20 : vector<16x1xf32> to vector<16x8xf32>
    %660 = arith.subf %643, %659 : vector<16x8xf32>
    %661 = vector.broadcast %9 : vector<16x1xf32> to vector<16x8xf32>
    %662 = arith.mulf %661, %656 : vector<16x8xf32>
    %663 = vector.broadcast %12 : vector<16x1xf32> to vector<16x8xf32>
    %664 = arith.mulf %663, %658 : vector<16x8xf32>
    %665 = arith.addf %662, %664 : vector<16x8xf32>
    %666 = vector.broadcast %15 : vector<16x1xf32> to vector<16x8xf32>
    %667 = arith.mulf %666, %660 : vector<16x8xf32>
    %668 = arith.addf %665, %667 : vector<16x8xf32>
    %669 = vector.broadcast %10 : vector<16x1xf32> to vector<16x8xf32>
    %670 = arith.mulf %669, %656 : vector<16x8xf32>
    %671 = vector.broadcast %13 : vector<16x1xf32> to vector<16x8xf32>
    %672 = arith.mulf %671, %658 : vector<16x8xf32>
    %673 = arith.addf %670, %672 : vector<16x8xf32>
    %674 = vector.broadcast %16 : vector<16x1xf32> to vector<16x8xf32>
    %675 = arith.mulf %674, %660 : vector<16x8xf32>
    %676 = arith.addf %673, %675 : vector<16x8xf32>
    %677 = vector.broadcast %11 : vector<16x1xf32> to vector<16x8xf32>
    %678 = arith.mulf %677, %656 : vector<16x8xf32>
    %679 = vector.broadcast %14 : vector<16x1xf32> to vector<16x8xf32>
    %680 = arith.mulf %679, %658 : vector<16x8xf32>
    %681 = arith.addf %678, %680 : vector<16x8xf32>
    %682 = vector.broadcast %17 : vector<16x1xf32> to vector<16x8xf32>
    %683 = arith.mulf %682, %660 : vector<16x8xf32>
    %684 = arith.addf %681, %683 : vector<16x8xf32>
    %685 = arith.mulf %668, %668 : vector<16x8xf32>
    %686 = arith.mulf %676, %676 : vector<16x8xf32>
    %687 = arith.addf %685, %686 : vector<16x8xf32>
    %688 = arith.mulf %684, %684 : vector<16x8xf32>
    %689 = arith.addf %687, %688 : vector<16x8xf32>
    %cst_260 = arith.constant 9.99999993E-9 : f32
    %690 = vector.broadcast %cst_260 : f32 to vector<16x8xf32>
    %691 = arith.addf %689, %690 : vector<16x8xf32>
    %692 = math.sqrt %691 : vector<16x8xf32>
    %c0_261 = arith.constant 0 : index
    %c48 = arith.constant 48 : index
    %693 = vector.load %arg18[%c0_261, %c48] : memref<16x208xf32, #tpu.memory_space<vmem>>, vector<16x16xf32>
    tpu.vector_store %arg18[%c0_261, %c48], %640 {strides = array<i32>} : memref<16x208xf32, #tpu.memory_space<vmem>>, vector<16x16xf32>,
    %c0_262 = arith.constant 0 : index
    %c88 = arith.constant 88 : index
    %694 = vector.load %arg18[%c0_262, %c88] : memref<16x208xf32, #tpu.memory_space<vmem>>, vector<16x8xf32>
    tpu.vector_store %arg18[%c0_262, %c88], %668 {strides = array<i32>} : memref<16x208xf32, #tpu.memory_space<vmem>>, vector<16x8xf32>,
    %c0_263 = arith.constant 0 : index
    %c120 = arith.constant 120 : index
    %695 = vector.load %arg18[%c0_263, %c120] : memref<16x208xf32, #tpu.memory_space<vmem>>, vector<16x8xf32>
    tpu.vector_store %arg18[%c0_263, %c120], %676 {strides = array<i32>} : memref<16x208xf32, #tpu.memory_space<vmem>>, vector<16x8xf32>,
    %c0_264 = arith.constant 0 : index
    %c152 = arith.constant 152 : index
    %696 = vector.load %arg18[%c0_264, %c152] : memref<16x208xf32, #tpu.memory_space<vmem>>, vector<16x8xf32>
    tpu.vector_store %arg18[%c0_264, %c152], %684 {strides = array<i32>} : memref<16x208xf32, #tpu.memory_space<vmem>>, vector<16x8xf32>,
    %c0_265 = arith.constant 0 : index
    %c184 = arith.constant 184 : index
    %697 = vector.load %arg18[%c0_265, %c184] : memref<16x208xf32, #tpu.memory_space<vmem>>, vector<16x8xf32>
    tpu.vector_store %arg18[%c0_265, %c184], %692 {strides = array<i32>} : memref<16x208xf32, #tpu.memory_space<vmem>>, vector<16x8xf32>,
    %c0_266 = arith.constant 0 : index
    %c204 = arith.constant 204 : index
    %698 = vector.load %arg18[%c0_266, %c204] : memref<16x208xf32, #tpu.memory_space<vmem>>, vector<16x4xf32>
    tpu.vector_store %arg18[%c0_266, %c204], %654 {strides = array<i32>} : memref<16x208xf32, #tpu.memory_space<vmem>>, vector<16x4xf32>,
    %c0_267 = arith.constant 0 : index
    %c0_268 = arith.constant 0 : index
    %699 = vector.load %arg18[%c0_267, %c0_268] : memref<16x208xf32, #tpu.memory_space<vmem>>, vector<16x208xf32>
    %c0_269 = arith.constant 0 : index
    %c0_270 = arith.constant 0 : index
    %700 = vector.load %arg12[%c0_269, %c0_270] : memref<208x32xf32, #tpu.memory_space<vmem>>, vector<208x32xf32>
    %cst_271 = arith.constant dense<0.000000e+00> : vector<16x32xf32>
    %701 = tpu.matmul %699, %700, %cst_271 {dimension_numbers = #tpu.dot_dimension_numbers<[1], [0], [0], [1], [0, 0, 1, 1], [], []>} : vector<16x208xf32>, vector<208x32xf32>, vector<16x32xf32> -> vector<16x32xf32>
    %c0_272 = arith.constant 0 : index
    %c0_273 = arith.constant 0 : index
    %702 = vector.load %arg13[%c0_272, %c0_273] : memref<1x32xf32, #tpu.memory_space<vmem>>, vector<1x32xf32>
    %703 = vector.broadcast %702 : vector<1x32xf32> to vector<16x32xf32>
    %704 = arith.addf %701, %703 : vector<16x32xf32>
    %c0_274 = arith.constant 0 : index
    %c0_275 = arith.constant 0 : index
    %c0_276 = arith.constant 0 : index
    %705 = vector.load %arg14[%c0_274, %c0_275, %c0_276] : memref<1x16x32xf32, #tpu.memory_space<vmem>>, vector<1x16x32xf32>
    %706 = vector.shape_cast %705 : vector<1x16x32xf32> to vector<16x32xf32>
    %707 = vector.shape_cast %704 : vector<16x32xf32> to vector<1x16x32xf32>
    tpu.vector_store %arg14[%c0_274, %c0_275, %c0_276], %707 {strides = array<i32>} : memref<1x16x32xf32, #tpu.memory_space<vmem>>, vector<1x16x32xf32>,
    return
  }
  func.func @transform_0(%arg0: i32) -> (i32, i32, i32) {
    %c0_i32 = arith.constant 0 : i32
    %c0_i32_0 = arith.constant 0 : i32
    %c0_i32_1 = arith.constant 0 : i32
    return %arg0, %c0_i32, %c0_i32_0 : i32, i32, i32
  }
  func.func @transform_1(%arg0: i32) -> (i32, i32, i32, i32) {
    %c0_i32 = arith.constant 0 : i32
    %c0_i32_0 = arith.constant 0 : i32
    %c0_i32_1 = arith.constant 0 : i32
    %c0_i32_2 = arith.constant 0 : i32
    return %arg0, %c0_i32, %c0_i32_0, %c0_i32_1 : i32, i32, i32, i32
  }
  func.func @transform_2(%arg0: i32) -> (i32, i32, i32) {
    %c0_i32 = arith.constant 0 : i32
    %c0_i32_0 = arith.constant 0 : i32
    %c0_i32_1 = arith.constant 0 : i32
    return %arg0, %c0_i32, %c0_i32_0 : i32, i32, i32
  }
  func.func @transform_3(%arg0: i32) -> (i32, i32, i32) {
    %c0_i32 = arith.constant 0 : i32
    %c0_i32_0 = arith.constant 0 : i32
    %c0_i32_1 = arith.constant 0 : i32
    return %arg0, %c0_i32, %c0_i32_0 : i32, i32, i32
  }
  func.func @transform_4(%arg0: i32) -> (i32, i32) {
    %c0_i32 = arith.constant 0 : i32
    %c0_i32_0 = arith.constant 0 : i32
    %c0_i32_1 = arith.constant 0 : i32
    return %c0_i32, %c0_i32_0 : i32, i32
  }
  func.func @transform_5(%arg0: i32) -> (i32, i32) {
    %c0_i32 = arith.constant 0 : i32
    %c0_i32_0 = arith.constant 0 : i32
    %c0_i32_1 = arith.constant 0 : i32
    return %c0_i32, %c0_i32_0 : i32, i32
  }
  func.func @transform_6(%arg0: i32) -> (i32, i32) {
    %c0_i32 = arith.constant 0 : i32
    %c0_i32_0 = arith.constant 0 : i32
    %c0_i32_1 = arith.constant 0 : i32
    return %c0_i32, %c0_i32_0 : i32, i32
  }
  func.func @transform_7(%arg0: i32) -> (i32, i32) {
    %c0_i32 = arith.constant 0 : i32
    %c0_i32_0 = arith.constant 0 : i32
    %c0_i32_1 = arith.constant 0 : i32
    return %c0_i32, %c0_i32_0 : i32, i32
  }
  func.func @transform_8(%arg0: i32) -> (i32, i32) {
    %c0_i32 = arith.constant 0 : i32
    %c0_i32_0 = arith.constant 0 : i32
    %c0_i32_1 = arith.constant 0 : i32
    return %c0_i32, %c0_i32_0 : i32, i32
  }
  func.func @transform_9(%arg0: i32) -> (i32, i32) {
    %c0_i32 = arith.constant 0 : i32
    %c0_i32_0 = arith.constant 0 : i32
    %c0_i32_1 = arith.constant 0 : i32
    return %c0_i32, %c0_i32_0 : i32, i32
  }
  func.func @transform_10(%arg0: i32) -> (i32, i32) {
    %c0_i32 = arith.constant 0 : i32
    %c0_i32_0 = arith.constant 0 : i32
    %c0_i32_1 = arith.constant 0 : i32
    return %c0_i32, %c0_i32_0 : i32, i32
  }
  func.func @transform_11(%arg0: i32) -> (i32, i32) {
    %c0_i32 = arith.constant 0 : i32
    %c0_i32_0 = arith.constant 0 : i32
    %c0_i32_1 = arith.constant 0 : i32
    return %c0_i32, %c0_i32_0 : i32, i32
  }
  func.func @transform_12(%arg0: i32) -> (i32, i32) {
    %c0_i32 = arith.constant 0 : i32
    %c0_i32_0 = arith.constant 0 : i32
    %c0_i32_1 = arith.constant 0 : i32
    return %c0_i32, %c0_i32_0 : i32, i32
  }
  func.func @transform_13(%arg0: i32) -> (i32, i32, i32) {
    %c0_i32 = arith.constant 0 : i32
    %c0_i32_0 = arith.constant 0 : i32
    %c0_i32_1 = arith.constant 0 : i32
    return %arg0, %c0_i32, %c0_i32_0 : i32, i32, i32
  }
}

</mosaic_0001>

<bundles_post_ra>
// kernel: ipa_forward_pallas.1
= control target key start
LH: loop header
LB: loop body
LE: loop exit
PB: predicated region body
PF: predicated region fallthrough
CT: control target
= control target key end

     0   :  { %s12352_s0 = inlined_call_operand.vmem [shape: f32[2,16,32], index: 0, kind: input, shape index: {}]   ;;  %s12353_s1 = inlined_call_operand.vmem [shape: f32[2,16,16,16], index: 1, kind: input, shape index: {}]   ;;  %s12354_s2 = inlined_call_operand.vmem [shape: f32[2,16,12], index: 2, kind: input, shape index: {}]   ;;  %s12355_s3 = inlined_call_operand.vmem [shape: f32[2,16,16], index: 3, kind: input, shape index: {}]   ;;  %s12356_s4 = inlined_call_operand.hbm [shape: f32[32,384], index: 4, kind: input, shape index: {}]   ;;  %s12357_s5 = inlined_call_operand.hbm [shape: f32[1,384], index: 5, kind: input, shape index: {}]   ;;  %s12358_s6 = inlined_call_operand.vmem [shape: f32[4,16], index: 6, kind: input, shape index: {}]   ;;  %s12359_s7 = inlined_call_operand.vmem [shape: f32[1,4], index: 7, kind: input, shape index: {}]   ;;  %s12360_s8 = inlined_call_operand.vmem [shape: f32[16,4], index: 8, kind: input, shape index: {}]   ;;  %s12361_s9 = inlined_call_operand.hbm [shape: f32[1,4], index: 9, kind: input, shape index: {}]   ;;  %s12362_s10 = inlined_call_operand.hbm [shape: f32[1,4], index: 10, kind: input, shape index: {}]   ;;  %s12363_s11 = inlined_call_operand.vmem [shape: f32[208,32], index: 11, kind: input, shape index: {}]   ;;  %s12364_s12 = inlined_call_operand.hbm [shape: f32[1,32], index: 12, kind: input, shape index: {}]   ;;  %s12365_s13 = inlined_call_operand.hbm [shape: f32[2,16,32], index: 13, kind: output, shape index: {}]  }
   0x1   :  { %12532 = sst [smem:[#allocation115_spill]] %s12357_s5 }
   0x2   :  { %12533 = sst [smem:[#allocation116_spill]] %s12362_s10 }
   0x3   :  { %12534 = sst [smem:[#allocation117_spill]] %s12365_s13 }
   0x4   :  { %18 = vsyncpa [#allocation7], 0 }
   0x5   :  { %19 = vsyncpa [#allocation10], 0 }
   0x6   :  { %20 = vsyncpa [#allocation13], 0 }
   0x7   :  { %21 = vsyncpa [#allocation8], 0 }
   0x8   :  { %23 = vsyncpa [#allocation8 + $0x1], 0  ;;  %s8160_s25 = smov 0   ;;  %s8162_s26 = smov 0  }
   0x9   :  { %s8164_s27 = smov 0   ;;  %s8166_s28 = smov 0  }
   0xa LB: > { %12535 = sst [smem:[#allocation20_spill]] %s8020_s25  ;;  %s8181_s29 = sadd.s32 4294967295, %s8032_s28   ;;  %s8032_s28 = sphi %s8166_s28, %s12885_s28   ;;  %s8028_s27 = sphi %s8164_s27, %s12888_s27   ;;  %s8024_s26 = sphi %s8162_s26, %s12887_s26   ;;  %s8020_s25 = sphi %s8160_s25, %s12886_s25  }
   0xb   : > { %12536 = sst [smem:[#allocation21_spill]] %s8024_s26  ;;  %s7145_s30 = sadd.s32 4294967294, %s8032_s28  }
   0xc   : > { %12537 = sst [smem:[#allocation22_spill]] %s8028_s27  ;;  %s8185_s14 = sadd.s32 1, %s8032_s28  }
   0xd   : > { %12538 = sst [smem:[#allocation23_spill]] %s8032_s28  ;;  %s329_s15 = sadd.s32 1, %s8028_s27 }
   0xe   : > { %12539 = sst [smem:[#allocation24_spill]] %s8185_s14  ;;  %s326_s16 = ssub.s32 %s8032_s28, %s8185_s14 }
   0xf   : > { %p339_p0 = scmp.ne.s32.totalorder %s8028_s27, %s8024_s26  ;;  %p327_p1 = scmp.eq.s32.totalorder %s326_s16, 0 }
  0x10   : > { %p340_p2 = scmp.eq.s32.totalorder %s8181_s29, 1  ;;  %p345_p3 = scmp.ne.s32.totalorder %s8024_s26, %s8020_s25 }
  0x11   : > { %p346_p4 = scmp.eq.s32.totalorder %s7145_s30, 1  ;;  %p7146_p7 = scmp.ge.s32.totalorder %s8032_s28, 1 }
  0x12   : > { %s8196_s17 = scalar_select %p327_p1, %s8028_s27, %s329_s15  }
  0x13   : > { %p8198_p5 = por %p340_p2, %p339_p0  ;;  %p8202_p6 = por %p346_p4, %p345_p3 }
  0x14   : > { %12540 = sst [smem:[#allocation25_spill]] %s8196_s17  ;;  %p353_p8 = scmp.lt.s32.totalorder %s8032_s28, 3 }
  0x15   : > { %s12541_s18 = scalar_select %p8198_p5, 1, 0 }
  0x16   : > { %s12543_s19 = scalar_select %p8202_p6, 1, 0 }
  0x17   : > { %12542 = sst [smem:[#allocation26_spill]] %s12541_s18  ;;  %p12371_p9 = scmp.eq.s32.totalorder %s8181_s29, 0 }
  0x18   : > { %12544 = sst [smem:[#allocation27_spill]] %s12543_s19  ;;  %p8209_p10 = pnand %p7146_p7, %p353_p8 }
  0x19   : > { %s8034_s21 = smov [#allocation9]   ;;  %s8035_s23 = smov [#allocation12]  }
  0x1a   : > { %s12545_s20 = scalar_select %p8209_p10, 1, 0 }
  0x1b   : > { %s379_s22 = sshll.u32 %s8034_s21, 4  ;;  %p7508_p11 = pneg %p8209_p10  ;;  %s380_s22 = int_to_ptr.vmem [resolvable:$true] %s379_s22 }
  0x1c   : > { %s410_s24 = sshll.u32 %s8035_s23, 4  ;;  %s8036_s15 = smov [#allocation6]   ;;  %s8221_s24 = int_to_ptr.vmem [resolvable:$true] %s410_s24 }
  0x1d   : > { %p8217_p12 = pnand %p12371_p9, %p7508_p11  ;;  %s365_s16 = sshll.u32 %s8036_s15, 4  ;;  %s8223_s16 = int_to_ptr.vmem [resolvable:$true] %s365_s16 }
  0x1e   : > { %s12547_s5 = sld [smem:[#allocation115_spill]] }
  0x1f   : > { %p8233_p0 = pneg %p8217_p12 }
  0x24   : > { %s7818_s21 = scalar_lea.hbm %s12547_s5, 48 }
  0x25   : > { %p7819_p13 = scmp.ne.s32.totalorder %s12547_s5, %s7818_s21  ;;  %p7825_p3 = scmp.lt.u32.totalorder %s7818_s21, %s12547_s5 }
  0x27   : > { %p7821_p1 = pnand %p8233_p0, %p7819_p13 }
  0x29   : > { %p7822_p2 = pneg %p7821_p1 }
  0x2b   : > { %p7827_p4 = pnand %p7825_p3, %p7822_p2 }
  0x2d   : > { %7830 = shalt.err (!%p7827_p4)
}
  0x2e   : > { %s7831_s27 = scalar_lea.vmem %s380_s22, 48  ;;  %s7838_s14 = scalar_lea.vmem %s380_s22, 64 }
  0x2f   : > { %p7832_p7 = scmp.ne.s32.totalorder %s380_s22, %s7831_s27  ;;  %p7839_p9 = scmp.lt.s32.totalorder %s380_s22, %s380_s22 }
  0x30   : > { %p7840_p6 = scmp.lt.s32.totalorder %s7838_s14, %s7831_s27 }
  0x31   : > { %p7834_p8 = pnand %p7832_p7, %p8233_p0 }
  0x32   : > { %p7841_p5 = por %p7840_p6, %p7839_p9 }
  0x33   : > { %p7835_p11 = pneg %p7834_p8 }
  0x35   : > { %p7842_p10 = pnand %p7841_p5, %p7835_p11 }
  0x37   : > { %7845 = shalt.err (!%p7842_p10)
}
  0x38   : > { %7514 = dma.hbm_to_vmem [thread:$0]  (!%p8217_p12), %s12547_s5, 48, %s380_s22, [#allocation10]  }
  0x39   : > { %s12549_s10 = sld [smem:[#allocation116_spill]] }
  0x3f   : > { %s7846_s15 = scalar_lea.hbm %s12549_s10, 16 }
  0x40   : > { %p7847_p13 = scmp.ne.s32.totalorder %s12549_s10, %s7846_s15  ;;  %p7853_p5 = scmp.lt.u32.totalorder %s7846_s15, %s12549_s10 }
  0x42   : > { %p7849_p1 = pnand %p7847_p13, %p8233_p0 }
  0x44   : > { %p7850_p6 = pneg %p7849_p1 }
  0x46   : > { %p7855_p9 = pnand %p7853_p5, %p7850_p6 }
  0x48   : > { %7858 = shalt.err (!%p7855_p9)
}
  0x49   : > { %s7859_s22 = scalar_lea.vmem %s8221_s24, 16  ;;  %s7866_s13 = scalar_lea.vmem %s8221_s24, 32 }
  0x4a   : > { %p7860_p10 = scmp.ne.s32.totalorder %s8221_s24, %s7859_s22  ;;  %p7867_p4 = scmp.lt.s32.totalorder %s8221_s24, %s8221_s24 }
  0x4b   : > { %p7868_p7 = scmp.lt.s32.totalorder %s7866_s13, %s7859_s22 }
  0x4c   : > { %p7862_p2 = pnand %p7860_p10, %p8233_p0 }
  0x4d   : > { %p7869_p8 = por %p7868_p7, %p7867_p4 }
  0x4e   : > { %p7863_p3 = pneg %p7862_p2 }
  0x50   : > { %p7870_p11 = pnand %p7869_p8, %p7863_p3 }
  0x52   : > { %7873 = shalt.err (!%p7870_p11)
}
  0x53   : > { %7520 = dma.hbm_to_vmem [thread:$0]  (!%p8217_p12), %s12549_s10, 16, %s8221_s24, [#allocation13]  }
  0x54   : > { %s7874_s21 = scalar_lea.hbm %s12356_s4, 1536 }
  0x55   : > { %p7875_p13 = scmp.ne.s32.totalorder %s12356_s4, %s7874_s21  ;;  %p7881_p5 = scmp.lt.u32.totalorder %s7874_s21, %s12356_s4 }
  0x57   : > { %p7877_p1 = pnand %p7875_p13, %p8233_p0 }
  0x59   : > { %p7878_p6 = pneg %p7877_p1 }
  0x5b   : > { %p7883_p9 = pnand %p7881_p5, %p7878_p6 }
  0x5d   : > { %7886 = shalt.err (!%p7883_p9)
}
  0x5e   : > { %s7887_s24 = scalar_lea.vmem %s8223_s16, 1536  ;;  %p7895_p4 = scmp.lt.s32.totalorder %s8223_s16, %s8223_s16 }
  0x5f   : > { %p7888_p10 = scmp.ne.s32.totalorder %s8223_s16, %s7887_s24  ;;  %p7896_p7 = scmp.lt.s32.totalorder %s7887_s24, %s7887_s24 }
  0x61   : > { %p7890_p2 = pnand %p7888_p10, %p8233_p0  ;;  %p7897_p8 = por %p7896_p7, %p7895_p4 }
  0x63   : > { %p7891_p3 = pneg %p7890_p2 }
  0x65   : > { %p7898_p11 = pnand %p7897_p8, %p7891_p3 }
  0x67   : > { %7901 = shalt.err (!%p7898_p11)
}
  0x68   : > { %s8037_s13 = smov 384   ;;  %s8038_s28 = smov 24  }
  0x69   : > { %7511 = dma.hbm_to_vmem [thread:$0]  (!%p8217_p12), %s12356_s4, 1536, %s8223_s16, [#allocation7], %s8037_s13, %s8037_s13, %s8038_s28  }
  0x6a   : > { %s8039_s25 = smov [#allocation11]   ;;  %s8040_s15 = smov [#allocation14]  }
  0x6b   : > { %s399_s21 = sshll.u32 %s8039_s25, 4  ;;  %s424_s27 = sshll.u32 %s8040_s15, 4  ;;  %s400_s21 = int_to_ptr.vmem [resolvable:$true] %s399_s21  ;;  %s425_s27 = int_to_ptr.vmem [resolvable:$true] %s424_s27 }
  0x6c   : > { %s7902_s24 = scalar_lea.hbm %s12361_s9, 16 }
  0x6d   : > { %p7903_p13 = scmp.ne.s32.totalorder %s12361_s9, %s7902_s24  ;;  %p7909_p5 = scmp.lt.u32.totalorder %s7902_s24, %s12361_s9 }
  0x6f   : > { %p7905_p1 = pnand %p7903_p13, %p8233_p0 }
  0x71   : > { %p7906_p6 = pneg %p7905_p1 }
  0x73   : > { %p7911_p9 = pnand %p7909_p5, %p7906_p6 }
  0x75   : > { %7914 = shalt.err (!%p7911_p9)
}
  0x76   : > { %s7915_s16 = scalar_lea.vmem %s400_s21, 16  ;;  %s7922_s13 = scalar_lea.vmem %s400_s21, 32 }
  0x77   : > { %p7916_p10 = scmp.ne.s32.totalorder %s400_s21, %s7915_s16  ;;  %p7923_p4 = scmp.lt.s32.totalorder %s400_s21, %s400_s21 }
  0x78   : > { %p7924_p7 = scmp.lt.s32.totalorder %s7922_s13, %s7915_s16 }
  0x79   : > { %p7918_p2 = pnand %p7916_p10, %p8233_p0 }
  0x7a   : > { %p7925_p8 = por %p7924_p7, %p7923_p4 }
  0x7b   : > { %p7919_p3 = pneg %p7918_p2 }
  0x7d   : > { %p7926_p11 = pnand %p7925_p8, %p7919_p3 }
  0x7f   : > { %7929 = shalt.err (!%p7926_p11)
}
  0x80   : > { %7517 = dma.hbm_to_vmem [thread:$0]  (!%p8217_p12), %s12361_s9, 16, %s400_s21, [#allocation10]  }
  0x81   : > { %s7930_s28 = scalar_lea.hbm %s12364_s12, 16 }
  0x82   : > { %p7931_p13 = scmp.ne.s32.totalorder %s12364_s12, %s7930_s28  ;;  %p7937_p5 = scmp.lt.u32.totalorder %s7930_s28, %s12364_s12 }
  0x84   : > { %p7933_p1 = pnand %p7931_p13, %p8233_p0 }
  0x86   : > { %p7934_p6 = pneg %p7933_p1 }
  0x88   : > { %p7939_p9 = pnand %p7937_p5, %p7934_p6 }
  0x8a   : > { %7942 = shalt.err (!%p7939_p9)
}
  0x8b   : > { %s7943_s14 = scalar_lea.vmem %s425_s27, 16  ;;  %s7950_s21 = scalar_lea.vmem %s425_s27, 32 }
  0x8c   : > { %p7944_p10 = scmp.ne.s32.totalorder %s425_s27, %s7943_s14  ;;  %p7951_p4 = scmp.lt.s32.totalorder %s425_s27, %s425_s27 }
  0x8d   : > { %p7952_p7 = scmp.lt.s32.totalorder %s7950_s21, %s7943_s14 }
  0x8e   : > { %p7946_p2 = pnand %p7944_p10, %p8233_p0 }
  0x8f   : > { %p7953_p8 = por %p7952_p7, %p7951_p4 }
  0x90   : > { %p7947_p3 = pneg %p7946_p2 }
  0x92   : > { %p7954_p11 = pnand %p7953_p8, %p7947_p3 }
  0x94   : > { %7957 = shalt.err (!%p7954_p11)
}
  0x95   : > { %7523 = dma.hbm_to_vmem [thread:$0]  (!%p8217_p12), %s12364_s12, 16, %s425_s27, [#allocation13]  }
  0x96   : > { %p12550_p13 = scmp.ne.s32.totalorder %s12545_s20, 0 }
  0x98   : > { %469 = sbr.rel (%p12550_p13) target bundleno = 4010 (0xfaa), region = 72 }
  0x9f   : > { %p12551_p1 = scmp.eq.s32.totalorder %s8181_s29, 0 }
  0xa1   : > { %8003 = dma.done.wait (%p12551_p1), [#allocation7], 1536   ;;  %p12552_p0 = pmov %p12551_p1 }
  0xa3   : > { %8005 = vsyncadd (%p12552_p0), [#allocation7], 4294965760  ;;  %p12553_p6 = pmov %p12552_p0 }
  0xa4   : > { %p12554_p5 = pmov %p12552_p0 }
  0xa5   : > { %8007 = dma.done.wait (%p12553_p6), [#allocation10], 64  }
  0xa6   : > { %8009 = vsyncadd (%p12554_p5), [#allocation10], 4294967232  ;;  %p12555_p9 = pmov %p12552_p0 }
  0xa7   : > { %p12556_p12 = pmov %p12552_p0 }
  0xa8   : > { %8011 = dma.done.wait (%p12555_p9), [#allocation13], 32  }
  0xa9   : > { %8013 = vsyncadd (%p12556_p12), [#allocation13], 4294967264  ;;  %p544_p10 = scmp.lt.s32.totalorder %s8181_s29, 1  ;;  %v8041_v0 = vmov 0.0   ;;  %v8042_v1 = vmov 4   ;;  %v12380_v2 = vmov 1   ;;  %v12379_v36 = vlaneseq }
  0xaa   : > { %666 = vmatprep.mubr.f32.mxu1 %v8041_v0  ;;  %7627 = vset.pattern.permute.xlu1 %v8042_v1  ;;  %v567_v3 = vld [vmem:[#allocation6 + $0x8] sm:$0xff]  ;;  %v570_v4 = vld [vmem:[#allocation6 + $0x20] sm:$0xff]  ;;  %v569_v7 = vld [vmem:[#allocation6 + $0x18] sm:$0xff]  ;;  %vm595_vm0 = vcmask 261120   ;;  %v12383_v25 = vmov 2   ;;  %v8045_v26 = vmov 5  }
  0xab   : > { %s8349_s20 = scalar_select %p544_p10, %s8181_s29, 1  ;;  %7626 = vset.pattern.permute.xlu0 %v12380_v2  ;;  %v566_v5 = vld [vmem:[#allocation6] sm:$0xff]  ;;  %v7375_v6 = vpack.c.bf16 %v570_v4, %v567_v3  ;;  %v573_v8 = vld [vmem:[#allocation6 + $0x38] sm:$0xff]  ;;  %v576_v9 = vld [vmem:[#allocation6 + $0x50] sm:$0xff]  ;;  %v8046_v27 = vmov 7   ;;  %v8047_v28 = vmov 8  }
  0xac   : > { %v7377_v10 = vpack.c.bf16 %v569_v7, %v566_v5  ;;  %v7379_v11 = vpack.c.bf16 %v576_v9, %v573_v8  ;;  %v572_v12 = vld [vmem:[#allocation6 + $0x30] sm:$0xff]  ;;  %v575_v13 = vld [vmem:[#allocation6 + $0x48] sm:$0xff]  ;;  %v574_v20 = vld [vmem:[#allocation6 + $0x40] sm:$0xff]  ;;  %v8048_v29 = vmov 6   ;;  %v8049_v30 = vmov 9   ;;  %s8055_s26 = smov 112  }
  0xad   : > { %s8353_s30 = sshll.u32 %s8349_s20, 4  ;;  %7376 = vmatprep.subr.bf16.mxu1 %v7375_v6  ;;  %v568_v15 = vld [vmem:[#allocation6 + $0x10] sm:$0xff]  ;;  %v7381_v16 = vpack.c.bf16 %v575_v13, %v572_v12  ;;  %v571_v17 = vld [vmem:[#allocation6 + $0x28] sm:$0xff]  ;;  %v577_v21 = vld [vmem:[#allocation6 + $0x58] sm:$0xff]  ;;  %v8050_v31 = vmov 0   ;;  %v8051_v32 = vmov 11  }
  0xae   : > { %s558_s16 = scalar_lea.vmem %s12354_s2, %s8353_s30  ;;  %7378 = vmatpush1.bf16.msra.mxu1 %v7377_v10  ;;  %s548_s10 = scalar_lea.vmem %s12352_s0, %s8353_s30  ;;  %v7383_v19 = vpack.c.bf16 %v571_v17, %v568_v15  ;;  %v7387_v23 = vpack.c.bf16 %v577_v21, %v574_v20  ;;  %v12381_v33 = vmov 3   ;;  %v8053_v34 = vmov 10   ;;  %v578_v41 = vld [vmem:[#allocation9] sm:$0x7]  ;;  %v8494_v17 = vld [vmem:[#allocation12] sm:$0x1] }
  0xaf   : > { %v8359_v14 = vld [vmem:[%s558_s16] sm:$0xff]  ;;  %7380 = vmatprep.subr.bf16.mxu1 %v7379_v11  ;;  %v8366_v18 = vld [vmem:[%s558_s16 + $0x8] sm:$0xff]  ;;  %vm1083_vm1 = vcmask 261360   ;;  %vm1077_vm2 = vcmask 236768   ;;  %v8054_v35 = vmov 1.0   ;;  %v8410_v38 = vshrl.u32 %v12379_v36, 7 }
  0xb0   : > { %829 = vperm.xlu1 %7627, %v8359_v14   ;;  %769 = vperm.xlu0 %7626, %v8359_v14   ;;  %v564_v22 = vld [vmem:[%s548_s10] sm:$0xff]  ;;  %v565_v24 = vld [vmem:[%s548_s10 + $0x8] sm:$0xff]  ;;  %1078 = vst.msk [vmem:[#allocation2] sm:$0xff] %vm1077_vm2, %v8054_v35  ;;  %1079 = vst.msk [vmem:[#allocation2 + $0x8] sm:$0xff] %vm1077_vm2, %v8054_v35  ;;  %vm1148_vm3 = vcmask 130048   ;;  %s12450_s18 = smov 96   ;;  %7652 = vrsqrt.f32 %v8494_v17 }
  0xb1   : > { %1084 = vst.msk [vmem:[#allocation2] sm:$0xff] %vm1083_vm1, %v8041_v0  ;;  %1085 = vst.msk [vmem:[#allocation2 + $0x8] sm:$0xff] %vm1083_vm1, %v8041_v0  ;;  %v8413_v39 = vsub.s32 0, %v8410_v38  ;;  %v8418_v42 = vsub.s32 1, %v8410_v38  ;;  %v8440_v56 = vsub.s32 2, %v8410_v38  ;;  %s8057_s28 = smov 80  }
  0xb2   : > { %7382 = vmatpush1.bf16.msra.mxu1 %v7381_v16  ;;  %12558 = vst [vmem:[#allocation29_spill] sm:$0xff] %v8410_v38  ;;  %s8058_s17 = smov 32   ;;  %vm1080_vm4 = vcmask 244968   ;;  %vm1091_vm5 = vcmp.eq.f32.partialorder %v8494_v17, inf  ;;  %vm1093_vm6 = vcmp.eq.f32.partialorder %v8494_v17, 0.0  ;;  %s8059_s19 = smov 64  }
  0xb3   : > { %7384 = vmatprep.subr.bf16.mxu1 %v7383_v19  ;;  %12559 = vst [vmem:[#allocation30_spill] sm:$0xff] %v8413_v39  ;;  %12561 = vst [vmem:[#allocation32_spill] sm:$0xff] %v8418_v42  ;;  %v583_v44 = vrot.slane %v578_v41, %v8413_v39  ;;  %v587_v45 = vrot.slane %v578_v41, %v8418_v42  ;;  %v591_v63 = vrot.slane %v578_v41, %v8440_v56  ;;  %s8060_s25 = smov 84   ;;  %s12446_s15 = smov 88   ;;  %vm1115_vm7 = vcmask 31744  }
  0xb4   : > { %833 = vperm.xlu1 %7627, %v8366_v18   ;;  %773 = vperm.xlu0 %7626, %v8366_v18   ;;  %12567 = vst [vmem:[#allocation38_spill] sm:$0xff] %v8440_v56  ;;  %1081 = vst.msk [vmem:[#allocation3] sm:$0xff] %vm1080_vm4, %v8054_v35  ;;  %s8062_s14 = smov 36   ;;  %s12423_s21 = smov 40   ;;  %vm1170_vm8 = vcmask 162944   ;;  %vm1183_vm9 = vcmask 195744  }
  0xb5   : > { %7168 = vmatmul.mubr.msk.f32.vlgmr.msra.gmra.mrb[0].mxu1 %vm595_vm0, %v564_v22  ;;  %1082 = vst.msk [vmem:[#allocation3 + $0x8] sm:$0xff] %vm1080_vm4, %v8054_v35  ;;  %s8064_s22 = smov 16   ;;  %s7222_s24 = sshll.u32 %s8349_s20, 8  ;;  %vm1196_vm10 = vcmask 228544   ;;  %vm12473_vm11 = vcmask 195712   ;;  %vm12472_vm12 = vcmask 261312  }
  0xb6   : > { %7386 = vmatpush3.bf16.msra.mxu1 %v7383_v19  ;;  %672 = vmatprep.mubr.f32.mxu1 %v8041_v0  ;;  %1086 = vst.msk [vmem:[#allocation3] sm:$0xff] %vm1083_vm1, %v8041_v0  ;;  %1087 = vst.msk [vmem:[#allocation3 + $0x8] sm:$0xff] %vm1083_vm1, %v8041_v0  ;;  %s8762_s16 = scalar_lea.vmem %s12353_s1, %s7222_s24  ;;  %s8065_s20 = smov 48   ;;  %vm12464_vm13 = vcmask 326912  }
  0xb7   : > { %7388 = vmatprep.subr.bf16.mxu1 %v7387_v23  ;;  %v1057_v56 = vld [vmem:[%s8762_s16 + $0x88] sm:$0xff]  ;;  %s8066_s23 = smov 29   ;;  %s8067_s27 = smov 44  }
  0xb8   : > { %7629 = vset.pattern.permute.xlu1 %v12383_v25  ;;  %7628 = vset.pattern.permute.xlu0 %v12383_v25  ;;  %s8068_s13 = smov 4   ;;  %s8069_s5 = smov 60  }
  0xb9   : > { %793 = vperm.xlu1 %7629, %v8366_v18   ;;  %7169 = vmatmul.mubr.msk.f32.gmra.mrb[2].mxu1 %vm595_vm0, %v565_v24  ;;  %s8070_s10 = smov 120   ;;  %s12448_s24 = smov 56  }
  0xba   : > { %789 = vperm.xlu0 %7628, %v8359_v14   ;;  %7390 = vmatpush3.bf16.msra.mxu1 %v7387_v23 }
  0xbb   : > { %7288 = vmatprep.mubr.msk.f32.mxu1 %vm595_vm0, %v564_v22 }
  0xbd   : > { %7630 = vset.pattern.permute.xlu1 %v8045_v26  ;;  %7289 = vmatmul.mubr.msk.f32.vlgmr.msra.gmra.mrb[4].mxu1 %vm595_vm0, %v565_v24 }
  0xbe   : > { %849 = vperm.xlu1 %7630, %v8359_v14   ;;  %7631 = vset.pattern.permute.xlu0 %v8045_v26 }
  0xbf   : > { %853 = vperm.xlu0 %7631, %v8366_v18  }
  0xc2   : > { %7632 = vset.pattern.permute.xlu1 %v8046_v27 }
  0xc3   : > { %889 = vperm.xlu1 %7632, %v8359_v14   ;;  %7633 = vset.pattern.permute.xlu0 %v8047_v28 }
  0xc4   : > { %909 = vperm.xlu0 %7633, %v8359_v14  }
  0xc7   : > { %893 = vperm.xlu1 %7632, %v8366_v18  }
  0xc8   : > { %7637 = vset.pattern.permute.xlu0 %v8048_v29 }
  0xc9   : > { %879 = vperm.xlu0 %7637, %v8359_v14  }
  0xcb   : > { %7634 = vset.pattern.permute.xlu1 %v8047_v28 }
  0xcc   : > { %913 = vperm.xlu1 %7634, %v8366_v18  }
  0xcd   : > { %7640 = vset.pattern.permute.xlu0 %v8049_v30 }
  0xce   : > { %813 = vperm.xlu0 %7640, %v8366_v18  }
  0xd0   : > { %7635 = vset.pattern.permute.xlu1 %v8050_v31 }
  0xd1   : > { %758 = vperm.xlu1 %7635, %v8359_v14  }
  0xd2   : > { %7642 = vset.pattern.permute.xlu0 %v8051_v32 }
  0xd3   : > { %929 = vperm.xlu0 %7642, %v8359_v14  }
  0xd5   : > { %7636 = vset.pattern.permute.xlu1 %v12381_v33 }
  0xd6   : > { %819 = vperm.xlu1 %7636, %v8359_v14  }
  0xd7   : > { %7643 = vset.pattern.permute.xlu0 %v8050_v31 }
  0xd8   : > { %763 = vperm.xlu0 %7643, %v8366_v18  }
  0xda   : > { %823 = vperm.xlu1 %7636, %v8366_v18  }
  0xde   : > { %7638 = vset.pattern.permute.xlu1 %v8048_v29  ;;  %v7653_v29 = vpop.eup %7652 }
  0xdf   : > { %883 = vperm.xlu1 %7638, %v8366_v18  }
  0xe3   : > { %7639 = vset.pattern.permute.xlu1 %v8049_v30 }
  0xe4   : > { %809 = vperm.xlu1 %7639, %v8359_v14  }
  0xe8   : > { %7641 = vset.pattern.permute.xlu1 %v8053_v34  ;;  %v1094_v34 = vand.u32 2147483648, %v8494_v17 }
  0xe9   : > { %869 = vperm.xlu1 %7641, %v8359_v14  }
  0xed   : > { %873 = vperm.xlu1 %7641, %v8366_v18  }
  0xf1   : > { %7644 = vset.pattern.permute.xlu1 %v8051_v32  ;;  %v1090_v32 = vmul.f32 %v7653_v29, %v8494_v17 }
  0xf2   : > { %933 = vperm.xlu1 %7644, %v8366_v18  }
  0xf6   : > { %7645 = vset.pattern.permute.xlu1 %v8050_v31 }
 0x12f   : > { %v8407_v37 = vpop.permute.xlu1 %829  ;;  %v8415_v40 = vpop.permute.xlu0 %769 }
 0x130   : > { %12557 = vst [vmem:[#allocation28_spill] sm:$0xff] %v8407_v37  ;;  %12560 = vst [vmem:[#allocation31_spill] sm:$0xff] %v8415_v40 }
 0x133   : > { %v8420_v43 = vpop.permute.xlu1 %833  ;;  %v8424_v46 = vpop.permute.xlu0 %773 }
 0x134   : > { %12562 = vst [vmem:[#allocation33_spill] sm:$0xff] %v8420_v43  ;;  %12563 = vst [vmem:[#allocation34_spill] sm:$0xff] %v8424_v46 }
 0x138   : > { %v8426_v48 = vpop.permute.xlu1 %793 }
 0x139   : > { %12564 = vst [vmem:[#allocation35_spill] sm:$0xff] %v8426_v48  ;;  %v8450_v60 = vpop.permute.xlu0 %789 }
 0x13a   : > { %12570 = vst [vmem:[#allocation41_spill] sm:$0xff] %v8450_v60 }
 0x13d   : > { %v8448_v59 = vpop.permute.xlu1 %849 }
 0x13e   : > { %12569 = vst [vmem:[#allocation40_spill] sm:$0xff] %v8448_v59  ;;  %v8498_v18 = vpop.permute.xlu0 %853 }
 0x13f   : > { %12573 = vst [vmem:[#allocation44_spill] sm:$0xff] %v8498_v18 }
 0x142   : > { %v8488_v14 = vpop.permute.xlu1 %889 }
 0x143   : > { %12572 = vst [vmem:[#allocation43_spill] sm:$0xff] %v8488_v14  ;;  %v8517_v26 = vpop.permute.xlu0 %909 }
 0x144   : > { %12576 = vst [vmem:[#allocation47_spill] sm:$0xff] %v8517_v26 }
 0x146   : > { %v8505_v21 = vpop.permute.xlu1 %893 }
 0x147   : > { %12574 = vst [vmem:[#allocation45_spill] sm:$0xff] %v8505_v21 }
 0x14b   : > { %v8515_v24 = vpop.permute.xlu1 %913 }
 0x14c   : > { %12575 = vst [vmem:[#allocation46_spill] sm:$0xff] %v8515_v24 }
 0x188   : > { %v668_v47 = vpop.f32.mrb[0].mxu1 }
 0x189   : > { %v8428_v49 = vadd.f32 %v668_v47, %v583_v44  ;;  %v670_v50 = vpop.f32.mrb[1].mxu1 }
 0x18a   : > { %v8430_v51 = vadd.f32 %v670_v50, %v587_v45 }
 0x18b   : > { %12565 = vst [vmem:[#allocation36_spill] sm:$0xff] %v8428_v49  ;;  %v8433_v52 = vmul.f32 0.37991783, %v8428_v49 }
 0x18c   : > { %12566 = vst [vmem:[#allocation37_spill] sm:$0xff] %v8430_v51  ;;  %v674_v53 = vpop.f32.mrb[2].mxu1  ;;  %v836_v54 = vmul.f32 %v8407_v37, %v8430_v51  ;;  %v776_v55 = vmul.f32 %v8415_v40, %v8430_v51  ;;  %v856_v3 = vmul.f32 %v8448_v59, %v8430_v51  ;;  %v796_v4 = vmul.f32 %v8450_v60, %v8430_v51 }
 0x18d   : > { %v8442_v57 = vadd.f32 %v674_v53, %v583_v44  ;;  %v676_v58 = vpop.f32.mrb[3].mxu1  ;;  %1149 = vst.msk [vmem:[#allocation2] sm:$0xff] %vm1148_vm3, %v8433_v52  ;;  %v896_v31 = vmul.f32 %v8488_v14, %v8430_v51  ;;  %v1092_v44 = vsel %vm1091_vm5, %v8494_v17, %v1090_v32  ;;  %v916_v47 = vmul.f32 %v8517_v26, %v8430_v51  ;;  %v8562_v53 = vpop.permute.xlu1 %758 }
 0x18e   : > { %840 = vrot.lane.b32.xlu0 %v836_v54, %s8055_s26  ;;  %780 = vrot.lane.b32.xlu1 %v776_v55, %s8055_s26  ;;  %v8455_v62 = vadd.f32 %v676_v58, %v587_v45  ;;  %v1095_v0 = vsel %vm1093_vm6, %v1094_v34, %v1092_v44  ;;  %12577 = vst [vmem:[#allocation48_spill] sm:$0xff] %v8562_v53  ;;  %vm9205_vm6 = vmpackc.low %vm595_vm0, %vm595_vm0 }
 0x18f   : > { %12568 = vst [vmem:[#allocation39_spill] sm:$0xff] %v8442_v57  ;;  %v8453_v61 = vmul.f32 0.37991783, %v8442_v57  ;;  %v1155_v50 = vrot.slane %v1095_v0, %v8413_v39 }
 0x190   : > { %12571 = vst [vmem:[#allocation42_spill] sm:$0xff] %v8455_v62  ;;  %v7290_v1 = vpop.f32.mrb[4].mxu1  ;;  %v777_v6 = vmul.f32 %v8424_v46, %v8455_v62  ;;  %v837_v9 = vmul.f32 %v8420_v43, %v8455_v62  ;;  %v797_v30 = vmul.f32 %v8426_v48, %v8455_v62  ;;  %v897_v41 = vmul.f32 %v8505_v21, %v8455_v62 }
 0x191   : > { %v745_v5 = vpop.f32.mrb[5].mxu1  ;;  %1150 = vst.msk [vmem:[#allocation2 + $0x8] sm:$0xff] %vm1148_vm3, %v8453_v61  ;;  %v8468_v7 = vadd.f32 %v7290_v1, %v591_v63  ;;  %v857_v35 = vmul.f32 %v8498_v18, %v8455_v62  ;;  %v917_v45 = vmul.f32 %v8515_v24, %v8455_v62  ;;  %v8564_v54 = vpop.permute.xlu1 %819 }
 0x192   : > { %860 = vrot.lane.b32.xlu0 %v856_v3, %s12450_s18  ;;  %800 = vrot.lane.b32.xlu1 %v796_v4, %s12450_s18  ;;  %v8470_v8 = vadd.f32 %v745_v5, %v591_v63  ;;  %12578 = vst [vmem:[#allocation49_spill] sm:$0xff] %v8564_v54  ;;  %v8572_v1 = vpop.permute.xlu0 %879 }
 0x193   : > { %v941_v10 = vmul.f32 %v8424_v46, %v8468_v7  ;;  %v975_v12 = vmul.f32 %v8420_v43, %v8468_v7  ;;  %v955_v15 = vmul.f32 %v8426_v48, %v8468_v7  ;;  %v989_v19 = vmul.f32 %v8498_v18, %v8468_v7  ;;  %12582 = vst [vmem:[#allocation53_spill] sm:$0xff] %v8572_v1 }
 0x194   : > { %v940_v11 = vmul.f32 %v8415_v40, %v8470_v8  ;;  %v974_v13 = vmul.f32 %v8407_v37, %v8470_v8  ;;  %v954_v16 = vmul.f32 %v8450_v60, %v8470_v8  ;;  %v988_v20 = vmul.f32 %v8448_v59, %v8470_v8 }
 0x195   : > { %v1009_v22 = vmul.f32 %v8505_v21, %v8468_v7  ;;  %v1008_v23 = vmul.f32 %v8488_v14, %v8470_v8  ;;  %v1023_v27 = vmul.f32 %v8515_v24, %v8468_v7  ;;  %v1022_v28 = vmul.f32 %v8517_v26, %v8470_v8  ;;  %v8566_v55 = vpop.permute.xlu1 %823 }
 0x196   : > { %842 = vrot.lane.b32.xlu0 %v837_v9, %s8055_s26  ;;  %782 = vrot.lane.b32.xlu1 %v777_v6, %s8055_s26  ;;  %12579 = vst [vmem:[#allocation50_spill] sm:$0xff] %v8566_v55  ;;  %v8576_v4 = vpop.permute.xlu0 %813  ;;  %v886_v46 = vmul.f32 %v8572_v1, %v8430_v51 }
 0x197   : > { %12584 = vst [vmem:[#allocation55_spill] sm:$0xff] %v8576_v4 }
 0x199   : > { %v8568_v58 = vpop.permute.xlu1 %883 }
 0x19a   : > { %946 = vrot.lane.b32.xlu0 %v941_v10, %s8057_s28  ;;  %944 = vrot.lane.b32.xlu1 %v940_v11, %s8057_s28  ;;  %12580 = vst [vmem:[#allocation51_spill] sm:$0xff] %v8568_v58  ;;  %v8580_v6 = vpop.permute.xlu0 %929 }
 0x19b   : > { %12586 = vst [vmem:[#allocation57_spill] sm:$0xff] %v8580_v6 }
 0x19d   : > { %v8570_v63 = vpop.permute.xlu1 %809 }
 0x19e   : > { %980 = vrot.lane.b32.xlu0 %v975_v12, %s8057_s28  ;;  %978 = vrot.lane.b32.xlu1 %v974_v13, %s8057_s28  ;;  %12581 = vst [vmem:[#allocation52_spill] sm:$0xff] %v8570_v63  ;;  %v8584_v10 = vpop.permute.xlu0 %763 }
 0x19f   : > { %12588 = vst [vmem:[#allocation59_spill] sm:$0xff] %v8584_v10 }
 0x1a1   : > { %v8574_v3 = vpop.permute.xlu1 %869 }
 0x1a2   : > { %960 = vrot.lane.b32.xlu0 %v955_v15, %s8058_s17  ;;  %958 = vrot.lane.b32.xlu1 %v954_v16, %s8058_s17  ;;  %12583 = vst [vmem:[#allocation54_spill] sm:$0xff] %v8574_v3 }
 0x1a5   : > { %v8578_v5 = vpop.permute.xlu1 %873 }
 0x1a6   : > { %994 = vrot.lane.b32.xlu0 %v989_v19, %s8058_s17  ;;  %992 = vrot.lane.b32.xlu1 %v988_v20, %s8058_s17  ;;  %12585 = vst [vmem:[#allocation56_spill] sm:$0xff] %v8578_v5 }
 0x1a9   : > { %v8582_v9 = vpop.permute.xlu1 %933 }
 0x1aa   : > { %1014 = vrot.lane.b32.xlu0 %v1009_v22, %s8057_s28  ;;  %1012 = vrot.lane.b32.xlu1 %v1008_v23, %s8057_s28  ;;  %12587 = vst [vmem:[#allocation58_spill] sm:$0xff] %v8582_v9 }
 0x1ae   : > { %1028 = vrot.lane.b32.xlu0 %v1023_v27, %s8058_s17  ;;  %1026 = vrot.lane.b32.xlu1 %v1022_v28, %s8058_s17 }
 0x1b2   : > { %802 = vrot.lane.b32.xlu0 %v797_v30, %s12450_s18  ;;  %900 = vrot.lane.b32.xlu1 %v896_v31, %s8055_s26 }
 0x1b6   : > { %902 = vrot.lane.b32.xlu0 %v897_v41, %s8055_s26  ;;  %862 = vrot.lane.b32.xlu1 %v857_v35, %s12450_s18  ;;  %v8608_v41 = vmul.f32 %v8564_v54, %v8430_v51  ;;  %v8612_v35 = vmul.f32 %v8562_v53, %v8430_v51  ;;  %v1048_v51 = vld [vmem:[%s8762_s16 + $0x40] sm:$0xff] }
 0x1ba   : > { %922 = vrot.lane.b32.xlu0 %v917_v45, %s12450_s18  ;;  %920 = vrot.lane.b32.xlu1 %v916_v47, %s12450_s18 }
 0x1be   : > { %1157 = vperm.xlu0 %7643, %v1155_v50   ;;  %1219 = vrot.lane.b32.xlu1 %v8433_v52, %s8059_s19 }
 0x1c2   : > { %1221 = vrot.lane.b32.xlu1 %v8453_v61, %s8059_s19  ;;  %7646 = vset.pattern.permute.xlu0 %v12380_v2 }
 0x200   : > { %v841_v11 = vpop.permute.xlu0 %840  ;;  %v781_v12 = vpop.permute.xlu1 %780 }
 0x201   : > { %v846_v0 = vadd.f32 %v841_v11, %v8608_v41  ;;  %v786_v45 = vadd.f32 %v781_v12, %v8612_v35 }
 0x204   : > { %v861_v13 = vpop.permute.xlu0 %860  ;;  %v801_v15 = vpop.permute.xlu1 %800 }
 0x205   : > { %v866_v50 = vadd.f32 %v861_v13, %v846_v0  ;;  %v806_v36 = vadd.f32 %v801_v15, %v786_v45 }
 0x207   : > { %v8621_v25 = vadd.f32 %v8574_v3, %v866_v50  ;;  %v8624_v48 = vadd.f32 %v8570_v63, %v806_v36 }
 0x208   : > { %v843_v16 = vpop.permute.xlu0 %842  ;;  %v783_v19 = vpop.permute.xlu1 %782 }
 0x209   : > { %v1097_v12 = vmul.f32 %v8624_v48, %v8624_v48  ;;  %v1099_v13 = vmul.f32 %v8621_v25, %v8621_v25 }
 0x20b   : > { %v1101_v36 = vadd.f32 %v1099_v13, %v1097_v12 }
 0x20c   : > { %v8586_v20 = vpop.permute.xlu0 %946  ;;  %v8588_v22 = vpop.permute.xlu1 %944 }
 0x210   : > { %v8590_v23 = vpop.permute.xlu0 %980  ;;  %v8592_v27 = vpop.permute.xlu1 %978 }
 0x214   : > { %v8594_v28 = vpop.permute.xlu1 %958  ;;  %v8596_v29 = vpop.permute.xlu0 %960 }
 0x218   : > { %v8598_v30 = vpop.permute.xlu1 %992  ;;  %v8600_v31 = vpop.permute.xlu0 %994 }
 0x21c   : > { %v8602_v32 = vpop.permute.xlu1 %1012  ;;  %v8614_v44 = vpop.permute.xlu0 %1014 }
 0x220   : > { %v8604_v34 = vpop.permute.xlu1 %1026  ;;  %v8618_v2 = vpop.permute.xlu0 %1028 }
 0x224   : > { %v901_v47 = vpop.permute.xlu1 %900  ;;  %v803_v11 = vpop.permute.xlu0 %802 }
 0x225   : > { %v906_v40 = vadd.f32 %v901_v47, %v886_v46 }
 0x228   : > { %v863_v33 = vpop.permute.xlu1 %862  ;;  %v903_v47 = vpop.permute.xlu0 %902 }
 0x22c   : > { %v921_v60 = vpop.permute.xlu1 %920  ;;  %v923_v13 = vpop.permute.xlu0 %922 }
 0x22d   : > { %v926_v21 = vadd.f32 %v921_v60, %v906_v40  ;;  %v767_v40 = vmul.f32 %v8584_v10, %v8455_v62 }
 0x22f   : > { %v8633_v15 = vadd.f32 %v8580_v6, %v926_v21  ;;  %v787_v21 = vadd.f32 %v783_v19, %v767_v40 }
 0x230   : > { %v1220_v0 = vpop.permute.xlu1 %1219 }
 0x231   : > { %1225 = vst.msk [vmem:[#allocation3] sm:$0xff] %vm1148_vm3, %v1220_v0  ;;  %v1103_v45 = vmul.f32 %v8633_v15, %v8633_v15  ;;  %v827_v0 = vmul.f32 %v8566_v55, %v8455_v62  ;;  %v807_v12 = vadd.f32 %v803_v11, %v787_v21 }
 0x233   : > { %v8638_v50 = vadd.f32 %v1103_v45, %v1101_v36  ;;  %v847_v24 = vadd.f32 %v843_v16, %v827_v0  ;;  %v887_v36 = vmul.f32 %v8568_v58, %v8455_v62  ;;  %v8650_v45 = vadd.f32 %v8576_v4, %v807_v12  ;;  %v1061_v62 = vld [vmem:[%s8762_s16 + $0xa8] sm:$0xff] }
 0x234   : > { %v1222_v60 = vpop.permute.xlu1 %1221 }
 0x235   : > { %1226 = vst.msk [vmem:[#allocation3 + $0x8] sm:$0xff] %vm1148_vm3, %v1222_v60  ;;  %1109 = vrot.lane.b32.xlu1 %v8638_v50, %s8059_s19  ;;  %v907_v43 = vadd.f32 %v903_v47, %v887_v36  ;;  %v867_v18 = vadd.f32 %v863_v33, %v847_v24  ;;  %v952_v60 = vadd.f32 %v8586_v20, %v767_v40 }
 0x236   : > { %v986_v33 = vadd.f32 %v8590_v23, %v827_v0  ;;  %v1020_v40 = vadd.f32 %v8614_v44, %v887_v36  ;;  %v1018_v0 = vadd.f32 %v8602_v32, %v886_v46 }
 0x237   : > { %v927_v26 = vadd.f32 %v923_v13, %v907_v43  ;;  %v966_v16 = vadd.f32 %v8596_v29, %v952_v60  ;;  %v8661_v21 = vadd.f32 %v8578_v5, %v867_v18 }
 0x238   : > { %v1000_v12 = vadd.f32 %v8600_v31, %v986_v33  ;;  %v1034_v13 = vadd.f32 %v8618_v2, %v1020_v40  ;;  %v1032_v33 = vadd.f32 %v8604_v34, %v1018_v0 }
 0x239   : > { %v8667_v24 = vadd.f32 %v8582_v9, %v927_v26  ;;  %v8675_v18 = vadd.f32 %v966_v16, %v8576_v4  ;;  %v1100_v26 = vmul.f32 %v8661_v21, %v8661_v21 }
 0x23a   : > { %v8693_v16 = vadd.f32 %v1000_v12, %v8578_v5  ;;  %v8703_v40 = vadd.f32 %v1034_v13, %v8582_v9 }
 0x23d   : > { %v8652_v59 = vpop.permute.xlu0 %1157 }
 0x23e   : > { %v1160_v19 = vmul.f32 %v8652_v59, %v8624_v48  ;;  %v1161_v11 = vmul.f32 %v8652_v59, %v8650_v45  ;;  %v1173_v43 = vmul.f32 %v8652_v59, %v8621_v25  ;;  %v1174_v47 = vmul.f32 %v8652_v59, %v8661_v21 }
 0x23f   : > { %v1186_v36 = vmul.f32 %v8652_v59, %v8633_v15  ;;  %v1228_v60 = vmul.f32 %v8652_v59, %v8675_v18  ;;  %v1240_v12 = vmul.f32 %v8652_v59, %v8693_v16  ;;  %v1252_v13 = vmul.f32 %v8652_v59, %v8703_v40 }
 0x240   : > { %1164 = vrot.lane.b32.xlu0 %v1160_v19, %s8057_s28  ;;  %1166 = vrot.lane.b32.xlu1 %v1161_v11, %s8057_s28  ;;  %v1098_v19 = vmul.f32 %v8650_v45, %v8650_v45  ;;  %v1104_v11 = vmul.f32 %v8667_v24, %v8667_v24 }
 0x242   : > { %v1102_v46 = vadd.f32 %v1100_v26, %v1098_v19  ;;  %v8712_v26 = vadd.f32 %v1032_v33, %v8580_v6  ;;  %v1129_v19 = vmul.f32 %v8703_v40, %v8703_v40 }
 0x244   : > { %1177 = vrot.lane.b32.xlu0 %v1173_v43, %s8060_s25  ;;  %1179 = vrot.lane.b32.xlu1 %v1174_v47, %s8060_s25  ;;  %v950_v43 = vadd.f32 %v8588_v22, %v8612_v35  ;;  %v984_v47 = vadd.f32 %v8592_v27, %v8608_v41  ;;  %v8705_v14 = vadd.f32 %v1104_v11, %v1102_v46 }
 0x245   : > { %v1125_v41 = vmul.f32 %v8693_v16, %v8693_v16  ;;  %v1251_v35 = vmul.f32 %v8652_v59, %v8712_v26 }
 0x246   : > { %v964_v0 = vadd.f32 %v8594_v28, %v950_v43 }
 0x248   : > { %1190 = vrot.lane.b32.xlu0 %v1186_v36, %s12446_s15  ;;  %1233 = vrot.lane.b32.xlu1 %v1228_v60, %s8058_s17  ;;  %v998_v36 = vadd.f32 %v8598_v30, %v984_v47  ;;  %v1123_v60 = vmul.f32 %v8675_v18, %v8675_v18  ;;  %v8728_v11 = vadd.f32 %v964_v0, %v8570_v63 }
 0x24a   : > { %v8731_v33 = vadd.f32 %v998_v36, %v8574_v3  ;;  %v1127_v46 = vadd.f32 %v1125_v41, %v1123_v60  ;;  %v1227_v47 = vmul.f32 %v8652_v59, %v8728_v11  ;;  %v1122_v36 = vmul.f32 %v8728_v11, %v8728_v11 }
 0x24b   : > { %v1128_v41 = vmul.f32 %v8712_v26, %v8712_v26  ;;  %v1187_v60 = vmul.f32 %v8652_v59, %v8667_v24 }
 0x24c   : > { %1111 = vrot.lane.b32.xlu0 %v8705_v14, %s8059_s19  ;;  %1245 = vrot.lane.b32.xlu1 %v1240_v12, %s8062_s14  ;;  %v8735_v43 = vadd.f32 %v1129_v19, %v1127_v46  ;;  %v1124_v12 = vmul.f32 %v8731_v33, %v8731_v33  ;;  %v1239_v0 = vmul.f32 %v8652_v59, %v8731_v33  ;;  %v1040_v19 = vld [vmem:[%s8762_s16] sm:$0xff] }
 0x24d   : > { %v8768_v46 = vld [vmem:[%s12358_s6] ss:$0 sm:$0xff] }
 0x24e   : > { %v1284_v59 = vmul.f32 %v8768_v46, %v1040_v19  ;;  %v1301_v42 = vmul.f32 %v8768_v46, %v1057_v56 }
 0x250   : > { %1255 = vrot.lane.b32.xlu0 %v1251_v35, %s12423_s21  ;;  %1257 = vrot.lane.b32.xlu1 %v1252_v13, %s12423_s21  ;;  %v1126_v35 = vadd.f32 %v1124_v12, %v1122_v36  ;;  %v1316_v12 = vsel %vm1148_vm3, %v1284_v59, 0.0  ;;  %v1043_v36 = vld [vmem:[%s8762_s16 + $0x18] sm:$0xff]  ;;  %v1041_v59 = vld [vmem:[%s8762_s16 + $0x8] sm:$0xff]  ;;  %s8072_s21 = smov 28  }
 0x252   : > { %v8751_v13 = vadd.f32 %v1128_v41, %v1126_v35  ;;  %v1287_v35 = vmul.f32 %v8768_v46, %v1043_v36  ;;  %v1044_v36 = vld [vmem:[%s8762_s16 + $0x20] sm:$0xff] }
 0x253   : > { %v1288_v38 = vmul.f32 %v8768_v46, %v1044_v36  ;;  %v1305_v36 = vmul.f32 %v8768_v46, %v1061_v62 }
 0x254   : > { %1136 = vrot.lane.b32.xlu0 %v8735_v43, %s8064_s22  ;;  %1231 = vrot.lane.b32.xlu1 %v1227_v47, %s8058_s17  ;;  %v1042_v47 = vld [vmem:[%s8762_s16 + $0x10] sm:$0xff]  ;;  %v1325_v37 = vsel %vm1148_vm3, %v1287_v35, 0.0 }
 0x258   : > { %1243 = vrot.lane.b32.xlu1 %v1239_v0, %s8062_s14  ;;  %v1286_v0 = vmul.f32 %v8768_v46, %v1042_v47 }
 0x25a   : > { %v1322_v41 = vsel %vm1148_vm3, %v1286_v0, 0.0  ;;  %v1059_v0 = vld [vmem:[%s8762_s16 + $0x98] sm:$0xff] }
 0x25b   : > { %v1303_v35 = vmul.f32 %v8768_v46, %v1059_v0  ;;  %v1058_v0 = vld [vmem:[%s8762_s16 + $0x90] sm:$0xff] }
 0x25c   : > { %1134 = vrot.lane.b32.xlu1 %v8751_v13, %s8064_s22 }
 0x25d   : > { %v1373_v56 = vsel %vm1148_vm3, %v1303_v35, 0.0  ;;  %v1302_v35 = vmul.f32 %v8768_v46, %v1058_v0 }
 0x260   : > { %1192 = vrot.lane.b32.xlu1 %v1187_v60, %s12446_s15  ;;  %v1045_v60 = vld [vmem:[%s8762_s16 + $0x28] sm:$0xff]  ;;  %s8079_s15 = smov 8  }
 0x261   : > { %v1289_v19 = vmul.f32 %v8768_v46, %v1045_v60 }
 0x263   : > { %v1331_v47 = vsel %vm1148_vm3, %v1289_v19, 0.0  ;;  %v1056_v19 = vld [vmem:[%s8762_s16 + $0x80] sm:$0xff] }
 0x273   : > { %1317 = vadd.xlane.f32.xlu0 %v1316_v12  ;;  %v1285_v12 = vmul.f32 %v8768_v46, %v1041_v59 }
 0x275   : > { %v1319_v60 = vsel %vm1148_vm3, %v1285_v12, 0.0 }
 0x277   : > { %1323 = vadd.xlane.f32.xlu0 %v1322_v41  ;;  %v1367_v41 = vsel %vm1148_vm3, %v1301_v42, 0.0  ;;  %v1300_v42 = vmul.f32 %v8768_v46, %v1056_v19 }
 0x27b   : > { %1326 = vadd.xlane.f32.xlu0 %v1325_v37  ;;  %v1047_v37 = vld [vmem:[%s8762_s16 + $0x38] sm:$0xff] }
 0x27c   : > { %v1291_v59 = vmul.f32 %v8768_v46, %v1047_v37  ;;  %v1046_v37 = vld [vmem:[%s8762_s16 + $0x30] sm:$0xff] }
 0x27e   : > { %v1337_v12 = vsel %vm1148_vm3, %v1291_v59, 0.0  ;;  %v1060_v59 = vld [vmem:[%s8762_s16 + $0xa0] sm:$0xff] }
 0x27f   : > { %1332 = vadd.xlane.f32.xlu0 %v1331_v47  ;;  %v1328_v47 = vsel %vm1148_vm3, %v1288_v38, 0.0  ;;  %v1379_v38 = vsel %vm1148_vm3, %v1305_v36, 0.0  ;;  %v1304_v0 = vmul.f32 %v8768_v46, %v1060_v59  ;;  %v1292_v36 = vmul.f32 %v8768_v46, %v1048_v51 }
 0x283   : > { %1368 = vadd.xlane.f32.xlu0 %v1367_v41  ;;  %v1364_v41 = vsel %vm1148_vm3, %v1300_v42, 0.0 }
 0x284   : > { %1320 = vadd.xlane.f32.xlu1 %v1319_v60  ;;  %v1049_v60 = vld [vmem:[%s8762_s16 + $0x48] sm:$0xff] }
 0x285   : > { %v1293_v19 = vmul.f32 %v8768_v46, %v1049_v60 }
 0x287   : > { %1374 = vadd.xlane.f32.xlu0 %v1373_v56  ;;  %v1370_v56 = vsel %vm1148_vm3, %v1302_v35, 0.0  ;;  %v1343_v62 = vsel %vm1148_vm3, %v1293_v19, 0.0 }
 0x288   : > { %1329 = vadd.xlane.f32.xlu1 %v1328_v47  ;;  %v1290_v47 = vmul.f32 %v8768_v46, %v1046_v37 }
 0x28a   : > { %v1334_v42 = vsel %vm1148_vm3, %v1290_v47, 0.0 }
 0x28b   : > { %1338 = vadd.xlane.f32.xlu0 %v1337_v12  ;;  %v1376_v12 = vsel %vm1148_vm3, %v1304_v0, 0.0 }
 0x28c   : > { %1365 = vadd.xlane.f32.xlu1 %v1364_v41  ;;  %v1340_v41 = vsel %vm1148_vm3, %v1292_v36, 0.0  ;;  %v1063_v36 = vld [vmem:[%s8762_s16 + $0xb8] sm:$0xff] }
 0x28f   : > { %1380 = vadd.xlane.f32.xlu0 %v1379_v38 }
 0x290   : > { %1371 = vadd.xlane.f32.xlu1 %v1370_v56 }
 0x293   : > { %1344 = vadd.xlane.f32.xlu0 %v1343_v62 }
 0x294   : > { %1335 = vadd.xlane.f32.xlu1 %v1334_v42 }
 0x298   : > { %1377 = vadd.xlane.f32.xlu1 %v1376_v12 }
 0x29c   : > { %1341 = vadd.xlane.f32.xlu1 %v1340_v41  ;;  %v1307_v41 = vmul.f32 %v8768_v46, %v1063_v36 }
 0x2a7   : > { %v1110_v35 = vpop.permute.xlu1 %1109 }
 0x2a8   : > { %v1116_v60 = vsel %vm1115_vm7, %v1110_v35, 0.0 }
 0x2a9   : > { %1117 = vadd.xlane.f32.xlu1 %v1116_v60 }
 0x2b2   : > { %v1165_v37 = vpop.permute.xlu0 %1164  ;;  %v1167_v38 = vpop.permute.xlu1 %1166 }
 0x2b3   : > { %1171 = vst.msk [vmem:[#allocation2] sm:$0xff] %vm1170_vm8, %v1165_v37  ;;  %1172 = vst.msk [vmem:[#allocation2 + $0x8] sm:$0xff] %vm1170_vm8, %v1167_v38  ;;  %v1051_v37 = vld [vmem:[%s8762_s16 + $0x58] sm:$0xff] }
 0x2b6   : > { %v1178_v19 = vpop.permute.xlu0 %1177  ;;  %v1180_v51 = vpop.permute.xlu1 %1179 }
 0x2b7   : > { %1184 = vst.msk [vmem:[#allocation2] sm:$0xff] %vm1183_vm9, %v1178_v19  ;;  %1185 = vst.msk [vmem:[#allocation2 + $0x8] sm:$0xff] %vm1183_vm9, %v1180_v51  ;;  %v1385_v19 = vsel %vm1148_vm3, %v1307_v41, 0.0  ;;  %v1295_v51 = vmul.f32 %v8768_v46, %v1051_v37  ;;  %v1053_v41 = vld [vmem:[%s8762_s16 + $0x68] sm:$0xff] }
 0x2ba   : > { %v1191_v56 = vpop.permute.xlu0 %1190  ;;  %v1234_v47 = vpop.permute.xlu1 %1233 }
 0x2bb   : > { %1197 = vst.msk [vmem:[#allocation2] sm:$0xff] %vm1196_vm10, %v1191_v56 }
 0x2bc   : > { %1238 = vst.msk [vmem:[#allocation3 + $0x8] sm:$0xff] %vm1170_vm8, %v1234_v47  ;;  %v1065_v47 = vld [vmem:[%s8762_s16 + $0xc8] sm:$0xff] }
 0x2be   : > { %v1112_v59 = vpop.permute.xlu0 %1111  ;;  %v1246_v62 = vpop.permute.xlu1 %1245 }
 0x2bf   : > { %1250 = vst.msk [vmem:[#allocation3 + $0x8] sm:$0xff] %vm1183_vm9, %v1246_v62  ;;  %v1119_v42 = vsel %vm1115_vm7, %v1112_v59, 0.0  ;;  %v1062_v59 = vld [vmem:[%s8762_s16 + $0xb0] sm:$0xff]  ;;  %v1349_v62 = vsel %vm1148_vm3, %v1295_v51, 0.0 }
 0x2c0   : > { %1120 = vadd.xlane.f32.xlu1 %v1119_v42  ;;  %v1309_v42 = vmul.f32 %v8768_v46, %v1065_v47  ;;  %v1064_v47 = vld [vmem:[%s8762_s16 + $0xc0] sm:$0xff] }
 0x2c2   : > { %v1256_v0 = vpop.permute.xlu0 %1255  ;;  %v1258_v12 = vpop.permute.xlu1 %1257 }
 0x2c3   : > { %1262 = vst.msk [vmem:[#allocation3 + $0x8] sm:$0xff] %vm1196_vm10, %v1258_v12  ;;  %v1306_v12 = vmul.f32 %v8768_v46, %v1062_v59 }
 0x2c5   : > { %v1382_v37 = vsel %vm1148_vm3, %v1306_v12, 0.0  ;;  %v1308_v12 = vmul.f32 %v8768_v46, %v1064_v47 }
 0x2c6   : > { %v1137_v35 = vpop.permute.xlu0 %1136  ;;  %v1232_v60 = vpop.permute.xlu1 %1231 }
 0x2c7   : > { %1237 = vst.msk [vmem:[#allocation3] sm:$0xff] %vm1170_vm8, %v1232_v60  ;;  %v1143_v38 = vsel %vm1115_vm7, %v1137_v35, 0.0  ;;  %v1050_v35 = vld [vmem:[%s8762_s16 + $0x50] sm:$0xff] }
 0x2c8   : > { %1144 = vadd.xlane.f32.xlu0 %v1143_v38  ;;  %v1297_v38 = vmul.f32 %v8768_v46, %v1053_v41  ;;  %v1052_v41 = vld [vmem:[%s8762_s16 + $0x60] sm:$0xff] }
 0x2ca   : > { %v1244_v56 = vpop.permute.xlu1 %1243  ;;  %v1355_v59 = vsel %vm1148_vm3, %v1297_v38, 0.0  ;;  %v1069_v38 = vld [vmem:[%s8762_s16 + $0xe8] sm:$0xff] }
 0x2cb   : > { %1249 = vst.msk [vmem:[#allocation3] sm:$0xff] %vm1183_vm9, %v1244_v56  ;;  %v1067_v56 = vld [vmem:[%s8762_s16 + $0xd8] sm:$0xff]  ;;  %v1313_v47 = vmul.f32 %v8768_v46, %v1069_v38 }
 0x2cc   : > { %1261 = vst.msk [vmem:[#allocation3] sm:$0xff] %vm1196_vm10, %v1256_v0  ;;  %1386 = vadd.xlane.f32.xlu0 %v1385_v19  ;;  %v1391_v0 = vsel %vm1148_vm3, %v1309_v42, 0.0  ;;  %v1294_v19 = vmul.f32 %v8768_v46, %v1050_v35  ;;  %v1311_v42 = vmul.f32 %v8768_v46, %v1067_v56 }
 0x2ce   : > { %v1135_v36 = vpop.permute.xlu1 %1134  ;;  %v1397_v35 = vsel %vm1148_vm3, %v1311_v42, 0.0  ;;  %v1054_v42 = vld [vmem:[%s8762_s16 + $0x70] sm:$0xff] }
 0x2cf   : > { %v1140_v60 = vsel %vm1115_vm7, %v1135_v36, 0.0  ;;  %v1055_v36 = vld [vmem:[%s8762_s16 + $0x78] sm:$0xff] }
 0x2d0   : > { %1350 = vadd.xlane.f32.xlu0 %v1349_v62  ;;  %1141 = vadd.xlane.f32.xlu1 %v1140_v60  ;;  %v1346_v62 = vsel %vm1148_vm3, %v1294_v19, 0.0  ;;  %v1388_v60 = vsel %vm1148_vm3, %v1308_v12, 0.0  ;;  %v1066_v19 = vld [vmem:[%s8762_s16 + $0xd0] sm:$0xff]  ;;  %v1403_v12 = vsel %vm1148_vm3, %v1313_v47, 0.0 }
 0x2d2   : > { %v1193_v51 = vpop.permute.xlu1 %1192 }
 0x2d3   : > { %1198 = vst.msk [vmem:[#allocation2 + $0x8] sm:$0xff] %vm1196_vm10, %v1193_v51 }
 0x2d4   : > { %1392 = vadd.xlane.f32.xlu0 %v1391_v0  ;;  %1383 = vadd.xlane.f32.xlu1 %v1382_v37  ;;  %v1299_v0 = vmul.f32 %v8768_v46, %v1055_v36  ;;  %v1296_v37 = vmul.f32 %v8768_v46, %v1052_v41 }
 0x2d6   : > { %v1361_v51 = vsel %vm1148_vm3, %v1299_v0, 0.0  ;;  %v1352_v56 = vsel %vm1148_vm3, %v1296_v37, 0.0 }
 0x2d8   : > { %1356 = vadd.xlane.f32.xlu0 %v1355_v59  ;;  %1347 = vadd.xlane.f32.xlu1 %v1346_v62  ;;  %v1310_v59 = vmul.f32 %v8768_v46, %v1066_v19  ;;  %v1071_v62 = vld [vmem:[%s8762_s16 + $0xf8] sm:$0xff]  ;;  %v1070_v19 = vld [vmem:[%s8762_s16 + $0xf0] sm:$0xff] }
 0x2d9   : > { %v1315_v41 = vmul.f32 %v8768_v46, %v1071_v62  ;;  %v12589_v62 = vmov 2  }
 0x2da   : > { %v1394_v36 = vsel %vm1148_vm3, %v1310_v59, 0.0  ;;  %v7173_v59 = vld [vmem:[%s12359_s7] ss:$0 sm:$0xff] }
 0x2db   : > { %v1409_v0 = vsel %vm1148_vm3, %v1315_v41, 0.0 }
 0x2dc   : > { %1398 = vadd.xlane.f32.xlu0 %v1397_v35  ;;  %1389 = vadd.xlane.f32.xlu1 %v1388_v60  ;;  %v1298_v35 = vmul.f32 %v8768_v46, %v1054_v42  ;;  %v1068_v60 = vld [vmem:[%s8762_s16 + $0xe0] sm:$0xff] }
 0x2dd   : > { %v1312_v38 = vmul.f32 %v8768_v46, %v1068_v60 }
 0x2de   : > { %v1358_v37 = vsel %vm1148_vm3, %v1298_v35, 0.0 }
 0x2e0   : > { %1362 = vadd.xlane.f32.xlu0 %v1361_v51  ;;  %1353 = vadd.xlane.f32.xlu1 %v1352_v56  ;;  %v1400_v51 = vsel %vm1148_vm3, %v1312_v38, 0.0  ;;  %v1314_v56 = vmul.f32 %v8768_v46, %v1070_v19  ;;  %v1096_v38 = vmul.f32 -0.5, %v8494_v17 }
 0x2e2   : > { %v1406_v47 = vsel %vm1148_vm3, %v1314_v56, 0.0  ;;  %v8911_v56 = vrot.slane %v1096_v38, %v8413_v39 }
 0x2e4   : > { %1404 = vadd.xlane.f32.xlu0 %v1403_v12  ;;  %1395 = vadd.xlane.f32.xlu1 %v1394_v36 }
 0x2e8   : > { %1410 = vadd.xlane.f32.xlu0 %v1409_v0  ;;  %1359 = vadd.xlane.f32.xlu1 %v1358_v37 }
 0x2ec   : > { %1401 = vadd.xlane.f32.xlu1 %v1400_v51 }
 0x2f0   : > { %1407 = vadd.xlane.f32.xlu1 %v1406_v47  ;;  %v972_v47 = vmul.f32 %v8564_v54, %v8470_v8 }
 0x2fe   : > { %1802 = vrot.lane.b32.xlu0 %v8428_v49, %s8065_s20  ;;  %v985_v49 = vadd.f32 %v8592_v27, %v972_v47 }
 0x300   : > { %v8895_v41 = vpop.xlane.xlu0 %1317  ;;  %v999_v38 = vadd.f32 %v8598_v30, %v985_v49 }
 0x301   : > { %1419 = vperm.xlu1 %7645, %v7173_v59  }
 0x302   : > { %v8929_v27 = vadd.f32 %v999_v38, %v8574_v3 }
 0x304   : > { %v8899_v60 = vpop.xlane.xlu0 %1323  ;;  %12594 = vst [vmem:[#allocation64_spill] sm:$0xff] %v8929_v27 }
 0x305   : > { %7647 = vset.pattern.permute.xlu1 %v12589_v62  ;;  %v938_v62 = vmul.f32 %v8562_v53, %v8470_v8 }
 0x308   : > { %v8903_v37 = vpop.xlane.xlu0 %1326 }
 0x30c   : > { %v8908_v51 = vpop.xlane.xlu0 %1332 }
 0x30d   : > { %12593 = vst [vmem:[#allocation63_spill] sm:$0xff] %v8908_v51  ;;  %v951_v51 = vadd.f32 %v8588_v22, %v938_v62 }
 0x30f   : > { %v965_v54 = vadd.f32 %v8594_v28, %v951_v51  ;;  %v4029_v28 = vmul.f32 %v8929_v27, %v8929_v27 }
 0x311   : > { %v8887_v42 = vpop.xlane.xlu1 %1320  ;;  %v8936_v22 = vadd.f32 %v965_v54, %v8570_v63 }
 0x313   : > { %12595 = vst [vmem:[#allocation65_spill] sm:$0xff] %v8936_v22 }
 0x315   : > { %v8889_v12 = vpop.xlane.xlu1 %1329 }
 0x316   : > { %12590 = vst [vmem:[#allocation60_spill] sm:$0xff] %v8889_v12 }
 0x319   : > { %v8891_v46 = vpop.xlane.xlu1 %1365 }
 0x31d   : > { %v8893_v36 = vpop.xlane.xlu1 %1371 }
 0x321   : > { %v8897_v35 = vpop.xlane.xlu1 %1335 }
 0x322   : > { %12591 = vst [vmem:[#allocation61_spill] sm:$0xff] %v8897_v35  ;;  %v1006_v35 = vmul.f32 %v8572_v1, %v8470_v8 }
 0x324   : > { %v1019_v12 = vadd.f32 %v8602_v32, %v1006_v35  ;;  %v4027_v32 = vmul.f32 %v8936_v22, %v8936_v22 }
 0x325   : > { %v8901_v0 = vpop.xlane.xlu1 %1377 }
 0x326   : > { %v1033_v53 = vadd.f32 %v8604_v34, %v1019_v12 }
 0x328   : > { %v8939_v49 = vadd.f32 %v1033_v53, %v8580_v6  ;;  %v4031_v53 = vadd.f32 %v4029_v28, %v4027_v32  ;;  %v973_v32 = vmul.f32 %v8566_v55, %v8468_v7 }
 0x329   : > { %v8906_v19 = vpop.xlane.xlu1 %1341 }
 0x32a   : > { %12592 = vst [vmem:[#allocation62_spill] sm:$0xff] %v8906_v19  ;;  %v8921_v19 = vpop.xlane.xlu0 %1368  ;;  %12596 = vst [vmem:[#allocation66_spill] sm:$0xff] %v8939_v49  ;;  %v4033_v34 = vmul.f32 %v8939_v49, %v8939_v49 }
 0x32c   : > { %v8953_v54 = vadd.f32 %v4033_v34, %v4031_v53  ;;  %v939_v53 = vmul.f32 %v8584_v10, %v8468_v7 }
 0x32e   : > { %v8933_v8 = vpop.xlane.xlu0 %1374 }
 0x332   : > { %v8945_v30 = vpop.xlane.xlu0 %1338 }
 0x336   : > { %v1118_v59 = vpop.xlane.xlu1 %1117 }
 0x337   : > { %v1205_v17 = vmul.f32 %v8911_v56, %v1118_v59 }
 0x339   : > { %1209 = vrot.lane.b32.xlu0 %v1205_v17, %s8066_s23 }
 0x33d   : > { %1836 = vrot.lane.b32.xlu0 %v8703_v40, %s8067_s27 }
 0x341   : > { %2588 = vrot.lane.b32.xlu0 %v8751_v13, %s8068_s13  ;;  %v8957_v13 = vpop.xlane.xlu0 %1380 }
 0x345   : > { %2576 = vrot.lane.b32.xlu0 %v8638_v50, %s8069_s5  ;;  %v8962_v51 = vpop.xlane.xlu0 %1344 }
 0x349   : > { %4039 = vrot.lane.b32.xlu0 %v8953_v54, %s8070_s10 }
 0x34d   : > { %4015 = vrot.lane.b32.xlu0 %v8638_v50, %s12448_s24  ;;  %v1121_v12 = vpop.xlane.xlu1 %1120 }
 0x34e   : > { %v1206_v35 = vmul.f32 %v8911_v56, %v1121_v12  ;;  %v987_v12 = vadd.f32 %v8590_v23, %v973_v32 }
 0x350   : > { %1211 = vrot.lane.b32.xlu1 %v1206_v35, %s8066_s23  ;;  %v1007_v35 = vmul.f32 %v8568_v58, %v8468_v7  ;;  %s8074_s23 = smov 52  }
 0x352   : > { %v1021_v63 = vadd.f32 %v8614_v44, %v1007_v35 }
 0x354   : > { %v1035_v10 = vadd.f32 %v8618_v2, %v1021_v63 }
 0x355   : > { %v1145_v47 = vpop.xlane.xlu0 %1144 }
 0x356   : > { %v1264_v59 = vmul.f32 %v8911_v56, %v1145_v47  ;;  %v953_v47 = vadd.f32 %v8586_v20, %v939_v53 }
 0x358   : > { %1269 = vrot.lane.b32.xlu1 %v1264_v59, %s8072_s21  ;;  %v1001_v59 = vadd.f32 %v8600_v31, %v987_v12  ;;  %v967_v55 = vadd.f32 %v8596_v29, %v953_v47  ;;  %v9011_v31 = vadd.f32 %v1035_v10, %v8582_v9 }
 0x359   : > { %v8966_v62 = vpop.xlane.xlu0 %1386 }
 0x35a   : > { %v9001_v23 = vadd.f32 %v1001_v59, %v8578_v5  ;;  %v9008_v20 = vadd.f32 %v967_v55, %v8576_v4  ;;  %12602 = vst [vmem:[#allocation72_spill] sm:$0xff] %v9011_v31  ;;  %v4034_v44 = vmul.f32 %v9011_v31, %v9011_v31 }
 0x35c   : > { %1804 = vrot.lane.b32.xlu1 %v8442_v57, %s8065_s20  ;;  %12600 = vst [vmem:[#allocation70_spill] sm:$0xff] %v9001_v23  ;;  %12601 = vst [vmem:[#allocation71_spill] sm:$0xff] %v9008_v20  ;;  %v4030_v2 = vmul.f32 %v9001_v23, %v9001_v23  ;;  %v4028_v29 = vmul.f32 %v9008_v20, %v9008_v20 }
 0x35d   : > { %v8970_v17 = vpop.xlane.xlu0 %1350 }
 0x35e   : > { %12597 = vst [vmem:[#allocation67_spill] sm:$0xff] %v8970_v17  ;;  %v4032_v55 = vadd.f32 %v4030_v2, %v4028_v29 }
 0x360   : > { %1812 = vrot.lane.b32.xlu1 %v8728_v11, %s8072_s21  ;;  %v9026_v32 = vadd.f32 %v4034_v44, %v4032_v55 }
 0x361   : > { %v8974_v38 = vpop.xlane.xlu0 %1392 }
 0x364   : > { %1814 = vrot.lane.b32.xlu1 %v8675_v18, %s8072_s21 }
 0x365   : > { %v8978_v28 = vpop.xlane.xlu0 %1356 }
 0x366   : > { %12598 = vst [vmem:[#allocation68_spill] sm:$0xff] %v8978_v28 }
 0x368   : > { %1823 = vrot.lane.b32.xlu1 %v8731_v33, %s8062_s14 }
 0x369   : > { %v8984_v34 = vpop.xlane.xlu0 %1398 }
 0x36c   : > { %1825 = vrot.lane.b32.xlu1 %v8693_v16, %s8062_s14  ;;  %s8073_s14 = smov 108  }
 0x36d   : > { %v8996_v1 = vpop.xlane.xlu0 %1362 }
 0x36e   : > { %12599 = vst [vmem:[#allocation69_spill] sm:$0xff] %v8996_v1 }
 0x370   : > { %1834 = vrot.lane.b32.xlu1 %v8712_v26, %s8067_s27  ;;  %s8075_s27 = smov 20  }
 0x371   : > { %v9005_v7 = vpop.xlane.xlu0 %1404 }
 0x374   : > { %2590 = vrot.lane.b32.xlu1 %v8735_v43, %s8068_s13  ;;  %v9032_v43 = vpop.xlane.xlu1 %1141 }
 0x375   : > { %v9017_v63 = vpop.xlane.xlu0 %1410 }
 0x378   : > { %2578 = vrot.lane.b32.xlu1 %v8705_v14, %s8069_s5  ;;  %v9034_v53 = vpop.xlane.xlu1 %1383  ;;  %s8076_s5 = smov 24  }
 0x379   : > { %v1803_v10 = vpop.permute.xlu0 %1802 }
 0x37a   : > { %1808 = vst.msk [vmem:[#allocation4] sm:$0xff] %vm1148_vm3, %v1803_v10 }
 0x37c   : > { %4041 = vrot.lane.b32.xlu1 %v9026_v32, %s8070_s10  ;;  %v9036_v12 = vpop.xlane.xlu1 %1347 }
 0x37d   : > { %12603 = vst [vmem:[#allocation73_spill] sm:$0xff] %v9036_v12  ;;  %v12606_v12 = vmov 3  }
 0x380   : > { %4017 = vrot.lane.b32.xlu1 %v8705_v14, %s12448_s24  ;;  %v9038_v35 = vpop.xlane.xlu1 %1389  ;;  %s8080_s24 = smov 12  }
 0x384   : > { %v9040_v47 = vpop.xlane.xlu1 %1353 }
 0x385   : > { %12604 = vst [vmem:[#allocation74_spill] sm:$0xff] %v9040_v47 }
 0x388   : > { %v9042_v59 = vpop.xlane.xlu1 %1395 }
 0x38c   : > { %v9044_v29 = vpop.xlane.xlu1 %1359 }
 0x38d   : > { %12605 = vst [vmem:[#allocation75_spill] sm:$0xff] %v9044_v29 }
 0x390   : > { %v9047_v55 = vpop.xlane.xlu1 %1401 }
 0x394   : > { %v9051_v5 = vpop.xlane.xlu1 %1407 }
 0x398   : > { %v9054_v3 = vpop.permute.xlu1 %1419 }
 0x3ab   : > { %v1210_v2 = vpop.permute.xlu0 %1209 }
 0x3ac   : > { %1215 = vst.msk [vmem:[#allocation2] sm:$0xff] %vm1080_vm4, %v1210_v2 }
 0x3af   : > { %v1837_v44 = vpop.permute.xlu0 %1836 }
 0x3b3   : > { %v2589_v10 = vpop.permute.xlu0 %2588  ;;  %v1275_v4 = vld [vmem:[#allocation2] sm:$0xff] }
 0x3b4   : > { %7295 = vmatprep.mubr.msk.f32.mxu1 %vm595_vm0, %v1275_v4  ;;  %v2594_v58 = vsel %vm1115_vm7, %v2589_v10, 0.0 }
 0x3b5   : > { %2595 = vadd.xlane.f32.xlu1 %v2594_v58 }
 0x3b7   : > { %v2577_v9 = vpop.permute.xlu0 %2576 }
 0x3b8   : > { %v2582_v6 = vsel %vm1115_vm7, %v2577_v9, 0.0 }
 0x3b9   : > { %2583 = vadd.xlane.f32.xlu1 %v2582_v6 }
 0x3bb   : > { %v4040_v29 = vpop.permute.xlu0 %4039 }
 0x3c2   : > { %v1212_v57 = vpop.permute.xlu1 %1211 }
 0x3c3   : > { %1216 = vst.msk [vmem:[#allocation2 + $0x8] sm:$0xff] %vm1080_vm4, %v1212_v57  ;;  %v9064_v57 = vld [vmem:[#allocation12] sm:$0x1] }
 0x3c4   : > { %7654 = vrsqrt.f32 %v9064_v57  ;;  %vm2570_vm14 = vcmp.eq.f32.partialorder %v9064_v57, inf  ;;  %vm2572_vm15 = vcmp.eq.f32.partialorder %v9064_v57, 0.0 }
 0x3ca   : > { %v1270_v2 = vpop.permute.xlu1 %1269 }
 0x3cb   : > { %1274 = vst.msk [vmem:[#allocation3 + $0x8] sm:$0xff] %vm1077_vm2, %v1270_v2 }
 0x3ce   : > { %v1805_v1 = vpop.permute.xlu1 %1804 }
 0x3cf   : > { %1809 = vst.msk [vmem:[#allocation4 + $0x8] sm:$0xff] %vm1148_vm3, %v1805_v1 }
 0x3d2   : > { %v1813_v4 = vpop.permute.xlu1 %1812 }
 0x3d3   : > { %1819 = vst.msk [vmem:[#allocation4] sm:$0xff] %vm12473_vm11, %v1813_v4 }
 0x3d6   : > { %v1815_v58 = vpop.permute.xlu1 %1814 }
 0x3d7   : > { %1820 = vst.msk [vmem:[#allocation4 + $0x8] sm:$0xff] %vm12473_vm11, %v1815_v58  ;;  %vm1678_vm11 = vcmask 1047559  }
 0x3da   : > { %v1824_v6 = vpop.permute.xlu1 %1823 }
 0x3db   : > { %1830 = vst.msk [vmem:[#allocation4] sm:$0xff] %vm12472_vm12, %v1824_v6  ;;  %v9070_v6 = vld [vmem:[#allocation12] sm:$0x1] }
 0x3dc   : > { %7656 = vrsqrt.f32 %v9070_v6  ;;  %vm4009_vm1 = vcmp.eq.f32.partialorder %v9070_v6, inf  ;;  %vm4011_vm5 = vcmp.eq.f32.partialorder %v9070_v6, 0.0 }
 0x3de   : > { %v1826_v9 = vpop.permute.xlu1 %1825 }
 0x3df   : > { %1831 = vst.msk [vmem:[#allocation4 + $0x8] sm:$0xff] %vm12472_vm12, %v1826_v9  ;;  %v7655_v9 = vpop.eup %7654  ;;  %vm1676_vm12 = vcmask 1046534  }
 0x3e0   : > { %1842 = vst.msk [vmem:[#allocation4 + $0x8] sm:$0xff] %vm12464_vm13, %v1837_v44  ;;  %v4045_v44 = vsel %vm1115_vm7, %v4040_v29, 0.0 }
 0x3e2   : > { %v1835_v1 = vpop.permute.xlu1 %1834 }
 0x3e3   : > { %1841 = vst.msk [vmem:[#allocation4] sm:$0xff] %vm12464_vm13, %v1835_v1  ;;  %v2569_v1 = vmul.f32 %v7655_v9, %v9064_v57  ;;  %vm1674_vm13 = vcmask 1045509  }
 0x3e5   : > { %v2571_v47 = vsel %vm2570_vm14, %v9064_v57, %v2569_v1 }
 0x3e6   : > { %v2591_v10 = vpop.permute.xlu1 %2590  ;;  %v7657_v29 = vpop.eup %7656 }
 0x3e7   : > { %v2597_v2 = vsel %vm1115_vm7, %v2591_v10, 0.0  ;;  %v4008_v9 = vmul.f32 %v7657_v29, %v9070_v6 }
 0x3e8   : > { %2598 = vadd.xlane.f32.xlu0 %v2597_v2  ;;  %v2573_v2 = vand.u32 2147483648, %v9064_v57 }
 0x3ea   : > { %v2579_v4 = vpop.permute.xlu1 %2578  ;;  %v2574_v17 = vsel %vm2572_vm15, %v2573_v2, %v2571_v47 }
 0x3eb   : > { %v2585_v58 = vsel %vm1115_vm7, %v2579_v4, 0.0  ;;  %v4016_v4 = vpop.permute.xlu0 %4015 }
 0x3ec   : > { %2586 = vadd.xlane.f32.xlu1 %v2585_v58  ;;  %v4021_v58 = vsel %vm1115_vm7, %v4016_v4, 0.0 }
 0x3ee   : > { %v4042_v28 = vpop.permute.xlu1 %4041 }
 0x3ef   : > { %v4048_v10 = vsel %vm1115_vm7, %v4042_v28, 0.0  ;;  %v4012_v28 = vand.u32 2147483648, %v9070_v6 }
 0x3f0   : > { %4046 = vadd.xlane.f32.xlu1 %v4045_v44  ;;  %v2612_v44 = vrot.slane %v2574_v17, %v8413_v39 }
 0x3f2   : > { %v4018_v17 = vpop.permute.xlu1 %4017 }
 0x3f3   : > { %v4024_v2 = vsel %vm1115_vm7, %v4018_v17, 0.0 }
 0x3f4   : > { %4049 = vadd.xlane.f32.xlu1 %v4048_v10  ;;  %v4010_v10 = vsel %vm4009_vm1, %v9070_v6, %v4008_v9  ;;  %vm1666_vm1 = vcmask 1041409  }
 0x3f5   : > { %v4013_v1 = vsel %vm4011_vm5, %v4012_v28, %v4010_v10  ;;  %v2575_v10 = vmul.f32 -0.5, %v9064_v57  ;;  %vm1668_vm5 = vcmask 1042434  }
 0x3f6   : > { %v4063_v47 = vrot.slane %v4013_v1, %v8413_v39 }
 0x3f8   : > { %4022 = vadd.xlane.f32.xlu1 %v4021_v58 }
 0x3fe   : > { %2614 = vperm.xlu0 %7646, %v2612_v44  }
 0x402   : > { %7648 = vset.pattern.permute.xlu0 %v12606_v12 }
 0x409   : > { %4065 = vperm.xlu1 %7647, %v4063_v47   ;;  %v9119_v47 = vrot.slane %v2575_v10, %v8413_v39 }
 0x40d   : > { %5462 = vrot.lane.b32.xlu1 %v8953_v54, %s8073_s14  ;;  %v1263_v54 = vmul.f32 %v8911_v56, %v9032_v43 }
 0x411   : > { %5450 = vrot.lane.b32.xlu1 %v8638_v50, %s8074_s23 }
 0x415   : > { %5452 = vrot.lane.b32.xlu1 %v8705_v14, %s8074_s23  ;;  %s12474_s23 = smov 76  }
 0x419   : > { %2673 = vrot.lane.b32.xlu1 %v8453_v61, %s8058_s17 }
 0x41d   : > { %4025 = vadd.xlane.f32.xlu0 %v4024_v2 }
 0x433   : > { %5464 = vrot.lane.b32.xlu0 %v9026_v32, %s8073_s14  ;;  %s8077_s14 = smov 27  }
 0x437   : > { %2671 = vrot.lane.b32.xlu0 %v8433_v52, %s8058_s17 }
 0x43b   : > { %1267 = vrot.lane.b32.xlu0 %v1263_v54, %s8072_s21 }
 0x442   : > { %v9101_v50 = vpop.xlane.xlu1 %2595 }
 0x446   : > { %v2584_v14 = vpop.xlane.xlu1 %2583 }
 0x475   : > { %v2599_v4 = vpop.xlane.xlu0 %2598 }
 0x479   : > { %v2587_v58 = vpop.xlane.xlu1 %2586 }
 0x47d   : > { %v2615_v29 = vpop.permute.xlu0 %2614  ;;  %v9103_v44 = vpop.xlane.xlu1 %4046 }
 0x47e   : > { %v2680_v9 = vmul.f32 %v2615_v29, %v8675_v18  ;;  %v2679_v32 = vmul.f32 %v2615_v29, %v8728_v11  ;;  %v2692_v43 = vmul.f32 %v2615_v29, %v8693_v16  ;;  %v2691_v28 = vmul.f32 %v2615_v29, %v8731_v33 }
 0x47f   : > { %v2704_v11 = vmul.f32 %v2615_v29, %v8703_v40  ;;  %v2703_v1 = vmul.f32 %v2615_v29, %v8712_v26  ;;  %v2716_v33 = vmul.f32 %v9119_v47, %v2599_v4  ;;  %v2617_v26 = vmul.f32 %v2615_v29, %v8624_v48 }
 0x480   : > { %2685 = vrot.lane.b32.xlu1 %v2680_v9, %s8075_s27  ;;  %2683 = vrot.lane.b32.xlu0 %v2679_v32, %s8075_s27  ;;  %v2618_v17 = vmul.f32 %v2615_v29, %v8650_v45  ;;  %v2629_v2 = vmul.f32 %v2615_v29, %v8621_v25  ;;  %v2630_v4 = vmul.f32 %v2615_v29, %v8661_v21  ;;  %v1278_v32 = vld [vmem:[#allocation3 + $0x8] sm:$0xff] }
 0x481   : > { %v4050_v56 = vpop.xlane.xlu1 %4049  ;;  %v2641_v9 = vmul.f32 %v2615_v29, %v8633_v15  ;;  %v2642_v10 = vmul.f32 %v2615_v29, %v8667_v24 }
 0x484   : > { %2697 = vrot.lane.b32.xlu1 %v2692_v43, %s8076_s5  ;;  %2695 = vrot.lane.b32.xlu0 %v2691_v28, %s8076_s5  ;;  %v2659_v28 = vmul.f32 %v9119_v47, %v2584_v14  ;;  %v2660_v14 = vmul.f32 %v9119_v47, %v2587_v58 }
 0x485   : > { %v9114_v18 = vpop.xlane.xlu1 %4022 }
 0x488   : > { %2709 = vrot.lane.b32.xlu1 %v2704_v11, %s8072_s21  ;;  %2707 = vrot.lane.b32.xlu0 %v2703_v1, %s8072_s21 }
 0x489   : > { %v9123_v16 = vpop.permute.xlu1 %4065 }
 0x48a   : > { %v4127_v11 = vmul.f32 %v9123_v16, %v9008_v20  ;;  %v4126_v1 = vmul.f32 %v9123_v16, %v8936_v22  ;;  %v4138_v29 = vmul.f32 %v9123_v16, %v8929_v27 }
 0x48c   : > { %2721 = vrot.lane.b32.xlu1 %v2716_v33, %s8077_s14  ;;  %2600 = vrot.lane.b32.xlu0 %v8433_v52, %s8055_s26  ;;  %v4150_v33 = vmul.f32 %v9123_v16, %v8939_v49 }
 0x48d   : > { %v9129_v40 = vpop.permute.xlu1 %5462 }
 0x490   : > { %2602 = vrot.lane.b32.xlu1 %v8453_v61, %s8055_s26  ;;  %2621 = vrot.lane.b32.xlu0 %v2617_v26, %s12474_s23  ;;  %v4139_v26 = vmul.f32 %v9123_v16, %v9001_v23 }
 0x491   : > { %v9135_v57 = vpop.permute.xlu1 %5450 }
 0x494   : > { %2623 = vrot.lane.b32.xlu1 %v2618_v17, %s12474_s23  ;;  %2633 = vrot.lane.b32.xlu0 %v2629_v2, %s8057_s28  ;;  %v4014_v17 = vmul.f32 -0.5, %v9070_v6  ;;  %v4151_v2 = vmul.f32 %v9123_v16, %v9011_v31  ;;  %v4068_v6 = vmul.f32 %v9123_v16, %v8624_v48 }
 0x495   : > { %v9141_v54 = vpop.permute.xlu1 %5452 }
 0x498   : > { %2635 = vrot.lane.b32.xlu1 %v2630_v4, %s8057_s28  ;;  %2645 = vrot.lane.b32.xlu0 %v2641_v9, %s8060_s25  ;;  %v9173_v4 = vrot.slane %v4014_v17, %v8413_v39 }
 0x499   : > { %v2674_v43 = vpop.permute.xlu1 %2673 }
 0x49a   : > { %2678 = vst.msk [vmem:[#allocation3 + $0x8] sm:$0xff] %vm1148_vm3, %v2674_v43  ;;  %v4163_v9 = vmul.f32 %v9173_v4, %v4050_v56 }
 0x49c   : > { %2647 = vrot.lane.b32.xlu1 %v2642_v10, %s8060_s25  ;;  %2663 = vrot.lane.b32.xlu0 %v2659_v28, %s8072_s21  ;;  %s8081_s25 = smov 26   ;;  %v4080_v10 = vmul.f32 %v9123_v16, %v8621_v25 }
 0x4a0   : > { %4132 = vrot.lane.b32.xlu0 %v4127_v11, %s8079_s15  ;;  %4130 = vrot.lane.b32.xlu1 %v4126_v1, %s8079_s15  ;;  %v4069_v11 = vmul.f32 %v9123_v16, %v8650_v45  ;;  %v4092_v1 = vmul.f32 %v9123_v16, %v8633_v15 }
 0x4a4   : > { %4142 = vrot.lane.b32.xlu0 %v4138_v29, %s8080_s24  ;;  %2665 = vrot.lane.b32.xlu1 %v2660_v14, %s8072_s21  ;;  %s8082_s21 = smov 72   ;;  %v4110_v14 = vmul.f32 %v9173_v4, %v9114_v18  ;;  %v4081_v29 = vmul.f32 %v9123_v16, %v8661_v21  ;;  %v1844_v18 = vld [vmem:[#allocation4 + $0x8] sm:$0xff] }
 0x4a8   : > { %4154 = vrot.lane.b32.xlu0 %v4150_v33, %s8064_s22  ;;  %4144 = vrot.lane.b32.xlu1 %v4139_v26, %s8080_s24  ;;  %v4093_v33 = vmul.f32 %v9123_v16, %v8667_v24 }
 0x4aa   : > { %v4026_v58 = vpop.xlane.xlu0 %4025 }
 0x4ab   : > { %v4111_v16 = vmul.f32 %v9173_v4, %v4026_v58 }
 0x4ac   : > { %4051 = vrot.lane.b32.xlu0 %v8433_v52, %s12450_s18  ;;  %4156 = vrot.lane.b32.xlu1 %v4151_v2, %s8064_s22  ;;  %v1843_v2 = vld [vmem:[#allocation4] sm:$0xff] }
 0x4ae   : > { %v5465_v43 = vpop.permute.xlu0 %5464 }
 0x4af   : > { %v5471_v58 = vsel %vm1115_vm7, %v5465_v43, 0.0 }
 0x4b0   : > { %4168 = vrot.lane.b32.xlu1 %v4163_v9, %s8081_s25  ;;  %4072 = vrot.lane.b32.xlu0 %v4068_v6, %s8082_s21  ;;  %v7397_v6 = vpack.c.bf16 %v1844_v18, %v1843_v2  ;;  %v4162_v2 = vmul.f32 %v9173_v4, %v9103_v44  ;;  %v12609_v44 = vmov 1  }
 0x4b2   : > { %v2672_v28 = vpop.permute.xlu0 %2671 }
 0x4b4   : > { %4053 = vrot.lane.b32.xlu1 %v8453_v61, %s12450_s18  ;;  %4084 = vrot.lane.b32.xlu0 %v4080_v10, %s12474_s23  ;;  %v1276_v10 = vld [vmem:[#allocation2 + $0x8] sm:$0xff] }
 0x4b6   : > { %v1268_v56 = vpop.permute.xlu0 %1267 }
 0x4b7   : > { %1273 = vst.msk [vmem:[#allocation3] sm:$0xff] %vm1077_vm2, %v1268_v56 }
 0x4b8   : > { %4074 = vrot.lane.b32.xlu1 %v4069_v11, %s8082_s21  ;;  %4096 = vrot.lane.b32.xlu0 %v4092_v1, %s8057_s28  ;;  %v5456_v11 = vsel %vm1115_vm7, %v9135_v57, 0.0 }
 0x4bc   : > { %4086 = vrot.lane.b32.xlu1 %v4081_v29, %s12474_s23  ;;  %4114 = vrot.lane.b32.xlu0 %v4110_v14, %s8077_s14  ;;  %v5459_v29 = vsel %vm1115_vm7, %v9141_v54, 0.0 }
 0x4be   : > { %v1277_v26 = vld [vmem:[#allocation3] sm:$0xff] }
 0x4bf   : > { %v7391_v9 = vpack.c.bf16 %v1278_v32, %v1277_v26  ;;  %2677 = vst.msk [vmem:[#allocation3] sm:$0xff] %vm1148_vm3, %v2672_v28  ;;  %v5468_v32 = vsel %vm1115_vm7, %v9129_v40, 0.0  ;;  %v9220_v28 = vld [vmem:[#allocation12] sm:$0x1]  ;;  %v2715_v40 = vmul.f32 %v9119_v47, %v9101_v50  ;;  %vm1529_vm7 = vcmask 130112  }
 0x4c0   : > { %4098 = vrot.lane.b32.xlu1 %v4093_v33, %s8057_s28  ;;  %7658 = vrsqrt.f32 %v9220_v28  ;;  %vm5444_vm14 = vcmp.eq.f32.partialorder %v9220_v28, inf  ;;  %v5447_v14 = vand.u32 2147483648, %v9220_v28  ;;  %vm5446_vm15 = vcmp.eq.f32.partialorder %v9220_v28, 0.0 }
 0x4c1   : > { %7393 = vmatprep.subr.msk.bf16.mxu1 %vm9205_vm6, %v7391_v9 }
 0x4c2   : > { %7396 = vmatpush3.bf16.xpose.msk.msra.mxu1 %vm9205_vm6, %v7391_v9 }
 0x4c3   : > { %7398 = vmatprep.subr.bf16.mxu1 %v7397_v6 }
 0x4c4   : > { %4116 = vrot.lane.b32.xlu1 %v4111_v16, %s8077_s14  ;;  %v12610_v16 = vld [vmem:[#allocation37_spill] sm:$0xff] }
 0x4c9   : > { %7296 = vmatmul.mubr.msk.f32.vlgmr.msra.gmra.mrb[6].mxu1 %vm595_vm0, %v1276_v10  ;;  %v9250_v10 = vmul.f32 0.37991783, %v12610_v16 }
 0x4ca   : > { %7400 = vmatpush3.bf16.msra.mxu1 %v7397_v6  ;;  %v7659_v56 = vpop.eup %7658 }
 0x4cb   : > { %v5443_v1 = vmul.f32 %v7659_v56, %v9220_v28  ;;  %v12611_v56 = vld [vmem:[#allocation42_spill] sm:$0xff] }
 0x4cd   : > { %v5445_v43 = vsel %vm5444_vm14, %v9220_v28, %v5443_v1  ;;  %vm1670_vm14 = vcmask 1043459  }
 0x4ce   : > { %v5448_v26 = vsel %vm5446_vm15, %v5447_v14, %v5445_v43  ;;  %vm1672_vm15 = vcmask 1044484  }
 0x4cf   : > { %v5486_v50 = vrot.slane %v5448_v26, %v8413_v39 }
 0x4db   : > { %5469 = vadd.xlane.f32.xlu0 %v5468_v32 }
 0x4e8   : > { %5472 = vadd.xlane.f32.xlu1 %v5471_v58 }
 0x4ec   : > { %5457 = vadd.xlane.f32.xlu1 %v5456_v11  ;;  %v4123_v11 = vmul.f32 0.37991783, %v12611_v56 }
 0x4f0   : > { %5460 = vadd.xlane.f32.xlu1 %v5459_v29 }
 0x4f1   : > { %2719 = vrot.lane.b32.xlu0 %v2715_v40, %s8077_s14  ;;  %s8083_s14 = smov 124  }
 0x4f2   : > { %v2684_v57 = vpop.permute.xlu0 %2683  ;;  %v2686_v33 = vpop.permute.xlu1 %2685 }
 0x4f3   : > { %2689 = vst.msk [vmem:[#allocation3] sm:$0xff] %vm1170_vm8, %v2684_v57  ;;  %2690 = vst.msk [vmem:[#allocation3 + $0x8] sm:$0xff] %vm1170_vm8, %v2686_v33 }
 0x4f5   : > { %4166 = vrot.lane.b32.xlu0 %v4162_v2, %s8081_s25 }
 0x4f6   : > { %v2696_v47 = vpop.permute.xlu0 %2695  ;;  %v2698_v54 = vpop.permute.xlu1 %2697 }
 0x4f7   : > { %2701 = vst.msk [vmem:[#allocation3] sm:$0xff] %vm1183_vm9, %v2696_v47  ;;  %2702 = vst.msk [vmem:[#allocation3 + $0x8] sm:$0xff] %vm1183_vm9, %v2698_v54 }
 0x4f9   : > { %5488 = vperm.xlu0 %7648, %v5486_v50  }
 0x4fa   : > { %v2708_v9 = vpop.permute.xlu0 %2707  ;;  %v2710_v18 = vpop.permute.xlu1 %2709 }
 0x4fb   : > { %2713 = vst.msk [vmem:[#allocation3] sm:$0xff] %vm1196_vm10, %v2708_v9  ;;  %2714 = vst.msk [vmem:[#allocation3 + $0x8] sm:$0xff] %vm1196_vm10, %v2710_v18 }
 0x4fd   : > { %7649 = vset.pattern.permute.xlu0 %v12609_v44 }
 0x4fe   : > { %v2601_v4 = vpop.permute.xlu0 %2600  ;;  %v2722_v6 = vpop.permute.xlu1 %2721 }
 0x4ff   : > { %2606 = vst.msk [vmem:[#allocation2] sm:$0xff] %vm1148_vm3, %v2601_v4 }
 0x500   : > { %2726 = vst.msk [vmem:[#allocation3 + $0x8] sm:$0xff] %vm1077_vm2, %v2722_v6 }
 0x501   : > { %5547 = vrot.lane.b32.xlu1 %v9250_v10, %s12450_s18 }
 0x502   : > { %v2622_v32 = vpop.permute.xlu0 %2621  ;;  %v2603_v58 = vpop.permute.xlu1 %2602 }
 0x503   : > { %2627 = vst.msk [vmem:[#allocation2] sm:$0xff] %vm1170_vm8, %v2622_v32 }
 0x504   : > { %2607 = vst.msk [vmem:[#allocation2 + $0x8] sm:$0xff] %vm1148_vm3, %v2603_v58 }
 0x505   : > { %5549 = vrot.lane.b32.xlu1 %v4123_v11, %s12450_s18  ;;  %s8084_s18 = smov 25  }
 0x506   : > { %v2634_v1 = vpop.permute.xlu0 %2633  ;;  %v2624_v14 = vpop.permute.xlu1 %2623 }
 0x507   : > { %v9258_v40 = vld [vmem:[#allocation3 + $0x8] sm:$0xff]  ;;  %2639 = vst.msk [vmem:[#allocation2] sm:$0xff] %vm1183_vm9, %v2634_v1 }
 0x508   : > { %2628 = vst.msk [vmem:[#allocation2 + $0x8] sm:$0xff] %vm1170_vm8, %v2624_v14 }
 0x509   : > { %4125 = vst.msk [vmem:[#allocation3 + $0x8] sm:$0xff] %vm1148_vm3, %v4123_v11 }
 0x50a   : > { %v2646_v29 = vpop.permute.xlu0 %2645  ;;  %v2636_v43 = vpop.permute.xlu1 %2635 }
 0x50b   : > { %2651 = vst.msk [vmem:[#allocation2] sm:$0xff] %vm1196_vm10, %v2646_v29 }
 0x50c   : > { %2640 = vst.msk [vmem:[#allocation2 + $0x8] sm:$0xff] %vm1183_vm9, %v2636_v43 }
 0x50e   : > { %v2664_v57 = vpop.permute.xlu0 %2663  ;;  %v2648_v33 = vpop.permute.xlu1 %2647 }
 0x50f   : > { %2669 = vst.msk [vmem:[#allocation2] sm:$0xff] %vm1080_vm4, %v2664_v57 }
 0x510   : > { %2652 = vst.msk [vmem:[#allocation2 + $0x8] sm:$0xff] %vm1196_vm10, %v2648_v33 }
 0x512   : > { %v4133_v26 = vpop.permute.xlu0 %4132  ;;  %v4131_v2 = vpop.permute.xlu1 %4130 }
 0x513   : > { %4137 = vst.msk [vmem:[#allocation3 + $0x8] sm:$0xff] %vm1170_vm8, %v4133_v26 }
 0x516   : > { %v4143_v50 = vpop.permute.xlu0 %4142  ;;  %v2666_v47 = vpop.permute.xlu1 %2665  ;;  %v9270_v44 = vld [vmem:[#allocation2] sm:$0xff] }
 0x517   : > { %2670 = vst.msk [vmem:[#allocation2 + $0x8] sm:$0xff] %vm1080_vm4, %v2666_v47  ;;  %12612 = vst [vmem:[#allocation76_spill] sm:$0xff] %v9270_v44  ;;  %v12619_v44 = vld [vmem:[#allocation63_spill] sm:$0xff] }
 0x51a   : > { %v4155_v54 = vpop.permute.xlu0 %4154  ;;  %v4145_v9 = vpop.permute.xlu1 %4144 }
 0x51b   : > { %4149 = vst.msk [vmem:[#allocation3 + $0x8] sm:$0xff] %vm1183_vm9, %v4145_v9 }
 0x51e   : > { %v4052_v18 = vpop.permute.xlu0 %4051  ;;  %v4157_v4 = vpop.permute.xlu1 %4156  ;;  %v9276_v11 = vld [vmem:[#allocation2 + $0x8] sm:$0xff] }
 0x51f   : > { %4057 = vst.msk [vmem:[#allocation2] sm:$0xff] %vm1148_vm3, %v4052_v18  ;;  %12613 = vst [vmem:[#allocation77_spill] sm:$0xff] %v9276_v11  ;;  %v12618_v11 = vld [vmem:[#allocation60_spill] sm:$0xff] }
 0x520   : > { %4161 = vst.msk [vmem:[#allocation3 + $0x8] sm:$0xff] %vm1196_vm10, %v4157_v4 }
 0x522   : > { %v4073_v6 = vpop.permute.xlu0 %4072  ;;  %v4169_v32 = vpop.permute.xlu1 %4168 }
 0x523   : > { %4078 = vst.msk [vmem:[#allocation2] sm:$0xff] %vm1170_vm8, %v4073_v6 }
 0x524   : > { %4173 = vst.msk [vmem:[#allocation3 + $0x8] sm:$0xff] %vm1077_vm2, %v4169_v32 }
 0x526   : > { %v4085_v58 = vpop.permute.xlu0 %4084  ;;  %v4054_v1 = vpop.permute.xlu1 %4053 }
 0x527   : > { %4090 = vst.msk [vmem:[#allocation2] sm:$0xff] %vm1183_vm9, %v4085_v58  ;;  %v5449_v58 = vmul.f32 -0.5, %v9220_v28 }
 0x528   : > { %4058 = vst.msk [vmem:[#allocation2 + $0x8] sm:$0xff] %vm1148_vm3, %v4054_v1 }
 0x52a   : > { %v4097_v14 = vpop.permute.xlu0 %4096  ;;  %v4075_v29 = vpop.permute.xlu1 %4074 }
 0x52b   : > { %4102 = vst.msk [vmem:[#allocation2] sm:$0xff] %vm1196_vm10, %v4097_v14 }
 0x52c   : > { %4079 = vst.msk [vmem:[#allocation2 + $0x8] sm:$0xff] %vm1170_vm8, %v4075_v29 }
 0x52e   : > { %v4115_v43 = vpop.permute.xlu0 %4114  ;;  %v4087_v57 = vpop.permute.xlu1 %4086 }
 0x52f   : > { %4120 = vst.msk [vmem:[#allocation2] sm:$0xff] %vm1080_vm4, %v4115_v43  ;;  %v5531_v43 = vrot.slane %v5449_v58, %v8413_v39 }
 0x530   : > { %4091 = vst.msk [vmem:[#allocation2 + $0x8] sm:$0xff] %vm1183_vm9, %v4087_v57  ;;  %v4177_v57 = vld [vmem:[#allocation3 + $0x8] sm:$0xff] }
 0x532   : > { %v4099_v33 = vpop.permute.xlu1 %4098 }
 0x533   : > { %4103 = vst.msk [vmem:[#allocation2 + $0x8] sm:$0xff] %vm1196_vm10, %v4099_v33 }
 0x536   : > { %v4117_v26 = vpop.permute.xlu1 %4116  ;;  %v4174_v47 = vld [vmem:[#allocation2] sm:$0xff] }
 0x537   : > { %4121 = vst.msk [vmem:[#allocation2 + $0x8] sm:$0xff] %vm1080_vm4, %v4117_v26  ;;  %7337 = vmatprep.mubr.msk.f32.mxu0 %vm595_vm0, %v4174_v47 }
 0x568   : > { %v5470_v9 = vpop.xlane.xlu0 %5469 }
 0x56c   : > { %v2720_v18 = vpop.permute.xlu0 %2719 }
 0x56d   : > { %2725 = vst.msk [vmem:[#allocation3] sm:$0xff] %vm1077_vm2, %v2720_v18  ;;  %v5583_v18 = vmul.f32 %v5531_v43, %v5470_v9 }
 0x570   : > { %v4167_v6 = vpop.permute.xlu0 %4166 }
 0x574   : > { %v9288_v4 = vld [vmem:[#allocation3] sm:$0xff] }
 0x575   : > { %4124 = vst.msk [vmem:[#allocation3] sm:$0xff] %vm1148_vm3, %v9250_v10  ;;  %v5473_v32 = vpop.xlane.xlu1 %5472 }
 0x576   : > { %4136 = vst.msk [vmem:[#allocation3] sm:$0xff] %vm1170_vm8, %v4131_v2  ;;  %v5584_v28 = vmul.f32 %v5531_v43, %v5473_v32 }
 0x577   : > { %4148 = vst.msk [vmem:[#allocation3] sm:$0xff] %vm1183_vm9, %v4143_v50 }
 0x578   : > { %4160 = vst.msk [vmem:[#allocation3] sm:$0xff] %vm1196_vm10, %v4155_v54  ;;  %v9296_v1 = vpop.permute.xlu0 %5488 }
 0x579   : > { %4172 = vst.msk [vmem:[#allocation3] sm:$0xff] %vm1077_vm2, %v4167_v6  ;;  %v5458_v14 = vpop.xlane.xlu1 %5457  ;;  %v5572_v29 = vmul.f32 %v9296_v1, %v9011_v31  ;;  %v5555_v10 = vmul.f32 %v9296_v1, %v8936_v22  ;;  %v5556_v50 = vmul.f32 %v9296_v1, %v9008_v20  ;;  %v5571_v26 = vmul.f32 %v9296_v1, %v8939_v49  ;;  %v9450_v22 = vld [vmem:[%s8762_s16 + $0xa0] sm:$0xff] }
 0x57a   : > { %v5492_v32 = vmul.f32 %v9296_v1, %v8650_v45  ;;  %v5504_v58 = vmul.f32 %v9296_v1, %v8661_v21  ;;  %v5516_v45 = vmul.f32 %v9296_v1, %v8667_v24  ;;  %v5503_v21 = vmul.f32 %v9296_v1, %v8621_v25  ;;  %v9348_v25 = vld [vmem:[%s12358_s6 + $0x1] ss:$0 sm:$0xff] }
 0x57b   : > { %5577 = vrot.lane.b32.xlu0 %v5572_v29, %s8068_s13  ;;  %5559 = vrot.lane.b32.xlu1 %v5555_v10, %s8083_s14  ;;  %v4175_v29 = vld [vmem:[#allocation2 + $0x8] sm:$0xff]  ;;  %v5533_v24 = vmul.f32 %v5531_v43, %v5458_v14 }
 0x57d   : > { %v5461_v2 = vpop.xlane.xlu1 %5460 }
 0x57f   : > { %5561 = vrot.lane.b32.xlu1 %v5556_v50, %s8083_s14  ;;  %5589 = vrot.lane.b32.xlu0 %v5584_v28, %s8084_s18  ;;  %s12452_s14 = smov 68   ;;  %v9351_v28 = vld [vmem:[%s8762_s16 + $0x8] sm:$0xff] }
 0x580   : > { %v4176_v54 = vld [vmem:[#allocation3] sm:$0xff] }
 0x581   : > { %v5548_v33 = vpop.permute.xlu1 %5547  ;;  %v7419_v47 = vpack.c.bf16 %v4177_v57, %v4176_v54  ;;  %v9363_v54 = vld [vmem:[%s8762_s16 + $0x20] sm:$0xff] }
 0x582   : > { %5553 = vst.msk [vmem:[#allocation3] sm:$0xff] %vm1148_vm3, %v5548_v33  ;;  %v2740_v57 = vmul.f32 %v9363_v54, %v9348_v25  ;;  %v12614_v33 = vlaneseq }
 0x583   : > { %5575 = vrot.lane.b32.xlu1 %v5571_v26, %s8068_s13  ;;  %7421 = vmatprep.subr.msk.bf16.mxu0 %vm9205_vm6, %v7419_v47 }
 0x584   : > { %5476 = vrot.lane.b32.xlu0 %v8453_v61, %s8057_s28  ;;  %7424 = vmatpush3.bf16.xpose.msk.msra.mxu0 %vm9205_vm6, %v7419_v47  ;;  %v5491_v61 = vmul.f32 %v9296_v1, %v8624_v48  ;;  %v5515_v48 = vmul.f32 %v9296_v1, %v8633_v15  ;;  %v2737_v15 = vmul.f32 %v9351_v28, %v9348_v25  ;;  %v1519_v26 = vand.u32 127, %v12614_v33 }
 0x585   : > { %v5550_v6 = vpop.permute.xlu1 %5549  ;;  %v2780_v47 = vsel %vm1148_vm3, %v2740_v57, 0.0  ;;  %v1439_v57 = vadd.f32 %v9054_v3, %v8921_v19  ;;  %v1440_v33 = vadd.f32 %v9054_v3, %v8893_v36  ;;  %v1446_v19 = vadd.f32 %v9054_v3, %v9038_v35 }
 0x586   : > { %5554 = vst.msk [vmem:[#allocation3 + $0x8] sm:$0xff] %vm1148_vm3, %v5550_v6  ;;  %v2771_v14 = vsel %vm1148_vm3, %v2737_v15, 0.0  ;;  %v12615_v15 = vld [vmem:[#allocation29_spill] sm:$0xff]  ;;  %v1448_v35 = vadd.f32 %v9054_v3, %v9042_v59  ;;  %v9443_v59 = vadd.f32 %v9054_v3, %v9017_v63 }
 0x587   : > { %5587 = vrot.lane.b32.xlu1 %v5583_v18, %s8084_s18  ;;  %v9370_v18 = vld [vmem:[%s8762_s16 + $0x80] sm:$0xff]  ;;  %v1472_v49 = vmul.f32 0.57735026, %v1440_v33  ;;  %12616 = vst [vmem:[#allocation29_spill] sm:$0xff] %v9450_v22  ;;  %s9685_s18 = scalar_lea.vmem %s12355_s3, %s8353_s30  ;;  %s12870_s30 = smov 76  }
 0x588   : > { %5497 = vrot.lane.b32.xlu0 %v5492_v32, %s12452_s14  ;;  %v2752_v6 = vmul.f32 %v9370_v18, %v9348_v25  ;;  %v9375_v32 = vld [vmem:[%s8762_s16] sm:$0xff] }
 0x58b   : > { %5474 = vrot.lane.b32.xlu1 %v8433_v52, %s8057_s28  ;;  %7338 = vmatmul.mubr.msk.f32.vlgmr.msra.gmra.mrb[0].mxu0 %vm595_vm0, %v4175_v29  ;;  %v5534_v52 = vmul.f32 %v5531_v43, %v5461_v2  ;;  %v9357_v43 = vld [vmem:[%s8762_s16 + $0x10] sm:$0xff]  ;;  %v1524_v29 = vadd.s32 4294967288, %v1519_v26 }
 0x58c   : > { %5509 = vrot.lane.b32.xlu0 %v5504_v58, %s8082_s21  ;;  %v2738_v2 = vmul.f32 %v9357_v43, %v9348_v25  ;;  %v2736_v58 = vmul.f32 %v9375_v32, %v9348_v25 }
 0x58e   : > { %v2774_v50 = vsel %vm1148_vm3, %v2738_v2, 0.0  ;;  %v9395_v2 = vsub.s32 %v1524_v29, %v12615_v15  ;;  %v9418_v29 = vld [vmem:[%s8762_s16 + $0x30] sm:$0xff] }
 0x58f   : > { %5495 = vrot.lane.b32.xlu1 %v5491_v61, %s12452_s14  ;;  %v2816_v61 = vsel %vm1148_vm3, %v2752_v6, 0.0  ;;  %v1443_v6 = vadd.f32 %v9054_v3, %v8957_v13  ;;  %v9423_v13 = vld [vmem:[%s8762_s16 + $0x28] sm:$0xff]  ;;  %s8087_s14 = smov 104  }
 0x590   : > { %5521 = vrot.lane.b32.xlu0 %v5516_v45, %s12474_s23  ;;  %v2768_v45 = vsel %vm1148_vm3, %v2736_v58, 0.0  ;;  %v1444_v58 = vadd.f32 %v9054_v3, %v9034_v53  ;;  %v2741_v53 = vmul.f32 %v9423_v13, %v9348_v25 }
 0x592   : > { %v9461_v33 = vmul.f32 0.57735026, %v1444_v58 }
 0x593   : > { %5507 = vrot.lane.b32.xlu1 %v5503_v21, %s8082_s21  ;;  %v9382_v21 = vld [vmem:[%s8762_s16 + $0x90] sm:$0xff] }
 0x594   : > { %5539 = vrot.lane.b32.xlu0 %v5534_v52, %s8081_s25  ;;  %v2754_v52 = vmul.f32 %v9382_v21, %v9348_v25 }
 0x596   : > { %v2822_v36 = vsel %vm1148_vm3, %v2754_v52, 0.0  ;;  %v1451_v52 = vadd.f32 %v9054_v3, %v9005_v7  ;;  %v2783_v7 = vsel %vm1148_vm3, %v2741_v53, 0.0  ;;  %v1423_v53 = vadd.f32 %v9054_v3, %v8887_v42 }
 0x597   : > { %5519 = vrot.lane.b32.xlu1 %v5515_v48, %s12474_s23  ;;  %v9387_v48 = vld [vmem:[%s8762_s16 + $0x18] sm:$0xff] }
 0x598   : > { %v9496_v56 = vmul.f32 0.57735026, %v1451_v52  ;;  %v1455_v31 = vmul.f32 0.57735026, %v1423_v53  ;;  %v1427_v52 = vadd.f32 %v9054_v3, %v12619_v44 }
 0x59b   : > { %5537 = vrot.lane.b32.xlu1 %v5533_v24, %s8081_s25  ;;  %v2739_v24 = vmul.f32 %v9387_v48, %v9348_v25 }
 0x59c   : > { %v9341_v9 = vpop.f32.mrb[6].mxu1 }
 0x59d   : > { %v9343_v10 = vpop.f32.mrb[7].mxu1 }
 0x5b3   : > { %2772 = vadd.xlane.f32.xlu0 %v2771_v14  ;;  %v9392_v14 = vsub.s32 %v1519_v26, %v12615_v15  ;;  %v1442_v26 = vadd.f32 %v9054_v3, %v8901_v0  ;;  %v2742_v0 = vmul.f32 %v9418_v29, %v9348_v25 }
 0x5b5   : > { %v9445_v20 = vmul.f32 0.57735026, %v1442_v26  ;;  %v1422_v26 = vadd.f32 %v9054_v3, %v8895_v41  ;;  %v1425_v41 = vadd.f32 %v9054_v3, %v8903_v37 }
 0x5b7   : > { %2775 = vadd.xlane.f32.xlu0 %v2774_v50  ;;  %v1438_v50 = vadd.f32 %v9054_v3, %v8891_v46  ;;  %v1445_v46 = vadd.f32 %v9054_v3, %v8966_v62  ;;  %v1447_v62 = vadd.f32 %v9054_v3, %v8974_v38  ;;  %v1471_v38 = vmul.f32 0.57735026, %v1439_v57 }
 0x5b8   : > { %v9459_v57 = vmul.f32 0.57735026, %v1443_v6 }
 0x5b9   : > { %v1470_v16 = vmul.f32 0.57735026, %v1438_v50  ;;  %v9455_v50 = vld [vmem:[%s8762_s16 + $0x88] sm:$0xff]  ;;  %v1601_v37 = vrot.slane %v1471_v38, %v9395_v2 }
 0x5ba   : > { %v2753_v63 = vmul.f32 %v9455_v50, %v9348_v25  ;;  %v1619_v53 = vrot.slane %v9459_v57, %v9395_v2  ;;  %v1459_v57 = vmul.f32 0.57735026, %v1427_v52 }
 0x5bb   : > { %2781 = vadd.xlane.f32.xlu0 %v2780_v47  ;;  %v1441_v47 = vadd.f32 %v9054_v3, %v8933_v8  ;;  %v2777_v8 = vsel %vm1148_vm3, %v2739_v24, 0.0  ;;  %v9439_v24 = vadd.f32 %v9054_v3, %v9051_v5  ;;  %v2756_v5 = vmul.f32 %v9450_v22, %v9348_v25 }
 0x5bc   : > { %v1597_v58 = vrot.slane %v1470_v16, %v9392_v14  ;;  %v1457_v22 = vmul.f32 0.57735026, %v1425_v41 }
 0x5be   : > { %v1602_v44 = vsel %vm1529_vm7, %v1601_v37, %v1597_v58  ;;  %v1528_v58 = vrot.slane %v1455_v31, %v9395_v2 }
 0x5bf   : > { %2817 = vadd.xlane.f32.xlu0 %v2816_v61  ;;  %2769 = vadd.xlane.f32.xlu1 %v2768_v45  ;;  %v1449_v61 = vadd.f32 %v9054_v3, %v8984_v34  ;;  %v1450_v45 = vadd.f32 %v9054_v3, %v9047_v55  ;;  %v1473_v34 = vmul.f32 0.57735026, %v1441_v47  ;;  %v2786_v55 = vsel %vm1148_vm3, %v2742_v0, 0.0 }
 0x5c0   : > { %v9463_v47 = vmul.f32 0.57735026, %v1445_v46  ;;  %v9471_v0 = vmul.f32 0.57735026, %v1448_v35  ;;  %v1424_v46 = vadd.f32 %v9054_v3, %v8899_v60  ;;  %v9485_v35 = vld [vmem:[%s8762_s16 + $0x40] sm:$0xff] }
 0x5c1   : > { %v9475_v6 = vmul.f32 0.57735026, %v1449_v61  ;;  %12617 = vst [vmem:[#allocation78_spill] sm:$0xff] %v9485_v35  ;;  %v2744_v42 = vmul.f32 %v9485_v35, %v9348_v25  ;;  %v9490_v61 = vld [vmem:[%s8762_s16 + $0x98] sm:$0xff]  ;;  %v9494_v60 = vmul.f32 0.57735026, %v1450_v45  ;;  %v1426_v45 = vadd.f32 %v9054_v3, %v12618_v11 }
 0x5c2   : > { %v2755_v16 = vmul.f32 %v9490_v61, %v9348_v25  ;;  %v1456_v35 = vmul.f32 0.57735026, %v1424_v46  ;;  %v1624_v46 = vrot.slane %v9461_v33, %v9392_v14  ;;  %v1628_v41 = vrot.slane %v9463_v47, %v9395_v2 }
 0x5c3   : > { %2823 = vadd.xlane.f32.xlu0 %v2822_v36  ;;  %2778 = vadd.xlane.f32.xlu1 %v2777_v8  ;;  %v9467_v36 = vmul.f32 0.57735026, %v1446_v19  ;;  %v9469_v8 = vmul.f32 0.57735026, %v1447_v62  ;;  %v2828_v19 = vsel %vm1148_vm3, %v2756_v5, 0.0  ;;  %v2819_v62 = vsel %vm1148_vm3, %v2753_v63, 0.0 }
 0x5c4   : > { %v1615_v5 = vrot.slane %v9445_v20, %v9392_v14  ;;  %v1454_v63 = vmul.f32 0.57735026, %v1422_v26  ;;  %v2825_v38 = vsel %vm1148_vm3, %v2755_v16, 0.0  ;;  %v9515_v26 = vld [vmem:[%s8762_s16 + $0x38] sm:$0xff]  ;;  %v1458_v16 = vmul.f32 0.57735026, %v1426_v45 }
 0x5c5   : > { %v2743_v11 = vmul.f32 %v9515_v26, %v9348_v25  ;;  %v1534_v37 = vrot.slane %v1456_v35, %v9392_v14  ;;  %v1538_v33 = vrot.slane %v1457_v22, %v9395_v2  ;;  %v1637_v22 = vrot.slane %v9469_v8, %v9395_v2 }
 0x5c6   : > { %v1620_v35 = vsel %vm1529_vm7, %v1619_v53, %v1615_v5  ;;  %v1642_v45 = vrot.slane %v9471_v0, %v9392_v14  ;;  %v1646_v52 = vrot.slane %v9475_v6, %v9395_v2  ;;  %v1429_v5 = vadd.f32 %v9054_v3, %v8945_v30 }
 0x5c7   : > { %2787 = vadd.xlane.f32.xlu0 %v2786_v55  ;;  %2784 = vadd.xlane.f32.xlu1 %v2783_v7  ;;  %v1606_v55 = vrot.slane %v1472_v49, %v9392_v14  ;;  %v1610_v7 = vrot.slane %v1473_v34, %v9395_v2  ;;  %v2792_v49 = vsel %vm1148_vm3, %v2744_v42, 0.0  ;;  %v9510_v34 = vld [vmem:[%s8762_s16 + $0xb0] sm:$0xff]  ;;  %v1523_v42 = vrot.slane %v1454_v63, %v9392_v14  ;;  %v9541_v63 = vld [vmem:[%s8762_s16 + $0xa8] sm:$0xff] }
 0x5c8   : > { %v2758_v20 = vmul.f32 %v9510_v34, %v9348_v25  ;;  %v2757_v31 = vmul.f32 %v9541_v63, %v9348_v25  ;;  %v9559_v8 = vmul.f32 0.57735026, %v9439_v24  ;;  %v1539_v0 = vsel %vm1529_vm7, %v1538_v33, %v1534_v37  ;;  %v12623_v37 = vld [vmem:[#allocation62_spill] sm:$0xff] }
 0x5c9   : > { %v1543_v53 = vrot.slane %v1458_v16, %v9392_v14  ;;  %v1547_v6 = vrot.slane %v1459_v57, %v9395_v2  ;;  %v1430_v33 = vadd.f32 %v9054_v3, %v12623_v37  ;;  %v9595_v37 = vld [vmem:[%s8762_s16 + $0x60] sm:$0xff] }
 0x5ca   : > { %v2834_v47 = vsel %vm1148_vm3, %v2758_v20, 0.0 }
 0x5cb   : > { %2829 = vadd.xlane.f32.xlu0 %v2828_v19  ;;  %2820 = vadd.xlane.f32.xlu1 %v2819_v62  ;;  %v1611_v19 = vsel %vm1529_vm7, %v1610_v7, %v1606_v55  ;;  %v1633_v62 = vrot.slane %v9467_v36, %v9392_v14  ;;  %v2789_v55 = vsel %vm1148_vm3, %v2743_v11, 0.0  ;;  %v9536_v7 = vld [vmem:[%s8762_s16 + $0x50] sm:$0xff]  ;;  %v1530_v11 = vsel %vm1529_vm7, %v1528_v58, %v1523_v42  ;;  %v9572_v42 = vld [vmem:[%s8762_s16 + $0x48] sm:$0xff] }
 0x5cc   : > { %12620 = vst [vmem:[#allocation60_spill] sm:$0xff] %v9536_v7  ;;  %v2746_v36 = vmul.f32 %v9536_v7, %v9348_v25  ;;  %v2745_v24 = vmul.f32 %v9572_v42, %v9348_v25  ;;  %v1629_v58 = vsel %vm1529_vm7, %v1628_v41, %v1624_v46  ;;  %v9586_v46 = vmul.f32 0.57735026, %v9443_v59  ;;  %v12625_v41 = vld [vmem:[#allocation67_spill] sm:$0xff] }
 0x5cd   : > { %v1638_v16 = vsel %vm1529_vm7, %v1637_v22, %v1633_v62  ;;  %v1433_v62 = vadd.f32 %v9054_v3, %v12625_v41  ;;  %v1667_v22 = vsel %vm1666_vm1, %v1539_v0, %v1530_v11  ;;  %v9600_v59 = vld [vmem:[%s8762_s16 + $0xb8] sm:$0xff]  ;;  %v1655_v11 = vrot.slane %v9496_v56, %v9395_v2 }
 0x5ce   : > { %12627 = vst [vmem:[#allocation62_spill] sm:$0xff] %v9600_v59  ;;  %v12629_v41 = vld [vmem:[#allocation68_spill] sm:$0xff] }
 0x5cf   : > { %2793 = vadd.xlane.f32.xlu0 %v2792_v49  ;;  %2826 = vadd.xlane.f32.xlu1 %v2825_v38  ;;  %v1680_v49 = vsel %vm1666_vm1, %v1611_v19, %v1602_v44  ;;  %v12621_v38 = vld [vmem:[#allocation61_spill] sm:$0xff]  ;;  %v2798_v44 = vsel %vm1148_vm3, %v2746_v36, 0.0  ;;  %v2831_v19 = vsel %vm1148_vm3, %v2757_v31, 0.0  ;;  %v1465_v7 = vmul.f32 0.57735026, %v1433_v62  ;;  %v12630_v62 = vld [vmem:[#allocation75_spill] sm:$0xff] }
 0x5d0   : > { %v1428_v20 = vadd.f32 %v9054_v3, %v12621_v38  ;;  %v9567_v38 = vld [vmem:[%s8762_s16 + $0xc0] sm:$0xff]  ;;  %v1681_v57 = vsel %vm1668_vm5, %v1620_v35, %v1680_v49  ;;  %v1548_v35 = vsel %vm1529_vm7, %v1547_v6, %v1543_v53  ;;  %12626 = vst [vmem:[#allocation61_spill] sm:$0xff] %v9595_v37  ;;  %v1651_v53 = vrot.slane %v9494_v60, %v9392_v14  ;;  %v12628_v6 = vld [vmem:[#allocation74_spill] sm:$0xff] }
 0x5d1   : > { %12622 = vst [vmem:[#allocation63_spill] sm:$0xff] %v9567_v38  ;;  %v2760_v30 = vmul.f32 %v9567_v38, %v9348_v25  ;;  %v1461_v38 = vmul.f32 0.57735026, %v1429_v5  ;;  %v2759_v5 = vmul.f32 %v9600_v59, %v9348_v25  ;;  %v1682_v0 = vsel %vm1670_vm14, %v1629_v58, %v1681_v57  ;;  %v9619_v57 = vld [vmem:[%s8762_s16 + $0xd0] sm:$0xff] }
 0x5d2   : > { %v1460_v31 = vmul.f32 0.57735026, %v1428_v20  ;;  %v2748_v20 = vmul.f32 %v9595_v37, %v9348_v25  ;;  %v1435_v37 = vadd.f32 %v9054_v3, %v12629_v41  ;;  %v1669_v59 = vsel %vm1668_vm5, %v1548_v35, %v1667_v22  ;;  %v12631_v22 = vld [vmem:[#allocation69_spill] sm:$0xff] }
 0x5d3   : > { %2835 = vadd.xlane.f32.xlu0 %v2834_v47  ;;  %2790 = vadd.xlane.f32.xlu1 %v2789_v55  ;;  %v1431_v47 = vadd.f32 %v9054_v3, %v8962_v51  ;;  %v12624_v55 = vld [vmem:[#allocation73_spill] sm:$0xff]  ;;  %v2840_v49 = vsel %vm1148_vm3, %v2760_v30, 0.0  ;;  %v2795_v51 = vsel %vm1148_vm3, %v2745_v24, 0.0  ;;  %v2837_v58 = vsel %vm1148_vm3, %v2759_v5, 0.0 }
 0x5d4   : > { %v1432_v36 = vadd.f32 %v9054_v3, %v12624_v55  ;;  %v1552_v24 = vrot.slane %v1460_v31, %v9392_v14  ;;  %v1556_v55 = vrot.slane %v1461_v38, %v9395_v2  ;;  %v2804_v56 = vsel %vm1148_vm3, %v2748_v20, 0.0 }
 0x5d5   : > { %v1463_v30 = vmul.f32 0.57735026, %v1431_v47  ;;  %v9624_v47 = vld [vmem:[%s8762_s16 + $0x58] sm:$0xff]  ;;  %v1683_v31 = vsel %vm1672_vm15, %v1638_v16, %v1682_v0  ;;  %v1436_v35 = vadd.f32 %v9054_v3, %v12630_v62  ;;  %v1467_v41 = vmul.f32 0.57735026, %v1435_v37  ;;  %v9671_v62 = vld [vmem:[%s8762_s16 + $0x68] sm:$0xff] }
 0x5d6   : > { %v1464_v60 = vmul.f32 0.57735026, %v1432_v36  ;;  %v2747_v38 = vmul.f32 %v9624_v47, %v9348_v25  ;;  %v1647_v36 = vsel %vm1529_vm7, %v1646_v52, %v1642_v45  ;;  %v1557_v20 = vsel %vm1529_vm7, %v1556_v55, %v1552_v24  ;;  %v9648_v24 = vld [vmem:[%s8762_s16 + $0xc8] sm:$0xff] }
 0x5d7   : > { %2799 = vadd.xlane.f32.xlu0 %v2798_v44  ;;  %2832 = vadd.xlane.f32.xlu1 %v2831_v19  ;;  %v1434_v44 = vadd.f32 %v9054_v3, %v12628_v6  ;;  %v1462_v19 = vmul.f32 0.57735026, %v1430_v33  ;;  %v2762_v33 = vmul.f32 %v9619_v57, %v9348_v25  ;;  %v1565_v6 = vrot.slane %v1463_v30, %v9395_v2 }
 0x5d8   : > { %v1570_v45 = vrot.slane %v1464_v60, %v9392_v14  ;;  %v1574_v52 = vrot.slane %v1465_v7, %v9395_v2  ;;  %v1671_v16 = vsel %vm1670_vm14, %v1557_v20, %v1669_v59  ;;  %v2761_v37 = vmul.f32 %v9648_v24, %v9348_v25 }
 0x5d9   : > { %v1561_v5 = vrot.slane %v1462_v19, %v9392_v14  ;;  %v2846_v0 = vsel %vm1148_vm3, %v2762_v33, 0.0  ;;  %v1656_v7 = vsel %vm1529_vm7, %v1655_v11, %v1651_v53  ;;  %v1660_v59 = vrot.slane %v9559_v8, %v9392_v14 }
 0x5da   : > { %v1664_v30 = vrot.slane %v9586_v46, %v9395_v2  ;;  %v1684_v55 = vsel %vm1674_vm13, %v1647_v36, %v1683_v31  ;;  %v1468_v60 = vmul.f32 0.57735026, %v1436_v35  ;;  %v1583_v53 = vrot.slane %v1467_v41, %v9395_v2  ;;  %v9666_v36 = vld [vmem:[%s8762_s16 + $0xe0] sm:$0xff] }
 0x5db   : > { %2841 = vadd.xlane.f32.xlu0 %v2840_v49  ;;  %2796 = vadd.xlane.f32.xlu1 %v2795_v51  ;;  %v1437_v49 = vadd.f32 %v9054_v3, %v12631_v22  ;;  %v1466_v51 = vmul.f32 0.57735026, %v1434_v44  ;;  %v2801_v3 = vsel %vm1148_vm3, %v2747_v38, 0.0  ;;  %v9643_v44 = vld [vmem:[%s8762_s16 + $0x70] sm:$0xff]  ;;  %v1575_v38 = vsel %vm1529_vm7, %v1574_v52, %v1570_v45 }
 0x5dc   : > { %v2750_v19 = vmul.f32 %v9643_v44, %v9348_v25  ;;  %v2843_v46 = vsel %vm1148_vm3, %v2761_v37, 0.0  ;;  %v2764_v31 = vmul.f32 %v9666_v36, %v9348_v25  ;;  %v2749_v35 = vmul.f32 %v9671_v62, %v9348_v25  ;;  %v9690_v52 = vld [vmem:[%s8762_s16 + $0xf0] sm:$0xff] }
 0x5dd   : > { %v1579_v33 = vrot.slane %v1466_v51, %v9392_v14  ;;  %v1665_v22 = vsel %vm1529_vm7, %v1664_v30, %v1660_v59  ;;  %v1588_v51 = vrot.slane %v1468_v60, %v9392_v14  ;;  %v1073_v30 = vld [vmem:[%s9685_s18 + $0x8] sm:$0xff] }
 0x5de   : > { %v2810_v8 = vsel %vm1148_vm3, %v2750_v19, 0.0  ;;  %v2852_v41 = vsel %vm1148_vm3, %v2764_v31, 0.0  ;;  %v2807_v45 = vsel %vm1148_vm3, %v2749_v35, 0.0  ;;  %v9722_v35 = vld [vmem:[%s8762_s16 + $0xe8] sm:$0xff] }
 0x5df   : > { %2805 = vadd.xlane.f32.xlu0 %v2804_v56  ;;  %2838 = vadd.xlane.f32.xlu1 %v2837_v58  ;;  %v1469_v56 = vmul.f32 0.57735026, %v1437_v49  ;;  %v1566_v58 = vsel %vm1529_vm7, %v1565_v6, %v1561_v5  ;;  %v1685_v49 = vsel %vm1676_vm12, %v1656_v7, %v1684_v55  ;;  %v1584_v5 = vsel %vm1529_vm7, %v1583_v53, %v1579_v33 }
 0x5e0   : > { %v1673_v11 = vsel %vm1672_vm15, %v1566_v58, %v1671_v16  ;;  %v2766_v16 = vmul.f32 %v9690_v52, %v9348_v25  ;;  %v1686_v19 = vsel %vm1678_vm11, %v1665_v22, %v1685_v49  ;;  %v5567_v53 = vmul.f32 %v9296_v1, %v8929_v27 }
 0x5e1   : > { %v1592_v20 = vrot.slane %v1469_v56, %v9395_v2  ;;  %v1675_v6 = vsel %vm1674_vm13, %v1575_v38, %v1673_v11  ;;  %v1773_v37 = vadd.f32 %v9341_v9, %v1686_v19  ;;  %v9707_v56 = vld [vmem:[%s8762_s16 + $0x78] sm:$0xff]  ;;  %v2765_v22 = vmul.f32 %v9722_v35, %v9348_v25 }
 0x5e2   : > { %v1677_v59 = vsel %vm1676_vm12, %v1584_v5, %v1675_v6  ;;  %v2858_v55 = vsel %vm1148_vm3, %v2766_v16, 0.0  ;;  %v2751_v58 = vmul.f32 %v9707_v56, %v9348_v25 }
 0x5e3   : > { %2847 = vadd.xlane.f32.xlu0 %v2846_v0  ;;  %2802 = vadd.xlane.f32.xlu1 %v2801_v3  ;;  %v9695_v0 = vld [vmem:[%s8762_s16 + $0xd8] sm:$0xff]  ;;  %v1593_v7 = vsel %vm1529_vm7, %v1592_v20, %v1588_v51  ;;  %v9714_v11 = vadd.f32 %v1773_v37, %v1073_v30  ;;  %v5568_v51 = vmul.f32 %v9296_v1, %v9001_v23  ;;  %v2855_v6 = vsel %vm1148_vm3, %v2765_v22, 0.0 }
 0x5e4   : > { %v2763_v3 = vmul.f32 %v9695_v0, %v9348_v25  ;;  %v1679_v9 = vsel %vm1678_vm11, %v1593_v7, %v1677_v59  ;;  %v2813_v31 = vsel %vm1148_vm3, %v2751_v58, 0.0 }
 0x5e5   : > { %v1781_v5 = vsel %vm1148_vm3, %v9714_v11, -inf }
 0x5e6   : > { %v2849_v60 = vsel %vm1148_vm3, %v2763_v3, 0.0 }
 0x5e7   : > { %2811 = vadd.xlane.f32.xlu0 %v2810_v8  ;;  %2844 = vadd.xlane.f32.xlu1 %v2843_v46  ;;  %v1768_v8 = vadd.f32 %v9343_v10, %v1679_v9  ;;  %v1072_v46 = vld [vmem:[%s9685_s18] sm:$0xff] }
 0x5e9   : > { %v9728_v20 = vadd.f32 %v1768_v8, %v1072_v46  ;;  %v9763_v8 = vld [vmem:[%s12359_s7] ss:$0 sm:$0xff] }
 0x5eb   : > { %2853 = vadd.xlane.f32.xlu0 %v2852_v41  ;;  %2808 = vadd.xlane.f32.xlu1 %v2807_v45  ;;  %v9737_v41 = vld [vmem:[%s8762_s16 + $0xf8] sm:$0xff]  ;;  %v1778_v3 = vsel %vm1148_vm3, %v9728_v20, -inf }
 0x5ec   : > { %v2767_v1 = vmul.f32 %v9737_v41, %v9348_v25 }
 0x5ed   : > { %v5578_v33 = vpop.permute.xlu0 %5577  ;;  %v5560_v38 = vpop.permute.xlu1 %5559 }
 0x5ee   : > { %5565 = vst.msk [vmem:[#allocation3] sm:$0xff] %vm1170_vm8, %v5560_v38  ;;  %v2861_v19 = vsel %vm1148_vm3, %v2767_v1, 0.0 }
 0x5ef   : > { %2859 = vadd.xlane.f32.xlu0 %v2858_v55  ;;  %2850 = vadd.xlane.f32.xlu1 %v2849_v60  ;;  %5569 = vst.msk [vmem:[#allocation3] sm:$0xff] %vm1183_vm9, %v5567_v53 }
 0x5f1   : > { %v5590_v49 = vpop.permute.xlu0 %5589  ;;  %v5562_v10 = vpop.permute.xlu1 %5561 }
 0x5f2   : > { %5566 = vst.msk [vmem:[#allocation3 + $0x8] sm:$0xff] %vm1170_vm8, %v5562_v10 }
 0x5f3   : > { %5570 = vst.msk [vmem:[#allocation3 + $0x8] sm:$0xff] %vm1183_vm9, %v5568_v51  ;;  %1782 = vmax.xlane.f32.xlu0 %v1781_v5  ;;  %2814 = vadd.xlane.f32.xlu1 %v2813_v31 }
 0x5f4   : > { %5582 = vst.msk [vmem:[#allocation3 + $0x8] sm:$0xff] %vm1196_vm10, %v5578_v33 }
 0x5f5   : > { %5594 = vst.msk [vmem:[#allocation3 + $0x8] sm:$0xff] %vm1077_vm2, %v5590_v49  ;;  %v5576_v45 = vpop.permute.xlu1 %5575 }
 0x5f6   : > { %v5477_v16 = vpop.permute.xlu0 %5476  ;;  %5581 = vst.msk [vmem:[#allocation3] sm:$0xff] %vm1196_vm10, %v5576_v45 }
 0x5f7   : > { %5481 = vst.msk [vmem:[#allocation2 + $0x8] sm:$0xff] %vm1148_vm3, %v5477_v16  ;;  %1779 = vmax.xlane.f32.xlu0 %v1778_v3  ;;  %2856 = vadd.xlane.f32.xlu1 %v2855_v6 }
 0x5f9   : > { %v5588_v37 = vpop.permute.xlu1 %5587 }
 0x5fa   : > { %v5498_v7 = vpop.permute.xlu0 %5497  ;;  %5593 = vst.msk [vmem:[#allocation3] sm:$0xff] %vm1077_vm2, %v5588_v37  ;;  %vm12700_vm2 = vcmask 195712  }
 0x5fb   : > { %5502 = vst.msk [vmem:[#allocation2 + $0x8] sm:$0xff] %vm1170_vm8, %v5498_v7  ;;  %2862 = vadd.xlane.f32.xlu1 %v2861_v19 }
 0x5fc   : > { %v5598_v60 = vld [vmem:[#allocation3 + $0x8] sm:$0xff] }
 0x5fd   : > { %v5475_v25 = vpop.permute.xlu1 %5474 }
 0x5fe   : > { %v5510_v59 = vpop.permute.xlu0 %5509  ;;  %5480 = vst.msk [vmem:[#allocation2] sm:$0xff] %vm1148_vm3, %v5475_v25 }
 0x5ff   : > { %5514 = vst.msk [vmem:[#allocation2 + $0x8] sm:$0xff] %vm1183_vm9, %v5510_v59 }
 0x601   : > { %v5496_v30 = vpop.permute.xlu1 %5495  ;;  %v5597_v55 = vld [vmem:[#allocation3] sm:$0xff] }
 0x602   : > { %v5522_v58 = vpop.permute.xlu0 %5521  ;;  %5501 = vst.msk [vmem:[#allocation2] sm:$0xff] %vm1170_vm8, %v5496_v30  ;;  %v7433_v9 = vpack.c.bf16 %v5598_v60, %v5597_v55  ;;  %vm12702_vm8 = vmmov %vm12700_vm2 }
 0x603   : > { %5526 = vst.msk [vmem:[#allocation2 + $0x8] sm:$0xff] %vm1196_vm10, %v5522_v58 }
 0x604   : > { %7435 = vmatprep.subr.msk.bf16.mxu0 %vm9205_vm6, %v7433_v9 }
 0x605   : > { %v5508_v33 = vpop.permute.xlu1 %5507  ;;  %7438 = vmatpush3.bf16.xpose.msk.msra.mxu0 %vm9205_vm6, %v7433_v9 }
 0x606   : > { %v5540_v38 = vpop.permute.xlu0 %5539  ;;  %5513 = vst.msk [vmem:[#allocation2] sm:$0xff] %vm1183_vm9, %v5508_v33 }
 0x607   : > { %5544 = vst.msk [vmem:[#allocation2 + $0x8] sm:$0xff] %vm1080_vm4, %v5540_v38 }
 0x609   : > { %v5520_v53 = vpop.permute.xlu1 %5519 }
 0x60a   : > { %5525 = vst.msk [vmem:[#allocation2] sm:$0xff] %vm1196_vm10, %v5520_v53  ;;  %vm12704_vm10 = vcmask 326912  }
 0x60d   : > { %2871 = vperm.xlu0 %7649, %v9763_v8   ;;  %v5538_v46 = vpop.permute.xlu1 %5537 }
 0x60e   : > { %5543 = vst.msk [vmem:[#allocation2] sm:$0xff] %vm1080_vm4, %v5538_v46  ;;  %v5596_v22 = vld [vmem:[#allocation2 + $0x8] sm:$0xff]  ;;  %vm12701_vm4 = vcmask 261312  }
 0x60f   : > { %vm12703_vm9 = vmmov %vm12701_vm4 }
 0x611   : > { %7651 = vset.pattern.permute.xlu0 %v12606_v12 }
 0x615   : > { %v5595_v31 = vld [vmem:[#allocation2] sm:$0xff] }
 0x616   : > { %7358 = vmatprep.mubr.msk.f32.mxu0 %vm595_vm0, %v5595_v31 }
 0x617   : > { %7359 = vmatmul.mubr.msk.f32.vlgmr.msra.gmra.mrb[2].mxu0 %vm595_vm0, %v5596_v22 }
 0x640   : > { %v9770_v49 = vpop.xlane.xlu0 %2772 }
 0x641   : > { %12632 = vst [vmem:[#allocation73_spill] sm:$0xff] %v9770_v49 }
 0x644   : > { %v9772_v51 = vpop.xlane.xlu0 %2775 }
 0x645   : > { %12633 = vst [vmem:[#allocation67_spill] sm:$0xff] %v9772_v51 }
 0x648   : > { %v9774_v10 = vpop.xlane.xlu0 %2781 }
 0x649   : > { %12634 = vst [vmem:[#allocation74_spill] sm:$0xff] %v9774_v10 }
 0x64c   : > { %v9776_v5 = vpop.xlane.xlu0 %2817 }
 0x64d   : > { %12635 = vst [vmem:[#allocation68_spill] sm:$0xff] %v9776_v5 }
 0x650   : > { %v9778_v6 = vpop.xlane.xlu0 %2823 }
 0x651   : > { %12636 = vst [vmem:[#allocation75_spill] sm:$0xff] %v9778_v6 }
 0x654   : > { %v9780_v1 = vpop.xlane.xlu0 %2787 }
 0x655   : > { %12637 = vst [vmem:[#allocation69_spill] sm:$0xff] %v9780_v1 }
 0x658   : > { %v9782_v45 = vpop.xlane.xlu0 %2829 }
 0x659   : > { %12638 = vst [vmem:[#allocation79_spill] sm:$0xff] %v9782_v45 }
 0x65c   : > { %v9784_v16 = vpop.xlane.xlu0 %2793 }
 0x65d   : > { %12639 = vst [vmem:[#allocation80_spill] sm:$0xff] %v9784_v16  ;;  %v1074_v16 = vld [vmem:[%s12360_s8] sm:$0xff] }
 0x65e   : > { %v9786_v3 = vpop.f32.mrb[0].mxu0 }
 0x65f   : > { %v9788_v19 = vpop.f32.mrb[1].mxu0 }
 0x660   : > { %v9790_v37 = vpop.xlane.xlu0 %2835 }
 0x661   : > { %12640 = vst [vmem:[#allocation81_spill] sm:$0xff] %v9790_v37  ;;  %v12681_v37 = vld [vmem:[#allocation63_spill] sm:$0xff] }
 0x664   : > { %v9792_v7 = vpop.xlane.xlu0 %2799 }
 0x665   : > { %12641 = vst [vmem:[#allocation82_spill] sm:$0xff] %v9792_v7 }
 0x668   : > { %v9794_v25 = vpop.xlane.xlu0 %2841 }
 0x669   : > { %12642 = vst [vmem:[#allocation83_spill] sm:$0xff] %v9794_v25 }
 0x66c   : > { %v9796_v59 = vpop.xlane.xlu0 %2805 }
 0x66d   : > { %12643 = vst [vmem:[#allocation84_spill] sm:$0xff] %v9796_v59 }
 0x670   : > { %v9798_v30 = vpop.xlane.xlu0 %2847 }
 0x671   : > { %12644 = vst [vmem:[#allocation85_spill] sm:$0xff] %v9798_v30 }
 0x674   : > { %v9800_v55 = vpop.xlane.xlu0 %2811 }
 0x675   : > { %12645 = vst [vmem:[#allocation86_spill] sm:$0xff] %v9800_v55 }
 0x678   : > { %v9802_v60 = vpop.xlane.xlu0 %2853 }
 0x679   : > { %12646 = vst [vmem:[#allocation87_spill] sm:$0xff] %v9802_v60 }
 0x67c   : > { %v9804_v58 = vpop.xlane.xlu0 %2859 }
 0x67d   : > { %12647 = vst [vmem:[#allocation88_spill] sm:$0xff] %v9804_v58  ;;  %v12654_v58 = vld [vmem:[#allocation32_spill] sm:$0xff] }
 0x680   : > { %v1783_v9 = vpop.xlane.xlu0 %1782 }
 0x681   : > { %v1785_v33 = vsub.f32 %v9714_v11, %v1783_v9  ;;  %v1075_v11 = vld [vmem:[%s12360_s8 + $0x8] sm:$0xff] }
 0x682   : > { %v9816_v9 = vpack.c.bf16 %v1075_v11, %v1074_v16 }
 0x683   : > { %v1788_v38 = vmul.f32 1.442695, %v1785_v33 }
 0x684   : > { %v1780_v53 = vpop.xlane.xlu0 %1779  ;;  %12648 = vst [vmem:[#allocation89_spill] sm:$0xff] %v9816_v9  ;;  %7402 = vmatprep.subr.bf16.mxu1 %v9816_v9 }
 0x685   : > { %7660 = vpow2.f32 %v1788_v38  ;;  %v1784_v46 = vsub.f32 %v9728_v20, %v1780_v53 }
 0x687   : > { %v1786_v31 = vmul.f32 1.442695, %v1784_v46 }
 0x689   : > { %7662 = vpow2.f32 %v1786_v31 }
 0x68f   : > { %v7661_v22 = vpop.eup %7660 }
 0x690   : > { %v1793_v59 = vsel %vm1148_vm3, %v7661_v22, 0.0 }
 0x691   : > { %1794 = vadd.xlane.f32.xlu0 %v1793_v59  ;;  %v9823_v59 = vpop.permute.xlu0 %2871 }
 0x692   : > { %12651 = vst [vmem:[#allocation92_spill] sm:$0xff] %v9823_v59 }
 0x693   : > { %v7663_v7 = vpop.eup %7662 }
 0x694   : > { %v1790_v55 = vsel %vm1148_vm3, %v7663_v7, 0.0 }
 0x695   : > { %1791 = vadd.xlane.f32.xlu0 %v1790_v55 }
 0x6ea   : > { %v9819_v20 = vpop.f32.mrb[2].mxu0 }
 0x6eb   : > { %12649 = vst [vmem:[#allocation90_spill] sm:$0xff] %v9819_v20  ;;  %v9821_v33 = vpop.f32.mrb[3].mxu0 }
 0x6ec   : > { %12650 = vst [vmem:[#allocation91_spill] sm:$0xff] %v9821_v33 }
 0x71e   : > { %v1795_v38 = vpop.xlane.xlu0 %1794 }
 0x71f   : > { %7664 = vrcp.f32 %v1795_v38 }
 0x722   : > { %v1792_v55 = vpop.xlane.xlu0 %1791 }
 0x723   : > { %7666 = vrcp.f32 %v1792_v55  ;;  %v9848_v55 = vsub.s32 3, %v12615_v15 }
 0x725   : > { %12656 = vst [vmem:[#allocation95_spill] sm:$0xff] %v9848_v55 }
 0x729   : > { %v7665_v53 = vpop.eup %7664 }
 0x72a   : > { %v9825_v46 = vmul.f32 %v7665_v53, %v7661_v22  ;;  %v9839_v22 = vpack.c.bf16 %v9258_v40, %v9288_v4  ;;  %v9853_v4 = vsub.s32 4, %v12615_v15  ;;  %v9858_v53 = vsub.s32 5, %v12615_v15 }
 0x72c   : > { %12652 = vst [vmem:[#allocation93_spill] sm:$0xff] %v9825_v46  ;;  %v2017_v31 = vrot.slane %v9825_v46, %v8413_v39  ;;  %v2028_v1 = vrot.slane %v9825_v46, %v12654_v58  ;;  %v2050_v40 = vrot.slane %v9825_v46, %v9848_v55  ;;  %12657 = vst [vmem:[#allocation96_spill] sm:$0xff] %v9853_v4 }
 0x72d   : > { %v7667_v16 = vpop.eup %7666  ;;  %12658 = vst [vmem:[#allocation97_spill] sm:$0xff] %v9858_v53 }
 0x72e   : > { %v9829_v11 = vmul.f32 %v7667_v16, %v7663_v7  ;;  %2023 = vbcast.lane.b32.xlu0 %v2017_v31, 264  ;;  %2019 = vbcast.lane.b32.xlu1 %v2017_v31, 256  ;;  %v12655_v7 = vld [vmem:[#allocation38_spill] sm:$0xff]  ;;  %v2072_v31 = vrot.slane %v9825_v46, %v9858_v53  ;;  %v9863_v16 = vsub.s32 6, %v12615_v15 }
 0x72f   : > { %v2039_v38 = vrot.slane %v9825_v46, %v12655_v7 }
 0x730   : > { %12653 = vst [vmem:[#allocation94_spill] sm:$0xff] %v9829_v11  ;;  %7302 = vmatprep.mubr.msk.f32.mxu1 %vm1148_vm3, %v9829_v11  ;;  %12659 = vst [vmem:[#allocation98_spill] sm:$0xff] %v9863_v16 }
 0x731   : > { %7303 = vmatmul.mubr.msk.f32.vlgmr.msra.gmra.mrb[8].mxu1 %vm1148_vm3, %v9825_v46 }
 0x732   : > { %7404 = vmatpush3.bf16.msra.mxu1 %v9816_v9  ;;  %2034 = vbcast.lane.b32.xlu0 %v2028_v1, 264 }
 0x733   : > { %2030 = vbcast.lane.b32.xlu1 %v2028_v1, 256  ;;  %7407 = vmatprep.subr.msk.bf16.mxu1 %vm9205_vm6, %v9839_v22  ;;  %v2061_v1 = vrot.slane %v9825_v46, %v9853_v4 }
 0x736   : > { %2045 = vbcast.lane.b32.xlu0 %v2039_v38, 264 }
 0x737   : > { %2041 = vbcast.lane.b32.xlu1 %v2039_v38, 256  ;;  %v2083_v38 = vrot.slane %v9825_v46, %v9863_v16 }
 0x73a   : > { %2056 = vbcast.lane.b32.xlu0 %v2050_v40, 264 }
 0x73b   : > { %2052 = vbcast.lane.b32.xlu1 %v2050_v40, 256  ;;  %v9868_v40 = vsub.s32 7, %v12615_v15  ;;  %v1951_v15 = vrot.slane %v9829_v11, %v12655_v7 }
 0x73d   : > { %12660 = vst [vmem:[#allocation99_spill] sm:$0xff] %v9868_v40  ;;  %v2094_v60 = vrot.slane %v9825_v46, %v9868_v40 }
 0x73e   : > { %2063 = vbcast.lane.b32.xlu0 %v2061_v1, 256 }
 0x73f   : > { %2067 = vbcast.lane.b32.xlu1 %v2061_v1, 264  ;;  %v1929_v1 = vrot.slane %v9829_v11, %v8413_v39 }
 0x742   : > { %2074 = vbcast.lane.b32.xlu0 %v2072_v31, 256 }
 0x743   : > { %2078 = vbcast.lane.b32.xlu1 %v2072_v31, 264  ;;  %v1940_v31 = vrot.slane %v9829_v11, %v12654_v58 }
 0x746   : > { %2085 = vbcast.lane.b32.xlu0 %v2083_v38, 256 }
 0x747   : > { %2089 = vbcast.lane.b32.xlu1 %v2083_v38, 264  ;;  %v1962_v38 = vrot.slane %v9829_v11, %v9848_v55 }
 0x74a   : > { %2096 = vbcast.lane.b32.xlu0 %v2094_v60, 256 }
 0x74b   : > { %2100 = vbcast.lane.b32.xlu1 %v2094_v60, 264  ;;  %v9880_v60 = vpop.xlane.xlu1 %2769 }
 0x74c   : > { %12661 = vst [vmem:[#allocation100_spill] sm:$0xff] %v9880_v60 }
 0x74e   : > { %1935 = vbcast.lane.b32.xlu0 %v1929_v1, 264 }
 0x74f   : > { %1931 = vbcast.lane.b32.xlu1 %v1929_v1, 256  ;;  %v1973_v1 = vrot.slane %v9829_v11, %v9853_v4  ;;  %v9886_v46 = vpop.xlane.xlu1 %2778 }
 0x750   : > { %12662 = vst [vmem:[#allocation101_spill] sm:$0xff] %v9886_v46 }
 0x752   : > { %1946 = vbcast.lane.b32.xlu0 %v1940_v31, 264 }
 0x753   : > { %1942 = vbcast.lane.b32.xlu1 %v1940_v31, 256  ;;  %v1984_v31 = vrot.slane %v9829_v11, %v9858_v53  ;;  %v9890_v10 = vpop.xlane.xlu1 %2784 }
 0x754   : > { %12663 = vst [vmem:[#allocation102_spill] sm:$0xff] %v9890_v10 }
 0x756   : > { %1957 = vbcast.lane.b32.xlu0 %v1951_v15, 264 }
 0x757   : > { %1953 = vbcast.lane.b32.xlu1 %v1951_v15, 256  ;;  %v1995_v15 = vrot.slane %v9829_v11, %v9863_v16  ;;  %v9894_v4 = vpop.xlane.xlu1 %2820 }
 0x758   : > { %12664 = vst [vmem:[#allocation103_spill] sm:$0xff] %v9894_v4 }
 0x75a   : > { %1968 = vbcast.lane.b32.xlu0 %v1962_v38, 264 }
 0x75b   : > { %1964 = vbcast.lane.b32.xlu1 %v1962_v38, 256  ;;  %v2006_v38 = vrot.slane %v9829_v11, %v9868_v40 }
 0x75e   : > { %1979 = vbcast.lane.b32.xlu0 %v1973_v1, 264 }
 0x75f   : > { %1975 = vbcast.lane.b32.xlu1 %v1973_v1, 256  ;;  %v9896_v1 = vpop.xlane.xlu1 %2826 }
 0x760   : > { %12665 = vst [vmem:[#allocation104_spill] sm:$0xff] %v9896_v1  ;;  %v10044_v1 = vld [vmem:[%s8762_s16 + $0x8] sm:$0xff] }
 0x762   : > { %1990 = vbcast.lane.b32.xlu0 %v1984_v31, 264 }
 0x763   : > { %1986 = vbcast.lane.b32.xlu1 %v1984_v31, 256  ;;  %v9898_v53 = vpop.xlane.xlu1 %2790  ;;  %v9903_v31 = vld [vmem:[%s12358_s6 + $0x2] ss:$0 sm:$0xff] }
 0x764   : > { %12666 = vst [vmem:[#allocation105_spill] sm:$0xff] %v9898_v53  ;;  %v4190_v16 = vmul.f32 %v9515_v26, %v9903_v31  ;;  %v4194_v11 = vmul.f32 %v9624_v47, %v9903_v31  ;;  %v4208_v30 = vmul.f32 %v9648_v24, %v9903_v31  ;;  %v4183_v46 = vmul.f32 %v9375_v32, %v9903_v31 }
 0x766   : > { %2001 = vbcast.lane.b32.xlu0 %v1995_v15, 264  ;;  %v4248_v53 = vsel %vm1148_vm3, %v4194_v11, 0.0  ;;  %v4290_v51 = vsel %vm1148_vm3, %v4208_v30, 0.0  ;;  %v4215_v49 = vsel %vm1148_vm3, %v4183_v46, 0.0  ;;  %v4186_v46 = vmul.f32 %v9387_v48, %v9903_v31 }
 0x767   : > { %1997 = vbcast.lane.b32.xlu1 %v1995_v15, 256  ;;  %v9907_v10 = vpop.xlane.xlu1 %2832  ;;  %v4236_v15 = vsel %vm1148_vm3, %v4190_v16, 0.0  ;;  %v4196_v16 = vmul.f32 %v9671_v62, %v9903_v31 }
 0x768   : > { %12667 = vst [vmem:[#allocation106_spill] sm:$0xff] %v9907_v10 }
 0x769   : > { %v4254_v11 = vsel %vm1148_vm3, %v4196_v16, 0.0 }
 0x76b   : > { %2008 = vbcast.lane.b32.xlu1 %v2006_v38, 256  ;;  %v9912_v40 = vpop.xlane.xlu1 %2796 }
 0x76c   : > { %12668 = vst [vmem:[#allocation107_spill] sm:$0xff] %v9912_v40 }
 0x76f   : > { %v9922_v55 = vpop.xlane.xlu1 %2838 }
 0x770   : > { %12669 = vst [vmem:[#allocation108_spill] sm:$0xff] %v9922_v55 }
 0x773   : > { %v9931_v30 = vpop.xlane.xlu1 %2802 }
 0x774   : > { %12670 = vst [vmem:[#allocation109_spill] sm:$0xff] %v9931_v30 }
 0x777   : > { %v9936_v25 = vpop.xlane.xlu1 %2844 }
 0x778   : > { %12671 = vst [vmem:[#allocation110_spill] sm:$0xff] %v9936_v25 }
 0x785   : > { %4237 = vadd.xlane.f32.xlu0 %v4236_v15  ;;  %v4184_v15 = vmul.f32 %v9351_v28, %v9903_v31  ;;  %v4224_v28 = vsel %vm1148_vm3, %v4186_v46, 0.0  ;;  %v4201_v46 = vmul.f32 %v9382_v21, %v9903_v31  ;;  %v12676_v21 = vld [vmem:[#allocation29_spill] sm:$0xff] }
 0x787   : > { %v4218_v40 = vsel %vm1148_vm3, %v4184_v15, 0.0  ;;  %v4199_v15 = vmul.f32 %v9370_v18, %v9903_v31  ;;  %v4269_v18 = vsel %vm1148_vm3, %v4201_v46, 0.0 }
 0x789   : > { %4249 = vadd.xlane.f32.xlu0 %v4248_v53  ;;  %v4185_v53 = vmul.f32 %v9357_v43, %v9903_v31 }
 0x78b   : > { %v4221_v60 = vsel %vm1148_vm3, %v4185_v53, 0.0 }
 0x78d   : > { %4291 = vadd.xlane.f32.xlu0 %v4290_v51  ;;  %v4188_v51 = vmul.f32 %v9423_v13, %v9903_v31 }
 0x78f   : > { %4216 = vadd.xlane.f32.xlu1 %v4215_v49  ;;  %v4187_v49 = vmul.f32 %v9363_v54, %v9903_v31  ;;  %v4230_v16 = vsel %vm1148_vm3, %v4188_v51, 0.0  ;;  %v4200_v54 = vmul.f32 %v9455_v50, %v9903_v31 }
 0x791   : > { %4255 = vadd.xlane.f32.xlu0 %v4254_v11  ;;  %v4227_v43 = vsel %vm1148_vm3, %v4187_v49, 0.0  ;;  %v4263_v11 = vsel %vm1148_vm3, %v4199_v15, 0.0  ;;  %v4266_v53 = vsel %vm1148_vm3, %v4200_v54, 0.0  ;;  %v4202_v49 = vmul.f32 %v9490_v61, %v9903_v31 }
 0x792   : > { %v4203_v15 = vmul.f32 %v12676_v21, %v9903_v31 }
 0x793   : > { %4219 = vadd.xlane.f32.xlu1 %v4218_v40  ;;  %v9944_v40 = vpop.xlane.xlu1 %2808  ;;  %v4272_v51 = vsel %vm1148_vm3, %v4202_v49, 0.0  ;;  %v12678_v49 = vld [vmem:[#allocation78_spill] sm:$0xff] }
 0x794   : > { %12672 = vst [vmem:[#allocation111_spill] sm:$0xff] %v9944_v40  ;;  %v4275_v54 = vsel %vm1148_vm3, %v4203_v15, 0.0  ;;  %v4205_v40 = vmul.f32 %v9510_v34, %v9903_v31 }
 0x797   : > { %4222 = vadd.xlane.f32.xlu1 %v4221_v60  ;;  %v9949_v60 = vpop.xlane.xlu1 %2850 }
 0x798   : > { %12673 = vst [vmem:[#allocation112_spill] sm:$0xff] %v9949_v60 }
 0x79b   : > { %4225 = vadd.xlane.f32.xlu1 %v4224_v28  ;;  %v9957_v28 = vpop.xlane.xlu1 %2814 }
 0x79c   : > { %12674 = vst [vmem:[#allocation113_spill] sm:$0xff] %v9957_v28  ;;  %v4192_v28 = vmul.f32 %v9572_v42, %v9903_v31 }
 0x79f   : > { %4228 = vadd.xlane.f32.xlu1 %v4227_v43  ;;  %v9962_v43 = vpop.xlane.xlu1 %2856 }
 0x7a0   : > { %12675 = vst [vmem:[#allocation114_spill] sm:$0xff] %v9962_v43 }
 0x7a3   : > { %4231 = vadd.xlane.f32.xlu1 %v4230_v16 }
 0x7a7   : > { %4264 = vadd.xlane.f32.xlu1 %v4263_v11  ;;  %2012 = vbcast.lane.b32.xlu0 %v2006_v38, 264  ;;  %v4189_v38 = vmul.f32 %v9418_v29, %v9903_v31  ;;  %v9970_v11 = vpop.xlane.xlu1 %2862 }
 0x7a8   : > { %12677 = vst [vmem:[#allocation29_spill] sm:$0xff] %v9970_v11  ;;  %v12679_v11 = vld [vmem:[#allocation62_spill] sm:$0xff] }
 0x7a9   : > { %v4233_v16 = vsel %vm1148_vm3, %v4189_v38, 0.0  ;;  %v4206_v43 = vmul.f32 %v12679_v11, %v9903_v31 }
 0x7ab   : > { %4267 = vadd.xlane.f32.xlu1 %v4266_v53  ;;  %v4204_v53 = vmul.f32 %v9541_v63, %v9903_v31  ;;  %v9975_v46 = vpop.permute.xlu1 %2019 }
 0x7ad   : > { %v4278_v29 = vsel %vm1148_vm3, %v4204_v53, 0.0  ;;  %v4198_v53 = vmul.f32 %v9707_v56, %v9903_v31 }
 0x7af   : > { %4270 = vadd.xlane.f32.xlu1 %v4269_v18  ;;  %v9977_v18 = vpop.permute.xlu0 %2023  ;;  %v9982_v38 = vpop.permute.xlu1 %2030 }
 0x7b3   : > { %4273 = vadd.xlane.f32.xlu1 %v4272_v51  ;;  %v4191_v51 = vmul.f32 %v12678_v49, %v9903_v31  ;;  %v9984_v21 = vpop.permute.xlu0 %2034  ;;  %v4242_v49 = vsel %vm1148_vm3, %v4192_v28, 0.0 }
 0x7b5   : > { %v4239_v15 = vsel %vm1148_vm3, %v4191_v51, 0.0  ;;  %v4260_v51 = vsel %vm1148_vm3, %v4198_v53, 0.0  ;;  %v4284_v53 = vsel %vm1148_vm3, %v4206_v43, 0.0 }
 0x7b7   : > { %4234 = vadd.xlane.f32.xlu1 %v4233_v16  ;;  %v4210_v16 = vmul.f32 %v9695_v0, %v9903_v31  ;;  %v9999_v30 = vpop.permute.xlu0 %2045 }
 0x7bb   : > { %4276 = vadd.xlane.f32.xlu1 %v4275_v54  ;;  %v4296_v54 = vsel %vm1148_vm3, %v4210_v16, 0.0  ;;  %v4281_v16 = vsel %vm1148_vm3, %v4205_v40, 0.0  ;;  %v10009_v60 = vpop.permute.xlu0 %2056 }
 0x7bf   : > { %4279 = vadd.xlane.f32.xlu1 %v4278_v29  ;;  %v9997_v29 = vpop.permute.xlu1 %2041 }
 0x7c3   : > { %4240 = vadd.xlane.f32.xlu1 %v4239_v15  ;;  %v4212_v15 = vmul.f32 %v9722_v35, %v9903_v31  ;;  %v10007_v28 = vpop.permute.xlu1 %2052 }
 0x7c5   : > { %v4302_v25 = vsel %vm1148_vm3, %v4212_v15, 0.0  ;;  %v10023_v15 = vpop.permute.xlu0 %2063 }
 0x7c6   : > { %4297 = vadd.xlane.f32.xlu0 %v4296_v54  ;;  %v4214_v54 = vmul.f32 %v9737_v41, %v9903_v31 }
 0x7c7   : > { %4243 = vadd.xlane.f32.xlu1 %v4242_v49  ;;  %v12680_v49 = vld [vmem:[#allocation60_spill] sm:$0xff]  ;;  %v10021_v10 = vpop.permute.xlu1 %2067 }
 0x7c8   : > { %v4193_v55 = vmul.f32 %v12680_v49, %v9903_v31  ;;  %v4308_v40 = vsel %vm1148_vm3, %v4214_v54, 0.0  ;;  %v12682_v49 = vld [vmem:[#allocation61_spill] sm:$0xff] }
 0x7c9   : > { %v10031_v54 = vld [vmem:[%s12358_s6 + $0x3] ss:$0 sm:$0xff]  ;;  %v10037_v45 = vpop.permute.xlu0 %2074 }
 0x7ca   : > { %4261 = vadd.xlane.f32.xlu0 %v4260_v51  ;;  %v4245_v51 = vsel %vm1148_vm3, %v4193_v55, 0.0  ;;  %v5604_v55 = vmul.f32 %v9375_v32, %v10031_v54  ;;  %v5605_v6 = vmul.f32 %v10044_v1, %v10031_v54 }
 0x7cb   : > { %4282 = vadd.xlane.f32.xlu1 %v4281_v16  ;;  %v4207_v16 = vmul.f32 %v12681_v37, %v9903_v31 }
 0x7cc   : > { %v5639_v32 = vsel %vm1148_vm3, %v5605_v6, 0.0  ;;  %v4211_v6 = vmul.f32 %v9666_v36, %v9903_v31 }
 0x7cd   : > { %v4287_v43 = vsel %vm1148_vm3, %v4207_v16, 0.0  ;;  %v5636_v16 = vsel %vm1148_vm3, %v5604_v55, 0.0  ;;  %v10056_v55 = vpop.permute.xlu0 %2085 }
 0x7ce   : > { %4303 = vadd.xlane.f32.xlu0 %v4302_v25  ;;  %v4195_v25 = vmul.f32 %v12682_v49, %v9903_v31 }
 0x7cf   : > { %4285 = vadd.xlane.f32.xlu1 %v4284_v53  ;;  %v10035_v53 = vpop.permute.xlu1 %2078 }
 0x7d2   : > { %4309 = vadd.xlane.f32.xlu0 %v4308_v40  ;;  %v4251_v40 = vsel %vm1148_vm3, %v4195_v25, 0.0  ;;  %v5607_v25 = vmul.f32 %v9387_v48, %v10031_v54 }
 0x7d3   : > { %4246 = vadd.xlane.f32.xlu1 %v4245_v51  ;;  %v4209_v51 = vmul.f32 %v9619_v57, %v9903_v31  ;;  %v10054_v59 = vpop.permute.xlu1 %2089 }
 0x7d4   : > { %v5645_v5 = vsel %vm1148_vm3, %v5607_v25, 0.0  ;;  %v5609_v25 = vmul.f32 %v9423_v13, %v10031_v54  ;;  %v5621_v13 = vmul.f32 %v9455_v50, %v10031_v54 }
 0x7d5   : > { %v4293_v4 = vsel %vm1148_vm3, %v4209_v51, 0.0 }
 0x7d6   : > { %5637 = vadd.xlane.f32.xlu0 %v5636_v16  ;;  %v5651_v7 = vsel %vm1148_vm3, %v5609_v25, 0.0 }
 0x7d7   : > { %4288 = vadd.xlane.f32.xlu1 %v4287_v43  ;;  %v4197_v43 = vmul.f32 %v9643_v44, %v9903_v31  ;;  %v10068_v51 = vpop.permute.xlu1 %2100 }
 0x7d9   : > { %v4257_v16 = vsel %vm1148_vm3, %v4197_v43, 0.0  ;;  %v4213_v43 = vmul.f32 %v9690_v52, %v9903_v31 }
 0x7da   : > { %5640 = vadd.xlane.f32.xlu0 %v5639_v32  ;;  %v10070_v32 = vpop.permute.xlu0 %2096 }
 0x7db   : > { %4252 = vadd.xlane.f32.xlu1 %v4251_v40  ;;  %v10063_v40 = vld [vmem:[%s8762_s16 + $0x20] sm:$0xff]  ;;  %v10081_v58 = vpop.permute.xlu1 %1931 }
 0x7dc   : > { %v5608_v44 = vmul.f32 %v10063_v40, %v10031_v54 }
 0x7de   : > { %5646 = vadd.xlane.f32.xlu0 %v5645_v5  ;;  %v5648_v48 = vsel %vm1148_vm3, %v5608_v44, 0.0  ;;  %v4305_v5 = vsel %vm1148_vm3, %v4213_v43, 0.0  ;;  %v7742_v44 = vld [vmem:[%s8762_s16 + $0x80] sm:$0xff]  ;;  %v7743_v43 = vld [vmem:[%s8762_s16 + $0x90] sm:$0xff] }
 0x7df   : > { %4294 = vadd.xlane.f32.xlu1 %v4293_v4  ;;  %v4299_v4 = vsel %vm1148_vm3, %v4211_v6, 0.0  ;;  %v5620_v9 = vmul.f32 %v7742_v44, %v10031_v54  ;;  %v5687_v6 = vsel %vm1148_vm3, %v5621_v13, 0.0  ;;  %v5622_v25 = vmul.f32 %v7743_v43, %v10031_v54 }
 0x7e1   : > { %v5684_v31 = vsel %vm1148_vm3, %v5620_v9, 0.0  ;;  %v2119_v9 = vmul.f32 %v9455_v50, %v9977_v18 }
 0x7e2   : > { %5649 = vadd.xlane.f32.xlu0 %v5648_v48  ;;  %v10089_v48 = vpop.permute.xlu1 %1942 }
 0x7e3   : > { %4258 = vadd.xlane.f32.xlu1 %v4257_v16  ;;  %v10083_v16 = vpop.permute.xlu0 %1935  ;;  %v2207_v20 = vsel %vm1148_vm3, %v2119_v9, 0.0 }
 0x7e6   : > { %5652 = vadd.xlane.f32.xlu0 %v5651_v7  ;;  %v2118_v7 = vmul.f32 %v7742_v44, %v9975_v46  ;;  %v10101_v13 = vpop.permute.xlu1 %1953  ;;  %v10109_v44 = vld [vmem:[%s8762_s16 + $0x30] sm:$0xff] }
 0x7e7   : > { %4300 = vadd.xlane.f32.xlu1 %v4299_v4  ;;  %v10091_v4 = vpop.permute.xlu0 %1946  ;;  %v5610_v50 = vmul.f32 %v10109_v44, %v10031_v54 }
 0x7e8   : > { %v2206_v23 = vsel %vm1148_vm3, %v2118_v7, 0.0 }
 0x7e9   : > { %v2208_v18 = vadd.f32 %v2207_v20, %v2206_v23  ;;  %v10125_v20 = vld [vmem:[%s8762_s16 + $0xa0] sm:$0xff] }
 0x7ea   : > { %5685 = vadd.xlane.f32.xlu0 %v5684_v31  ;;  %v5623_v31 = vmul.f32 %v9490_v61, %v10031_v54  ;;  %v10117_v7 = vpop.permute.xlu1 %1964 }
 0x7eb   : > { %4306 = vadd.xlane.f32.xlu1 %v4305_v5  ;;  %v5690_v5 = vsel %vm1148_vm3, %v5622_v25, 0.0  ;;  %v10103_v39 = vpop.permute.xlu0 %1957  ;;  %v2121_v25 = vmul.f32 %v9490_v61, %v9984_v21  ;;  %v2123_v61 = vmul.f32 %v9541_v63, %v9999_v30 }
 0x7ec   : > { %v5693_v46 = vsel %vm1148_vm3, %v5623_v31, 0.0  ;;  %v2209_v31 = vrot.slane %v2208_v18, 4 }
 0x7ed   : > { %v2216_v23 = vsel %vm1148_vm3, %v2121_v25, 0.0  ;;  %v2124_v25 = vmul.f32 %v9510_v34, %v10007_v28  ;;  %v2126_v28 = vmul.f32 %v12681_v37, %v10023_v15 }
 0x7ee   : > { %5688 = vadd.xlane.f32.xlu0 %v5687_v6  ;;  %v2120_v6 = vmul.f32 %v7743_v43, %v9982_v38  ;;  %v2122_v38 = vmul.f32 %v10125_v20, %v9997_v29  ;;  %v2210_v21 = vadd.f32 %v2209_v31, %v2208_v18  ;;  %v5611_v29 = vmul.f32 %v9515_v26, %v10031_v54 }
 0x7ef   : > { %v10119_v9 = vpop.permute.xlu0 %1968 }
 0x7f0   : > { %v2215_v33 = vsel %vm1148_vm3, %v2120_v6, 0.0  ;;  %v2225_v6 = vsel %vm1148_vm3, %v2123_v61, 0.0 }
 0x7f1   : > { %v2217_v43 = vadd.f32 %v2216_v23, %v2215_v33  ;;  %v2211_v33 = vrot.slane %v2210_v21, 2  ;;  %v2129_v23 = vmul.f32 %v9695_v0, %v10035_v53  ;;  %v2242_v53 = vsel %vm1148_vm3, %v2126_v28, 0.0  ;;  %v7751_v28 = vld [vmem:[%s8762_s16] sm:$0xff] }
 0x7f2   : > { %5691 = vadd.xlane.f32.xlu0 %v5690_v5  ;;  %v5654_v5 = vsel %vm1148_vm3, %v5610_v50, 0.0  ;;  %v2224_v50 = vsel %vm1148_vm3, %v2122_v38, 0.0 }
 0x7f3   : > { %v2218_v18 = vrot.slane %v2217_v43, 4  ;;  %v10144_v31 = vadd.f32 %v2225_v6, %v2224_v50  ;;  %v7746_v6 = vld [vmem:[%s8762_s16 + $0x40] sm:$0xff] }
 0x7f5   : > { %v10166_v37 = vadd.f32 %v2218_v18, %v2217_v43  ;;  %v2227_v15 = vrot.slane %v10144_v31, 4  ;;  %v2252_v43 = vsel %vm1148_vm3, %v2129_v23, 0.0  ;;  %v2103_v23 = vmul.f32 %v10044_v1, %v10083_v16  ;;  %v10208_v1 = vld [vmem:[%s8762_s16 + $0x50] sm:$0xff] }
 0x7f6   : > { %5694 = vadd.xlane.f32.xlu0 %v5693_v46  ;;  %v1976_v46 = vpop.permute.xlu1 %1975 }
 0x7fa   : > { %5655 = vadd.xlane.f32.xlu0 %v5654_v5  ;;  %v2125_v5 = vmul.f32 %v12679_v11, %v10009_v60  ;;  %v5657_v60 = vsel %vm1148_vm3, %v5611_v29, 0.0  ;;  %v2233_v11 = vsel %vm1148_vm3, %v2124_v25, 0.0  ;;  %v1987_v38 = vpop.permute.xlu1 %1986  ;;  %v10176_v29 = vld [vmem:[%s8762_s16 + $0x10] sm:$0xff] }
 0x7fb   : > { %v2112_v16 = vmul.f32 %v10208_v1, %v1987_v38 }
 0x7fc   : > { %4318 = vperm.xlu1 %7647, %v9763_v8   ;;  %v1980_v8 = vpop.permute.xlu0 %1979  ;;  %v2234_v26 = vsel %vm1148_vm3, %v2125_v5, 0.0  ;;  %v2128_v5 = vmul.f32 %v9619_v57, %v10037_v45  ;;  %v2131_v57 = vmul.f32 %v9722_v35, %v10054_v59  ;;  %v2130_v45 = vmul.f32 %v9666_v36, %v10056_v55  ;;  %v7752_v35 = vld [vmem:[%s8762_s16 + $0x38] sm:$0xff] }
 0x7fd   : > { %v10169_v25 = vadd.f32 %v2234_v26, %v2233_v11  ;;  %v7750_v26 = vld [vmem:[%s8762_s16 + $0x28] sm:$0xff]  ;;  %v2109_v59 = vmul.f32 %v7752_v35, %v10119_v9 }
 0x7fe   : > { %5658 = vadd.xlane.f32.xlu0 %v5657_v60  ;;  %v7749_v60 = vld [vmem:[%s8762_s16 + $0xb0] sm:$0xff]  ;;  %v1998_v36 = vpop.permute.xlu1 %1997 }
 0x7ff   : > { %v5626_v11 = vmul.f32 %v7749_v60, %v10031_v54  ;;  %v2162_v38 = vsel %vm1148_vm3, %v2109_v59, 0.0 }
 0x800   : > { %7650 = vset.pattern.permute.xlu1 %v12606_v12  ;;  %v5625_v12 = vmul.f32 %v9541_v63, %v10031_v54  ;;  %v2127_v63 = vmul.f32 %v9648_v24, %v10021_v10  ;;  %v1991_v61 = vpop.permute.xlu0 %1990  ;;  %v5612_v24 = vmul.f32 %v7746_v6, %v10031_v54  ;;  %v10164_v10 = vadd.f32 %v2211_v33, %v2210_v21 }
 0x801   : > { %v2104_v21 = vmul.f32 %v10176_v29, %v10089_v48  ;;  %v2106_v48 = vmul.f32 %v10063_v40, %v10101_v13  ;;  %v2133_v40 = vmul.f32 %v9737_v41, %v10068_v51  ;;  %v2114_v51 = vmul.f32 %v12682_v49, %v1998_v36 }
 0x802   : > { %v5699_v50 = vsel %vm1148_vm3, %v5625_v12, 0.0  ;;  %v2243_v0 = vsel %vm1148_vm3, %v2127_v63, 0.0  ;;  %v7748_v12 = vld [vmem:[%s8762_s16 + $0x18] sm:$0xff]  ;;  %v5660_v18 = vsel %vm1148_vm3, %v5612_v24, 0.0  ;;  %v2107_v63 = vmul.f32 %v7750_v26, %v10103_v39 }
 0x803   : > { %5700 = vadd.xlane.f32.xlu0 %v5699_v50  ;;  %v2105_v33 = vmul.f32 %v7748_v12, %v10091_v4  ;;  %v2102_v4 = vmul.f32 %v7751_v28, %v10081_v58  ;;  %v2108_v50 = vmul.f32 %v10109_v44, %v10117_v7  ;;  %v2143_v13 = vsel %vm1148_vm3, %v2104_v21, 0.0 }
 0x804   : > { %v10142_v30 = vpop.f32.mrb[8].mxu1  ;;  %v2002_v55 = vpop.permute.xlu0 %2001  ;;  %v2110_v39 = vmul.f32 %v7746_v6, %v1976_v46  ;;  %v2111_v24 = vmul.f32 %v9572_v42, %v1980_v8  ;;  %v2113_v44 = vmul.f32 %v9624_v47, %v1991_v61  ;;  %v5702_v7 = vsel %vm1148_vm3, %v5626_v11, 0.0 }
 0x805   : > { %12683 = vst [vmem:[#allocation78_spill] sm:$0xff] %v10142_v30  ;;  %2512 = vst.msk [vmem:[#allocation5 + $0x10] sm:$0xff] %vm1148_vm3, %v10142_v30  ;;  %v10148_v34 = vpop.f32.mrb[9].mxu1  ;;  %v2144_v58 = vsel %vm1148_vm3, %v2105_v33, 0.0  ;;  %v2152_v9 = vsel %vm1148_vm3, %v2106_v48, 0.0  ;;  %v2153_v41 = vsel %vm1148_vm3, %v2107_v63, 0.0  ;;  %v2115_v46 = vmul.f32 %v9671_v62, %v2002_v55 }
 0x806   : > { %12684 = vst [vmem:[#allocation62_spill] sm:$0xff] %v10148_v34  ;;  %2511 = vst.msk [vmem:[#allocation5] sm:$0xff] %vm1148_vm3, %v10148_v34  ;;  %v2134_v42 = vsel %vm1148_vm3, %v2102_v4, 0.0  ;;  %v2135_v8 = vsel %vm1148_vm3, %v2103_v23, 0.0  ;;  %v2161_v6 = vsel %vm1148_vm3, %v2108_v50, 0.0  ;;  %v2132_v47 = vmul.f32 %v9690_v52, %v10070_v32 }
 0x807   : > { %5661 = vadd.xlane.f32.xlu0 %v5660_v18  ;;  %v2145_v61 = vadd.f32 %v2144_v58, %v2143_v13  ;;  %v2170_v21 = vsel %vm1148_vm3, %v2110_v39, 0.0  ;;  %v2171_v12 = vsel %vm1148_vm3, %v2111_v24, 0.0  ;;  %v2251_v62 = vsel %vm1148_vm3, %v2128_v5, 0.0 }
 0x808   : > { %v2154_v49 = vadd.f32 %v2153_v41, %v2152_v9  ;;  %v2179_v18 = vsel %vm1148_vm3, %v2112_v16, 0.0  ;;  %v2180_v60 = vsel %vm1148_vm3, %v2113_v44, 0.0  ;;  %v2136_v11 = vadd.f32 %v2135_v8, %v2134_v42 }
 0x809   : > { %v2163_v48 = vadd.f32 %v2162_v38, %v2161_v6  ;;  %v2188_v26 = vsel %vm1148_vm3, %v2114_v51, 0.0  ;;  %v2189_v52 = vsel %vm1148_vm3, %v2115_v46, 0.0  ;;  %v2244_v32 = vadd.f32 %v2243_v0, %v2242_v53 }
 0x80a   : > { %v2261_v63 = vsel %vm1148_vm3, %v2131_v57, 0.0  ;;  %v2260_v28 = vsel %vm1148_vm3, %v2130_v45, 0.0  ;;  %v2172_v4 = vadd.f32 %v2171_v12, %v2170_v21  ;;  %v2270_v23 = vsel %vm1148_vm3, %v2133_v40, 0.0  ;;  %v2009_v45 = vpop.permute.xlu1 %2008 }
 0x80b   : > { %5703 = vadd.xlane.f32.xlu0 %v5702_v7  ;;  %v2269_v5 = vsel %vm1148_vm3, %v2132_v47, 0.0  ;;  %v2146_v50 = vrot.slane %v2145_v61, 4  ;;  %v2181_v35 = vadd.f32 %v2180_v60, %v2179_v18  ;;  %v2220_v36 = vrot.slane %v10166_v37, 2 }
 0x80c   : > { %v2253_v55 = vadd.f32 %v2252_v43, %v2251_v62  ;;  %v2155_v13 = vrot.slane %v2154_v49, 4  ;;  %v2190_v39 = vadd.f32 %v2189_v52, %v2188_v26  ;;  %v2236_v0 = vrot.slane %v10169_v25, 4 }
 0x80d   : > { %v2262_v53 = vadd.f32 %v2261_v63, %v2260_v28  ;;  %v2137_v57 = vrot.slane %v2136_v11, 4  ;;  %v2164_v24 = vrot.slane %v2163_v48, 4  ;;  %v2213_v58 = vrot.slane %v10164_v10, 1 }
 0x80e   : > { %v2271_v40 = vadd.f32 %v2270_v23, %v2269_v5  ;;  %v2173_v16 = vrot.slane %v2172_v4, 4  ;;  %v5606_v44 = vmul.f32 %v10176_v29, %v10031_v54  ;;  %v2228_v7 = vadd.f32 %v2227_v15, %v10144_v31 }
 0x80f   : > { %v2245_v43 = vrot.slane %v2244_v32, 4  ;;  %v2147_v9 = vadd.f32 %v2146_v50, %v2145_v61  ;;  %v2182_v41 = vrot.slane %v2181_v35, 4  ;;  %v10249_v46 = vadd.f32 %v2220_v36, %v10166_v37 }
 0x810   : > { %v2254_v42 = vrot.slane %v2253_v55, 4  ;;  %v2156_v8 = vadd.f32 %v2155_v13, %v2154_v49  ;;  %v2191_v6 = vrot.slane %v2190_v39, 4  ;;  %v2237_v38 = vadd.f32 %v2236_v0, %v10169_v25 }
 0x811   : > { %v2263_v47 = vrot.slane %v2262_v53, 4  ;;  %v2138_v21 = vadd.f32 %v2137_v57, %v2136_v11  ;;  %v2165_v29 = vadd.f32 %v2164_v24, %v2163_v48  ;;  %v2272_v62 = vrot.slane %v2271_v40, 4 }
 0x812   : > { %v10225_v33 = vpop.xlane.xlu0 %4237  ;;  %v2174_v31 = vadd.f32 %v2173_v16, %v2172_v4  ;;  %v5642_v15 = vsel %vm1148_vm3, %v5606_v44, 0.0  ;;  %v5624_v61 = vmul.f32 %v10125_v20, %v10031_v54  ;;  %v2229_v18 = vrot.slane %v2228_v7, 2 }
 0x813   : > { %v2246_v37 = vadd.f32 %v2245_v43, %v2244_v32  ;;  %v2148_v60 = vrot.slane %v2147_v9, 2  ;;  %v2183_v49 = vadd.f32 %v2182_v41, %v2181_v35  ;;  %v2222_v25 = vrot.slane %v10249_v46, 1  ;;  %v10263_v32 = vld [vmem:[%s8762_s16 + $0x70] sm:$0xff] }
 0x814   : > { %v2255_v11 = vadd.f32 %v2254_v42, %v2253_v55  ;;  %v2157_v48 = vrot.slane %v2156_v8, 2  ;;  %v2192_v52 = vadd.f32 %v2191_v6, %v2190_v39  ;;  %v2238_v63 = vrot.slane %v2237_v38, 2 }
 0x815   : > { %v2264_v28 = vadd.f32 %v2263_v47, %v2262_v53  ;;  %v2139_v4 = vrot.slane %v2138_v21, 2  ;;  %v2166_v23 = vrot.slane %v2165_v29, 2  ;;  %v2273_v20 = vadd.f32 %v2272_v62, %v2271_v40 }
 0x816   : > { %v10236_v59 = vpop.xlane.xlu0 %4249  ;;  %v2175_v50 = vrot.slane %v2174_v31, 2  ;;  %v2116_v35 = vmul.f32 %v10263_v32, %v2009_v45  ;;  %v5696_v36 = vsel %vm1148_vm3, %v5624_v61, 0.0  ;;  %v2230_v13 = vadd.f32 %v2229_v18, %v2228_v7 }
 0x817   : > { %v2247_v0 = vrot.slane %v2246_v37, 2  ;;  %v2149_v55 = vadd.f32 %v2148_v60, %v2147_v9  ;;  %v2184_v57 = vrot.slane %v2183_v49, 2  ;;  %v2256_v24 = vrot.slane %v2255_v11, 2 }
 0x818   : > { %v2158_v53 = vadd.f32 %v2157_v48, %v2156_v8  ;;  %v2193_v16 = vrot.slane %v2192_v52, 2  ;;  %v2239_v43 = vadd.f32 %v2238_v63, %v2237_v38  ;;  %v2265_v41 = vrot.slane %v2264_v28, 2 }
 0x819   : > { %v2140_v40 = vadd.f32 %v2139_v4, %v2138_v21  ;;  %v2167_v42 = vadd.f32 %v2166_v23, %v2165_v29  ;;  %v2274_v45 = vrot.slane %v2273_v20, 2  ;;  %v2176_v47 = vadd.f32 %v2175_v50, %v2174_v31 }
 0x81a   : > { %v10246_v51 = vpop.xlane.xlu0 %4291  ;;  %v2197_v7 = vsel %vm1148_vm3, %v2116_v35, 0.0  ;;  %v2248_v62 = vadd.f32 %v2247_v0, %v2246_v37  ;;  %v2185_v61 = vadd.f32 %v2184_v57, %v2183_v49  ;;  %v2231_v18 = vrot.slane %v2230_v13, 1 }
 0x81b   : > { %v2257_v60 = vadd.f32 %v2256_v24, %v2255_v11  ;;  %v2194_v38 = vadd.f32 %v2193_v16, %v2192_v52  ;;  %v2266_v48 = vadd.f32 %v2265_v41, %v2264_v28  ;;  %v2141_v21 = vrot.slane %v2140_v40, 1 }
 0x81c   : > { %v10252_v12 = vpop.xlane.xlu1 %4216  ;;  %v2168_v29 = vrot.slane %v2167_v42, 1  ;;  %v2223_v31 = vadd.f32 %v2222_v25, %v10249_v46  ;;  %v2240_v23 = vrot.slane %v2239_v43, 1  ;;  %v2275_v50 = vadd.f32 %v2274_v45, %v2273_v20 }
 0x81d   : > { %v2177_v35 = vrot.slane %v2176_v47, 1  ;;  %v2186_v0 = vrot.slane %v2185_v61, 1  ;;  %v2232_v57 = vadd.f32 %v2231_v18, %v2230_v13  ;;  %v2195_v24 = vrot.slane %v2194_v38, 1 }
 0x81e   : > { %v10257_v26 = vpop.xlane.xlu0 %4255  ;;  %v2267_v52 = vrot.slane %v2266_v48, 1  ;;  %v2142_v28 = vadd.f32 %v2141_v21, %v2140_v40  ;;  %v2169_v16 = vadd.f32 %v2168_v29, %v2167_v42  ;;  %v2214_v46 = vadd.f32 %v2213_v58, %v10164_v10 }
 0x81f   : > { %v2241_v25 = vadd.f32 %v2240_v23, %v2239_v43  ;;  %v2276_v20 = vrot.slane %v2275_v50, 1  ;;  %v2178_v45 = vadd.f32 %v2177_v35, %v2176_v47  ;;  %v2187_v13 = vadd.f32 %v2186_v0, %v2185_v61 }
 0x820   : > { %v10260_v5 = vpop.xlane.xlu1 %4219  ;;  %5643 = vadd.xlane.f32.xlu1 %v5642_v15  ;;  %v2150_v15 = vrot.slane %v2149_v55, 1  ;;  %v2196_v40 = vadd.f32 %v2195_v24, %v2194_v38  ;;  %v2268_v18 = vadd.f32 %v2267_v52, %v2266_v48 }
 0x821   : > { %v2277_v43 = vadd.f32 %v2276_v20, %v2275_v50  ;;  %v12685_v50 = vld [vmem:[#allocation76_spill] sm:$0xff] }
 0x822   : > { %v2013_v39 = vpop.permute.xlu0 %2012  ;;  %v2151_v37 = vadd.f32 %v2150_v15, %v2149_v55 }
 0x823   : > { %v2117_v44 = vmul.f32 %v9707_v56, %v2013_v39  ;;  %v2159_v56 = vrot.slane %v2158_v53, 1  ;;  %v2258_v39 = vrot.slane %v2257_v60, 1 }
 0x824   : > { %v10268_v6 = vpop.xlane.xlu1 %4222  ;;  %5697 = vadd.xlane.f32.xlu1 %v5696_v36  ;;  %v2249_v36 = vrot.slane %v2248_v62, 1 }
 0x825   : > { %v2198_v9 = vsel %vm1148_vm3, %v2117_v44, 0.0  ;;  %v2160_v11 = vadd.f32 %v2159_v56, %v2158_v53  ;;  %v2315_v53 = vsel %vm1666_vm1, %v2223_v31, %v2214_v46  ;;  %v2259_v15 = vadd.f32 %v2258_v39, %v2257_v60 }
 0x826   : > { %v2199_v8 = vadd.f32 %v2198_v9, %v2197_v7  ;;  %v2250_v55 = vadd.f32 %v2249_v36, %v2248_v62  ;;  %v2308_v7 = vsel %vm1666_vm1, %v2151_v37, %v2142_v28  ;;  %v12686_v37 = vld [vmem:[#allocation77_spill] sm:$0xff] }
 0x827   : > { %v2309_v42 = vsel %vm1668_vm5, %v2160_v11, %v2308_v7 }
 0x828   : > { %v2200_v63 = vrot.slane %v2199_v8, 4  ;;  %v10272_v4 = vpop.xlane.xlu1 %4225  ;;  %v2310_v10 = vsel %vm1670_vm14, %v2169_v16, %v2309_v42 }
 0x829   : > { %v2311_v58 = vsel %vm1672_vm15, %v2178_v45, %v2310_v10 }
 0x82a   : > { %v2201_v49 = vadd.f32 %v2200_v63, %v2199_v8  ;;  %v2316_v8 = vsel %vm1668_vm5, %v2232_v57, %v2315_v53  ;;  %v2312_v61 = vsel %vm1674_vm13, %v2187_v13, %v2311_v58 }
 0x82b   : > { %v2317_v47 = vsel %vm1670_vm14, %v2241_v25, %v2316_v8  ;;  %v2313_v38 = vsel %vm1676_vm12, %v2196_v40, %v2312_v61  ;;  %v7756_v8 = vld [vmem:[%s8762_s16 + $0xb8] sm:$0xff] }
 0x82c   : > { %v2202_v44 = vrot.slane %v2201_v49, 2  ;;  %v10275_v41 = vpop.xlane.xlu1 %4228  ;;  %v2318_v60 = vsel %vm1672_vm15, %v2250_v55, %v2317_v47 }
 0x82d   : > { %v2319_v29 = vsel %vm1674_vm13, %v2259_v15, %v2318_v60 }
 0x82e   : > { %v2203_v9 = vadd.f32 %v2202_v44, %v2201_v49  ;;  %v2320_v31 = vsel %vm1676_vm12, %v2268_v18, %v2319_v29  ;;  %v10337_v18 = vmul.f32 %v7756_v8, %v10031_v54 }
 0x82f   : > { %v2321_v23 = vsel %vm1678_vm11, %v2277_v43, %v2320_v31 }
 0x830   : > { %v4232_v56 = vpop.xlane.xlu1 %4231  ;;  %v2204_v21 = vrot.slane %v2203_v9, 1 }
 0x832   : > { %v2205_v62 = vadd.f32 %v2204_v21, %v2203_v9  ;;  %v7755_v9 = vld [vmem:[%s8762_s16 + $0x48] sm:$0xff] }
 0x833   : > { %v5613_v53 = vmul.f32 %v7755_v9, %v10031_v54 }
 0x834   : > { %v10291_v63 = vpop.xlane.xlu1 %4264  ;;  %v2314_v48 = vsel %vm1678_vm11, %v2205_v62, %v2313_v38 }
 0x835   : > { %7309 = vmatprep.mubr.msk.f32.mxu1 %vm1148_vm3, %v2314_v48  ;;  %v10346_v43 = vsel %vm1148_vm3, %v5613_v53, 0.0 }
 0x836   : > { %7310 = vmatmul.mubr.msk.f32.vlgmr.msra.gmra.mrb[10].mxu1 %vm1148_vm3, %v2321_v23 }
 0x837   : > { %7410 = vmatpush3.bf16.xpose.msk.msra.mxu1 %vm9205_vm6, %v9839_v22  ;;  %7316 = vmatprep.mubr.msk.f32.mxu1 %vm595_vm0, %v12685_v50  ;;  %vm12705_vm6 = vmmov %vm12704_vm10 }
 0x838   : > { %v10303_v35 = vpop.xlane.xlu1 %4267 }
 0x83c   : > { %v10305_v36 = vpop.xlane.xlu1 %4270 }
 0x83e   : > { %7317 = vmatmul.mubr.msk.f32.vlgmr.msra.gmra.mrb[12].mxu1 %vm595_vm0, %v12686_v37 }
 0x840   : > { %v10309_v0 = vpop.xlane.xlu1 %4273 }
 0x844   : > { %v4235_v49 = vpop.xlane.xlu1 %4234 }
 0x848   : > { %v10311_v57 = vpop.xlane.xlu1 %4276 }
 0x84c   : > { %v10313_v39 = vpop.xlane.xlu1 %4279 }
 0x850   : > { %v4241_v17 = vpop.xlane.xlu1 %4240 }
 0x853   : > { %v10321_v44 = vpop.xlane.xlu0 %4297 }
 0x854   : > { %v4244_v22 = vpop.xlane.xlu1 %4243 }
 0x857   : > { %v4262_v25 = vpop.xlane.xlu0 %4261 }
 0x858   : > { %v10315_v11 = vpop.xlane.xlu1 %4282 }
 0x85b   : > { %v10327_v55 = vpop.xlane.xlu0 %4303 }
 0x85c   : > { %v10317_v24 = vpop.xlane.xlu1 %4285 }
 0x85f   : > { %v4310_v13 = vpop.xlane.xlu0 %4309 }
 0x860   : > { %v4247_v52 = vpop.xlane.xlu1 %4246 }
 0x864   : > { %v10319_v28 = vpop.xlane.xlu1 %4288 }
 0x868   : > { %v4253_v16 = vpop.xlane.xlu1 %4252 }
 0x86c   : > { %v10323_v46 = vpop.xlane.xlu1 %4294 }
 0x870   : > { %v4259_v20 = vpop.xlane.xlu1 %4258 }
 0x874   : > { %v10325_v45 = vpop.xlane.xlu1 %4300 }
 0x878   : > { %v4307_v7 = vpop.xlane.xlu1 %4306 }
 0x87c   : > { %v10331_v15 = vpop.permute.xlu1 %4318 }
 0x87d   : > { %v4351_v40 = vadd.f32 %v10331_v15, %v4307_v7  ;;  %v4352_v42 = vadd.f32 %v10331_v15, %v4310_v13  ;;  %v4321_v21 = vadd.f32 %v10331_v15, %v10252_v12  ;;  %v4322_v10 = vadd.f32 %v10331_v15, %v10260_v5 }
 0x87e   : > { %v4323_v58 = vadd.f32 %v10331_v15, %v10268_v6  ;;  %v4324_v62 = vadd.f32 %v10331_v15, %v10272_v4  ;;  %v4325_v61 = vadd.f32 %v10331_v15, %v10275_v41  ;;  %v4326_v60 = vadd.f32 %v10331_v15, %v4232_v56 }
 0x87f   : > { %v10348_v47 = vmul.f32 0.57735026, %v4351_v40  ;;  %v10355_v12 = vmul.f32 0.57735026, %v4352_v42  ;;  %v4327_v5 = vadd.f32 %v10331_v15, %v4235_v49  ;;  %v4328_v6 = vadd.f32 %v10331_v15, %v10225_v33 }
 0x880   : > { %v4329_v38 = vadd.f32 %v10331_v15, %v4241_v17  ;;  %v4330_v29 = vadd.f32 %v10331_v15, %v4244_v22  ;;  %v4331_v48 = vadd.f32 %v10331_v15, %v4247_v52  ;;  %v4332_v4 = vadd.f32 %v10331_v15, %v10236_v59 }
 0x881   : > { %v4333_v41 = vadd.f32 %v10331_v15, %v4253_v16  ;;  %v4334_v56 = vadd.f32 %v10331_v15, %v10257_v26  ;;  %v4335_v31 = vadd.f32 %v10331_v15, %v4259_v20  ;;  %v4353_v23 = vmul.f32 0.57735026, %v4321_v21 }
 0x882   : > { %v4354_v50 = vmul.f32 0.57735026, %v4322_v10  ;;  %v4336_v33 = vadd.f32 %v10331_v15, %v4262_v25  ;;  %v4355_v37 = vmul.f32 0.57735026, %v4323_v58  ;;  %v4356_v49 = vmul.f32 0.57735026, %v4324_v62 }
 0x883   : > { %v4357_v17 = vmul.f32 0.57735026, %v4325_v61  ;;  %v4358_v22 = vmul.f32 0.57735026, %v4326_v60  ;;  %v4359_v7 = vmul.f32 0.57735026, %v4327_v5  ;;  %v4420_v13 = vrot.slane %v4353_v23, %v9392_v14 }
 0x884   : > { %v4360_v52 = vmul.f32 0.57735026, %v4328_v6  ;;  %v4361_v59 = vmul.f32 0.57735026, %v4329_v38  ;;  %v4362_v9 = vmul.f32 0.57735026, %v4330_v29  ;;  %v4424_v53 = vrot.slane %v4354_v50, %v9395_v2 }
 0x885   : > { %v4363_v16 = vmul.f32 0.57735026, %v4331_v48  ;;  %v4364_v26 = vmul.f32 0.57735026, %v4332_v4  ;;  %v4365_v40 = vmul.f32 0.57735026, %v4333_v41  ;;  %v4429_v42 = vrot.slane %v4355_v37, %v9392_v14 }
 0x886   : > { %v4366_v20 = vmul.f32 0.57735026, %v4334_v56  ;;  %v4367_v8 = vmul.f32 0.57735026, %v4335_v31  ;;  %v4368_v25 = vmul.f32 0.57735026, %v4336_v33  ;;  %v4425_v21 = vsel %vm1529_vm7, %v4424_v53, %v4420_v13 }
 0x887   : > { %v4433_v10 = vrot.slane %v4356_v49, %v9395_v2  ;;  %v4438_v58 = vrot.slane %v4357_v17, %v9392_v14  ;;  %v4442_v62 = vrot.slane %v4358_v22, %v9395_v2  ;;  %v4447_v61 = vrot.slane %v4359_v7, %v9392_v14 }
 0x888   : > { %v4451_v60 = vrot.slane %v4360_v52, %v9395_v2  ;;  %v4456_v6 = vrot.slane %v4361_v59, %v9392_v14  ;;  %v4460_v38 = vrot.slane %v4362_v9, %v9395_v2  ;;  %v4465_v29 = vrot.slane %v4363_v16, %v9392_v14 }
 0x889   : > { %v4434_v5 = vsel %vm1529_vm7, %v4433_v10, %v4429_v42  ;;  %v4443_v48 = vsel %vm1529_vm7, %v4442_v62, %v4438_v58  ;;  %v4469_v41 = vrot.slane %v4364_v26, %v9395_v2  ;;  %v4474_v56 = vrot.slane %v4365_v40, %v9392_v14 }
 0x88a   : > { %v4452_v4 = vsel %vm1529_vm7, %v4451_v60, %v4447_v61  ;;  %v4461_v31 = vsel %vm1529_vm7, %v4460_v38, %v4456_v6  ;;  %v4478_v23 = vrot.slane %v4366_v20, %v9395_v2  ;;  %v4483_v50 = vrot.slane %v4367_v8, %v9392_v14 }
 0x88b   : > { %v4487_v33 = vrot.slane %v4368_v25, %v9395_v2  ;;  %v4470_v37 = vsel %vm1529_vm7, %v4469_v41, %v4465_v29  ;;  %v4561_v49 = vsel %vm1666_vm1, %v4434_v5, %v4425_v21  ;;  %v4337_v17 = vadd.f32 %v10331_v15, %v10291_v63 }
 0x88c   : > { %v4338_v22 = vadd.f32 %v10331_v15, %v10303_v35  ;;  %v4479_v7 = vsel %vm1529_vm7, %v4478_v23, %v4474_v56  ;;  %v4562_v13 = vsel %vm1668_vm5, %v4443_v48, %v4561_v49  ;;  %v4339_v59 = vadd.f32 %v10331_v15, %v10305_v36 }
 0x88d   : > { %v4488_v52 = vsel %vm1529_vm7, %v4487_v33, %v4483_v50  ;;  %v4563_v9 = vsel %vm1670_vm14, %v4452_v4, %v4562_v13  ;;  %v4340_v16 = vadd.f32 %v10331_v15, %v10309_v0  ;;  %v4341_v63 = vadd.f32 %v10331_v15, %v10311_v57 }
 0x88e   : > { %v4342_v35 = vadd.f32 %v10331_v15, %v10313_v39  ;;  %v4564_v53 = vsel %vm1672_vm15, %v4461_v31, %v4563_v9  ;;  %v4343_v26 = vadd.f32 %v10331_v15, %v10315_v11  ;;  %v4344_v40 = vadd.f32 %v10331_v15, %v10317_v24 }
 0x88f   : > { %v4345_v36 = vadd.f32 %v10331_v15, %v10319_v28  ;;  %v4565_v20 = vsel %vm1674_vm13, %v4470_v37, %v4564_v53  ;;  %v4346_v0 = vadd.f32 %v10331_v15, %v10246_v51  ;;  %v4347_v57 = vadd.f32 %v10331_v15, %v10323_v46 }
 0x890   : > { %v4348_v39 = vadd.f32 %v10331_v15, %v10321_v44  ;;  %v4566_v42 = vsel %vm1676_vm12, %v4479_v7, %v4565_v20  ;;  %v4349_v11 = vadd.f32 %v10331_v15, %v10325_v45  ;;  %v4350_v24 = vadd.f32 %v10331_v15, %v10327_v55  ;;  %v10432_v45 = vld [vmem:[%s9685_s18] sm:$0xff] }
 0x891   : > { %v4369_v28 = vmul.f32 0.57735026, %v4337_v17  ;;  %v4567_v8 = vsel %vm1678_vm11, %v4488_v52, %v4566_v42  ;;  %v4370_v25 = vmul.f32 0.57735026, %v4338_v22  ;;  %v4371_v51 = vmul.f32 0.57735026, %v4339_v59 }
 0x892   : > { %v4372_v21 = vmul.f32 0.57735026, %v4340_v16  ;;  %v4656_v46 = vadd.f32 %v9788_v19, %v4567_v8  ;;  %v4373_v10 = vmul.f32 0.57735026, %v4341_v63  ;;  %v4374_v58 = vmul.f32 0.57735026, %v4342_v35 }
 0x893   : > { %v4375_v44 = vmul.f32 0.57735026, %v4343_v26  ;;  %v4376_v62 = vmul.f32 0.57735026, %v4344_v40  ;;  %v4377_v61 = vmul.f32 0.57735026, %v4345_v36  ;;  %v4492_v5 = vrot.slane %v4369_v28, %v9392_v14 }
 0x894   : > { %v4378_v60 = vmul.f32 0.57735026, %v4346_v0  ;;  %v10435_v55 = vadd.f32 %v10432_v45, %v4656_v46  ;;  %v4379_v15 = vmul.f32 0.57735026, %v4347_v57  ;;  %v4380_v6 = vmul.f32 0.57735026, %v4348_v39 }
 0x895   : > { %v4381_v38 = vmul.f32 0.57735026, %v4349_v11  ;;  %v4382_v29 = vmul.f32 0.57735026, %v4350_v24  ;;  %v4496_v48 = vrot.slane %v4370_v25, %v9395_v2  ;;  %v4501_v19 = vrot.slane %v4371_v51, %v9392_v14  ;;  %v7758_v24 = vld [vmem:[%s8762_s16 + $0xc0] sm:$0xff]  ;;  %v10481_v28 = vld [vmem:[%s9685_s18 + $0x8] sm:$0xff] }
 0x896   : > { %v4505_v4 = vrot.slane %v4372_v21, %v9395_v2  ;;  %v4666_v41 = vsel %vm1148_vm3, %v10435_v55, -inf  ;;  %v4510_v56 = vrot.slane %v4373_v10, %v9392_v14  ;;  %v4514_v31 = vrot.slane %v4374_v58, %v9395_v2  ;;  %v7760_v25 = vld [vmem:[%s8762_s16 + $0x58] sm:$0xff]  ;;  %v7761_v46 = vld [vmem:[%s8762_s16 + $0x60] sm:$0xff] }
 0x897   : > { %v4519_v23 = vrot.slane %v4375_v44, %v9392_v14  ;;  %4667 = vmax.xlane.f32.xlu1 %v4666_v41  ;;  %v4497_v50 = vsel %vm1529_vm7, %v4496_v48, %v4492_v5  ;;  %v4523_v37 = vrot.slane %v4376_v62, %v9395_v2  ;;  %v4528_v49 = vrot.slane %v4377_v61, %v9392_v14  ;;  %v7762_v44 = vld [vmem:[%s8762_s16 + $0xc8] sm:$0xff] }
 0x898   : > { %v4506_v33 = vsel %vm1529_vm7, %v4505_v4, %v4501_v19  ;;  %v4515_v17 = vsel %vm1529_vm7, %v4514_v31, %v4510_v56  ;;  %v4532_v22 = vrot.slane %v4378_v60, %v9395_v2  ;;  %v4537_v7 = vrot.slane %v4379_v15, %v9392_v14  ;;  %v7763_v60 = vld [vmem:[%s8762_s16 + $0xd0] sm:$0xff]  ;;  %v7765_v4 = vld [vmem:[%s8762_s16 + $0xd8] sm:$0xff]  ;;  %v7766_v31 = vld [vmem:[%s8762_s16 + $0xe0] sm:$0xff] }
 0x899   : > { %v4541_v52 = vrot.slane %v4380_v6, %v9395_v2  ;;  %v4546_v13 = vrot.slane %v4381_v38, %v9392_v14  ;;  %v4550_v59 = vrot.slane %v4382_v29, %v9395_v2  ;;  %v4568_v9 = vsel %vm1666_vm1, %v4506_v33, %v4497_v50  ;;  %v7764_v6 = vld [vmem:[%s8762_s16 + $0x68] sm:$0xff]  ;;  %v7767_v33 = vld [vmem:[%s8762_s16 + $0x78] sm:$0xff] }
 0x89a   : > { %v4555_v16 = vrot.slane %v10348_v47, %v9392_v14  ;;  %v4559_v63 = vrot.slane %v10355_v12, %v9395_v2  ;;  %v4524_v35 = vsel %vm1529_vm7, %v4523_v37, %v4519_v23  ;;  %v4569_v53 = vsel %vm1668_vm5, %v4515_v17, %v4568_v9  ;;  %v7770_v9 = vld [vmem:[%s8762_s16 + $0xf8] sm:$0xff] }
 0x89b   : > { %v4533_v26 = vsel %vm1529_vm7, %v4532_v22, %v4528_v49  ;;  %v4570_v40 = vsel %vm1670_vm14, %v4524_v35, %v4569_v53  ;;  %5664 = vadd.xlane.f32.xlu1 %v10346_v43  ;;  %v4542_v36 = vsel %vm1529_vm7, %v4541_v52, %v4537_v7  ;;  %v5705_v12 = vsel %vm1148_vm3, %v10337_v18, 0.0  ;;  %v7768_v49 = vld [vmem:[%s8762_s16 + $0xf0] sm:$0xff]  ;;  %v7769_v7 = vld [vmem:[%s8762_s16 + $0xe8] sm:$0xff]  ;;  %v7204_v35 = vld [vmem:[%s12359_s7] ss:$0 sm:$0xff]  ;;  %v5638_v53 = vpop.xlane.xlu0 %5637 }
 0x89c   : > { %v4571_v47 = vsel %vm1672_vm15, %v4533_v26, %v4570_v40  ;;  %v5614_v20 = vmul.f32 %v10208_v1, %v10031_v54  ;;  %v4551_v0 = vsel %vm1529_vm7, %v4550_v59, %v4546_v13  ;;  %v4560_v39 = vsel %vm1529_vm7, %v4559_v63, %v4555_v16 }
 0x89d   : > { %v4572_v57 = vsel %vm1674_vm13, %v4542_v36, %v4571_v47  ;;  %v5628_v1 = vmul.f32 %v7758_v24, %v10031_v54  ;;  %v5615_v51 = vmul.f32 %v7760_v25, %v10031_v54  ;;  %v5616_v10 = vmul.f32 %v7761_v46, %v10031_v54 }
 0x89e   : > { %v4573_v43 = vsel %vm1676_vm12, %v4551_v0, %v4572_v57  ;;  %v5666_v18 = vsel %vm1148_vm3, %v5614_v20, 0.0  ;;  %v5629_v62 = vmul.f32 %v7762_v44, %v10031_v54  ;;  %v5630_v5 = vmul.f32 %v7763_v60, %v10031_v54 }
 0x89f   : > { %v4574_v42 = vsel %vm1678_vm11, %v4560_v39, %v4573_v43  ;;  %5706 = vadd.xlane.f32.xlu1 %v5705_v12  ;;  %v5669_v58 = vsel %vm1148_vm3, %v5615_v51, 0.0  ;;  %v5672_v61 = vsel %vm1148_vm3, %v5616_v10, 0.0  ;;  %v5617_v38 = vmul.f32 %v7764_v6, %v10031_v54  ;;  %v5641_v26 = vpop.xlane.xlu0 %5640 }
 0x8a0   : > { %v4661_v11 = vadd.f32 %v9786_v3, %v4574_v42  ;;  %v5708_v3 = vsel %vm1148_vm3, %v5628_v1, 0.0  ;;  %v5711_v15 = vsel %vm1148_vm3, %v5629_v62, 0.0  ;;  %v5714_v29 = vsel %vm1148_vm3, %v5630_v5, 0.0 }
 0x8a1   : > { %v5618_v48 = vmul.f32 %v10263_v32, %v10031_v54  ;;  %v5675_v19 = vsel %vm1148_vm3, %v5617_v38, 0.0  ;;  %v5631_v41 = vmul.f32 %v7765_v4, %v10031_v54  ;;  %v5632_v23 = vmul.f32 %v7766_v31, %v10031_v54 }
 0x8a2   : > { %v10484_v8 = vadd.f32 %v10481_v28, %v4661_v11  ;;  %v5619_v32 = vmul.f32 %v7767_v33, %v10031_v54  ;;  %v5634_v17 = vmul.f32 %v7768_v49, %v10031_v54  ;;  %v5633_v52 = vmul.f32 %v7769_v7, %v10031_v54 }
 0x8a3   : > { %5667 = vadd.xlane.f32.xlu1 %v5666_v18  ;;  %v5678_v56 = vsel %vm1148_vm3, %v5618_v48, 0.0  ;;  %v5717_v50 = vsel %vm1148_vm3, %v5631_v41, 0.0  ;;  %v5720_v37 = vsel %vm1148_vm3, %v5632_v23, 0.0  ;;  %v5635_v16 = vmul.f32 %v7770_v9, %v10031_v54  ;;  %v5647_v40 = vpop.xlane.xlu0 %5646 }
 0x8a4   : > { %v4669_v21 = vsel %vm1148_vm3, %v10484_v8, -inf  ;;  %v5681_v22 = vsel %vm1148_vm3, %v5619_v32, 0.0  ;;  %v5726_v13 = vsel %vm1148_vm3, %v5634_v17, 0.0  ;;  %v5723_v59 = vsel %vm1148_vm3, %v5633_v52, 0.0 }
 0x8a5   : > { %4670 = vmax.xlane.f32.xlu0 %v4669_v21  ;;  %v5729_v63 = vsel %vm1148_vm3, %v5635_v16, 0.0 }
 0x8a7   : > { %5709 = vadd.xlane.f32.xlu1 %v5708_v3  ;;  %v5650_v36 = vpop.xlane.xlu0 %5649 }
 0x8a9   : > { %5670 = vadd.xlane.f32.xlu0 %v5669_v58 }
 0x8ab   : > { %5673 = vadd.xlane.f32.xlu1 %v5672_v61  ;;  %v5653_v47 = vpop.xlane.xlu0 %5652 }
 0x8ad   : > { %5712 = vadd.xlane.f32.xlu0 %v5711_v15  ;;  %v5644_v18 = vpop.xlane.xlu1 %5643 }
 0x8af   : > { %5715 = vadd.xlane.f32.xlu1 %v5714_v29  ;;  %v10528_v12 = vpop.xlane.xlu0 %5685 }
 0x8b1   : > { %5676 = vadd.xlane.f32.xlu0 %v5675_v19  ;;  %v10544_v1 = vpop.xlane.xlu1 %5697 }
 0x8b3   : > { %5679 = vadd.xlane.f32.xlu1 %v5678_v56  ;;  %v10530_v20 = vpop.xlane.xlu0 %5688 }
 0x8b5   : > { %5718 = vadd.xlane.f32.xlu0 %v5717_v50 }
 0x8b7   : > { %5721 = vadd.xlane.f32.xlu1 %v5720_v37  ;;  %v10532_v54 = vpop.xlane.xlu0 %5691 }
 0x8b9   : > { %5682 = vadd.xlane.f32.xlu0 %v5681_v22 }
 0x8bb   : > { %5727 = vadd.xlane.f32.xlu1 %v5726_v13  ;;  %v10538_v39 = vpop.xlane.xlu0 %5694 }
 0x8bd   : > { %5724 = vadd.xlane.f32.xlu0 %v5723_v59 }
 0x8bf   : > { %v5656_v11 = vpop.xlane.xlu0 %5655 }
 0x8c1   : > { %5730 = vadd.xlane.f32.xlu0 %v5729_v63 }
 0x8c3   : > { %v5659_v24 = vpop.xlane.xlu0 %5658 }
 0x8c7   : > { %v10546_v25 = vpop.xlane.xlu0 %5700 }
 0x8cb   : > { %v5662_v3 = vpop.xlane.xlu0 %5661 }
 0x8cc   : > { %5739 = vperm.xlu1 %7650, %v7204_v35  }
 0x8cf   : > { %v10549_v58 = vpop.xlane.xlu0 %5703 }
 0x909   : > { %v10534_v0 = vpop.f32.mrb[10].mxu1 }
 0x90a   : > { %12687 = vst [vmem:[#allocation60_spill] sm:$0xff] %v10534_v0  ;;  %v10536_v57 = vpop.f32.mrb[11].mxu1 }
 0x90b   : > { %12688 = vst [vmem:[#allocation63_spill] sm:$0xff] %v10536_v57 }
 0x911   : > { %v10540_v43 = vpop.f32.mrb[12].mxu1 }
 0x912   : > { %v10542_v42 = vpop.f32.mrb[13].mxu1 }
 0x924   : > { %v4668_v51 = vpop.xlane.xlu1 %4667 }
 0x925   : > { %v4672_v21 = vsub.f32 %v10435_v55, %v4668_v51 }
 0x927   : > { %v4674_v46 = vmul.f32 1.442695, %v4672_v21 }
 0x928   : > { %v5665_v10 = vpop.xlane.xlu1 %5664 }
 0x929   : > { %7668 = vpow2.f32 %v4674_v46 }
 0x92c   : > { %v10551_v44 = vpop.xlane.xlu1 %5706 }
 0x930   : > { %v5668_v62 = vpop.xlane.xlu1 %5667 }
 0x932   : > { %v4671_v61 = vpop.xlane.xlu0 %4670 }
 0x933   : > { %v10553_v60 = vpop.eup %7668  ;;  %v4673_v5 = vsub.f32 %v10484_v8, %v4671_v61 }
 0x934   : > { %v10556_v15 = vpop.xlane.xlu1 %5709  ;;  %v4678_v6 = vsel %vm1148_vm3, %v10553_v60, 0.0 }
 0x935   : > { %v4676_v55 = vmul.f32 1.442695, %v4673_v5  ;;  %4679 = vadd.xlane.f32.xlu0 %v4678_v6 }
 0x936   : > { %v5671_v38 = vpop.xlane.xlu0 %5670 }
 0x937   : > { %7670 = vpow2.f32 %v4676_v55 }
 0x938   : > { %v5674_v29 = vpop.xlane.xlu1 %5673 }
 0x93a   : > { %v10560_v48 = vpop.xlane.xlu0 %5712 }
 0x93c   : > { %v10562_v19 = vpop.xlane.xlu1 %5715 }
 0x93e   : > { %v5677_v4 = vpop.xlane.xlu0 %5676 }
 0x940   : > { %v5680_v41 = vpop.xlane.xlu1 %5679 }
 0x941   : > { %v10564_v56 = vpop.eup %7670 }
 0x942   : > { %v4681_v8 = vsel %vm1148_vm3, %v10564_v56, 0.0  ;;  %v10568_v31 = vpop.xlane.xlu0 %5718 }
 0x943   : > { %4682 = vadd.xlane.f32.xlu1 %v4681_v8 }
 0x944   : > { %v10570_v23 = vpop.xlane.xlu1 %5721 }
 0x946   : > { %v5683_v50 = vpop.xlane.xlu0 %5682 }
 0x948   : > { %v5728_v33 = vpop.xlane.xlu1 %5727 }
 0x94a   : > { %v10572_v32 = vpop.xlane.xlu0 %5724 }
 0x94c   : > { %v10574_v37 = vpop.permute.xlu1 %5739 }
 0x94d   : > { %v5772_v49 = vadd.f32 %v10574_v37, %v5728_v33  ;;  %v5742_v17 = vadd.f32 %v10574_v37, %v5638_v53  ;;  %v5743_v7 = vadd.f32 %v10574_v37, %v5641_v26  ;;  %v5744_v52 = vadd.f32 %v10574_v37, %v5644_v18 }
 0x94e   : > { %v5731_v22 = vpop.xlane.xlu0 %5730  ;;  %v5745_v13 = vadd.f32 %v10574_v37, %v5647_v40  ;;  %v5746_v59 = vadd.f32 %v10574_v37, %v5650_v36  ;;  %v5747_v63 = vadd.f32 %v10574_v37, %v5653_v47  ;;  %v5748_v35 = vadd.f32 %v10574_v37, %v5656_v11 }
 0x94f   : > { %v10582_v9 = vmul.f32 0.57735026, %v5772_v49  ;;  %v5773_v16 = vadd.f32 %v10574_v37, %v5731_v22  ;;  %v5749_v51 = vadd.f32 %v10574_v37, %v5659_v24  ;;  %v5750_v53 = vadd.f32 %v10574_v37, %v5662_v3 }
 0x950   : > { %v5751_v26 = vadd.f32 %v10574_v37, %v5665_v10  ;;  %v5752_v18 = vadd.f32 %v10574_v37, %v5668_v62  ;;  %v5753_v40 = vadd.f32 %v10574_v37, %v5671_v38  ;;  %v5754_v36 = vadd.f32 %v10574_v37, %v5674_v29 }
 0x951   : > { %v10591_v21 = vmul.f32 0.57735026, %v5773_v16  ;;  %v5755_v46 = vadd.f32 %v10574_v37, %v5677_v4  ;;  %v5756_v47 = vadd.f32 %v10574_v37, %v5680_v41  ;;  %v5774_v61 = vmul.f32 0.57735026, %v5742_v17 }
 0x952   : > { %v5775_v11 = vmul.f32 0.57735026, %v5743_v7  ;;  %v5776_v5 = vmul.f32 0.57735026, %v5744_v52  ;;  %v5757_v24 = vadd.f32 %v10574_v37, %v5683_v50  ;;  %v5777_v3 = vmul.f32 0.57735026, %v5745_v13 }
 0x953   : > { %v5778_v6 = vmul.f32 0.57735026, %v5746_v59  ;;  %v5779_v10 = vmul.f32 0.57735026, %v5747_v63  ;;  %v5780_v62 = vmul.f32 0.57735026, %v5748_v35  ;;  %v5841_v29 = vrot.slane %v5774_v61, %v9392_v14 }
 0x954   : > { %3261 = vrot.lane.b32.xlu1 %v8929_v27, %s8076_s5  ;;  %v5781_v55 = vmul.f32 0.57735026, %v5749_v51  ;;  %v5782_v38 = vmul.f32 0.57735026, %v5750_v53  ;;  %v5783_v8 = vmul.f32 0.57735026, %v5751_v26  ;;  %v5845_v22 = vrot.slane %v5775_v11, %v9395_v2 }
 0x955   : > { %v5784_v4 = vmul.f32 0.57735026, %v5752_v18  ;;  %v5785_v33 = vmul.f32 0.57735026, %v5753_v40  ;;  %v5786_v41 = vmul.f32 0.57735026, %v5754_v36  ;;  %v5850_v7 = vrot.slane %v5776_v5, %v9392_v14 }
 0x956   : > { %v5787_v49 = vmul.f32 0.57735026, %v5755_v46  ;;  %v5788_v17 = vmul.f32 0.57735026, %v5756_v47  ;;  %v5789_v50 = vmul.f32 0.57735026, %v5757_v24  ;;  %v5854_v52 = vrot.slane %v5777_v3, %v9395_v2 }
 0x957   : > { %v5859_v13 = vrot.slane %v5778_v6, %v9392_v14  ;;  %v12689_v59 = vld [vmem:[#allocation72_spill] sm:$0xff]  ;;  %v5846_v16 = vsel %vm1529_vm7, %v5845_v22, %v5841_v29  ;;  %v5863_v63 = vrot.slane %v5779_v10, %v9395_v2  ;;  %v5868_v35 = vrot.slane %v5780_v62, %v9392_v14  ;;  %v12690_v6 = vld [vmem:[#allocation42_spill] sm:$0xff] }
 0x958   : > { %3273 = vrot.lane.b32.xlu1 %v12689_v59, %s8058_s17  ;;  %v5872_v51 = vrot.slane %v5781_v55, %v9395_v2  ;;  %v5855_v53 = vsel %vm1529_vm7, %v5854_v52, %v5850_v7  ;;  %v5877_v26 = vrot.slane %v5782_v38, %v9392_v14  ;;  %v5881_v18 = vrot.slane %v5783_v8, %v9395_v2  ;;  %v12691_v7 = vld [vmem:[#allocation65_spill] sm:$0xff] }
 0x959   : > { %v5886_v40 = vrot.slane %v5784_v4, %v9392_v14  ;;  %v5864_v36 = vsel %vm1529_vm7, %v5863_v63, %v5859_v13  ;;  %v5890_v47 = vrot.slane %v5785_v33, %v9395_v2  ;;  %v5895_v61 = vrot.slane %v5786_v41, %v9392_v14 }
 0x95a   : > { %v5873_v46 = vsel %vm1529_vm7, %v5872_v51, %v5868_v35  ;;  %v5882_v11 = vsel %vm1529_vm7, %v5881_v18, %v5877_v26  ;;  %v5899_v5 = vrot.slane %v5787_v49, %v9395_v2  ;;  %v5904_v24 = vrot.slane %v5788_v17, %v9392_v14  ;;  %v12692_v51 = vld [vmem:[#allocation91_spill] sm:$0xff] }
 0x95b   : > { %v5908_v3 = vrot.slane %v5789_v50, %v9395_v2  ;;  %v5891_v10 = vsel %vm1529_vm7, %v5890_v47, %v5886_v40  ;;  %v5982_v62 = vsel %vm1666_vm1, %v5855_v53, %v5846_v16  ;;  %v5758_v55 = vadd.f32 %v10574_v37, %v10528_v12 }
 0x95c   : > { %4692 = vrot.lane.b32.xlu1 %v12690_v6, %s8055_s26  ;;  %v5759_v38 = vadd.f32 %v10574_v37, %v10530_v20  ;;  %v5900_v29 = vsel %vm1529_vm7, %v5899_v5, %v5895_v61  ;;  %v5983_v4 = vsel %vm1668_vm5, %v5864_v36, %v5982_v62  ;;  %v5760_v33 = vadd.f32 %v10574_v37, %v10532_v54 }
 0x95d   : > { %v5909_v8 = vsel %vm1529_vm7, %v5908_v3, %v5904_v24  ;;  %v5984_v41 = vsel %vm1670_vm14, %v5873_v46, %v5983_v4  ;;  %v5761_v49 = vadd.f32 %v10574_v37, %v10538_v39  ;;  %v5762_v12 = vadd.f32 %v10574_v37, %v10544_v1 }
 0x95e   : > { %v5763_v20 = vadd.f32 %v10574_v37, %v10546_v25  ;;  %v5985_v17 = vsel %vm1672_vm15, %v5882_v11, %v5984_v41  ;;  %v5764_v22 = vadd.f32 %v10574_v37, %v10549_v58  ;;  %v5765_v50 = vadd.f32 %v10574_v37, %v10551_v44 }
 0x95f   : > { %v5766_v54 = vadd.f32 %v10574_v37, %v10556_v15  ;;  %v5986_v39 = vsel %vm1674_vm13, %v5891_v10, %v5985_v17  ;;  %v5767_v1 = vadd.f32 %v10574_v37, %v10560_v48  ;;  %v5768_v25 = vadd.f32 %v10574_v37, %v10562_v19 }
 0x960   : > { %4698 = vrot.lane.b32.xlu1 %v12691_v7, %s8068_s13  ;;  %v5769_v58 = vadd.f32 %v10574_v37, %v10568_v31  ;;  %v5987_v52 = vsel %vm1676_vm12, %v5900_v29, %v5986_v39  ;;  %v5770_v44 = vadd.f32 %v10574_v37, %v10570_v23  ;;  %v5771_v15 = vadd.f32 %v10574_v37, %v10572_v32  ;;  %v12693_v31 = vld [vmem:[#allocation71_spill] sm:$0xff] }
 0x961   : > { %v5790_v13 = vmul.f32 0.57735026, %v5758_v55  ;;  %v5988_v16 = vsel %vm1678_vm11, %v5909_v8, %v5987_v52  ;;  %v5791_v63 = vmul.f32 0.57735026, %v5759_v38  ;;  %v5792_v35 = vmul.f32 0.57735026, %v5760_v33 }
 0x962   : > { %v5793_v48 = vmul.f32 0.57735026, %v5761_v49  ;;  %v6077_v53 = vadd.f32 %v12692_v51, %v5988_v16  ;;  %v5794_v19 = vmul.f32 0.57735026, %v5762_v12  ;;  %v5795_v26 = vmul.f32 0.57735026, %v5763_v20 }
 0x963   : > { %v5796_v18 = vmul.f32 0.57735026, %v5764_v22  ;;  %v5797_v40 = vmul.f32 0.57735026, %v5765_v50  ;;  %v5798_v36 = vmul.f32 0.57735026, %v5766_v54  ;;  %v5913_v46 = vrot.slane %v5790_v13, %v9392_v14 }
 0x964   : > { %4700 = vrot.lane.b32.xlu1 %v12693_v31, %s8068_s13  ;;  %v5799_v23 = vmul.f32 0.57735026, %v5767_v1  ;;  %v6085_v32 = vadd.f32 %v10432_v45, %v6077_v53  ;;  %v5800_v37 = vmul.f32 0.57735026, %v5768_v25  ;;  %v5801_v47 = vmul.f32 0.57735026, %v5769_v58 }
 0x965   : > { %v5802_v61 = vmul.f32 0.57735026, %v5770_v44  ;;  %v5803_v11 = vmul.f32 0.57735026, %v5771_v15  ;;  %v5917_v5 = vrot.slane %v5791_v63, %v9395_v2  ;;  %v5922_v24 = vrot.slane %v5792_v35, %v9392_v14  ;;  %v12694_v35 = vld [vmem:[#allocation90_spill] sm:$0xff]  ;;  %s12867_s13 = smov 88  }
 0x966   : > { %v5926_v3 = vrot.slane %v5793_v48, %v9395_v2  ;;  %v6087_v10 = vsel %vm1148_vm3, %v6085_v32, -inf  ;;  %v5931_v62 = vrot.slane %v5794_v19, %v9392_v14  ;;  %v5935_v55 = vrot.slane %v5795_v26, %v9395_v2  ;;  %v12695_v19 = vld [vmem:[#allocation36_spill] sm:$0xff]  ;;  %v12696_v26 = vld [vmem:[#allocation39_spill] sm:$0xff] }
 0x967   : > { %v5940_v38 = vrot.slane %v5796_v18, %v9392_v14  ;;  %6088 = vmax.xlane.f32.xlu0 %v6087_v10  ;;  %v5918_v29 = vsel %vm1529_vm7, %v5917_v5, %v5913_v46  ;;  %v5944_v4 = vrot.slane %v5797_v40, %v9395_v2  ;;  %v5949_v33 = vrot.slane %v5798_v36, %v9392_v14  ;;  %v12697_v18 = vld [vmem:[#allocation70_spill] sm:$0xff]  ;;  %v12699_v36 = vld [vmem:[#allocation37_spill] sm:$0xff] }
 0x968   : > { %v5927_v8 = vsel %vm1529_vm7, %v5926_v3, %v5922_v24  ;;  %v5936_v41 = vsel %vm1529_vm7, %v5935_v55, %v5931_v62  ;;  %v5953_v49 = vrot.slane %v5799_v23, %v9395_v2  ;;  %v5958_v12 = vrot.slane %v5800_v37, %v9392_v14  ;;  %v12698_v40 = vld [vmem:[#allocation66_spill] sm:$0xff] }
 0x969   : > { %v5962_v20 = vrot.slane %v5801_v47, %v9395_v2  ;;  %v5967_v17 = vrot.slane %v5802_v61, %v9392_v14  ;;  %v5971_v22 = vrot.slane %v5803_v11, %v9395_v2  ;;  %v5989_v50 = vsel %vm1666_vm1, %v5927_v8, %v5918_v29 }
 0x96a   : > { %v5976_v54 = vrot.slane %v10582_v9, %v9392_v14  ;;  %v5980_v39 = vrot.slane %v10591_v21, %v9395_v2  ;;  %v5945_v1 = vsel %vm1529_vm7, %v5944_v4, %v5940_v38  ;;  %v5990_v25 = vsel %vm1668_vm5, %v5936_v41, %v5989_v50 }
 0x96b   : > { %v5954_v58 = vsel %vm1529_vm7, %v5953_v49, %v5949_v33  ;;  %v5991_v52 = vsel %vm1670_vm14, %v5945_v1, %v5990_v25  ;;  %v5963_v44 = vsel %vm1529_vm7, %v5962_v20, %v5958_v12  ;;  %v5972_v13 = vsel %vm1529_vm7, %v5971_v22, %v5967_v17 }
 0x96c   : > { %v5992_v15 = vsel %vm1672_vm15, %v5954_v58, %v5991_v52  ;;  %v5981_v9 = vsel %vm1529_vm7, %v5980_v39, %v5976_v54  ;;  %v12707_v39 = vld [vmem:[#allocation30_spill] sm:$0xff] }
 0x96d   : > { %v5993_v16 = vsel %vm1674_vm13, %v5963_v44, %v5992_v15  ;;  %v12710_v15 = vld [vmem:[#allocation32_spill] sm:$0xff] }
 0x96e   : > { %v5994_v21 = vsel %vm1676_vm12, %v5972_v13, %v5993_v16  ;;  %v12711_v16 = vld [vmem:[#allocation89_spill] sm:$0xff] }
 0x96f   : > { %v5995_v63 = vsel %vm1678_vm11, %v5981_v9, %v5994_v21  ;;  %v12712_v21 = vld [vmem:[#allocation38_spill] sm:$0xff] }
 0x970   : > { %v6082_v48 = vadd.f32 %v12694_v35, %v5995_v63  ;;  %v12713_v35 = vld [vmem:[#allocation68_spill] sm:$0xff] }
 0x972   : > { %v6086_v51 = vadd.f32 %v10481_v28, %v6082_v48  ;;  %v12714_v48 = vld [vmem:[#allocation92_spill] sm:$0xff] }
 0x974   : > { %v6090_v53 = vsel %vm1148_vm3, %v6086_v51, -inf }
 0x975   : > { %6091 = vmax.xlane.f32.xlu0 %v6090_v53 }
 0x98b   : > { %3241 = vrot.lane.b32.xlu0 %v12695_v19, %s8064_s22  ;;  %v12716_v19 = vld [vmem:[#allocation75_spill] sm:$0xff] }
 0x98f   : > { %3243 = vrot.lane.b32.xlu0 %v12696_v26, %s8064_s22  ;;  %v2892_v26 = vadd.f32 %v12714_v48, %v12716_v19 }
 0x993   : > { %3251 = vrot.lane.b32.xlu0 %v12691_v7, %s8064_s22 }
 0x997   : > { %3253 = vrot.lane.b32.xlu0 %v12693_v31, %s8064_s22 }
 0x99b   : > { %3263 = vrot.lane.b32.xlu0 %v12697_v18, %s8076_s5 }
 0x99f   : > { %3271 = vrot.lane.b32.xlu0 %v12698_v40, %s8058_s17 }
 0x9a3   : > { %4690 = vrot.lane.b32.xlu0 %v12699_v36, %s8055_s26 }
 0x9c2   : > { %v4680_v23 = vpop.xlane.xlu0 %4679 }
 0x9d0   : > { %v4683_v61 = vpop.xlane.xlu1 %4682 }
 0x9d4   : > { %v3262_v55 = vpop.permute.xlu1 %3261 }
 0x9f4   : > { %v6089_v46 = vpop.xlane.xlu0 %6088 }
 0x9f5   : > { %v6093_v37 = vsub.f32 %v6085_v32, %v6089_v46  ;;  %v3274_v32 = vpop.permute.xlu1 %3273 }
 0x9f7   : > { %v6095_v47 = vmul.f32 1.442695, %v6093_v37 }
 0x9f9   : > { %7672 = vpow2.f32 %v6095_v47  ;;  %v4693_v41 = vpop.permute.xlu1 %4692  ;;  %v12718_v47 = vld [vmem:[#allocation79_spill] sm:$0xff] }
 0x9fd   : > { %v4699_v20 = vpop.permute.xlu1 %4698 }
 0xa01   : > { %v4701_v54 = vpop.permute.xlu1 %4700 }
 0xa02   : > { %v6092_v11 = vpop.xlane.xlu0 %6091 }
 0xa03   : > { %v10720_v5 = vpop.eup %7672  ;;  %v6094_v24 = vsub.f32 %v6086_v51, %v6092_v11  ;;  %v12715_v51 = vld [vmem:[#allocation103_spill] sm:$0xff]  ;;  %v12719_v11 = vld [vmem:[#allocation106_spill] sm:$0xff] }
 0xa04   : > { %v6099_v3 = vsel %vm1148_vm3, %v10720_v5, 0.0  ;;  %v2891_v53 = vadd.f32 %v12714_v48, %v12715_v51 }
 0xa05   : > { %v6097_v10 = vmul.f32 1.442695, %v6094_v24  ;;  %6100 = vadd.xlane.f32.xlu0 %v6099_v3  ;;  %v2895_v24 = vadd.f32 %v12714_v48, %v12719_v11  ;;  %v12720_v3 = vld [vmem:[#allocation81_spill] sm:$0xff] }
 0xa06   : > { %v3242_v62 = vpop.permute.xlu0 %3241 }
 0xa07   : > { %7674 = vpow2.f32 %v6097_v10  ;;  %3247 = vst.msk [vmem:[#allocation4] sm:$0xff] %vm1148_vm3, %v3242_v62  ;;  %v2896_v10 = vadd.f32 %v12714_v48, %v12720_v3  ;;  %v12721_v62 = vld [vmem:[#allocation108_spill] sm:$0xff] }
 0xa08   : > { %7676 = vrcp.f32 %v4683_v61  ;;  %v2894_v61 = vadd.f32 %v12714_v48, %v12718_v47 }
 0xa09   : > { %7678 = vrcp.f32 %v4680_v23  ;;  %v12717_v23 = vld [vmem:[#allocation104_spill] sm:$0xff] }
 0xa0a   : > { %v3244_v38 = vpop.permute.xlu0 %3243  ;;  %v2893_v46 = vadd.f32 %v12714_v48, %v12717_v23 }
 0xa0b   : > { %3248 = vst.msk [vmem:[#allocation4 + $0x8] sm:$0xff] %vm1148_vm3, %v3244_v38  ;;  %v12722_v38 = vld [vmem:[#allocation83_spill] sm:$0xff] }
 0xa0e   : > { %v3252_v29 = vpop.permute.xlu0 %3251 }
 0xa0f   : > { %3257 = vst.msk [vmem:[#allocation4] sm:$0xff] %vm12700_vm2, %v3252_v29  ;;  %v12723_v29 = vld [vmem:[#allocation110_spill] sm:$0xff] }
 0xa10   : > { %3267 = vst.msk [vmem:[#allocation4] sm:$0xff] %vm12701_vm4, %v3262_v55  ;;  %vm12708_vm4 = vmmov %vm12700_vm2  ;;  %v2897_v55 = vadd.f32 %v12714_v48, %v12721_v62 }
 0xa11   : > { %v10728_v8 = vpop.eup %7674 }
 0xa12   : > { %v3254_v4 = vpop.permute.xlu0 %3253  ;;  %v6102_v33 = vsel %vm1148_vm3, %v10728_v8, 0.0  ;;  %v7677_v12 = vpop.eup %7676 }
 0xa13   : > { %3258 = vst.msk [vmem:[#allocation4 + $0x8] sm:$0xff] %vm12702_vm8, %v3254_v4  ;;  %6103 = vadd.xlane.f32.xlu1 %v6102_v33  ;;  %v10739_v22 = vmul.f32 %v7677_v12, %v10564_v56  ;;  %v7679_v25 = vpop.eup %7678  ;;  %v2899_v4 = vadd.f32 %v12714_v48, %v12723_v29  ;;  %v2925_v12 = vmul.f32 0.57735026, %v2893_v46  ;;  %vm12751_vm8 = vmmov %vm12703_vm9 }
 0xa14   : > { %v10750_v56 = vmul.f32 %v7679_v25, %v10553_v60  ;;  %v2890_v60 = vadd.f32 %v12714_v48, %v12713_v35 }
 0xa15   : > { %12706 = vst [vmem:[#allocation61_spill] sm:$0xff] %v10739_v22  ;;  %v4896_v1 = vrot.slane %v10739_v22, %v12707_v39  ;;  %v4907_v13 = vrot.slane %v10739_v22, %v12710_v15  ;;  %v4918_v63 = vrot.slane %v10739_v22, %v12712_v21  ;;  %v3058_v11 = vrot.slane %v2925_v12, %v9395_v2 }
 0xa16   : > { %v3264_v49 = vpop.permute.xlu0 %3263  ;;  %12709 = vst [vmem:[#allocation76_spill] sm:$0xff] %v10750_v56  ;;  %v4808_v9 = vrot.slane %v10750_v56, %v12707_v39  ;;  %v4819_v37 = vrot.slane %v10750_v56, %v12710_v15  ;;  %v2922_v33 = vmul.f32 0.57735026, %v2890_v60  ;;  %v12728_v60 = vld [vmem:[#allocation101_spill] sm:$0xff] }
 0xa17   : > { %3268 = vst.msk [vmem:[#allocation4 + $0x8] sm:$0xff] %vm12703_vm9, %v3264_v49  ;;  %v2924_v49 = vmul.f32 0.57735026, %v2892_v26  ;;  %v2877_v51 = vadd.f32 %v12714_v48, %v12728_v60  ;;  %v10802_v26 = vmul.f32 0.57735026, %v2897_v55  ;;  %v12732_v55 = vld [vmem:[#allocation102_spill] sm:$0xff]  ;;  %vm12752_vm9 = vmmov %vm12751_vm8 }
 0xa18   : > { %3278 = vst.msk [vmem:[#allocation4 + $0x8] sm:$0xff] %vm12704_vm10, %v3274_v32  ;;  %v2898_v32 = vadd.f32 %v12714_v48, %v12722_v38  ;;  %v3045_v46 = vrot.slane %v2922_v33, %v9392_v14  ;;  %v2879_v38 = vadd.f32 %v12714_v48, %v12732_v55  ;;  %v12733_v33 = vld [vmem:[#allocation112_spill] sm:$0xff]  ;;  %vm12753_vm10 = vmmov %vm12705_vm6 }
 0xa1a   : > { %v3272_v17 = vpop.permute.xlu0 %3271  ;;  %v10804_v23 = vmul.f32 0.57735026, %v2898_v32 }
 0xa1b   : > { %3277 = vst.msk [vmem:[#allocation4] sm:$0xff] %vm12705_vm6, %v3272_v17  ;;  %4706 = vrot.lane.b32.xlu0 %v8929_v27, %s8080_s24  ;;  %v2926_v17 = vmul.f32 0.57735026, %v2894_v61  ;;  %v3054_v61 = vrot.slane %v2924_v49, %v9392_v14  ;;  %v12734_v49 = vld [vmem:[#allocation87_spill] sm:$0xff]  ;;  %v11164_v27 = vld [vmem:[%s8762_s16 + $0x28] sm:$0xff] }
 0xa1c   : > { %v2902_v12 = vadd.f32 %v12714_v48, %v12734_v49  ;;  %12771 = vst [vmem:[#allocation32_spill] sm:$0xff] %v11164_v27 }
 0xa1e   : > { %v4691_v58 = vpop.permute.xlu0 %4690 }
 0xa1f   : > { %v3280_v50 = vld [vmem:[#allocation4 + $0x8] sm:$0xff]  ;;  %4708 = vrot.lane.b32.xlu0 %v12697_v18, %s8080_s24  ;;  %v12772_v18 = vld [vmem:[#allocation28_spill] sm:$0xff]  ;;  %s7225_s24 = sshll.u32 %s8181_s29, 8  ;;  %s8088_s29 = smov [#allocation15]  }
 0xa20   : > { %4697 = vst.msk [vmem:[#allocation4 + $0x8] sm:$0xff] %vm1148_vm3, %v4693_v41  ;;  %v2923_v41 = vmul.f32 0.57735026, %v2891_v53  ;;  %v12729_v53 = vld [vmem:[#allocation85_spill] sm:$0xff] }
 0xa21   : > { %4705 = vst.msk [vmem:[#allocation4 + $0x8] sm:$0xff] %vm12700_vm2, %v4701_v54  ;;  %v2900_v19 = vadd.f32 %v12714_v48, %v12729_v53  ;;  %v2931_v53 = vmul.f32 0.57735026, %v2899_v4 }
 0xa22   : > { %v3279_v52 = vld [vmem:[#allocation4] sm:$0xff]  ;;  %v3049_v47 = vrot.slane %v2923_v41, %v9395_v2  ;;  %v2909_v41 = vmul.f32 0.57735026, %v2877_v51 }
 0xa23   : > { %v7411_v44 = vpack.c.bf16 %v3280_v50, %v3279_v52  ;;  %4696 = vst.msk [vmem:[#allocation4] sm:$0xff] %vm1148_vm3, %v4691_v58  ;;  %4898 = vbcast.lane.b32.xlu0 %v4896_v1, 256  ;;  %v12724_v50 = vld [vmem:[#allocation100_spill] sm:$0xff]  ;;  %v12726_v58 = vld [vmem:[#allocation95_spill] sm:$0xff]  ;;  %v10823_v0 = vmul.f32 0.57735026, %v2900_v19 }
 0xa24   : > { %4902 = vbcast.lane.b32.xlu1 %v4896_v1, 264  ;;  %4704 = vst.msk [vmem:[#allocation4] sm:$0xff] %vm12708_vm4, %v4699_v20  ;;  %v10783_v20 = vrot.slane %v10750_v56, %v12712_v21  ;;  %v2874_v54 = vadd.f32 %v12714_v48, %v12724_v50  ;;  %v12725_v1 = vld [vmem:[#allocation73_spill] sm:$0xff]  ;;  %v10791_v52 = vrot.slane %v10739_v22, %v12726_v58  ;;  %vm12813_vm4 = vmmov %vm12751_vm8 }
 0xa25   : > { %7412 = vmatprep.subr.bf16.mxu1 %v7411_v44  ;;  %v2875_v25 = vadd.f32 %v12714_v48, %v12725_v1  ;;  %v2901_v50 = vadd.f32 %v12714_v48, %v12733_v33  ;;  %v12736_v51 = vld [vmem:[#allocation69_spill] sm:$0xff] }
 0xa26   : > { %7414 = vmatpush3.bf16.msra.mxu1 %v7411_v44  ;;  %v2927_v44 = vmul.f32 0.57735026, %v2895_v24  ;;  %v12730_v24 = vld [vmem:[#allocation96_spill] sm:$0xff]  ;;  %v2906_v32 = vmul.f32 0.57735026, %v2874_v54  ;;  %v3059_v54 = vsel %vm1529_vm7, %v3058_v11, %v3054_v61  ;;  %v2880_v55 = vadd.f32 %v12714_v48, %v12736_v51  ;;  %v12737_v33 = vld [vmem:[#allocation105_spill] sm:$0xff] }
 0xa27   : > { %4909 = vbcast.lane.b32.xlu0 %v4907_v13, 256  ;;  %7416 = vmatprep.subr.bf16.mxu1 %v12711_v16  ;;  %v4852_v3 = vrot.slane %v10750_v56, %v12730_v24  ;;  %v2907_v29 = vmul.f32 0.57735026, %v2875_v25  ;;  %v3063_v25 = vrot.slane %v2926_v17, %v9392_v14  ;;  %v2881_v49 = vadd.f32 %v12714_v48, %v12737_v33  ;;  %v12738_v17 = vld [vmem:[#allocation88_spill] sm:$0xff] }
 0xa28   : > { %4913 = vbcast.lane.b32.xlu1 %v4907_v13, 264  ;;  %v10793_v13 = vmul.f32 0.57735026, %v2896_v10  ;;  %v12731_v10 = vld [vmem:[#allocation74_spill] sm:$0xff]  ;;  %v2973_v4 = vrot.slane %v2906_v32, %v9392_v14  ;;  %v2933_v11 = vmul.f32 0.57735026, %v2901_v50  ;;  %v3076_v32 = vrot.slane %v10802_v26, %v9395_v2 }
 0xa29   : > { %v2878_v62 = vadd.f32 %v12714_v48, %v12731_v10  ;;  %v3050_v10 = vsel %vm1529_vm7, %v3049_v47, %v3045_v46  ;;  %v2986_v46 = vrot.slane %v2909_v41, %v9395_v2  ;;  %v12739_v47 = vld [vmem:[#allocation29_spill] sm:$0xff]  ;;  %v10841_v51 = vmul.f32 0.57735026, %v2902_v12  ;;  %v12741_v41 = vld [vmem:[#allocation107_spill] sm:$0xff] }
 0xa2a   : > { %v2905_v61 = vadd.f32 %v12714_v48, %v12739_v47  ;;  %v2883_v33 = vadd.f32 %v12714_v48, %v12741_v41  ;;  %v2912_v12 = vmul.f32 0.57735026, %v2880_v55  ;;  %v3081_v47 = vrot.slane %v10804_v23, %v9392_v14  ;;  %v12743_v55 = vld [vmem:[#allocation109_spill] sm:$0xff]  ;;  %v12745_v41 = vld [vmem:[#allocation111_spill] sm:$0xff] }
 0xa2b   : > { %4810 = vbcast.lane.b32.xlu0 %v4808_v9, 256  ;;  %v2910_v57 = vmul.f32 0.57735026, %v2878_v62  ;;  %v4841_v23 = vrot.slane %v10750_v56, %v12726_v58 }
 0xa2c   : > { %4920 = vbcast.lane.b32.xlu1 %v4918_v63, 256 }
 0xa2d   : > { %v2991_v50 = vrot.slane %v2910_v57, %v9392_v14  ;;  %v12742_v57 = vld [vmem:[#allocation82_spill] sm:$0xff] }
 0xa2f   : > { %4821 = vbcast.lane.b32.xlu0 %v4819_v37, 256 }
 0xa30   : > { %4924 = vbcast.lane.b32.xlu1 %v4918_v63, 264  ;;  %v12727_v63 = vld [vmem:[#allocation67_spill] sm:$0xff] }
 0xa31   : > { %v2876_v35 = vadd.f32 %v12714_v48, %v12727_v63  ;;  %v12735_v63 = vld [vmem:[#allocation114_spill] sm:$0xff] }
 0xa32   : > { %v2903_v60 = vadd.f32 %v12714_v48, %v12735_v63  ;;  %v2911_v63 = vmul.f32 0.57735026, %v2879_v38  ;;  %v3072_v38 = vrot.slane %v10793_v13, %v9392_v14 }
 0xa33   : > { %4832 = vbcast.lane.b32.xlu0 %v10783_v20, 256  ;;  %v2908_v1 = vmul.f32 0.57735026, %v2876_v35  ;;  %v3067_v35 = vrot.slane %v2927_v44, %v9395_v2  ;;  %v2904_v44 = vadd.f32 %v12714_v48, %v12738_v17 }
 0xa34   : > { %4931 = vbcast.lane.b32.xlu1 %v10791_v52, 256  ;;  %v2935_v17 = vmul.f32 0.57735026, %v2903_v60 }
 0xa35   : > { %v2982_v19 = vrot.slane %v2908_v1, %v9392_v14  ;;  %v3068_v62 = vsel %vm1529_vm7, %v3067_v35, %v3063_v25  ;;  %v3121_v1 = vsel %vm1666_vm1, %v3059_v54, %v3050_v10  ;;  %v2913_v25 = vmul.f32 0.57735026, %v2881_v49 }
 0xa36   : > { %v2936_v26 = vmul.f32 0.57735026, %v2904_v44  ;;  %v3085_v10 = vrot.slane %v2931_v53, %v9395_v2  ;;  %v3122_v54 = vsel %vm1668_vm5, %v3068_v62, %v3121_v1  ;;  %v2885_v49 = vadd.f32 %v12714_v48, %v12743_v55 }
 0xa37   : > { %4854 = vbcast.lane.b32.xlu0 %v4852_v3, 256  ;;  %v2987_v13 = vsel %vm1529_vm7, %v2986_v46, %v2982_v19  ;;  %v2937_v53 = vmul.f32 0.57735026, %v2905_v61  ;;  %v3000_v46 = vrot.slane %v2912_v12, %v9392_v14  ;;  %v3004_v44 = vrot.slane %v2913_v25, %v9395_v2 }
 0xa38   : > { %4814 = vbcast.lane.b32.xlu1 %v4808_v9, 264  ;;  %v2977_v9 = vrot.slane %v2907_v29, %v9395_v2  ;;  %v12740_v29 = vld [vmem:[#allocation80_spill] sm:$0xff]  ;;  %v3090_v62 = vrot.slane %v10823_v0, %v9392_v14  ;;  %v3094_v61 = vrot.slane %v2933_v11, %v9395_v2  ;;  %v3099_v0 = vrot.slane %v10841_v51, %v9392_v14 }
 0xa39   : > { %v3103_v55 = vrot.slane %v2935_v17, %v9395_v2 }
 0xa3a   : > { %v2978_v35 = vsel %vm1529_vm7, %v2977_v9, %v2973_v4  ;;  %v2915_v9 = vmul.f32 0.57735026, %v2883_v33  ;;  %v2887_v33 = vadd.f32 %v12714_v48, %v12745_v41 }
 0xa3b   : > { %4858 = vbcast.lane.b32.xlu0 %v4852_v3, 264  ;;  %v2882_v3 = vadd.f32 %v12714_v48, %v12740_v29  ;;  %v3114_v19 = vsel %vm1666_vm1, %v2987_v13, %v2978_v35  ;;  %v12746_v13 = vld [vmem:[#allocation86_spill] sm:$0xff] }
 0xa3c   : > { %4825 = vbcast.lane.b32.xlu1 %v4819_v37, 264  ;;  %v2995_v37 = vrot.slane %v2911_v63, %v9395_v2  ;;  %v2884_v63 = vadd.f32 %v12714_v48, %v12742_v57  ;;  %v3013_v25 = vrot.slane %v2915_v9, %v9395_v2  ;;  %v12747_v57 = vld [vmem:[#allocation113_spill] sm:$0xff] }
 0xa3d   : > { %v2914_v4 = vmul.f32 0.57735026, %v2882_v3  ;;  %v12744_v3 = vld [vmem:[#allocation84_spill] sm:$0xff]  ;;  %v2889_v11 = vadd.f32 %v12714_v48, %v12747_v57 }
 0xa3e   : > { %v2996_v60 = vsel %vm1529_vm7, %v2995_v37, %v2991_v50  ;;  %v2886_v1 = vadd.f32 %v12714_v48, %v12744_v3  ;;  %v2916_v50 = vmul.f32 0.57735026, %v2884_v63  ;;  %v3086_v37 = vsel %vm1529_vm7, %v3085_v10, %v3081_v47 }
 0xa3f   : > { %v3009_v12 = vrot.slane %v2914_v4, %v9392_v14  ;;  %v3005_v63 = vsel %vm1529_vm7, %v3004_v44, %v3000_v46  ;;  %v2919_v10 = vmul.f32 0.57735026, %v2887_v33  ;;  %v3112_v46 = vrot.slane %v2937_v53, %v9395_v2 }
 0xa40   : > { %4836 = vbcast.lane.b32.xlu1 %v10783_v20, 264  ;;  %v3077_v20 = vsel %vm1529_vm7, %v3076_v32, %v3072_v38  ;;  %v2917_v38 = vmul.f32 0.57735026, %v2885_v49  ;;  %v3115_v32 = vsel %vm1668_vm5, %v2996_v60, %v3114_v19  ;;  %v2918_v47 = vmul.f32 0.57735026, %v2886_v1 }
 0xa41   : > { %v3123_v29 = vsel %vm1670_vm14, %v3077_v20, %v3122_v54  ;;  %v2888_v54 = vadd.f32 %v12714_v48, %v12746_v13  ;;  %v3116_v51 = vsel %vm1670_vm14, %v3005_v63, %v3115_v32  ;;  %v3095_v49 = vsel %vm1529_vm7, %v3094_v61, %v3090_v62  ;;  %v12748_v20 = vld [vmem:[#allocation97_spill] sm:$0xff]  ;;  %v12750_v63 = vld [vmem:[#allocation99_spill] sm:$0xff] }
 0xa42   : > { %v3124_v35 = vsel %vm1672_vm15, %v3086_v37, %v3123_v29  ;;  %v3018_v4 = vrot.slane %v2916_v50, %v9392_v14  ;;  %v3022_v9 = vrot.slane %v2917_v38, %v9395_v2  ;;  %v3108_v60 = vrot.slane %v2936_v26, %v9392_v14 }
 0xa43   : > { %v3125_v19 = vsel %vm1674_vm13, %v3095_v49, %v3124_v35  ;;  %v3014_v48 = vsel %vm1529_vm7, %v3013_v25, %v3009_v12  ;;  %v4863_v17 = vrot.slane %v10750_v56, %v12748_v20  ;;  %v2920_v44 = vmul.f32 0.57735026, %v2888_v54  ;;  %v12749_v25 = vld [vmem:[#allocation98_spill] sm:$0xff] }
 0xa44   : > { %4843 = vbcast.lane.b32.xlu1 %v4841_v23, 256  ;;  %v2921_v29 = vmul.f32 0.57735026, %v2889_v11  ;;  %v3104_v62 = vsel %vm1529_vm7, %v3103_v55, %v3099_v0  ;;  %v3027_v3 = vrot.slane %v2918_v47, %v9392_v14  ;;  %v3031_v1 = vrot.slane %v2919_v10, %v9395_v2 }
 0xa45   : > { %v3126_v26 = vsel %vm1676_vm12, %v3104_v62, %v3125_v19  ;;  %v3023_v41 = vsel %vm1529_vm7, %v3022_v9, %v3018_v4  ;;  %v4940_v53 = vrot.slane %v10739_v22, %v12730_v24  ;;  %v3113_v61 = vsel %vm1529_vm7, %v3112_v46, %v3108_v60 }
 0xa46   : > { %v3036_v50 = vrot.slane %v2920_v44, %v9392_v14  ;;  %v3040_v38 = vrot.slane %v2921_v29, %v9395_v2  ;;  %v3127_v32 = vsel %vm1678_vm11, %v3113_v61, %v3126_v26  ;;  %v3032_v37 = vsel %vm1529_vm7, %v3031_v1, %v3027_v3 }
 0xa47   : > { %v3214_v0 = vadd.f32 %v10540_v43, %v3127_v32  ;;  %v4874_v35 = vrot.slane %v10750_v56, %v12749_v25  ;;  %v4951_v57 = vrot.slane %v10739_v22, %v12748_v20  ;;  %v4885_v55 = vrot.slane %v10750_v56, %v12750_v63  ;;  %v11152_v56 = vld [vmem:[%s8762_s16 + $0x40] sm:$0xff] }
 0xa48   : > { %4847 = vbcast.lane.b32.xlu1 %v4841_v23, 264  ;;  %v3117_v23 = vsel %vm1672_vm15, %v3014_v48, %v3116_v51  ;;  %v3041_v13 = vsel %vm1529_vm7, %v3040_v38, %v3036_v50  ;;  %12767 = vst [vmem:[#allocation37_spill] sm:$0xff] %v11152_v56 }
 0xa49   : > { %v3118_v33 = vsel %vm1674_vm13, %v3023_v41, %v3117_v23  ;;  %v3218_v14 = vadd.f32 %v10481_v28, %v3214_v0 }
 0xa4a   : > { %v3119_v12 = vsel %vm1676_vm12, %v3032_v37, %v3118_v33 }
 0xa4b   : > { %v3120_v54 = vsel %vm1678_vm11, %v3041_v13, %v3119_v12  ;;  %v3222_v11 = vsel %vm1148_vm3, %v3218_v14, -inf }
 0xa4c   : > { %4869 = vbcast.lane.b32.xlu1 %v4863_v17, 264  ;;  %v3209_v2 = vadd.f32 %v10542_v42, %v3120_v54 }
 0xa4e   : > { %v3217_v43 = vadd.f32 %v10432_v45, %v3209_v2 }
 0xa50   : > { %4946 = vbcast.lane.b32.xlu1 %v4940_v53, 264  ;;  %v3219_v47 = vsel %vm1148_vm3, %v3217_v43, -inf }
 0xa54   : > { %4880 = vbcast.lane.b32.xlu1 %v4874_v35, 264 }
 0xa58   : > { %4957 = vbcast.lane.b32.xlu1 %v4951_v57, 264 }
 0xa5a   : > { %3223 = vmax.xlane.f32.xlu0 %v3222_v11 }
 0xa5c   : > { %4891 = vbcast.lane.b32.xlu1 %v4885_v55, 264 }
 0xa5e   : > { %3220 = vmax.xlane.f32.xlu0 %v3219_v47 }
 0xa74   : > { %4935 = vbcast.lane.b32.xlu0 %v10791_v52, 264 }
 0xa78   : > { %4714 = vrot.lane.b32.xlu0 %v12698_v40, %s8075_s27 }
 0xa7c   : > { %4716 = vrot.lane.b32.xlu0 %v12689_v59, %s8075_s27 }
 0xa80   : > { %4865 = vbcast.lane.b32.xlu0 %v4863_v17, 256 }
 0xa84   : > { %4942 = vbcast.lane.b32.xlu0 %v4940_v53, 256 }
 0xa88   : > { %4876 = vbcast.lane.b32.xlu0 %v4874_v35, 256 }
 0xa8c   : > { %4953 = vbcast.lane.b32.xlu0 %v4951_v57, 256 }
 0xa90   : > { %4887 = vbcast.lane.b32.xlu0 %v4885_v55, 256 }
 0xa92   : > { %v10938_v45 = vpop.xlane.xlu0 %6100 }
 0xa96   : > { %v4707_v28 = vpop.permute.xlu0 %4706 }
 0xa97   : > { %4712 = vst.msk [vmem:[#allocation4] sm:$0xff] %vm12751_vm8, %v4707_v28  ;;  %vm12814_vm8 = vmmov %vm12705_vm6 }
 0xa9a   : > { %v4709_v42 = vpop.permute.xlu0 %4708 }
 0xa9b   : > { %4713 = vst.msk [vmem:[#allocation4 + $0x8] sm:$0xff] %vm12752_vm9, %v4709_v42  ;;  %vm12817_vm9 = vmmov %vm12700_vm2 }
 0xa9e   : > { %v10942_v52 = vpop.permute.xlu0 %4898 }
 0xaa2   : > { %v10944_v10 = vpop.permute.xlu0 %4909 }
 0xaa6   : > { %v10946_v51 = vpop.permute.xlu0 %4810 }
 0xaaa   : > { %v10948_v49 = vpop.permute.xlu0 %4821 }
 0xaae   : > { %v10950_v4 = vpop.permute.xlu0 %4832 }
 0xab2   : > { %v10952_v9 = vpop.permute.xlu0 %4854 }
 0xab6   : > { %v10954_v60 = vpop.permute.xlu0 %4858 }
 0xae7   : > { %v3224_v19 = vpop.xlane.xlu0 %3223 }
 0xae8   : > { %v3226_v48 = vsub.f32 %v3218_v14, %v3224_v19  ;;  %v6104_v19 = vpop.xlane.xlu1 %6103 }
 0xaea   : > { %v3229_v17 = vmul.f32 1.442695, %v3226_v48 }
 0xaeb   : > { %v3221_v46 = vpop.xlane.xlu0 %3220 }
 0xaec   : > { %7680 = vpow2.f32 %v3229_v17  ;;  %v3225_v44 = vsub.f32 %v3217_v43, %v3221_v46  ;;  %v10998_v17 = vpop.permute.xlu1 %4902 }
 0xaee   : > { %v3227_v29 = vmul.f32 1.442695, %v3225_v44 }
 0xaef   : > { %v10956_v23 = vpop.permute.xlu0 %4935 }
 0xaf0   : > { %7682 = vpow2.f32 %v3227_v29 }
 0xaf3   : > { %v4715_v62 = vpop.permute.xlu0 %4714 }
 0xaf4   : > { %4720 = vst.msk [vmem:[#allocation4] sm:$0xff] %vm12753_vm10, %v4715_v62  ;;  %v4914_v62 = vpop.permute.xlu1 %4913  ;;  %vm12819_vm10 = vmmov %vm12813_vm4 }
 0xaf6   : > { %v7681_v3 = vpop.eup %7680 }
 0xaf7   : > { %v4717_v1 = vpop.permute.xlu0 %4716  ;;  %v3234_v26 = vsel %vm1148_vm3, %v7681_v3, 0.0 }
 0xaf8   : > { %4721 = vst.msk [vmem:[#allocation4 + $0x8] sm:$0xff] %vm12705_vm6, %v4717_v1  ;;  %3235 = vadd.xlane.f32.xlu0 %v3234_v26  ;;  %v11008_v1 = vpop.permute.xlu1 %4920 }
 0xafa   : > { %v7683_v41 = vpop.eup %7682 }
 0xafb   : > { %v3231_v33 = vsel %vm1148_vm3, %v7683_v41, 0.0  ;;  %v10962_v53 = vpop.permute.xlu0 %4865  ;;  %v4722_v43 = vld [vmem:[#allocation4] sm:$0xff] }
 0xafc   : > { %3232 = vadd.xlane.f32.xlu0 %v3231_v33  ;;  %v11014_v33 = vpop.permute.xlu1 %4924 }
 0xaff   : > { %v10964_v61 = vpop.permute.xlu0 %4942  ;;  %v4723_v2 = vld [vmem:[#allocation4 + $0x8] sm:$0xff] }
 0xb00   : > { %v10984_v11 = vpack.c.bf16 %v4723_v2, %v4722_v43  ;;  %v4962_v2 = vrot.slane %v10739_v22, %v12749_v25  ;;  %v4973_v43 = vrot.slane %v10739_v22, %v12750_v63 }
 0xb02   : > { %12756 = vst [vmem:[#allocation42_spill] sm:$0xff] %v10984_v11 }
 0xb03   : > { %v10966_v50 = vpop.permute.xlu0 %4876 }
 0xb07   : > { %v10968_v38 = vpop.permute.xlu0 %4953 }
 0xb0b   : > { %v10970_v32 = vpop.permute.xlu0 %4887 }
 0xb85   : > { %v3236_v37 = vpop.xlane.xlu0 %3235 }
 0xb86   : > { %7684 = vrcp.f32 %v3236_v37 }
 0xb89   : > { %v3233_v0 = vpop.xlane.xlu0 %3232 }
 0xb8a   : > { %7686 = vrcp.f32 %v3233_v0  ;;  %v11018_v0 = vpop.permute.xlu1 %4931 }
 0xb8b   : > { %7688 = vrcp.f32 %v10938_v45 }
 0xb8c   : > { %7690 = vrcp.f32 %v6104_v19 }
 0xb90   : > { %v7685_v12 = vpop.eup %7684 }
 0xb91   : > { %v10972_v35 = vmul.f32 %v7685_v12, %v7681_v3 }
 0xb93   : > { %12754 = vst [vmem:[#allocation77_spill] sm:$0xff] %v10972_v35  ;;  %v3453_v13 = vrot.slane %v10972_v35, %v12707_v39  ;;  %v3464_v57 = vrot.slane %v10972_v35, %v12710_v15  ;;  %v3475_v55 = vrot.slane %v10972_v35, %v12712_v21  ;;  %v3486_v47 = vrot.slane %v10972_v35, %v12726_v58 }
 0xb94   : > { %v7687_v54 = vpop.eup %7686  ;;  %v3497_v28 = vrot.slane %v10972_v35, %v12730_v24  ;;  %v3508_v42 = vrot.slane %v10972_v35, %v12748_v20  ;;  %v3519_v48 = vrot.slane %v10972_v35, %v12749_v25  ;;  %v3530_v46 = vrot.slane %v10972_v35, %v12750_v63 }
 0xb95   : > { %v10976_v14 = vmul.f32 %v7687_v54, %v7683_v41  ;;  %3459 = vbcast.lane.b32.xlu1 %v3453_v13, 264  ;;  %3455 = vbcast.lane.b32.xlu0 %v3453_v13, 256  ;;  %v4815_v54 = vpop.permute.xlu1 %4814 }
 0xb97   : > { %12755 = vst [vmem:[#allocation72_spill] sm:$0xff] %v10976_v14  ;;  %7323 = vmatprep.mubr.msk.f32.mxu1 %vm1148_vm3, %v10976_v14  ;;  %v3376_v44 = vrot.slane %v10976_v14, %v12710_v15  ;;  %v3365_v29 = vrot.slane %v10976_v14, %v12707_v39  ;;  %v3387_v3 = vrot.slane %v10976_v14, %v12712_v21 }
 0xb98   : > { %7324 = vmatmul.mubr.msk.f32.vlgmr.msra.gmra.mrb[14].mxu1 %vm1148_vm3, %v10972_v35  ;;  %v3398_v26 = vrot.slane %v10976_v14, %v12726_v58  ;;  %v3409_v41 = vrot.slane %v10976_v14, %v12730_v24  ;;  %v3420_v37 = vrot.slane %v10976_v14, %v12748_v20  ;;  %v3431_v12 = vrot.slane %v10976_v14, %v12749_v25 }
 0xb99   : > { %7418 = vmatpush3.bf16.msra.mxu1 %v12711_v16  ;;  %3470 = vbcast.lane.b32.xlu1 %v3464_v57, 264  ;;  %v3442_v13 = vrot.slane %v10976_v14, %v12750_v63 }
 0xb9a   : > { %3466 = vbcast.lane.b32.xlu0 %v3464_v57, 256  ;;  %7426 = vmatprep.subr.bf16.mxu1 %v10984_v11  ;;  %v11027_v57 = vpop.permute.xlu1 %4825 }
 0xb9d   : > { %3481 = vbcast.lane.b32.xlu1 %v3475_v55, 264 }
 0xb9e   : > { %3477 = vbcast.lane.b32.xlu0 %v3475_v55, 256  ;;  %v11031_v55 = vpop.permute.xlu1 %4836 }
 0xba1   : > { %3492 = vbcast.lane.b32.xlu1 %v3486_v47, 264 }
 0xba2   : > { %3488 = vbcast.lane.b32.xlu0 %v3486_v47, 256  ;;  %v7689_v47 = vpop.eup %7688 }
 0xba3   : > { %v11038_v45 = vmul.f32 %v7689_v47, %v10720_v5  ;;  %v7691_v5 = vpop.eup %7690  ;;  %v11103_v47 = vld [vmem:[%s8762_s16 + $0x8] sm:$0xff] }
 0xba4   : > { %12759 = vst [vmem:[#allocation71_spill] sm:$0xff] %v11103_v47 }
 0xba5   : > { %3503 = vbcast.lane.b32.xlu1 %v3497_v28, 264  ;;  %12757 = vst [vmem:[#allocation65_spill] sm:$0xff] %v11038_v45  ;;  %v6243_v19 = vrot.slane %v11038_v45, %v12712_v21 }
 0xba6   : > { %3499 = vbcast.lane.b32.xlu0 %v3497_v28, 256  ;;  %v11040_v28 = vpop.permute.xlu1 %4843 }
 0xba9   : > { %3514 = vbcast.lane.b32.xlu1 %v3508_v42, 264 }
 0xbaa   : > { %3510 = vbcast.lane.b32.xlu0 %v3508_v42, 256  ;;  %v11048_v42 = vpop.permute.xlu1 %4847 }
 0xbad   : > { %3525 = vbcast.lane.b32.xlu1 %v3519_v48, 264 }
 0xbae   : > { %3521 = vbcast.lane.b32.xlu0 %v3519_v48, 256  ;;  %v11064_v48 = vld [vmem:[%s8762_s16 + $0x90] sm:$0xff] }
 0xbb1   : > { %3536 = vbcast.lane.b32.xlu1 %v3530_v46, 264 }
 0xbb2   : > { %3532 = vbcast.lane.b32.xlu0 %v3530_v46, 256 }
 0xbb5   : > { %3382 = vbcast.lane.b32.xlu1 %v3376_v44, 264 }
 0xbb6   : > { %3367 = vbcast.lane.b32.xlu0 %v3365_v29, 256 }
 0xbb9   : > { %3393 = vbcast.lane.b32.xlu1 %v3387_v3, 264 }
 0xbba   : > { %3371 = vbcast.lane.b32.xlu0 %v3365_v29, 264 }
 0xbbd   : > { %3404 = vbcast.lane.b32.xlu1 %v3398_v26, 264 }
 0xbbe   : > { %3378 = vbcast.lane.b32.xlu0 %v3376_v44, 256  ;;  %v11075_v44 = vld [vmem:[%s8762_s16 + $0x80] sm:$0xff] }
 0xbbf   : > { %v4997_v29 = vmul.f32 %v11075_v44, %v10942_v52 }
 0xbc1   : > { %3415 = vbcast.lane.b32.xlu1 %v3409_v41, 264  ;;  %v5085_v52 = vsel %vm1148_vm3, %v4997_v29, 0.0 }
 0xbc2   : > { %3389 = vbcast.lane.b32.xlu0 %v3387_v3, 256 }
 0xbc5   : > { %3426 = vbcast.lane.b32.xlu1 %v3420_v37, 264 }
 0xbc6   : > { %3400 = vbcast.lane.b32.xlu0 %v3398_v26, 256  ;;  %v11082_v26 = vld [vmem:[%s8762_s16 + $0x88] sm:$0xff] }
 0xbc9   : > { %3437 = vbcast.lane.b32.xlu1 %v3431_v12, 264 }
 0xbca   : > { %3411 = vbcast.lane.b32.xlu0 %v3409_v41, 256 }
 0xbcd   : > { %3448 = vbcast.lane.b32.xlu1 %v3442_v13, 264 }
 0xbce   : > { %3422 = vbcast.lane.b32.xlu0 %v3420_v37, 256 }
 0xbd1   : > { %4968 = vbcast.lane.b32.xlu1 %v4962_v2, 264 }
 0xbd2   : > { %3433 = vbcast.lane.b32.xlu0 %v3431_v12, 256  ;;  %v11092_v12 = vld [vmem:[%s8762_s16 + $0xa8] sm:$0xff] }
 0xbd5   : > { %4979 = vbcast.lane.b32.xlu1 %v4973_v43, 264 }
 0xbd6   : > { %3444 = vbcast.lane.b32.xlu0 %v3442_v13, 256  ;;  %v5002_v13 = vmul.f32 %v11092_v12, %v11014_v33 }
 0xbd9   : > { %6111 = vrot.lane.b32.xlu1 %v12690_v6, %s8057_s28  ;;  %v6221_v6 = vrot.slane %v11038_v45, %v12707_v39 }
 0xbda   : > { %4964 = vbcast.lane.b32.xlu0 %v4962_v2, 256 }
 0xbdd   : > { %6119 = vrot.lane.b32.xlu1 %v12693_v31, %s8070_s10  ;;  %v6232_v31 = vrot.slane %v11038_v45, %v12710_v15 }
 0xbde   : > { %4975 = vbcast.lane.b32.xlu0 %v4973_v43, 256  ;;  %v11098_v43 = vld [vmem:[%s8762_s16 + $0xa0] sm:$0xff] }
 0xbe1   : > { %6129 = vrot.lane.b32.xlu1 %v12689_v59, %s8079_s15  ;;  %v11057_v59 = vmul.f32 %v7691_v5, %v10728_v8  ;;  %v6254_v5 = vrot.slane %v11038_v45, %v12726_v58 }
 0xbe2   : > { %6109 = vrot.lane.b32.xlu0 %v12699_v36, %s8057_s28  ;;  %v11059_v36 = vpop.permute.xlu1 %4869 }
 0xbe3   : > { %12758 = vst [vmem:[#allocation91_spill] sm:$0xff] %v11057_v59  ;;  %v6309_v46 = vrot.slane %v11057_v59, %v12707_v39 }
 0xbe5   : > { %6227 = vbcast.lane.b32.xlu1 %v6221_v6, 264 }
 0xbe6   : > { %6117 = vrot.lane.b32.xlu0 %v12691_v7, %s8070_s10  ;;  %v4999_v7 = vmul.f32 %v11064_v48, %v10944_v10  ;;  %v11079_v3 = vpop.permute.xlu1 %4946  ;;  %v4998_v10 = vmul.f32 %v11082_v26, %v10998_v17 }
 0xbe8   : > { %v5094_v39 = vsel %vm1148_vm3, %v4999_v7, 0.0  ;;  %v5086_v17 = vsel %vm1148_vm3, %v4998_v10, 0.0  ;;  %v5104_v7 = vsel %vm1148_vm3, %v5002_v13, 0.0  ;;  %v6331_v10 = vrot.slane %v11057_v59, %v12712_v21 }
 0xbe9   : > { %6238 = vbcast.lane.b32.xlu1 %v6232_v31, 264  ;;  %v5087_v2 = vadd.f32 %v5086_v17, %v5085_v52  ;;  %v11124_v17 = vld [vmem:[%s8762_s16 + $0x18] sm:$0xff] }
 0xbea   : > { %6127 = vrot.lane.b32.xlu0 %v12698_v40, %s8079_s15  ;;  %v11071_v40 = vld [vmem:[%s8762_s16 + $0x98] sm:$0xff]  ;;  %12761 = vst [vmem:[#allocation36_spill] sm:$0xff] %v11124_v17 }
 0xbeb   : > { %v5000_v8 = vmul.f32 %v11071_v40, %v4914_v62  ;;  %v6320_v62 = vrot.slane %v11057_v59, %v12710_v15  ;;  %v5001_v15 = vmul.f32 %v11098_v43, %v11008_v1  ;;  %v5088_v1 = vrot.slane %v5087_v2, 4 }
 0xbed   : > { %6249 = vbcast.lane.b32.xlu1 %v6243_v19, 264  ;;  %v5095_v41 = vsel %vm1148_vm3, %v5000_v8, 0.0  ;;  %v11112_v8 = vld [vmem:[%s8762_s16] sm:$0xff]  ;;  %v5103_v29 = vsel %vm1148_vm3, %v5001_v15, 0.0  ;;  %v4984_v15 = vmul.f32 %v11124_v17, %v11027_v57 }
 0xbee   : > { %6223 = vbcast.lane.b32.xlu0 %v6221_v6, 256  ;;  %v5096_v37 = vadd.f32 %v5095_v41, %v5094_v39  ;;  %v4982_v6 = vmul.f32 %v11103_v47, %v4815_v54  ;;  %12760 = vst [vmem:[#allocation90_spill] sm:$0xff] %v11112_v8  ;;  %v5105_v39 = vadd.f32 %v5104_v7, %v5103_v29  ;;  %v12765_v29 = vld [vmem:[#allocation57_spill] sm:$0xff] }
 0xbef   : > { %v5023_v35 = vsel %vm1148_vm3, %v4984_v15, 0.0  ;;  %v12770_v15 = vld [vmem:[#allocation58_spill] sm:$0xff] }
 0xbf0   : > { %v5097_v33 = vrot.slane %v5096_v37, 4  ;;  %v5014_v54 = vsel %vm1148_vm3, %v4982_v6, 0.0  ;;  %v6265_v6 = vrot.slane %v11038_v45, %v12730_v24  ;;  %v5106_v21 = vrot.slane %v5105_v39, 4 }
 0xbf1   : > { %6315 = vbcast.lane.b32.xlu1 %v6309_v46, 264 }
 0xbf2   : > { %6234 = vbcast.lane.b32.xlu0 %v6232_v31, 256  ;;  %v11106_v31 = vpop.permute.xlu1 %4880  ;;  %v5098_v41 = vadd.f32 %v5097_v33, %v5096_v37  ;;  %v11131_v37 = vld [vmem:[%s8762_s16 + $0x10] sm:$0xff]  ;;  %v5107_v16 = vadd.f32 %v5106_v21, %v5105_v39  ;;  %v4986_v39 = vmul.f32 %v11164_v27, %v11031_v55  ;;  %v6276_v55 = vrot.slane %v11038_v45, %v12748_v20  ;;  %v12779_v27 = vld [vmem:[#allocation53_spill] sm:$0xff] }
 0xbf3   : > { %12762 = vst [vmem:[#allocation39_spill] sm:$0xff] %v11131_v37  ;;  %v4983_v33 = vmul.f32 %v11131_v37, %v10948_v49  ;;  %v6342_v49 = vrot.slane %v11057_v59, %v12726_v58 }
 0xbf4   : > { %v5099_v7 = vrot.slane %v5098_v41, 2 }
 0xbf5   : > { %6326 = vbcast.lane.b32.xlu1 %v6320_v62, 264  ;;  %v5022_v58 = vsel %vm1148_vm3, %v4983_v33, 0.0 }
 0xbf6   : > { %6245 = vbcast.lane.b32.xlu0 %v6243_v19, 256  ;;  %v4981_v19 = vmul.f32 %v11112_v8, %v10946_v51  ;;  %v11121_v13 = vpop.permute.xlu1 %4957  ;;  %v5100_v11 = vadd.f32 %v5099_v7, %v5098_v41 }
 0xbf8   : > { %v5013_v52 = vsel %vm1148_vm3, %v4981_v19, 0.0  ;;  %v12763_v19 = vld [vmem:[#allocation54_spill] sm:$0xff] }
 0xbf9   : > { %6260 = vbcast.lane.b32.xlu1 %v6254_v5, 264  ;;  %v5015_v51 = vadd.f32 %v5014_v54, %v5013_v52  ;;  %v2405_v54 = vsub.f32 %v10148_v34, %v12765_v29  ;;  %v2406_v29 = vsub.f32 %v10142_v30, %v12770_v15  ;;  %v12777_v15 = vld [vmem:[#allocation47_spill] sm:$0xff] }
 0xbfa   : > { %6311 = vbcast.lane.b32.xlu0 %v6309_v46, 256  ;;  %v5089_v46 = vadd.f32 %v5088_v1, %v5087_v2  ;;  %v11138_v1 = vld [vmem:[%s8762_s16 + $0x48] sm:$0xff]  ;;  %v11145_v14 = vpop.permute.xlu1 %4891 }
 0xbfb   : > { %v5016_v2 = vrot.slane %v5015_v51, 4  ;;  %12764 = vst [vmem:[#allocation66_spill] sm:$0xff] %v11138_v1  ;;  %v4990_v57 = vmul.f32 %v11138_v1, %v10954_v60  ;;  %v4989_v60 = vmul.f32 %v11152_v56, %v10952_v9  ;;  %v11173_v56 = vld [vmem:[%s8762_s16 + $0x20] sm:$0xff]  ;;  %v11195_v1 = vmul.f32 %v2405_v54, %v12777_v15 }
 0xbfc   : > { %v5090_v52 = vrot.slane %v5089_v46, 2  ;;  %12773 = vst [vmem:[#allocation38_spill] sm:$0xff] %v11173_v56  ;;  %v4985_v41 = vmul.f32 %v11173_v56, %v10950_v4  ;;  %v5101_v4 = vrot.slane %v5100_v11, 1 }
 0xbfd   : > { %6337 = vbcast.lane.b32.xlu1 %v6331_v10, 264  ;;  %v5017_v21 = vadd.f32 %v5016_v2, %v5015_v51  ;;  %v5050_v9 = vsel %vm1148_vm3, %v4990_v57, 0.0  ;;  %v5049_v2 = vsel %vm1148_vm3, %v4989_v60, 0.0  ;;  %v12775_v57 = vld [vmem:[#allocation50_spill] sm:$0xff]  ;;  %12778 = vst [vmem:[#allocation68_spill] sm:$0xff] %v11195_v1  ;;  %v11198_v60 = vmul.f32 %v2405_v54, %v12779_v27  ;;  %v12784_v27 = vld [vmem:[#allocation44_spill] sm:$0xff] }
 0xbfe   : > { %6322 = vbcast.lane.b32.xlu0 %v6320_v62, 256  ;;  %v2403_v62 = vsub.f32 %v10148_v34, %v12763_v19  ;;  %v12766_v19 = vld [vmem:[#allocation56_spill] sm:$0xff]  ;;  %v5031_v47 = vsel %vm1148_vm3, %v4985_v41, 0.0  ;;  %v5102_v41 = vadd.f32 %v5101_v4, %v5100_v11  ;;  %v11222_v1 = vld [vmem:[%s8762_s16 + $0xb0] sm:$0xff]  ;;  %v12787_v11 = vld [vmem:[#allocation45_spill] sm:$0xff] }
 0xbff   : > { %v2404_v22 = vsub.f32 %v10142_v30, %v12766_v19  ;;  %v5024_v19 = vadd.f32 %v5023_v35, %v5022_v58  ;;  %v12774_v35 = vld [vmem:[#allocation43_spill] sm:$0xff]  ;;  %v5032_v30 = vsel %vm1148_vm3, %v4986_v39, 0.0  ;;  %v5018_v56 = vrot.slane %v5017_v21, 2  ;;  %12780 = vst [vmem:[#allocation92_spill] sm:$0xff] %v11198_v60 }
 0xc00   : > { %v11184_v51 = vmul.f32 %v2405_v54, %v12774_v35  ;;  %v11208_v39 = vrot.slane %v11057_v59, %v12730_v24  ;;  %v5033_v15 = vadd.f32 %v5032_v30, %v5031_v47  ;;  %v5003_v24 = vmul.f32 %v11222_v1, %v11018_v0 }
 0xc01   : > { %6271 = vbcast.lane.b32.xlu1 %v6265_v6, 264  ;;  %v5025_v35 = vrot.slane %v5024_v19, 4  ;;  %v5019_v47 = vadd.f32 %v5018_v56, %v5017_v21  ;;  %v11236_v4 = vmul.f32 %v2406_v29, %v12787_v11  ;;  %v11246_v56 = vrot.slane %v11057_v59, %v12748_v20 }
 0xc02   : > { %6256 = vbcast.lane.b32.xlu0 %v6254_v5, 256  ;;  %v12768_v5 = vld [vmem:[#allocation94_spill] sm:$0xff]  ;;  %v11261_v20 = vrot.slane %v11057_v59, %v12749_v25 }
 0xc03   : > { %v11158_v34 = vsel %vm1148_vm3, %v12768_v5, 0.0  ;;  %v11170_v5 = vmul.f32 %v2403_v62, %v12772_v18  ;;  %v5051_v18 = vadd.f32 %v5050_v9, %v5049_v2  ;;  %v12783_v9 = vld [vmem:[#allocation40_spill] sm:$0xff]  ;;  %12788 = vst [vmem:[#allocation75_spill] sm:$0xff] %v11236_v4 }
 0xc04   : > { %12769 = vst [vmem:[#allocation30_spill] sm:$0xff] %v11158_v34  ;;  %v5091_v34 = vadd.f32 %v5090_v52, %v5089_v46  ;;  %v11188_v46 = vmul.f32 %v2404_v22, %v12775_v57  ;;  %v12776_v52 = vld [vmem:[#allocation49_spill] sm:$0xff]  ;;  %v12781_v57 = vld [vmem:[#allocation51_spill] sm:$0xff]  ;;  %v11211_v2 = vmul.f32 %v2403_v62, %v12783_v9 }
 0xc05   : > { %6348 = vbcast.lane.b32.xlu1 %v6342_v49, 264  ;;  %v11191_v58 = vmul.f32 %v2403_v62, %v12776_v52  ;;  %v11201_v8 = vmul.f32 %v2406_v29, %v12781_v57  ;;  %v11216_v57 = vmul.f32 %v2404_v22, %v12784_v27  ;;  %v5052_v17 = vrot.slane %v5051_v18, 4  ;;  %v11308_v4 = vld [vmem:[%s8762_s16 + $0x58] sm:$0xff] }
 0xc06   : > { %6333 = vbcast.lane.b32.xlu0 %v6331_v10, 256  ;;  %v5108_v10 = vrot.slane %v5107_v16, 2  ;;  %v5092_v52 = vrot.slane %v5091_v34, 1  ;;  %v5026_v62 = vadd.f32 %v5025_v35, %v5024_v19  ;;  %v11242_v27 = vrot.slane %v11038_v45, %v12749_v25  ;;  %v11276_v25 = vld [vmem:[%s8762_s16 + $0xb8] sm:$0xff] }
 0xc07   : > { %v11177_v7 = vpop.permute.xlu1 %3459  ;;  %v11179_v33 = vpop.permute.xlu0 %3455  ;;  %12782 = vst [vmem:[#allocation103_spill] sm:$0xff] %v11201_v8  ;;  %v12785_v8 = vld [vmem:[#allocation33_spill] sm:$0xff]  ;;  %v11250_v19 = vrot.slane %v11038_v45, %v12750_v63  ;;  %v11267_v11 = vadd.f32 %v5052_v17, %v5051_v18  ;;  %v11281_v18 = vld [vmem:[%s8762_s16 + $0x50] sm:$0xff] }
 0xc08   : > { %v11219_v60 = vmul.f32 %v2404_v22, %v12785_v8  ;;  %v5093_v9 = vadd.f32 %v5092_v52, %v5091_v34  ;;  %v5112_v52 = vsel %vm1148_vm3, %v5003_v24, 0.0  ;;  %v5027_v8 = vrot.slane %v5026_v62, 2  ;;  %12790 = vst [vmem:[#allocation79_spill] sm:$0xff] %v11281_v18 }
 0xc09   : > { %6282 = vbcast.lane.b32.xlu1 %v6276_v55, 264  ;;  %v4991_v17 = vmul.f32 %v11281_v18, %v10962_v53  ;;  %v3555_v24 = vmul.f32 %v11082_v26, %v11177_v7 }
 0xc0a   : > { %6267 = vbcast.lane.b32.xlu0 %v6265_v6, 256  ;;  %v5109_v6 = vadd.f32 %v5108_v10, %v5107_v16  ;;  %v12786_v16 = vld [vmem:[#allocation46_spill] sm:$0xff]  ;;  %v11231_v10 = vld [vmem:[%s8762_s16 + $0x38] sm:$0xff]  ;;  %v11264_v35 = vsel %vm1666_vm1, %v5102_v41, %v5093_v9  ;;  %v5004_v9 = vmul.f32 %v11276_v25, %v10956_v23 }
 0xc0b   : > { %v11204_v37 = vpop.permute.xlu1 %3470  ;;  %v11228_v30 = vmul.f32 %v2406_v29, %v12786_v16  ;;  %v4988_v22 = vmul.f32 %v11231_v10, %v11048_v42  ;;  %v11253_v29 = vld [vmem:[%s8762_s16 + $0x30] sm:$0xff]  ;;  %12789 = vst [vmem:[#allocation104_spill] sm:$0xff] %v11264_v35  ;;  %v11272_v16 = vrot.slane %v11057_v59, %v12750_v63  ;;  %v11286_v63 = vld [vmem:[%s8762_s16 + $0xc0] sm:$0xff] }
 0xc0c   : > { %v11213_v54 = vpop.permute.xlu0 %3466  ;;  %v5110_v42 = vrot.slane %v5109_v6, 1  ;;  %v4987_v34 = vmul.f32 %v11253_v29, %v11040_v28  ;;  %v5020_v28 = vrot.slane %v5019_v47, 1  ;;  %v5005_v41 = vmul.f32 %v11286_v63, %v10964_v61  ;;  %v11300_v35 = vld [vmem:[%s8762_s16 + $0x60] sm:$0xff] }
 0xc0d   : > { %6359 = vbcast.lane.b32.xlu1 %v11208_v39, 264  ;;  %v5041_v45 = vsel %vm1148_vm3, %v4988_v22, 0.0  ;;  %v3554_v22 = vmul.f32 %v11075_v44, %v11179_v33  ;;  %12792 = vst [vmem:[#allocation81_spill] sm:$0xff] %v11300_v35  ;;  %v4993_v18 = vmul.f32 %v11300_v35, %v10966_v50  ;;  %v4992_v44 = vmul.f32 %v11308_v4, %v11059_v36  ;;  %v11313_v33 = vld [vmem:[%s8762_s16 + $0xc8] sm:$0xff] }
 0xc0e   : > { %6344 = vbcast.lane.b32.xlu0 %v6342_v49, 256  ;;  %v5034_v49 = vrot.slane %v5033_v15, 4  ;;  %v5040_v53 = vsel %vm1148_vm3, %v4987_v34, 0.0  ;;  %v11320_v50 = vadd.f32 %v5027_v8, %v5026_v62  ;;  %v5058_v36 = vsel %vm1148_vm3, %v4991_v17, 0.0 }
 0xc0f   : > { %v11238_v0 = vpop.permute.xlu1 %3481  ;;  %v5042_v7 = vadd.f32 %v5041_v45, %v5040_v53  ;;  %v5121_v34 = vsel %vm1148_vm3, %v5005_v41, 0.0  ;;  %v5067_v62 = vsel %vm1148_vm3, %v4993_v18, 0.0  ;;  %v5059_v41 = vsel %vm1148_vm3, %v4992_v44, 0.0 }
 0xc10   : > { %v11257_v21 = vpop.permute.xlu0 %3477  ;;  %v5035_v59 = vadd.f32 %v5034_v49, %v5033_v15  ;;  %v5006_v15 = vmul.f32 %v11313_v33, %v11079_v3  ;;  %v5113_v49 = vsel %vm1148_vm3, %v5004_v9, 0.0  ;;  %v3643_v3 = vsel %vm1148_vm3, %v3555_v24, 0.0 }
 0xc11   : > { %6293 = vbcast.lane.b32.xlu1 %v11242_v27, 264  ;;  %v5043_v17 = vrot.slane %v5042_v7, 4  ;;  %v5060_v53 = vadd.f32 %v5059_v41, %v5058_v36  ;;  %v3559_v36 = vmul.f32 %v11092_v12, %v11238_v0 }
 0xc12   : > { %6278 = vbcast.lane.b32.xlu0 %v6276_v55, 256  ;;  %v11296_v55 = vadd.f32 %v5110_v42, %v5109_v6  ;;  %v11318_v6 = vadd.f32 %v5020_v28, %v5019_v47  ;;  %v11323_v42 = vld [vmem:[%s8762_s16 + $0x68] sm:$0xff]  ;;  %v3642_v47 = vsel %vm1148_vm3, %v3554_v22, 0.0  ;;  %v5036_v8 = vrot.slane %v5035_v59, 2 }
 0xc13   : > { %v11294_v23 = vpop.permute.xlu1 %3492  ;;  %v4994_v45 = vmul.f32 %v11323_v42, %v11106_v31  ;;  %v3557_v31 = vmul.f32 %v11071_v40, %v11204_v37  ;;  %v5122_v24 = vsel %vm1148_vm3, %v5006_v15, 0.0  ;;  %v5114_v22 = vadd.f32 %v5113_v49, %v5112_v52  ;;  %v11354_v52 = vld [vmem:[%s8762_s16 + $0x70] sm:$0xff] }
 0xc14   : > { %12791 = vst [vmem:[#allocation106_spill] sm:$0xff] %v11296_v55  ;;  %v11304_v61 = vpop.permute.xlu0 %3488  ;;  %v5123_v26 = vadd.f32 %v5122_v24, %v5121_v34  ;;  %v3644_v40 = vadd.f32 %v3643_v3, %v3642_v47  ;;  %12793 = vst [vmem:[#allocation108_spill] sm:$0xff] %v11354_v52  ;;  %v4995_v15 = vmul.f32 %v11354_v52, %v10970_v32  ;;  %v11369_v47 = vld [vmem:[%s8762_s16 + $0xd8] sm:$0xff]  ;;  %v5061_v0 = vrot.slane %v5060_v53, 4 }
 0xc15   : > { %6370 = vbcast.lane.b32.xlu1 %v11246_v56, 264  ;;  %v5068_v18 = vsel %vm1148_vm3, %v4994_v45, 0.0  ;;  %v3652_v49 = vsel %vm1148_vm3, %v3557_v31, 0.0  ;;  %v3558_v34 = vmul.f32 %v11098_v43, %v11257_v21  ;;  %v5008_v32 = vmul.f32 %v11369_v47, %v11121_v13 }
 0xc16   : > { %6355 = vbcast.lane.b32.xlu0 %v11208_v39, 256  ;;  %v3556_v39 = vmul.f32 %v11064_v48, %v11213_v54  ;;  %v5029_v48 = vrot.slane %v11320_v50, 1  ;;  %v5069_v37 = vadd.f32 %v5068_v18, %v5067_v62  ;;  %v11349_v54 = vld [vmem:[%s8762_s16 + $0xd0] sm:$0xff]  ;;  %v11374_v62 = vld [vmem:[%s8762_s16 + $0x78] sm:$0xff]  ;;  %v5037_v12 = vadd.f32 %v5036_v8, %v5035_v59 }
 0xc17   : > { %v11333_v28 = vpop.permute.xlu1 %3503  ;;  %v5007_v44 = vmul.f32 %v11349_v54, %v10968_v38  ;;  %v5044_v38 = vadd.f32 %v5043_v17, %v5042_v7  ;;  %12794 = vst [vmem:[#allocation83_spill] sm:$0xff] %v11374_v62  ;;  %v4996_v31 = vmul.f32 %v11374_v62, %v11145_v14  ;;  %v5124_v41 = vrot.slane %v5123_v26, 4 }
 0xc18   : > { %v11340_v9 = vpop.permute.xlu0 %3499  ;;  %v3645_v43 = vrot.slane %v3644_v40, 4  ;;  %v5070_v21 = vrot.slane %v5069_v37, 4  ;;  %v5076_v17 = vsel %vm1148_vm3, %v4995_v15, 0.0  ;;  %v3661_v18 = vsel %vm1148_vm3, %v3559_v36, 0.0 }
 0xc19   : > { %6304 = vbcast.lane.b32.xlu1 %v11250_v19, 264  ;;  %v5130_v7 = vsel %vm1148_vm3, %v5007_v44, 0.0  ;;  %v3660_v14 = vsel %vm1148_vm3, %v3558_v34, 0.0  ;;  %v3561_v59 = vmul.f32 %v11276_v25, %v11294_v23  ;;  %v3560_v8 = vmul.f32 %v11222_v1, %v11304_v61 }
 0xc1a   : > { %6289 = vbcast.lane.b32.xlu0 %v11242_v27, 256  ;;  %v3651_v27 = vsel %vm1148_vm3, %v3556_v39, 0.0  ;;  %v5115_v39 = vrot.slane %v5114_v22, 4  ;;  %v5131_v44 = vsel %vm1148_vm3, %v5008_v32, 0.0  ;;  %v5077_v15 = vsel %vm1148_vm3, %v4996_v31, 0.0 }
 0xc1b   : > { %v11358_v45 = vpop.permute.xlu1 %3514  ;;  %v3653_v13 = vadd.f32 %v3652_v49, %v3651_v27  ;;  %v5062_v27 = vadd.f32 %v5061_v0, %v5060_v53  ;;  %v5132_v36 = vadd.f32 %v5131_v44, %v5130_v7  ;;  %v5078_v52 = vadd.f32 %v5077_v15, %v5076_v17 }
 0xc1c   : > { %v11366_v3 = vpop.permute.xlu0 %3510  ;;  %v5116_v49 = vadd.f32 %v5115_v39, %v5114_v22  ;;  %v3646_v34 = vadd.f32 %v3645_v43, %v3644_v40  ;;  %v5030_v25 = vadd.f32 %v5029_v48, %v11320_v50  ;;  %v5125_v23 = vadd.f32 %v5124_v41, %v5123_v26 }
 0xc1d   : > { %6381 = vbcast.lane.b32.xlu1 %v11261_v20, 264  ;;  %v3654_v1 = vrot.slane %v3653_v13, 4  ;;  %v3662_v61 = vadd.f32 %v3661_v18, %v3660_v14  ;;  %v5038_v35 = vrot.slane %v5037_v12, 1  ;;  %v5071_v32 = vadd.f32 %v5070_v21, %v5069_v37 }
 0xc1e   : > { %6366 = vbcast.lane.b32.xlu0 %v11246_v56, 256  ;;  %v5045_v56 = vrot.slane %v5044_v38, 2  ;;  %v3670_v31 = vsel %vm1148_vm3, %v3561_v59, 0.0  ;;  %v3669_v22 = vsel %vm1148_vm3, %v3560_v8, 0.0  ;;  %v5117_v0 = vrot.slane %v5116_v49, 2 }
 0xc1f   : > { %v11382_v24 = vpop.permute.xlu1 %3525  ;;  %v3562_v26 = vmul.f32 %v11286_v63, %v11340_v9  ;;  %v5063_v50 = vrot.slane %v5062_v27, 2  ;;  %v5133_v40 = vrot.slane %v5132_v36, 4  ;;  %v5079_v48 = vrot.slane %v5078_v52, 4 }
 0xc20   : > { %v11390_v55 = vpop.permute.xlu0 %3521  ;;  %v5046_v53 = vadd.f32 %v5045_v56, %v5044_v38  ;;  %v3647_v37 = vrot.slane %v3646_v34, 2  ;;  %v5126_v41 = vrot.slane %v5125_v23, 2  ;;  %v3655_v43 = vadd.f32 %v3654_v1, %v3653_v13 }
 0xc21   : > { %6392 = vbcast.lane.b32.xlu1 %v11272_v16, 264  ;;  %v3663_v21 = vrot.slane %v3662_v61, 4  ;;  %v3671_v38 = vadd.f32 %v3670_v31, %v3669_v22  ;;  %v5039_v17 = vadd.f32 %v5038_v35, %v5037_v12  ;;  %v12795_v63 = vrot.slane %v11267_v11, 2 }
 0xc22   : > { %6300 = vbcast.lane.b32.xlu0 %v11250_v19, 256  ;;  %v3563_v19 = vmul.f32 %v11313_v33, %v11333_v28  ;;  %v5181_v28 = vsel %vm1666_vm1, %v5030_v25, %v11318_v6  ;;  %v5047_v14 = vrot.slane %v5046_v53, 1  ;;  %v11417_v59 = vadd.f32 %v5117_v0, %v5116_v49 }
 0xc23   : > { %v11397_v62 = vpop.permute.xlu1 %3536  ;;  %v11415_v9 = vadd.f32 %v12795_v63, %v11267_v11  ;;  %v3678_v13 = vsel %vm1148_vm3, %v3562_v26, 0.0  ;;  %v11423_v8 = vadd.f32 %v5063_v50, %v5062_v27  ;;  %v5134_v35 = vadd.f32 %v5133_v40, %v5132_v36 }
 0xc24   : > { %v11401_v39 = vpop.permute.xlu0 %3532  ;;  %v5080_v6 = vadd.f32 %v5079_v48, %v5078_v52  ;;  %v3648_v12 = vadd.f32 %v3647_v37, %v3646_v34  ;;  %v11426_v11 = vadd.f32 %v5126_v41, %v5125_v23  ;;  %v3656_v56 = vrot.slane %v3655_v43, 2  ;;  %v11451_v48 = vld [vmem:[%s8762_s16 + $0xe8] sm:$0xff] }
 0xc25   : > { %2439 = vrot.lane.b32.xlu1 %v11170_v5, %s8070_s10  ;;  %v5072_v5 = vrot.slane %v5071_v32, 2  ;;  %v3664_v44 = vadd.f32 %v3663_v21, %v3662_v61  ;;  %v3672_v15 = vrot.slane %v3671_v38, 4  ;;  %v3565_v31 = vmul.f32 %v11369_v47, %v11358_v45 }
 0xc26   : > { %6377 = vbcast.lane.b32.xlu0 %v11261_v20, 256  ;;  %v3679_v20 = vsel %vm1148_vm3, %v3563_v19, 0.0  ;;  %v11435_v36 = vadd.f32 %v5047_v14, %v5046_v53  ;;  %v11441_v34 = vsel %vm1668_vm5, %v5039_v17, %v5181_v28  ;;  %v5135_v45 = vrot.slane %v5134_v35, 2  ;;  %v12798_v17 = vld [vmem:[#allocation68_spill] sm:$0xff] }
 0xc27   : > { %v3383_v7 = vpop.permute.xlu1 %3382  ;;  %v11428_v25 = vadd.f32 %v5072_v5, %v5071_v32  ;;  %v3680_v1 = vadd.f32 %v3679_v20, %v3678_v13  ;;  %v5081_v61 = vrot.slane %v5080_v6, 2  ;;  %v3657_v32 = vadd.f32 %v3656_v56, %v3655_v43  ;;  %v12796_v43 = vld [vmem:[#allocation36_spill] sm:$0xff]  ;;  %v12799_v20 = vld [vmem:[#allocation71_spill] sm:$0xff] }
 0xc28   : > { %v3368_v18 = vpop.permute.xlu0 %3367  ;;  %v3665_v22 = vrot.slane %v3664_v44, 2  ;;  %v3673_v53 = vadd.f32 %v3672_v15, %v3671_v38  ;;  %v3688_v26 = vsel %vm1148_vm3, %v3565_v31, 0.0  ;;  %v3567_v37 = vmul.f32 %v11451_v48, %v11382_v24  ;;  %v12797_v38 = vld [vmem:[#allocation39_spill] sm:$0xff]  ;;  %v12800_v24 = vld [vmem:[#allocation92_spill] sm:$0xff] }
 0xc29   : > { %2451 = vrot.lane.b32.xlu1 %v11184_v51, %s8055_s26  ;;  %v3564_v51 = vmul.f32 %v11349_v54, %v11366_v3  ;;  %v3649_v54 = vrot.slane %v3648_v12, 1  ;;  %v3681_v19 = vrot.slane %v3680_v1, 4  ;;  %v3541_v21 = vmul.f32 %v12796_v43, %v3383_v7 }
 0xc2a   : > { %6388 = vbcast.lane.b32.xlu0 %v11272_v16, 256  ;;  %v11464_v63 = vadd.f32 %v5135_v45, %v5134_v35  ;;  %v11466_v5 = vadd.f32 %v5081_v61, %v5080_v6  ;;  %v3658_v56 = vrot.slane %v3657_v32, 1  ;;  %v3674_v7 = vrot.slane %v3673_v53, 2  ;;  %v12801_v35 = vld [vmem:[#allocation90_spill] sm:$0xff]  ;;  %v12802_v6 = vld [vmem:[#allocation32_spill] sm:$0xff] }
 0xc2b   : > { %v3394_v49 = vpop.permute.xlu1 %3393  ;;  %v3687_v50 = vsel %vm1148_vm3, %v3564_v51, 0.0  ;;  %v3650_v14 = vadd.f32 %v3649_v54, %v3648_v12  ;;  %v3682_v51 = vadd.f32 %v3681_v19, %v3680_v1  ;;  %v3538_v45 = vmul.f32 %v12801_v35, %v3368_v18  ;;  %v11486_v18 = vld [vmem:[%s8762_s16 + $0xf0] sm:$0xff] }
 0xc2c   : > { %v3372_v27 = vpop.permute.xlu0 %3371  ;;  %v3543_v61 = vmul.f32 %v12802_v6, %v3394_v49  ;;  %v3568_v49 = vmul.f32 %v11486_v18, %v11401_v39  ;;  %v3659_v52 = vadd.f32 %v3658_v56, %v3657_v32  ;;  %v12805_v32 = vld [vmem:[#allocation66_spill] sm:$0xff] }
 0xc2d   : > { %2415 = vrot.lane.b32.xlu1 %v11188_v46, %s8070_s10  ;;  %v3539_v13 = vmul.f32 %v12799_v20, %v3372_v27  ;;  %v3697_v27 = vsel %vm1148_vm3, %v3567_v37, 0.0  ;;  %v12803_v20 = vld [vmem:[#allocation38_spill] sm:$0xff]  ;;  %v3675_v37 = vadd.f32 %v3674_v7, %v3673_v53 }
 0xc2e   : > { %2413 = vrot.lane.b32.xlu0 %v11191_v58, %s8070_s10  ;;  %v11456_v58 = vld [vmem:[%s8762_s16 + $0xe0] sm:$0xff]  ;;  %v3589_v46 = vsel %vm1148_vm3, %v3543_v61, 0.0 }
 0xc2f   : > { %v3405_v0 = vpop.permute.xlu1 %3404  ;;  %v3566_v41 = vmul.f32 %v11456_v58, %v11390_v55  ;;  %v3666_v55 = vadd.f32 %v3665_v22, %v3664_v44  ;;  %v12804_v22 = vld [vmem:[#allocation103_spill] sm:$0xff]  ;;  %v3571_v19 = vsel %vm1148_vm3, %v3539_v13, 0.0 }
 0xc30   : > { %v3379_v40 = vpop.permute.xlu0 %3378 }
 0xc31   : > { %v3540_v28 = vmul.f32 %v12797_v38, %v3379_v40  ;;  %2477 = vrot.lane.b32.xlu1 %v12798_v17, %s8055_s26  ;;  %v3689_v40 = vadd.f32 %v3688_v26, %v3687_v50  ;;  %v3696_v54 = vsel %vm1148_vm3, %v3566_v41, 0.0  ;;  %v3580_v17 = vsel %vm1148_vm3, %v3541_v21, 0.0 }
 0xc32   : > { %2425 = vrot.lane.b32.xlu0 %v12800_v24, %s8055_s26  ;;  %v3667_v50 = vrot.slane %v3666_v55, 1  ;;  %v3545_v41 = vmul.f32 %v11231_v10, %v3405_v0  ;;  %v3705_v0 = vsel %vm1148_vm3, %v3568_v49, 0.0 }
 0xc33   : > { %v3579_v15 = vsel %vm1148_vm3, %v3540_v28, 0.0  ;;  %v3416_v31 = vpop.permute.xlu1 %3415  ;;  %v11481_v28 = vld [vmem:[%s8762_s16 + $0xf8] sm:$0xff] }
 0xc34   : > { %v3390_v12 = vpop.permute.xlu0 %3389  ;;  %v3569_v1 = vmul.f32 %v11481_v28, %v11397_v62  ;;  %v3581_v26 = vadd.f32 %v3580_v17, %v3579_v15  ;;  %v3698_v62 = vadd.f32 %v3697_v27, %v3696_v54  ;;  %v3598_v61 = vsel %vm1148_vm3, %v3545_v41, 0.0 }
 0xc35   : > { %v3542_v44 = vmul.f32 %v12803_v20, %v3390_v12  ;;  %2427 = vrot.lane.b32.xlu1 %v12804_v22, %s8055_s26  ;;  %v3690_v12 = vrot.slane %v3689_v40, 4  ;;  %v3570_v22 = vsel %vm1148_vm3, %v3538_v45, 0.0  ;;  %v3676_v45 = vrot.slane %v3675_v37, 1 }
 0xc36   : > { %2465 = vrot.lane.b32.xlu0 %v11211_v2, %s8070_s10  ;;  %v3572_v13 = vadd.f32 %v3571_v19, %v3570_v22  ;;  %v3683_v2 = vrot.slane %v3682_v51, 2  ;;  %v3706_v53 = vsel %vm1148_vm3, %v3569_v1, 0.0  ;;  %v3582_v7 = vrot.slane %v3581_v26, 4 }
 0xc37   : > { %v3588_v21 = vsel %vm1148_vm3, %v3542_v44, 0.0  ;;  %v3427_v24 = vpop.permute.xlu1 %3426  ;;  %v3547_v56 = vmul.f32 %v12805_v32, %v3416_v31  ;;  %v3668_v54 = vadd.f32 %v3667_v50, %v3666_v55  ;;  %v3691_v44 = vadd.f32 %v3690_v12, %v3689_v40 }
 0xc38   : > { %v3401_v39 = vpop.permute.xlu0 %3400  ;;  %v3590_v15 = vadd.f32 %v3589_v46, %v3588_v21  ;;  %v3707_v1 = vadd.f32 %v3706_v53, %v3705_v0  ;;  %v3573_v22 = vrot.slane %v3572_v13, 4  ;;  %v3684_v41 = vadd.f32 %v3683_v2, %v3682_v51  ;;  %v12808_v2 = vld [vmem:[#allocation79_spill] sm:$0xff] }
 0xc39   : > { %v3544_v17 = vmul.f32 %v11253_v29, %v3401_v39  ;;  %2467 = vrot.lane.b32.xlu1 %v11216_v57, %s8070_s10  ;;  %v3699_v57 = vrot.slane %v3698_v62, 4  ;;  %v12806_v39 = vld [vmem:[#allocation37_spill] sm:$0xff]  ;;  %v3583_v31 = vadd.f32 %v3582_v7, %v3581_v26  ;;  %v3677_v55 = vadd.f32 %v3676_v45, %v3675_v37 }
 0xc3a   : > { %2441 = vrot.lane.b32.xlu0 %v11219_v60, %s8070_s10  ;;  %v3591_v49 = vrot.slane %v3590_v15, 4  ;;  %v3745_v60 = vsel %vm1666_vm1, %v3659_v52, %v3650_v14  ;;  %v3607_v40 = vsel %vm1148_vm3, %v3547_v56, 0.0  ;;  %v3549_v50 = vmul.f32 %v11308_v4, %v3427_v24 }
 0xc3b   : > { %v3597_v46 = vsel %vm1148_vm3, %v3544_v17, 0.0  ;;  %v3438_v27 = vpop.permute.xlu1 %3437  ;;  %v12807_v17 = vld [vmem:[#allocation75_spill] sm:$0xff]  ;;  %v3746_v0 = vsel %vm1668_vm5, %v3668_v54, %v3745_v60  ;;  %v3708_v14 = vrot.slane %v3707_v1, 4  ;;  %v3574_v51 = vadd.f32 %v3573_v22, %v3572_v13 }
 0xc3c   : > { %v3599_v19 = vadd.f32 %v3598_v61, %v3597_v46  ;;  %v3412_v21 = vpop.permute.xlu0 %3411  ;;  %v3692_v61 = vrot.slane %v3691_v44, 2  ;;  %v3592_v26 = vadd.f32 %v3591_v49, %v3590_v15  ;;  %v3584_v37 = vrot.slane %v3583_v31, 2 }
 0xc3d   : > { %v3546_v3 = vmul.f32 %v12806_v39, %v3412_v21  ;;  %2479 = vrot.lane.b32.xlu1 %v11228_v30, %s8055_s26  ;;  %v3700_v30 = vadd.f32 %v3699_v57, %v3698_v62  ;;  %v3685_v21 = vrot.slane %v3684_v41, 1  ;;  %v3616_v24 = vsel %vm1148_vm3, %v3549_v50, 0.0 }
 0xc3e   : > { %v3600_v32 = vrot.slane %v3599_v19, 4  ;;  %2453 = vrot.lane.b32.xlu0 %v12807_v17, %s8055_s26  ;;  %v11522_v62 = vsel %vm1670_vm14, %v3677_v55, %v3746_v0  ;;  %v11524_v57 = vadd.f32 %v3692_v61, %v3691_v44  ;;  %v3709_v60 = vadd.f32 %v3708_v14, %v3707_v1  ;;  %v12810_v0 = vld [vmem:[#allocation83_spill] sm:$0xff] }
 0xc3f   : > { %v3606_v12 = vsel %vm1148_vm3, %v3546_v3, 0.0  ;;  %v3449_v53 = vpop.permute.xlu1 %3448  ;;  %v3551_v3 = vmul.f32 %v11323_v42, %v3438_v27  ;;  %v3701_v13 = vrot.slane %v3700_v30, 2  ;;  %v3575_v17 = vrot.slane %v3574_v51, 2 }
 0xc40   : > { %v3608_v46 = vadd.f32 %v3607_v40, %v3606_v12  ;;  %v3423_v52 = vpop.permute.xlu0 %3422  ;;  %v3601_v45 = vadd.f32 %v3600_v32, %v3599_v19  ;;  %v3593_v19 = vrot.slane %v3592_v26, 2  ;;  %v12809_v32 = vld [vmem:[#allocation81_spill] sm:$0xff]  ;;  %v11527_v50 = vadd.f32 %v3685_v21, %v3684_v41 }
 0xc41   : > { %v3548_v7 = vmul.f32 %v12808_v2, %v3423_v52  ;;  %v3585_v27 = vadd.f32 %v3584_v37, %v3583_v31  ;;  %v3553_v44 = vmul.f32 %v12810_v0, %v3449_v53  ;;  %v11533_v1 = vadd.f32 %v3701_v13, %v3700_v30  ;;  %v12811_v37 = vld [vmem:[#allocation108_spill] sm:$0xff] }
 0xc42   : > { %v3609_v56 = vrot.slane %v3608_v46, 4  ;;  %v3602_v12 = vrot.slane %v3601_v45, 2  ;;  %v3710_v41 = vrot.slane %v3709_v60, 2  ;;  %v3576_v21 = vadd.f32 %v3575_v17, %v3574_v51 }
 0xc43   : > { %v3615_v39 = vsel %vm1148_vm3, %v3548_v7, 0.0  ;;  %v4969_v54 = vpop.permute.xlu1 %4968  ;;  %v3625_v7 = vsel %vm1148_vm3, %v3551_v3, 0.0  ;;  %v3594_v31 = vadd.f32 %v3593_v19, %v3592_v26 }
 0xc44   : > { %v3610_v15 = vadd.f32 %v3609_v56, %v3608_v46  ;;  %v3617_v22 = vadd.f32 %v3616_v24, %v3615_v39  ;;  %v3434_v49 = vpop.permute.xlu0 %3433  ;;  %v3603_v3 = vadd.f32 %v3602_v12, %v3601_v45  ;;  %v5010_v0 = vmul.f32 %v11451_v48, %v4969_v54 }
 0xc45   : > { %v3550_v40 = vmul.f32 %v12809_v32, %v3434_v49  ;;  %v3586_v32 = vrot.slane %v3585_v27, 1  ;;  %v3711_v17 = vadd.f32 %v3710_v41, %v3709_v60  ;;  %v3577_v45 = vrot.slane %v3576_v21, 1 }
 0xc46   : > { %v3618_v52 = vrot.slane %v3617_v22, 4  ;;  %v3611_v55 = vrot.slane %v3610_v15, 2  ;;  %v3595_v19 = vrot.slane %v3594_v31, 1 }
 0xc47   : > { %v3624_v61 = vsel %vm1148_vm3, %v3550_v40, 0.0  ;;  %v4980_v46 = vpop.permute.xlu1 %4979  ;;  %v3634_v40 = vsel %vm1148_vm3, %v3553_v44, 0.0  ;;  %v3587_v12 = vadd.f32 %v3586_v32, %v3585_v27  ;;  %v3578_v27 = vadd.f32 %v3577_v45, %v3576_v21 }
 0xc48   : > { %v3619_v14 = vadd.f32 %v3618_v52, %v3617_v22  ;;  %v3626_v24 = vadd.f32 %v3625_v7, %v3624_v61  ;;  %v3445_v39 = vpop.permute.xlu0 %3444  ;;  %v3612_v53 = vadd.f32 %v3611_v55, %v3610_v15  ;;  %v3703_v22 = vrot.slane %v11533_v1, 1 }
 0xc49   : > { %v3552_v49 = vmul.f32 %v12811_v37, %v3445_v39  ;;  %v3604_v55 = vrot.slane %v3603_v3, 1  ;;  %v5140_v39 = vsel %vm1148_vm3, %v5010_v0, 0.0  ;;  %v5012_v37 = vmul.f32 %v11481_v28, %v4980_v46 }
 0xc4a   : > { %v3620_v23 = vrot.slane %v3619_v14, 2  ;;  %v3627_v16 = vrot.slane %v3626_v24, 4  ;;  %v3613_v61 = vrot.slane %v3612_v53, 1  ;;  %v3596_v32 = vadd.f32 %v3595_v19, %v3594_v31 }
 0xc4b   : > { %v3633_v30 = vsel %vm1148_vm3, %v3552_v49, 0.0  ;;  %v6112_v13 = vpop.permute.xlu1 %6111  ;;  %v3738_v56 = vsel %vm1666_vm1, %v3587_v12, %v3578_v27 }
 0xc4c   : > { %v3621_v52 = vadd.f32 %v3620_v23, %v3619_v14  ;;  %v3628_v7 = vadd.f32 %v3627_v16, %v3626_v24  ;;  %v3635_v51 = vadd.f32 %v3634_v40, %v3633_v30  ;;  %6116 = vst.msk [vmem:[#allocation4 + $0x8] sm:$0xff] %vm1148_vm3, %v6112_v13  ;;  %v4965_v26 = vpop.permute.xlu0 %4964  ;;  %v3712_v40 = vrot.slane %v3711_v17, 1  ;;  %v12812_v30 = vld [vmem:[#allocation70_spill] sm:$0xff] }
 0xc4d   : > { %v5009_v15 = vmul.f32 %v11456_v58, %v4965_v26  ;;  %v3605_v13 = vadd.f32 %v3604_v55, %v3603_v3  ;;  %v12815_v3 = vrot.slane %v11524_v57, 1  ;;  %v3739_v12 = vsel %vm1668_vm5, %v3596_v32, %v3738_v56 }
 0xc4e   : > { %v3629_v44 = vrot.slane %v3628_v7, 2  ;;  %v3636_v54 = vrot.slane %v3635_v51, 4  ;;  %v3622_v14 = vrot.slane %v3621_v52, 1  ;;  %v12816_v32 = vrot.slane %v11417_v59, 1 }
 0xc4f   : > { %v5139_v16 = vsel %vm1148_vm3, %v5009_v15, 0.0  ;;  %v6120_v23 = vpop.permute.xlu1 %6119  ;;  %v3695_v55 = vadd.f32 %v12815_v3, %v11524_v57  ;;  %v3748_v57 = vsel %vm1672_vm15, %v11527_v50, %v11522_v62  ;;  %v12818_v50 = vld [vmem:[#allocation64_spill] sm:$0xff] }
 0xc50   : > { %v3630_v24 = vadd.f32 %v3629_v44, %v3628_v7  ;;  %v3637_v49 = vadd.f32 %v3636_v54, %v3635_v51  ;;  %v5141_v60 = vadd.f32 %v5140_v39, %v5139_v16  ;;  %6124 = vst.msk [vmem:[#allocation4 + $0x8] sm:$0xff] %vm12700_vm2, %v6120_v23  ;;  %v4976_v41 = vpop.permute.xlu0 %4975  ;;  %v3614_v7 = vadd.f32 %v3613_v61, %v3612_v53 }
 0xc51   : > { %6126 = vst.msk [vmem:[#allocation4 + $0x8] sm:$0xff] %vm12813_vm4, %v12812_v30  ;;  %v5011_v0 = vmul.f32 %v11486_v18, %v4976_v41  ;;  %v5149_v51 = vsel %vm1148_vm3, %v5012_v37, 0.0  ;;  %v3623_v39 = vadd.f32 %v3622_v14, %v3621_v52  ;;  %v3704_v16 = vadd.f32 %v3703_v22, %v11533_v1  ;;  %vm12868_vm4 = vmmov %vm12705_vm6 }
 0xc52   : > { %v3631_v46 = vrot.slane %v3630_v24, 1  ;;  %v3638_v26 = vrot.slane %v3637_v49, 2  ;;  %v5142_v15 = vrot.slane %v5141_v60, 4  ;;  %v3740_v23 = vsel %vm1670_vm14, %v3605_v13, %v3739_v12 }
 0xc53   : > { %v5148_v44 = vsel %vm1148_vm3, %v5011_v0, 0.0  ;;  %v6130_v54 = vpop.permute.xlu1 %6129  ;;  %v5137_v14 = vrot.slane %v11464_v63, 1  ;;  %v3713_v41 = vadd.f32 %v3712_v40, %v3711_v17  ;;  %v5120_v30 = vadd.f32 %v12816_v32, %v11417_v59  ;;  %v12832_v32 = vld [vmem:[#allocation72_spill] sm:$0xff] }
 0xc54   : > { %v3639_v21 = vadd.f32 %v3638_v26, %v3637_v49  ;;  %v5143_v31 = vadd.f32 %v5142_v15, %v5141_v60  ;;  %v5150_v45 = vadd.f32 %v5149_v51, %v5148_v44  ;;  %6134 = vst.msk [vmem:[#allocation4 + $0x8] sm:$0xff] %vm12814_vm8, %v6130_v54  ;;  %v6110_v19 = vpop.permute.xlu0 %6109  ;;  %v3632_v53 = vadd.f32 %v3631_v46, %v3630_v24 }
 0xc55   : > { %6115 = vst.msk [vmem:[#allocation4] sm:$0xff] %vm1148_vm3, %v6110_v19  ;;  %v3741_v60 = vsel %vm1672_vm15, %v3614_v7, %v3740_v23  ;;  %v3749_v17 = vsel %vm1674_vm13, %v3695_v55, %v3748_v57  ;;  %v5083_v40 = vrot.slane %v11466_v5, 1  ;;  %v12820_v59 = vrot.slane %v11423_v8, 1  ;;  %v12824_v55 = vld [vmem:[#allocation104_spill] sm:$0xff] }
 0xc56   : > { %v5144_v61 = vrot.slane %v5143_v31, 2  ;;  %v5151_v37 = vrot.slane %v5150_v45, 4  ;;  %v3640_v52 = vrot.slane %v3639_v21, 1  ;;  %v3742_v27 = vsel %vm1674_vm13, %v3623_v39, %v3741_v60 }
 0xc57   : > { %v11561_v49 = vpop.permute.xlu1 %6227  ;;  %v3743_v0 = vsel %vm1676_vm12, %v3632_v53, %v3742_v27  ;;  %v3750_v26 = vsel %vm1676_vm12, %v3704_v16, %v3749_v17  ;;  %v5066_v15 = vadd.f32 %v12820_v59, %v11423_v8  ;;  %v12821_v7 = vrot.slane %v11426_v11, 1  ;;  %v12825_v16 = vld [vmem:[#allocation106_spill] sm:$0xff] }
 0xc58   : > { %v5145_v1 = vadd.f32 %v5144_v61, %v5143_v31  ;;  %v5152_v22 = vadd.f32 %v5151_v37, %v5150_v45  ;;  %v6118_v24 = vpop.permute.xlu0 %6117  ;;  %v3641_v56 = vadd.f32 %v3640_v52, %v3639_v21  ;;  %v3751_v54 = vsel %vm1678_vm11, %v3713_v41, %v3750_v26  ;;  %v12828_v61 = vld [vmem:[#allocation76_spill] sm:$0xff]  ;;  %v12829_v37 = vld [vmem:[#allocation89_spill] sm:$0xff] }
 0xc59   : > { %6123 = vst.msk [vmem:[#allocation4] sm:$0xff] %vm12817_vm9, %v6118_v24  ;;  %v5129_v51 = vadd.f32 %v12821_v7, %v11426_v11  ;;  %v5183_v39 = vsel %vm1670_vm14, %v11435_v36, %v11441_v34  ;;  %v12822_v21 = vrot.slane %v11415_v9, 1  ;;  %v5138_v45 = vadd.f32 %v5137_v14, %v11464_v63  ;;  %v12826_v36 = vld [vmem:[#allocation42_spill] sm:$0xff]  ;;  %v12830_v41 = vld [vmem:[#allocation61_spill] sm:$0xff] }
 0xc5a   : > { %v5146_v13 = vrot.slane %v5145_v1, 1  ;;  %v5153_v62 = vrot.slane %v5152_v22, 2  ;;  %6125 = vst.msk [vmem:[#allocation4] sm:$0xff] %vm12819_vm10, %v12818_v50  ;;  %v3744_v46 = vsel %vm1678_vm11, %v3641_v56, %v3743_v0  ;;  %v12823_v11 = vrot.slane %v11428_v25, 1 }
 0xc5b   : > { %7330 = vmatprep.mubr.msk.f32.mxu1 %vm1148_vm3, %v3744_v46  ;;  %v6239_v44 = vpop.permute.xlu1 %6238  ;;  %v5057_v31 = vadd.f32 %v12822_v21, %v11415_v9  ;;  %v5189_v53 = vsel %vm1668_vm5, %v12825_v16, %v12824_v55  ;;  %v12827_v9 = vld [vmem:[#allocation30_spill] sm:$0xff]  ;;  %v5084_v34 = vadd.f32 %v5083_v40, %v11466_v5  ;;  %v12831_v5 = vld [vmem:[#allocation93_spill] sm:$0xff]  ;;  %v5157_v7 = vsel %vm1148_vm3, %v12828_v61, 0.0 }
 0xc5c   : > { %v5154_v8 = vadd.f32 %v5153_v62, %v5152_v22  ;;  %7331 = vmatmul.mubr.msk.f32.vlgmr.msra.gmra.mrb[16].mxu1 %vm1148_vm3, %v3751_v54  ;;  %v6128_v19 = vpop.permute.xlu0 %6127  ;;  %v5075_v3 = vadd.f32 %v12823_v11, %v11428_v25  ;;  %v5147_v12 = vadd.f32 %v5146_v13, %v5145_v1  ;;  %v5190_v52 = vsel %vm1670_vm14, %v5120_v30, %v5189_v53  ;;  %v12833_v62 = vld [vmem:[#allocation77_spill] sm:$0xff] }
 0xc5d   : > { %7428 = vmatpush3.bf16.msra.mxu1 %v12826_v36  ;;  %6133 = vst.msk [vmem:[#allocation4] sm:$0xff] %vm12705_vm6, %v6128_v19  ;;  %2279 = vadd.xlane.f32.xlu0 %v12827_v9  ;;  %v5184_v25 = vsel %vm1672_vm15, %v5057_v31, %v5183_v39  ;;  %v5191_v60 = vsel %vm1672_vm15, %v5129_v51, %v5190_v52  ;;  %v2281_v1 = vsel %vm1148_vm3, %v12831_v5, 0.0  ;;  %v3714_v30 = vsel %vm1148_vm3, %v12832_v32, 0.0  ;;  %v6136_v26 = vld [vmem:[#allocation4 + $0x8] sm:$0xff] }
 0xc5e   : > { %v5155_v63 = vrot.slane %v5154_v8, 1  ;;  %7344 = vmatprep.mubr.msk.f32.mxu1 %vm1148_vm3, %v12828_v61  ;;  %7430 = vmatprep.subr.bf16.mxu1 %v12829_v37  ;;  %v5185_v14 = vsel %vm1674_vm13, %v5066_v15, %v5184_v25  ;;  %v5192_v56 = vsel %vm1674_vm13, %v5138_v45, %v5191_v60  ;;  %v3717_v50 = vsel %vm1148_vm3, %v12833_v62, 0.0  ;;  %v12834_v15 = vld [vmem:[#allocation65_spill] sm:$0xff]  ;;  %v12836_v61 = vld [vmem:[#allocation56_spill] sm:$0xff] }
 0xc5f   : > { %v6250_v23 = vpop.permute.xlu1 %6249  ;;  %v5186_v22 = vsel %vm1676_vm12, %v5075_v3, %v5185_v14  ;;  %v5193_v0 = vsel %vm1676_vm12, %v5147_v12, %v5192_v56  ;;  %v7803_v54 = vld [vmem:[%s8762_s16 + $0x8] sm:$0xff]  ;;  %v12835_v3 = vld [vmem:[#allocation91_spill] sm:$0xff]  ;;  %vm2543_vm2 = vcmask 64512   ;;  %vm2521_vm8 = vcmask 589312  }
 0xc60   : > { %7345 = vmatmul.mubr.msk.f32.vlgmr.msra.gmra.mrb[18].mxu1 %vm1148_vm3, %v12830_v41  ;;  %v6224_v57 = vpop.permute.xlu0 %6223  ;;  %v5156_v24 = vadd.f32 %v5155_v63, %v5154_v8  ;;  %v5187_v27 = vsel %vm1678_vm11, %v5084_v34, %v5186_v22  ;;  %v6395_v39 = vmul.f32 %v7803_v54, %v11561_v49  ;;  %v6397_v8 = vmul.f32 %v12796_v43, %v6239_v44 }
 0xc61   : > { %2282 = vadd.xlane.f32.xlu0 %v2281_v1  ;;  %7432 = vmatpush3.bf16.msra.mxu1 %v12829_v37  ;;  %v6394_v59 = vmul.f32 %v12801_v35, %v6224_v57  ;;  %v6570_v35 = vsel %vm1148_vm3, %v12834_v15, 0.0  ;;  %v6399_v52 = vmul.f32 %v12802_v6, %v6250_v23  ;;  %v12837_v1 = vld [vmem:[#allocation58_spill] sm:$0xff]  ;;  %v7804_v23 = vld [vmem:[%s8762_s16 + $0x80] sm:$0xff]  ;;  %vm2564_vm9 = vcmask 556544  }
 0xc62   : > { %7351 = vmatprep.mubr.msk.f32.mxu1 %vm1148_vm3, %v5187_v27  ;;  %3715 = vadd.xlane.f32.xlu1 %v3714_v30  ;;  %v5194_v17 = vsel %vm1678_vm11, %v5156_v24, %v5193_v0  ;;  %v6427_v11 = vsel %vm1148_vm3, %v6395_v39, 0.0  ;;  %v6436_v43 = vsel %vm1148_vm3, %v6397_v8, 0.0  ;;  %v12838_v24 = vld [vmem:[#allocation33_spill] sm:$0xff] }
 0xc63   : > { %v6316_v40 = vpop.permute.xlu1 %6315  ;;  %v6426_v19 = vsel %vm1148_vm3, %v6394_v59, 0.0 }
 0xc64   : > { %7352 = vmatmul.mubr.msk.f32.vlgmr.msra.gmra.mrb[20].mxu1 %vm1148_vm3, %v5194_v17  ;;  %v6235_v13 = vpop.permute.xlu0 %6234  ;;  %v6135_v46 = vld [vmem:[#allocation4] sm:$0xff]  ;;  %v6428_v16 = vadd.f32 %v6427_v11, %v6426_v19  ;;  %v7806_v11 = vld [vmem:[%s8762_s16 + $0x98] sm:$0xff] }
 0xc65   : > { %3718 = vadd.xlane.f32.xlu0 %v3717_v50  ;;  %7365 = vmatprep.mubr.msk.f32.mxu1 %vm1148_vm3, %v12834_v15  ;;  %v7439_v51 = vpack.c.bf16 %v6136_v26, %v6135_v46  ;;  %v6396_v21 = vmul.f32 %v12797_v38, %v6235_v13  ;;  %v12839_v13 = vld [vmem:[#allocation51_spill] sm:$0xff]  ;;  %v7805_v50 = vld [vmem:[%s8762_s16 + $0x88] sm:$0xff] }
 0xc66   : > { %5158 = vadd.xlane.f32.xlu1 %v5157_v7  ;;  %v6429_v9 = vrot.slane %v6428_v16, 4  ;;  %v6411_v46 = vmul.f32 %v7805_v50, %v6316_v40 }
 0xc67   : > { %7440 = vmatprep.subr.bf16.mxu1 %v7439_v51  ;;  %v6327_v31 = vpop.permute.xlu1 %6326  ;;  %v6435_v49 = vsel %vm1148_vm3, %v6396_v21, 0.0  ;;  %v12840_v21 = vld [vmem:[#allocation44_spill] sm:$0xff] }
 0xc68   : > { %7442 = vmatpush3.bf16.msra.mxu1 %v7439_v51  ;;  %v6246_v45 = vpop.permute.xlu0 %6245  ;;  %v6437_v44 = vadd.f32 %v6436_v43, %v6435_v49  ;;  %v6430_v57 = vadd.f32 %v6429_v9, %v6428_v16  ;;  %v6499_v19 = vsel %vm1148_vm3, %v6411_v46, 0.0  ;;  %v6413_v49 = vmul.f32 %v7806_v11, %v6327_v31  ;;  %v7809_v31 = vld [vmem:[%s8762_s16 + $0x48] sm:$0xff]  ;;  %v12847_v11 = vld [vmem:[#allocation28_spill] sm:$0xff] }
 0xc69   : > { %6571 = vadd.xlane.f32.xlu0 %v6570_v35  ;;  %7444 = vmatprep.subr.bf16.mxu1 %v12829_v37  ;;  %v6398_v34 = vmul.f32 %v12803_v20, %v6246_v45  ;;  %v6445_v20 = vsel %vm1148_vm3, %v6399_v52, 0.0  ;;  %v12841_v35 = vld [vmem:[#allocation50_spill] sm:$0xff] }
 0xc6a   : > { %v6438_v14 = vrot.slane %v6437_v44, 4  ;;  %v6431_v6 = vrot.slane %v6430_v57, 2  ;;  %v12842_v52 = vld [vmem:[#allocation54_spill] sm:$0xff] }
 0xc6b   : > { %7366 = vmatmul.mubr.msk.f32.vlgmr.msra.gmra.mrb[22].mxu1 %vm1148_vm3, %v12835_v3  ;;  %v6261_v38 = vpop.permute.xlu1 %6260  ;;  %v11645_v55 = vpop.f32.mrb[14].mxu1 }
 0xc6c   : > { %v6312_v53 = vpop.permute.xlu0 %6311  ;;  %v11647_v12 = vpop.f32.mrb[15].mxu1  ;;  %7446 = vmatpush3.bf16.msra.mxu1 %v12829_v37  ;;  %v3834_v25 = vsub.f32 %v11645_v55, %v12836_v61  ;;  %v6444_v37 = vsel %vm1148_vm3, %v6398_v34, 0.0  ;;  %v3836_v22 = vsub.f32 %v11645_v55, %v12837_v1  ;;  %v6439_v27 = vadd.f32 %v6438_v14, %v6437_v44  ;;  %v7807_v44 = vld [vmem:[%s8762_s16 + $0x40] sm:$0xff]  ;;  %v7808_v14 = vld [vmem:[%s8762_s16 + $0x90] sm:$0xff] }
 0xc6d   : > { %v6446_v32 = vadd.f32 %v6445_v20, %v6444_v37  ;;  %v6410_v0 = vmul.f32 %v7804_v23, %v6312_v53  ;;  %v6432_v7 = vadd.f32 %v6431_v6, %v6430_v57  ;;  %v6401_v16 = vmul.f32 %v11231_v10, %v6261_v38  ;;  %v12843_v38 = vld [vmem:[#allocation46_spill] sm:$0xff]  ;;  %v12844_v20 = vld [vmem:[#allocation45_spill] sm:$0xff] }
 0xc6e   : > { %v3866_v56 = vmul.f32 %v3834_v25, %v12838_v24  ;;  %v3852_v62 = vmul.f32 %v3836_v22, %v12839_v13  ;;  %v6440_v26 = vrot.slane %v6439_v27, 2  ;;  %v3892_v45 = vmul.f32 %v3834_v25, %v12840_v21 }
 0xc6f   : > { %v11651_v36 = vpop.permute.xlu1 %6337  ;;  %v6447_v59 = vrot.slane %v6446_v32, 4  ;;  %v6498_v51 = vsel %vm1148_vm3, %v6410_v0, 0.0  ;;  %v3840_v8 = vmul.f32 %v3834_v25, %v12841_v35  ;;  %v6433_v34 = vrot.slane %v6432_v7, 1  ;;  %v12845_v0 = vld [vmem:[#allocation57_spill] sm:$0xff] }
 0xc70   : > { %v6323_v63 = vpop.permute.xlu0 %6322  ;;  %v6441_v40 = vadd.f32 %v6440_v26, %v6439_v27  ;;  %v6500_v43 = vadd.f32 %v6499_v19, %v6498_v51  ;;  %v11681_v25 = vsub.f32 %v11647_v12, %v12842_v52  ;;  %v3878_v27 = vmul.f32 %v3836_v22, %v12844_v20 }
 0xc71   : > { %v6448_v53 = vadd.f32 %v6447_v59, %v6446_v32  ;;  %v6412_v57 = vmul.f32 %v7808_v14, %v6323_v63  ;;  %v6508_v6 = vsel %vm1148_vm3, %v6413_v49, 0.0  ;;  %v6454_v23 = vsel %vm1148_vm3, %v6401_v16, 0.0 }
 0xc72   : > { %v6442_v32 = vrot.slane %v6441_v40, 1  ;;  %v6501_v50 = vrot.slane %v6500_v43, 4  ;;  %v6434_v26 = vadd.f32 %v6433_v34, %v6432_v7  ;;  %v3865_v49 = vmul.f32 %v11681_v25, %v12847_v11  ;;  %v7812_v34 = vld [vmem:[%s8762_s16 + $0xb0] sm:$0xff] }
 0xc73   : > { %v6272_v60 = vpop.permute.xlu1 %6271  ;;  %v6449_v63 = vrot.slane %v6448_v53, 2  ;;  %v6507_v59 = vsel %vm1148_vm3, %v6412_v57, 0.0 }
 0xc74   : > { %v6257_v5 = vpop.permute.xlu0 %6256  ;;  %v6443_v16 = vadd.f32 %v6442_v32, %v6441_v40 }
 0xc75   : > { %v6400_v39 = vmul.f32 %v11253_v29, %v6257_v5  ;;  %v6403_v5 = vmul.f32 %v7809_v31, %v6272_v60  ;;  %v6450_v57 = vadd.f32 %v6449_v63, %v6448_v53  ;;  %v6502_v31 = vadd.f32 %v6501_v50, %v6500_v43  ;;  %v7814_v53 = vld [vmem:[%s8762_s16 + $0xc0] sm:$0xff] }
 0xc76   : > { %v12849_v50 = vld [vmem:[#allocation53_spill] sm:$0xff] }
 0xc77   : > { %3871 = vrot.lane.b32.xlu1 %v3866_v56, %s8070_s10  ;;  %v11663_v30 = vpop.permute.xlu1 %6348  ;;  %v6453_v10 = vsel %vm1148_vm3, %v6400_v39, 0.0  ;;  %v3904_v56 = vmul.f32 %v3836_v22, %v12843_v38  ;;  %v12846_v39 = vld [vmem:[#allocation49_spill] sm:$0xff] }
 0xc78   : > { %v6334_v17 = vpop.permute.xlu0 %6333  ;;  %v6455_v51 = vadd.f32 %v6454_v23, %v6453_v10  ;;  %v6509_v10 = vadd.f32 %v6508_v6, %v6507_v59  ;;  %v12848_v23 = vld [vmem:[#allocation43_spill] sm:$0xff] }
 0xc7a   : > { %v6456_v40 = vrot.slane %v6455_v51, 4 }
 0xc7b   : > { %3857 = vrot.lane.b32.xlu1 %v3852_v62, %s8055_s26  ;;  %v6283_v15 = vpop.permute.xlu1 %6282  ;;  %v11692_v62 = vsub.f32 %v11647_v12, %v12845_v0 }
 0xc7c   : > { %v6268_v54 = vpop.permute.xlu0 %6267  ;;  %v6405_v60 = vmul.f32 %v11308_v4, %v6283_v15  ;;  %v7810_v4 = vld [vmem:[%s8762_s16 + $0xa0] sm:$0xff] }
 0xc7d   : > { %v6402_v9 = vmul.f32 %v7807_v44, %v6268_v54  ;;  %v6414_v15 = vmul.f32 %v7810_v4, %v6334_v17  ;;  %v7811_v44 = vld [vmem:[%s8762_s16 + $0xa8] sm:$0xff]  ;;  %v3877_v63 = vmul.f32 %v11692_v62, %v12848_v23 }
 0xc7e   : > { %v6415_v7 = vmul.f32 %v7811_v44, %v11651_v36 }
 0xc7f   : > { %3897 = vrot.lane.b32.xlu1 %v3892_v45, %s8070_s10  ;;  %3845 = vrot.lane.b32.xlu0 %v3840_v8, %s8070_s10  ;;  %v6360_v29 = vpop.permute.xlu1 %6359  ;;  %v6462_v46 = vsel %vm1148_vm3, %v6402_v9, 0.0  ;;  %v3839_v45 = vmul.f32 %v11681_v25, %v12846_v39  ;;  %v6463_v8 = vsel %vm1148_vm3, %v6403_v5, 0.0  ;;  %v6472_v5 = vsel %vm1148_vm3, %v6405_v60, 0.0 }
 0xc80   : > { %v6345_v37 = vpop.permute.xlu0 %6344  ;;  %v6464_v9 = vadd.f32 %v6463_v8, %v6462_v46  ;;  %v3851_v60 = vmul.f32 %v11692_v62, %v12849_v50  ;;  %v6517_v8 = vsel %vm1148_vm3, %v6415_v7, 0.0 }
 0xc81   : > { %v6416_v14 = vmul.f32 %v7812_v34, %v6345_v37  ;;  %v6516_v37 = vsel %vm1148_vm3, %v6414_v15, 0.0  ;;  %v6510_v15 = vrot.slane %v6509_v10, 4 }
 0xc82   : > { %v6465_v46 = vrot.slane %v6464_v9, 4  ;;  %v6518_v34 = vadd.f32 %v6517_v8, %v6516_v37 }
 0xc83   : > { %3909 = vrot.lane.b32.xlu1 %v3904_v56, %s8055_s26  ;;  %3883 = vrot.lane.b32.xlu0 %v3878_v27, %s8055_s26  ;;  %v6294_v22 = vpop.permute.xlu1 %6293  ;;  %v7813_v56 = vld [vmem:[%s8762_s16 + $0xb8] sm:$0xff]  ;;  %v6525_v6 = vsel %vm1148_vm3, %v6416_v14, 0.0 }
 0xc84   : > { %v6279_v54 = vpop.permute.xlu0 %6278  ;;  %v6417_v36 = vmul.f32 %v7813_v56, %v11663_v30  ;;  %v11724_v30 = vsel %vm1666_vm1, %v6443_v16, %v6434_v26  ;;  %v6407_v4 = vmul.f32 %v11323_v42, %v6294_v22  ;;  %v7815_v16 = vld [vmem:[%s8762_s16 + $0x60] sm:$0xff]  ;;  %v6451_v42 = vrot.slane %v6450_v57, 1 }
 0xc85   : > { %v6404_v19 = vmul.f32 %v12808_v2, %v6279_v54  ;;  %v6419_v54 = vmul.f32 %v11313_v33, %v6360_v29  ;;  %v6466_v22 = vadd.f32 %v6465_v46, %v6464_v9  ;;  %v7816_v46 = vld [vmem:[%s8762_s16 + $0xd0] sm:$0xff] }
 0xc86   : > { %v6526_v33 = vsel %vm1148_vm3, %v6417_v36, 0.0 }
 0xc87   : > { %v6471_v17 = vsel %vm1148_vm3, %v6404_v19, 0.0  ;;  %3843 = vrot.lane.b32.xlu1 %v3839_v45, %s8070_s10  ;;  %3869 = vrot.lane.b32.xlu0 %v3865_v49, %s8070_s10  ;;  %v6371_v2 = vpop.permute.xlu1 %6370  ;;  %v6503_v45 = vrot.slane %v6502_v31, 2  ;;  %v6457_v19 = vadd.f32 %v6456_v40, %v6455_v51  ;;  %v6527_v26 = vadd.f32 %v6526_v33, %v6525_v6 }
 0xc88   : > { %v6473_v27 = vadd.f32 %v6472_v5, %v6471_v17  ;;  %v6356_v32 = vpop.permute.xlu0 %6355  ;;  %v12850_v5 = vld [vmem:[#allocation40_spill] sm:$0xff]  ;;  %v6535_v17 = vsel %vm1148_vm3, %v6419_v54, 0.0  ;;  %v6481_v51 = vsel %vm1148_vm3, %v6407_v4, 0.0  ;;  %v6421_v40 = vmul.f32 %v11369_v47, %v6371_v2 }
 0xc89   : > { %v6418_v43 = vmul.f32 %v7814_v53, %v6356_v32  ;;  %v3891_v7 = vmul.f32 %v11681_v25, %v12850_v5  ;;  %v11740_v37 = vadd.f32 %v6503_v45, %v6502_v31  ;;  %v6511_v53 = vadd.f32 %v6510_v15, %v6509_v10  ;;  %v12852_v10 = vld [vmem:[#allocation83_spill] sm:$0xff] }
 0xc8a   : > { %v6474_v59 = vrot.slane %v6473_v27, 4  ;;  %v6528_v9 = vrot.slane %v6527_v26, 4  ;;  %v6467_v47 = vrot.slane %v6466_v22, 2  ;;  %v6544_v31 = vsel %vm1148_vm3, %v6421_v40, 0.0 }
 0xc8b   : > { %3881 = vrot.lane.b32.xlu1 %v3877_v63, %s8055_s26  ;;  %3855 = vrot.lane.b32.xlu0 %v3851_v60, %s8055_s26  ;;  %v6534_v29 = vsel %vm1148_vm3, %v6418_v43, 0.0  ;;  %v6305_v49 = vpop.permute.xlu1 %6304  ;;  %v6458_v43 = vrot.slane %v6457_v19, 2  ;;  %v6519_v60 = vrot.slane %v6518_v34, 4 }
 0xc8c   : > { %v6290_v44 = vpop.permute.xlu0 %6289  ;;  %v6475_v56 = vadd.f32 %v6474_v59, %v6473_v27  ;;  %v6536_v36 = vadd.f32 %v6535_v17, %v6534_v29  ;;  %v12851_v27 = vld [vmem:[#allocation47_spill] sm:$0xff]  ;;  %v6452_v59 = vadd.f32 %v6451_v42, %v6450_v57  ;;  %v6409_v15 = vmul.f32 %v12852_v10, %v6305_v49 }
 0xc8d   : > { %v6406_v14 = vmul.f32 %v7815_v16, %v6290_v44  ;;  %v3903_v6 = vmul.f32 %v11692_v62, %v12851_v27  ;;  %v6505_v29 = vrot.slane %v11740_v37, 1  ;;  %v6459_v44 = vadd.f32 %v6458_v43, %v6457_v19  ;;  %v7817_v17 = vld [vmem:[%s8762_s16 + $0x70] sm:$0xff]  ;;  %s12865_s16 = smov 56  }
 0xc8e   : > { %v6476_v2 = vrot.slane %v6475_v56, 2  ;;  %v6537_v45 = vrot.slane %v6536_v36, 4  ;;  %v6529_v42 = vadd.f32 %v6528_v9, %v6527_v26 }
 0xc8f   : > { %v6480_v32 = vsel %vm1148_vm3, %v6406_v14, 0.0  ;;  %3895 = vrot.lane.b32.xlu0 %v3891_v7, %s8070_s10  ;;  %v6382_v4 = vpop.permute.xlu1 %6381  ;;  %v6512_v14 = vrot.slane %v6511_v53, 2  ;;  %v6520_v7 = vadd.f32 %v6519_v60, %v6518_v34  ;;  %v6460_v19 = vrot.slane %v6459_v44, 1 }
 0xc90   : > { %v6482_v25 = vadd.f32 %v6481_v51, %v6480_v32  ;;  %v6367_v63 = vpop.permute.xlu0 %6366  ;;  %v6468_v32 = vadd.f32 %v6467_v47, %v6466_v22  ;;  %v6477_v40 = vadd.f32 %v6476_v2, %v6475_v56  ;;  %v6538_v49 = vadd.f32 %v6537_v45, %v6536_v36 }
 0xc91   : > { %v6420_v54 = vmul.f32 %v7816_v46, %v6367_v63  ;;  %v6595_v34 = vsel %vm1668_vm5, %v6452_v59, %v11724_v30  ;;  %v6521_v26 = vrot.slane %v6520_v7, 2  ;;  %v6530_v22 = vrot.slane %v6529_v42, 2 }
 0xc92   : > { %v6483_v8 = vrot.slane %v6482_v25, 4  ;;  %v6513_v36 = vadd.f32 %v6512_v14, %v6511_v53  ;;  %v6469_v9 = vrot.slane %v6468_v32, 1  ;;  %v6478_v47 = vrot.slane %v6477_v40, 1 }
 0xc93   : > { %v6543_v33 = vsel %vm1148_vm3, %v6420_v54, 0.0  ;;  %3907 = vrot.lane.b32.xlu0 %v3903_v6, %s8055_s26  ;;  %v6490_v54 = vsel %vm1148_vm3, %v6409_v15, 0.0  ;;  %v6423_v6 = vmul.f32 %v11451_v48, %v6382_v4  ;;  %v6539_v48 = vrot.slane %v6538_v49, 2 }
 0xc94   : > { %v6484_v16 = vadd.f32 %v6483_v8, %v6482_v25  ;;  %v6545_v62 = vadd.f32 %v6544_v31, %v6543_v33  ;;  %v6301_v57 = vpop.permute.xlu0 %6300  ;;  %v6393_v25 = vpop.permute.xlu1 %6392  ;;  %v6461_v33 = vadd.f32 %v6460_v19, %v6459_v44  ;;  %v6514_v53 = vrot.slane %v6513_v36, 1 }
 0xc95   : > { %v6408_v51 = vmul.f32 %v7817_v17, %v6301_v57  ;;  %v6553_v4 = vsel %vm1148_vm3, %v6423_v6, 0.0  ;;  %v6425_v45 = vmul.f32 %v11481_v28, %v6393_v25  ;;  %v6522_v17 = vadd.f32 %v6521_v26, %v6520_v7 }
 0xc96   : > { %v6485_v63 = vrot.slane %v6484_v16, 2  ;;  %v6546_v46 = vrot.slane %v6545_v62, 4  ;;  %v6470_v14 = vadd.f32 %v6469_v9, %v6468_v32  ;;  %v6540_v6 = vadd.f32 %v6539_v48, %v6538_v49 }
 0xc97   : > { %v6489_v10 = vsel %vm1148_vm3, %v6408_v51, 0.0  ;;  %v6562_v28 = vsel %vm1148_vm3, %v6425_v45, 0.0  ;;  %v6596_v26 = vsel %vm1670_vm14, %v6461_v33, %v6595_v34 }
 0xc98   : > { %v6547_v43 = vadd.f32 %v6546_v46, %v6545_v62  ;;  %v6491_v8 = vadd.f32 %v6490_v54, %v6489_v10  ;;  %v6378_v31 = vpop.permute.xlu0 %6377  ;;  %v6486_v56 = vadd.f32 %v6485_v63, %v6484_v16  ;;  %v6531_v16 = vadd.f32 %v6530_v22, %v6529_v42 }
 0xc99   : > { %v6422_v60 = vmul.f32 %v11456_v58, %v6378_v31  ;;  %v6479_v54 = vadd.f32 %v6478_v47, %v6477_v40  ;;  %v6523_v31 = vrot.slane %v6522_v17, 1  ;;  %v6515_v40 = vadd.f32 %v6514_v53, %v6513_v36 }
 0xc9a   : > { %v6492_v2 = vrot.slane %v6491_v8, 4  ;;  %v6548_v62 = vrot.slane %v6547_v43, 2  ;;  %v6487_v51 = vrot.slane %v6486_v56, 1  ;;  %v6532_v7 = vrot.slane %v6531_v16, 1 }
 0xc9b   : > { %v6552_v15 = vsel %vm1148_vm3, %v6422_v60, 0.0  ;;  %v6597_v60 = vsel %vm1672_vm15, %v6470_v14, %v6596_v26  ;;  %v6541_v49 = vrot.slane %v6540_v6, 1 }
 0xc9c   : > { %v6493_v57 = vadd.f32 %v6492_v2, %v6491_v8  ;;  %v6554_v30 = vadd.f32 %v6553_v4, %v6552_v15  ;;  %v6389_v59 = vpop.permute.xlu0 %6388  ;;  %v6549_v44 = vadd.f32 %v6548_v62, %v6547_v43  ;;  %v6488_v42 = vadd.f32 %v6487_v51, %v6486_v56 }
 0xc9d   : > { %v6424_v58 = vmul.f32 %v11486_v18, %v6389_v59  ;;  %v6598_v9 = vsel %vm1674_vm13, %v6479_v54, %v6597_v60  ;;  %v6506_v4 = vadd.f32 %v6505_v29, %v11740_v37  ;;  %v6524_v56 = vadd.f32 %v6523_v31, %v6522_v17  ;;  %v11782_v54 = vpop.permute.xlu1 %2439 }
 0xc9e   : > { %v6494_v63 = vrot.slane %v6493_v57, 2  ;;  %v6555_v46 = vrot.slane %v6554_v30, 4  ;;  %v6550_v47 = vrot.slane %v6549_v44, 1  ;;  %v6599_v34 = vsel %vm1676_vm12, %v6488_v42, %v6598_v9 }
 0xc9f   : > { %v6561_v10 = vsel %vm1148_vm3, %v6424_v58, 0.0  ;;  %v6533_v45 = vadd.f32 %v6532_v7, %v6531_v16  ;;  %v6542_v36 = vadd.f32 %v6541_v49, %v6540_v6 }
 0xca0   : > { %v6495_v19 = vadd.f32 %v6494_v63, %v6493_v57  ;;  %v6556_v25 = vadd.f32 %v6555_v46, %v6554_v30  ;;  %v6563_v8 = vadd.f32 %v6562_v28, %v6561_v10  ;;  %v6601_v57 = vsel %vm1666_vm1, %v6515_v40, %v6506_v4  ;;  %v11780_v46 = vpop.permute.xlu0 %2413 }
 0xca1   : > { %v6551_v30 = vadd.f32 %v6550_v47, %v6549_v44  ;;  %v6602_v51 = vsel %vm1668_vm5, %v6524_v56, %v6601_v57  ;;  %v11786_v28 = vpop.permute.xlu1 %2451 }
 0xca2   : > { %v6557_v18 = vrot.slane %v6556_v25, 2  ;;  %v6564_v22 = vrot.slane %v6563_v8, 4  ;;  %v6496_v32 = vrot.slane %v6495_v19, 1  ;;  %v6603_v37 = vsel %vm1670_vm14, %v6533_v45, %v6602_v51 }
 0xca3   : > { %v6604_v29 = vsel %vm1672_vm15, %v6542_v36, %v6603_v37 }
 0xca4   : > { %v6558_v2 = vadd.f32 %v6557_v18, %v6556_v25  ;;  %v6565_v43 = vadd.f32 %v6564_v22, %v6563_v8  ;;  %v6497_v48 = vadd.f32 %v6496_v32, %v6495_v19  ;;  %v6605_v16 = vsel %vm1674_vm13, %v6551_v30, %v6604_v29  ;;  %v11784_v6 = vpop.permute.xlu0 %2425  ;;  %v11808_v32 = vld [vmem:[#allocation11] ss:$0 sm:$0xff] }
 0xca5   : > { %v11790_v44 = vpop.permute.xlu1 %2415 }
 0xca6   : > { %v6559_v15 = vrot.slane %v6558_v2, 1  ;;  %v6566_v33 = vrot.slane %v6565_v43, 2  ;;  %v6600_v62 = vsel %vm1678_vm11, %v6497_v48, %v6599_v34 }
 0xca7   : > { %7372 = vmatprep.mubr.msk.f32.mxu1 %vm1148_vm3, %v6600_v62 }
 0xca8   : > { %v6567_v59 = vadd.f32 %v6566_v33, %v6565_v43  ;;  %v6560_v58 = vadd.f32 %v6559_v15, %v6558_v2  ;;  %v11788_v10 = vpop.permute.xlu0 %2465 }
 0xca9   : > { %v11794_v25 = vpop.permute.xlu1 %2477 }
 0xcaa   : > { %v6568_v53 = vrot.slane %v6567_v59, 1  ;;  %v6606_v14 = vsel %vm1676_vm12, %v6560_v58, %v6605_v16 }
 0xcac   : > { %v6569_v17 = vadd.f32 %v6568_v53, %v6567_v59  ;;  %v11792_v19 = vpop.permute.xlu0 %2441 }
 0xcad   : > { %v11798_v31 = vpop.permute.xlu1 %2427 }
 0xcae   : > { %v6607_v63 = vsel %vm1678_vm11, %v6569_v17, %v6606_v14 }
 0xcaf   : > { %7373 = vmatmul.mubr.msk.f32.vlgmr.msra.gmra.mrb[24].mxu1 %vm1148_vm3, %v6607_v63 }
 0xcb0   : > { %v11796_v8 = vpop.permute.xlu0 %2453 }
 0xcb1   : > { %v11802_v42 = vpop.permute.xlu1 %2467 }
 0xcb5   : > { %v11806_v18 = vpop.permute.xlu1 %2479 }
 0xcea   : > { %v11800_v7 = vpop.xlane.xlu0 %2279 }
 0xcee   : > { %v11804_v26 = vpop.xlane.xlu0 %2282 }
 0xcef   : > { %v11810_v60 = vpop.xlane.xlu1 %3715 }
 0xcf2   : > { %v3719_v22 = vpop.xlane.xlu0 %3718 }
 0xcf3   : > { %v3721_v40 = vmul.f32 %v11808_v32, %v3719_v22  ;;  %v5159_v43 = vpop.xlane.xlu1 %5158 }
 0xcf4   : > { %v5163_v33 = vmul.f32 %v11808_v32, %v5159_v43 }
 0xd2f   : > { %v7332_v49 = vpop.f32.mrb[16].mxu1 }
 0xd30   : > { %v11813_v9 = vadd.f32 %v7332_v49, %v3721_v40  ;;  %v11815_v47 = vpop.f32.mrb[17].mxu1 }
 0xd33   : > { %v11817_v2 = vpop.f32.mrb[18].mxu1 }
 0xd34   : > { %v5277_v48 = vsub.f32 %v11817_v2, %v12836_v61  ;;  %v5279_v4 = vsub.f32 %v11817_v2, %v12837_v1  ;;  %v11823_v56 = vpop.f32.mrb[19].mxu1 }
 0xd35   : > { %v5276_v34 = vsub.f32 %v11823_v56, %v12842_v52  ;;  %v5278_v30 = vsub.f32 %v11823_v56, %v12845_v0 }
 0xd36   : > { %v5321_v45 = vmul.f32 %v5279_v4, %v12844_v20  ;;  %v5283_v15 = vmul.f32 %v5277_v48, %v12841_v35  ;;  %v5309_v59 = vmul.f32 %v5277_v48, %v12838_v24  ;;  %v5295_v53 = vmul.f32 %v5279_v4, %v12839_v13 }
 0xd37   : > { %v11830_v62 = vpop.f32.mrb[20].mxu1  ;;  %v5282_v51 = vmul.f32 %v5276_v34, %v12846_v39  ;;  %v5294_v37 = vmul.f32 %v5278_v30, %v12849_v50  ;;  %v5335_v16 = vmul.f32 %v5277_v48, %v12840_v21  ;;  %v5334_v14 = vmul.f32 %v5276_v34, %v12850_v5 }
 0xd38   : > { %5326 = vrot.lane.b32.xlu0 %v5321_v45, %s8055_s26  ;;  %5288 = vrot.lane.b32.xlu1 %v5283_v15, %s8070_s10  ;;  %v5265_v36 = vpop.f32.mrb[21].mxu1  ;;  %v5347_v63 = vmul.f32 %v5279_v4, %v12843_v38  ;;  %v5308_v40 = vmul.f32 %v5276_v34, %v12847_v11  ;;  %v5320_v43 = vmul.f32 %v5278_v30, %v12848_v23  ;;  %v6572_v34 = vpop.xlane.xlu0 %6571  ;;  %v12853_v45 = vld [vmem:[#allocation52_spill] sm:$0xff]  ;;  %v12854_v15 = vld [vmem:[#allocation62_spill] sm:$0xff] }
 0xd39   : > { %v11834_v57 = vadd.f32 %v5265_v36, %v5163_v33  ;;  %v11883_v36 = vpop.permute.xlu1 %3871 }
 0xd3c   : > { %5314 = vrot.lane.b32.xlu1 %v5309_v59, %s8070_s10  ;;  %5286 = vrot.lane.b32.xlu0 %v5282_v51, %s8070_s10  ;;  %v12856_v59 = vld [vmem:[#allocation41_spill] sm:$0xff] }
 0xd3e   : > { %v11842_v58 = vpop.f32.mrb[22].mxu1 }
 0xd3f   : > { %v11846_v29 = vpop.f32.mrb[23].mxu1  ;;  %v6690_v17 = vsub.f32 %v11842_v58, %v12836_v61 }
 0xd40   : > { %5300 = vrot.lane.b32.xlu1 %v5295_v53, %s8055_s26  ;;  %5298 = vrot.lane.b32.xlu0 %v5294_v37, %s8055_s26  ;;  %v6689_v49 = vsub.f32 %v11846_v29, %v12842_v52  ;;  %v11890_v51 = vsub.f32 %v11846_v29, %v12845_v0  ;;  %v11893_v53 = vpop.permute.xlu0 %3845  ;;  %v12857_v37 = vld [vmem:[#allocation31_spill] sm:$0xff] }
 0xd41   : > { %v6696_v22 = vmul.f32 %v6690_v17, %v12841_v35  ;;  %v6722_v61 = vmul.f32 %v6690_v17, %v12838_v24  ;;  %v6748_v48 = vmul.f32 %v6690_v17, %v12840_v21  ;;  %v6692_v35 = vsub.f32 %v11842_v58, %v12837_v1 }
 0xd42   : > { %v5346_v24 = vmul.f32 %v5278_v30, %v12851_v27  ;;  %v6695_v4 = vmul.f32 %v6689_v49, %v12846_v39  ;;  %v2401_v1 = vsub.f32 %v12854_v15, %v12853_v45  ;;  %v12855_v39 = vld [vmem:[#allocation48_spill] sm:$0xff]  ;;  %v6707_v0 = vmul.f32 %v11890_v51, %v12849_v50 }
 0xd43   : > { %v6708_v52 = vmul.f32 %v6692_v35, %v12839_v13  ;;  %v6734_v21 = vmul.f32 %v6692_v35, %v12844_v20  ;;  %v6760_v33 = vmul.f32 %v6692_v35, %v12843_v38  ;;  %v6721_v20 = vmul.f32 %v6689_v49, %v12847_v11 }
 0xd44   : > { %5340 = vrot.lane.b32.xlu1 %v5335_v16, %s8070_s10  ;;  %5338 = vrot.lane.b32.xlu0 %v5334_v14, %s8070_s10  ;;  %v2407_v30 = vmul.f32 %v2401_v1, %v12855_v39  ;;  %v2459_v13 = vmul.f32 %v2401_v1, %v12856_v59  ;;  %v2433_v17 = vmul.f32 %v2401_v1, %v12857_v37  ;;  %v11899_v14 = vpop.permute.xlu1 %3857 }
 0xd46   : > { %v2419_v38 = vadd.f32 %v11780_v46, %v2407_v30  ;;  %v2471_v16 = vadd.f32 %v11788_v10, %v2459_v13  ;;  %v11912_v46 = vpop.permute.xlu0 %3883  ;;  %v12861_v30 = vld [vmem:[#allocation59_spill] sm:$0xff] }
 0xd48   : > { %5352 = vrot.lane.b32.xlu1 %v5347_v63, %s8055_s26  ;;  %6701 = vrot.lane.b32.xlu0 %v6696_v22, %s8070_s10  ;;  %v2445_v63 = vadd.f32 %v11782_v54, %v2433_v17  ;;  %v11903_v22 = vadd.f32 %v11784_v6, %v2419_v38  ;;  %v6733_v54 = vmul.f32 %v11890_v51, %v12848_v23  ;;  %v11918_v6 = vpop.permute.xlu1 %3897  ;;  %v6573_v23 = vsel %vm1148_vm3, %v12835_v3, 0.0 }
 0xd4a   : > { %v11908_v11 = vadd.f32 %v11786_v28, %v2445_v63  ;;  %v2485_v10 = vmul.f32 %v11903_v22, %v11903_v22 }
 0xd4c   : > { %5312 = vrot.lane.b32.xlu1 %v5308_v40, %s8070_s10  ;;  %6727 = vrot.lane.b32.xlu0 %v6722_v61, %s8070_s10  ;;  %v2483_v40 = vadd.f32 %v11794_v25, %v2471_v16  ;;  %v2487_v50 = vmul.f32 %v11908_v11, %v11908_v11  ;;  %v6747_v25 = vmul.f32 %v6689_v49, %v12850_v5  ;;  %v11925_v35 = vpop.permute.xlu1 %3909  ;;  %v12860_v5 = vld [vmem:[#allocation34_spill] sm:$0xff] }
 0xd4e   : > { %v2491_v61 = vmul.f32 %v2483_v40, %v2483_v40  ;;  %v2489_v28 = vadd.f32 %v2487_v50, %v2485_v10 }
 0xd50   : > { %5324 = vrot.lane.b32.xlu1 %v5320_v43, %s8055_s26  ;;  %6753 = vrot.lane.b32.xlu0 %v6748_v48, %s8070_s10  ;;  %v3870_v43 = vpop.permute.xlu0 %3869  ;;  %v2493_v48 = vadd.f32 %v2491_v61, %v2489_v28  ;;  %v3844_v1 = vpop.permute.xlu1 %3843  ;;  %v12862_v61 = vld [vmem:[#allocation35_spill] sm:$0xff] }
 0xd54   : > { %5350 = vrot.lane.b32.xlu1 %v5346_v24, %s8055_s26  ;;  %6699 = vrot.lane.b32.xlu0 %v6695_v4, %s8070_s10  ;;  %v2495_v24 = vadd.f32 1e-08, %v2493_v48  ;;  %v3856_v4 = vpop.permute.xlu0 %3855  ;;  %v3882_v63 = vpop.permute.xlu1 %3881 }
 0xd56   : > { %7692 = vrsqrt.f32 %v2495_v24  ;;  %vm2499_vm11 = vcmp.eq.f32.partialorder %v2495_v24, inf  ;;  %vm2501_vm12 = vcmp.eq.f32.partialorder %v2495_v24, 0.0 }
 0xd58   : > { %6713 = vrot.lane.b32.xlu1 %v6708_v52, %s8055_s26  ;;  %v12858_v52 = vld [vmem:[#allocation55_spill] sm:$0xff] }
 0xd5c   : > { %6739 = vrot.lane.b32.xlu1 %v6734_v21, %s8055_s26  ;;  %v12859_v21 = vld [vmem:[#allocation78_spill] sm:$0xff] }
 0xd5d   : > { %v2402_v15 = vsub.f32 %v12859_v21, %v12858_v52 }
 0xd5f   : > { %v2434_v49 = vmul.f32 %v2402_v15, %v12860_v5  ;;  %v2408_v13 = vmul.f32 %v2402_v15, %v12861_v30  ;;  %v2460_v28 = vmul.f32 %v2402_v15, %v12862_v61 }
 0xd60   : > { %6765 = vrot.lane.b32.xlu1 %v6760_v33, %s8055_s26  ;;  %v3831_v33 = vsub.f32 %v11647_v12, %v12853_v45  ;;  %v7693_v21 = vpop.eup %7692 }
 0xd61   : > { %v2446_v17 = vadd.f32 %v11792_v19, %v2434_v49  ;;  %v2420_v16 = vadd.f32 %v11790_v44, %v2408_v13  ;;  %v2472_v48 = vadd.f32 %v11802_v42, %v2460_v28 }
 0xd62   : > { %v3863_v3 = vmul.f32 %v3831_v33, %v12857_v37  ;;  %v3837_v38 = vmul.f32 %v3831_v33, %v12855_v39 }
 0xd63   : > { %v11943_v50 = vadd.f32 %v11798_v31, %v2420_v16  ;;  %v2484_v49 = vadd.f32 %v11806_v18, %v2472_v48  ;;  %v2502_v18 = vand.u32 2147483648, %v2495_v24 }
 0xd64   : > { %6725 = vrot.lane.b32.xlu1 %v6721_v20, %s8070_s10  ;;  %v3896_v20 = vpop.permute.xlu0 %3895  ;;  %v3875_v10 = vadd.f32 %v3870_v43, %v3863_v3  ;;  %v2498_v3 = vmul.f32 %v7693_v21, %v2495_v24 }
 0xd65   : > { %v2486_v15 = vmul.f32 %v11943_v50, %v11943_v50 }
 0xd66   : > { %v11947_v19 = vadd.f32 %v3882_v63, %v3875_v10  ;;  %v2500_v63 = vsel %vm2499_vm11, %v2495_v24, %v2498_v3  ;;  %v5160_v24 = vsel %vm1148_vm3, %v12830_v41, 0.0  ;;  %v12863_v41 = vld [vmem:[#allocation63_spill] sm:$0xff] }
 0xd67   : > { %v2503_v28 = vsel %vm2501_vm12, %v2502_v18, %v2500_v63  ;;  %v3720_v18 = vmul.f32 %v11808_v32, %v11810_v60 }
 0xd68   : > { %6711 = vrot.lane.b32.xlu1 %v6707_v0, %s8055_s26  ;;  %v11940_v0 = vadd.f32 %v11796_v8, %v2446_v17  ;;  %v6576_v8 = vmul.f32 %v11808_v32, %v6572_v34  ;;  %v3917_v42 = vmul.f32 %v11947_v19, %v11947_v19 }
 0xd6a   : > { %v2488_v44 = vmul.f32 %v11940_v0, %v11940_v0 }
 0xd6c   : > { %6737 = vrot.lane.b32.xlu1 %v6733_v54, %s8055_s26  ;;  %v3849_v54 = vadd.f32 %v3844_v1, %v3837_v38  ;;  %v2490_v38 = vadd.f32 %v2488_v44, %v2486_v15 }
 0xd6e   : > { %v11953_v43 = vadd.f32 %v3856_v4, %v3849_v54  ;;  %v2492_v4 = vmul.f32 %v2484_v49, %v2484_v49 }
 0xd70   : > { %6751 = vrot.lane.b32.xlu1 %v6747_v25, %s8070_s10  ;;  %v3889_v25 = vmul.f32 %v3831_v33, %v12856_v59  ;;  %v3915_v34 = vmul.f32 %v11953_v43, %v11953_v43  ;;  %v2494_v10 = vadd.f32 %v2492_v4, %v2490_v38 }
 0xd72   : > { %v3901_v1 = vadd.f32 %v3896_v20, %v3889_v25  ;;  %v3919_v20 = vadd.f32 %v3917_v42, %v3915_v34  ;;  %v3832_v25 = vsub.f32 %v11645_v55, %v12858_v52  ;;  %v2496_v48 = vadd.f32 1e-08, %v2494_v10 }
 0xd73   : > { %6574 = vadd.xlane.f32.xlu0 %v6573_v23  ;;  %v3908_v23 = vpop.permute.xlu0 %3907 }
 0xd74   : > { %v3913_v13 = vadd.f32 %v3908_v23, %v3901_v1  ;;  %v3864_v21 = vmul.f32 %v3832_v25, %v12860_v5  ;;  %v3838_v44 = vmul.f32 %v3832_v25, %v12861_v30  ;;  %7694 = vrsqrt.f32 %v2496_v48 }
 0xd75   : > { %vm2506_vm3 = vcmp.eq.f32.partialorder %v2496_v48, inf  ;;  %v2509_v63 = vand.u32 2147483648, %v2496_v48  ;;  %vm2508_vm1 = vcmp.eq.f32.partialorder %v2496_v48, 0.0 }
 0xd76   : > { %v3921_v16 = vmul.f32 %v3913_v13, %v3913_v13  ;;  %v3876_v1 = vadd.f32 %v11883_v36, %v3864_v21  ;;  %v3850_v15 = vadd.f32 %v11893_v53, %v3838_v44 }
 0xd78   : > { %v3923_v54 = vadd.f32 %v3921_v16, %v3919_v20 }
 0xd7a   : > { %v3925_v23 = vadd.f32 1e-08, %v3923_v54  ;;  %v5275_v54 = vsub.f32 %v11817_v2, %v12858_v52 }
 0xd7c   : > { %7696 = vrsqrt.f32 %v3925_v23  ;;  %vm3929_vm13 = vcmp.eq.f32.partialorder %v3925_v23, inf  ;;  %vm3931_vm5 = vcmp.eq.f32.partialorder %v3925_v23, 0.0  ;;  %v5307_v60 = vmul.f32 %v5275_v54, %v12860_v5 }
 0xd82   : > { %v11955_v31 = vpop.f32.mrb[24].mxu1 }
 0xd83   : > { %v6678_v33 = vpop.f32.mrb[25].mxu1 }
 0xd84   : > { %v11962_v17 = vadd.f32 %v6678_v33, %v6576_v8  ;;  %v2290_v8 = vmul.f32 %v11808_v32, %v11800_v7  ;;  %v6759_v33 = vmul.f32 %v11890_v51, %v12851_v27  ;;  %v11990_v7 = vadd.f32 %v11899_v14, %v3850_v15 }
 0xd86   : > { %v2393_v3 = vadd.f32 %v12863_v41, %v2290_v8  ;;  %v3916_v51 = vmul.f32 %v11990_v7, %v11990_v7  ;;  %v5281_v8 = vmul.f32 %v5275_v54, %v12861_v30 }
 0xd89   : > { %2537 = vrot.lane.b32.xlu0 %v2483_v40, %s8055_s26  ;;  %v3890_v40 = vmul.f32 %v3832_v25, %v12862_v61  ;;  %v2291_v25 = vmul.f32 %v11808_v32, %v11804_v26 }
 0xd8b   : > { %v3902_v42 = vadd.f32 %v11918_v6, %v3890_v40  ;;  %v12866_v40 = vld [vmem:[#allocation60_spill] sm:$0xff] }
 0xd8d   : > { %2548 = vrot.lane.b32.xlu0 %v2503_v28, %s8064_s22  ;;  %v11993_v36 = vadd.f32 %v11925_v35, %v3902_v42 }
 0xd8f   : > { %v3922_v53 = vmul.f32 %v11993_v36, %v11993_v36 }
 0xd91   : > { %2515 = vrot.lane.b32.xlu0 %v11903_v22, %s8065_s20  ;;  %v11984_v22 = vadd.f32 %v11912_v46, %v3876_v1  ;;  %v7695_v46 = vpop.eup %7694 }
 0xd92   : > { %v7697_v14 = vpop.eup %7696  ;;  %v2505_v35 = vmul.f32 %v7695_v46, %v2496_v48 }
 0xd93   : > { %v3918_v27 = vmul.f32 %v11984_v22, %v11984_v22  ;;  %v3928_v34 = vmul.f32 %v7697_v14, %v3925_v23 }
 0xd94   : > { %5161 = vadd.xlane.f32.xlu1 %v5160_v24  ;;  %v2507_v20 = vsel %vm2506_vm3, %v2496_v48, %v2505_v35  ;;  %v3823_v48 = vadd.f32 %v11815_v47, %v3720_v18  ;;  %v2398_v24 = vadd.f32 %v12866_v40, %v2291_v25  ;;  %vm3992_vm3 = vcmask 392512  }
 0xd95   : > { %6763 = vrot.lane.b32.xlu0 %v6759_v33, %s8055_s26  ;;  %v3920_v6 = vadd.f32 %v3918_v27, %v3916_v51  ;;  %v3930_v16 = vsel %vm3929_vm13, %v3925_v23, %v3928_v34  ;;  %v5333_v27 = vmul.f32 %v5275_v54, %v12862_v61  ;;  %vm2532_vm13 = vcmask 851712  }
 0xd97   : > { %v3924_v38 = vadd.f32 %v3922_v53, %v3920_v6 }
 0xd99   : > { %2558 = vrot.lane.b32.xlu0 %v2393_v3, %s8059_s19  ;;  %v12004_v4 = vadd.f32 1e-08, %v3924_v38 }
 0xd9b   : > { %7698 = vrsqrt.f32 %v12004_v4  ;;  %vm3936_vm14 = vcmp.eq.f32.partialorder %v12004_v4, inf  ;;  %vm3938_vm15 = vcmp.eq.f32.partialorder %v12004_v4, 0.0 }
 0xd9d   : > { %3976 = vrot.lane.b32.xlu0 %v3913_v13, %s8070_s10  ;;  %v3932_v13 = vand.u32 2147483648, %v3925_v23 }
 0xd9f   : > { %v3933_v10 = vsel %vm3931_vm5, %v3932_v13, %v3930_v16  ;;  %vm3960_vm5 = vcmask 654912  }
 0xda1   : > { %2539 = vrot.lane.b32.xlu0 %v2484_v49, %s8055_s26  ;;  %v2510_v49 = vsel %vm2508_vm1, %v2509_v63, %v2507_v20  ;;  %s12864_s26 = smov 68   ;;  %vm3949_vm1 = vcmask 261248  }
 0xda5   : > { %2526 = vrot.lane.b32.xlu1 %v11908_v11, %s8057_s28  ;;  %3943 = vrot.lane.b32.xlu0 %v11647_v12, %s8064_s22  ;;  %v5274_v11 = vsub.f32 %v11823_v56, %v12853_v45  ;;  %v7699_v26 = vpop.eup %7698 }
 0xda6   : > { %v3935_v51 = vmul.f32 %v7699_v26, %v12004_v4 }
 0xda7   : > { %v5280_v23 = vmul.f32 %v5274_v11, %v12855_v39 }
 0xda9   : > { %2550 = vrot.lane.b32.xlu1 %v2510_v49, %s8064_s22  ;;  %3986 = vrot.lane.b32.xlu0 %v3933_v10, %s8076_s5 }
 0xdaa   : > { %v5289_v12 = vpop.permute.xlu1 %5288  ;;  %v5327_v28 = vpop.permute.xlu0 %5326 }
 0xdab   : > { %v5293_v33 = vadd.f32 %v5289_v12, %v5281_v8 }
 0xdad   : > { %3997 = vrot.lane.b32.xlu1 %v3823_v48, %s12864_s26  ;;  %3954 = vrot.lane.b32.xlu0 %v11953_v43, %s12865_s16 }
 0xdae   : > { %v5315_v21 = vpop.permute.xlu1 %5314  ;;  %v5287_v44 = vpop.permute.xlu0 %5286 }
 0xdaf   : > { %v5319_v1 = vadd.f32 %v5315_v21, %v5307_v60  ;;  %v5292_v15 = vadd.f32 %v5287_v44, %v5280_v23  ;;  %v6688_v60 = vsub.f32 %v11842_v58, %v12858_v52 }
 0xdb1   : > { %v12029_v47 = vadd.f32 %v5327_v28, %v5319_v1  ;;  %2560 = vrot.lane.b32.xlu1 %v2398_v24, %s8059_s19  ;;  %2517 = vrot.lane.b32.xlu0 %v11943_v50, %s8065_s20  ;;  %v5332_v50 = vmul.f32 %v5274_v11, %v12856_v59  ;;  %v6746_v21 = vmul.f32 %v6688_v60, %v12862_v61 }
 0xdb2   : > { %v5301_v43 = vpop.permute.xlu1 %5300  ;;  %v5299_v42 = vpop.permute.xlu0 %5298  ;;  %v6720_v8 = vmul.f32 %v6688_v60, %v12860_v5  ;;  %v6694_v1 = vmul.f32 %v6688_v60, %v12861_v30  ;;  %v6873_v60 = vld [vmem:[%s12363_s11 + $0x38] sm:$0xff] }
 0xdb3   : > { %v5305_v41 = vadd.f32 %v5301_v43, %v5293_v33  ;;  %v12034_v3 = vadd.f32 %v5299_v42, %v5292_v15  ;;  %v5361_v53 = vmul.f32 %v12029_v47, %v12029_v47 }
 0xdb5   : > { %v5359_v46 = vmul.f32 %v5305_v41, %v5305_v41  ;;  %2528 = vrot.lane.b32.xlu1 %v11940_v0, %s8057_s28  ;;  %3965 = vrot.lane.b32.xlu0 %v11947_v19, %s12867_s13  ;;  %v3937_v0 = vsel %vm3936_vm14, %v12004_v4, %v3935_v51  ;;  %v3939_v19 = vand.u32 2147483648, %v12004_v4  ;;  %vm12871_vm14 = vmmov %vm12868_vm4 }
 0xdb6   : > { %v5341_v6 = vpop.permute.xlu1 %5340  ;;  %v5339_v14 = vpop.permute.xlu0 %5338 }
 0xdb7   : > { %v5363_v38 = vadd.f32 %v5361_v53, %v5359_v46  ;;  %v5345_v35 = vadd.f32 %v5341_v6, %v5333_v27  ;;  %v5344_v34 = vadd.f32 %v5339_v14, %v5332_v50  ;;  %v3940_v63 = vsel %vm3938_vm15, %v3939_v19, %v3937_v0 }
 0xdb8   : > { %v6687_v14 = vsub.f32 %v11846_v29, %v12853_v45  ;;  %v8086_v0 = vmov 0.0|0.0   ;;  %vm4003_vm15 = vcmask 589344  }
 0xdb9   : > { %5386 = vrot.lane.b32.xlu1 %v11823_v56, %s8058_s17  ;;  %3978 = vrot.lane.b32.xlu0 %v11993_v36, %s8070_s10  ;;  %v5306_v56 = vmul.f32 %v5274_v11, %v12857_v37  ;;  %s12873_s10 = smov 96  }
 0xdba   : > { %v5353_v20 = vpop.permute.xlu1 %5352  ;;  %v6702_v4 = vpop.permute.xlu0 %6701  ;;  %7447 = vmatprep.subr.bf16.mxu0 %v8086_v0  ;;  %v6745_v19 = vmul.f32 %v6687_v14, %v12856_v59  ;;  %v6693_v59 = vmul.f32 %v6687_v14, %v12855_v39 }
 0xdbb   : > { %v12052_v16 = vadd.f32 %v5353_v20, %v5345_v35  ;;  %v6706_v26 = vadd.f32 %v6702_v4, %v6694_v1  ;;  %v6867_v35 = vld [vmem:[%s12363_s11 + $0x8] sm:$0xff] }
 0xdbd   : > { %v5365_v13 = vmul.f32 %v12052_v16, %v12052_v16  ;;  %3945 = vrot.lane.b32.xlu1 %v11645_v55, %s8064_s22  ;;  %3988 = vrot.lane.b32.xlu0 %v3940_v63, %s8076_s5  ;;  %v5358_v55 = vmul.f32 %v12034_v3, %v12034_v3  ;;  %v6868_v63 = vld [vmem:[%s12363_s11 + $0x10] sm:$0xff]  ;;  %s12869_s22 = smov 40  }
 0xdbe   : > { %v5313_v36 = vpop.permute.xlu1 %5312 }
 0xdbf   : > { %v12061_v49 = vadd.f32 %v5365_v13, %v5363_v38  ;;  %v5318_v10 = vadd.f32 %v5313_v36, %v5306_v56  ;;  %v6866_v38 = vld [vmem:[%s12363_s11] sm:$0xff]  ;;  %v6869_v13 = vld [vmem:[%s12363_s11 + $0x18] sm:$0xff] }
 0xdc0   : > { %v7448_v20 = vpack.c.bf16 %v6867_v35, %v6866_v38  ;;  %v7451_v56 = vpack.c.bf16 %v6869_v13, %v6868_v63 }
 0xdc1   : > { %3956 = vrot.lane.b32.xlu1 %v11990_v7, %s12865_s16  ;;  %5432 = vrot.lane.b32.xlu0 %v11834_v57, %s8082_s21  ;;  %v6728_v57 = vpop.permute.xlu0 %6727 }
 0xdc2   : > { %v5325_v18 = vpop.permute.xlu1 %5324  ;;  %v6732_v52 = vadd.f32 %v6728_v57, %v6720_v8  ;;  %7449 = vmatpush1.bf16.msra.mxu0 %v7448_v20  ;;  %v6719_v57 = vmul.f32 %v6687_v14, %v12857_v37 }
 0xdc3   : > { %v12067_v54 = vadd.f32 %v5325_v18, %v5318_v10  ;;  %7450 = vmatprep.subr.bf16.mxu0 %v8086_v0 }
 0xdc5   : > { %v5360_v11 = vmul.f32 %v12067_v54, %v12067_v54  ;;  %3967 = vrot.lane.b32.xlu1 %v11984_v22, %s12867_s13  ;;  %3999 = vrot.lane.b32.xlu0 %v11813_v9, %s12864_s26  ;;  %v6754_v9 = vpop.permute.xlu0 %6753  ;;  %s7962_s26 = sshll.u32 %s8088_s29, 4  ;;  %s7963_s26 = int_to_ptr.vmem [resolvable:$false] %s7962_s26 }
 0xdc6   : > { %v5351_v7 = vpop.permute.xlu1 %5350  ;;  %v6758_v44 = vadd.f32 %v6754_v9, %v6746_v21  ;;  %7452 = vmatpush1.bf16.msra.mxu0 %v7451_v56 }
 0xdc7   : > { %v5362_v12 = vadd.f32 %v5360_v11, %v5358_v55  ;;  %v12077_v28 = vadd.f32 %v5351_v7, %v5344_v34  ;;  %7453 = vmatprep.subr.bf16.mxu0 %v8086_v0  ;;  %v6870_v7 = vld [vmem:[%s12363_s11 + $0x20] sm:$0xff] }
 0xdc9   : > { %v5364_v25 = vmul.f32 %v12077_v28, %v12077_v28  ;;  %6799 = vrot.lane.b32.xlu0 %v11846_v29, %s8065_s20  ;;  %v6700_v33 = vpop.permute.xlu0 %6699 }
 0xdca   : > { %v6714_v48 = vpop.permute.xlu1 %6713  ;;  %v6705_v18 = vadd.f32 %v6700_v33, %v6693_v59  ;;  %v6876_v33 = vld [vmem:[%s12363_s11 + $0x50] sm:$0xff] }
 0xdcb   : > { %v5366_v23 = vadd.f32 %v5364_v25, %v5362_v12  ;;  %v12094_v43 = vadd.f32 %v6714_v48, %v6706_v26  ;;  %v6871_v12 = vld [vmem:[%s12363_s11 + $0x28] sm:$0xff]  ;;  %v6872_v48 = vld [vmem:[%s12363_s11 + $0x30] sm:$0xff] }
 0xdcc   : > { %v7454_v25 = vpack.c.bf16 %v6871_v12, %v6870_v7  ;;  %v6885_v12 = vld [vmem:[%s12363_s11 + $0x98] sm:$0xff] }
 0xdcd   : > { %5388 = vrot.lane.b32.xlu0 %v11817_v2, %s8058_s17  ;;  %v6772_v27 = vmul.f32 %v12094_v43, %v12094_v43  ;;  %v12103_v53 = vadd.f32 1e-08, %v5366_v23 }
 0xdce   : > { %v6740_v22 = vpop.permute.xlu1 %6739  ;;  %7455 = vmatpush1.bf16.msra.mxu0 %v7454_v25 }
 0xdcf   : > { %v12092_v2 = vadd.f32 %v6740_v22, %v6732_v52  ;;  %7700 = vrsqrt.f32 %v12103_v53  ;;  %v7457_v22 = vpack.c.bf16 %v6873_v60, %v6872_v48  ;;  %7456 = vmatprep.subr.bf16.mxu0 %v8086_v0  ;;  %vm5372_vm10 = vcmp.eq.f32.partialorder %v12103_v53, inf  ;;  %v6886_v48 = vld [vmem:[%s12363_s11 + $0xa0] sm:$0xff] }
 0xdd0   : > { %v5375_v26 = vand.u32 2147483648, %v12103_v53  ;;  %vm5374_vm6 = vcmp.eq.f32.partialorder %v12103_v53, 0.0 }
 0xdd1   : > { %5399 = vrot.lane.b32.xlu0 %v5305_v41, %s8059_s19  ;;  %v6774_v61 = vmul.f32 %v12092_v2, %v12092_v2 }
 0xdd2   : > { %v6766_v40 = vpop.permute.xlu1 %6765  ;;  %7458 = vmatpush1.bf16.msra.mxu0 %v7457_v22  ;;  %v6888_v22 = vld [vmem:[%s12363_s11 + $0xb0] sm:$0xff] }
 0xdd3   : > { %v6770_v24 = vadd.f32 %v6766_v40, %v6758_v44  ;;  %v6776_v30 = vadd.f32 %v6774_v61, %v6772_v27  ;;  %v6874_v40 = vld [vmem:[%s12363_s11 + $0x40] sm:$0xff]  ;;  %7459 = vmatprep.subr.bf16.mxu0 %v8086_v0  ;;  %v6877_v61 = vld [vmem:[%s12363_s11 + $0x58] sm:$0xff] }
 0xdd5   : > { %6834 = vrot.lane.b32.xlu0 %v6770_v24, %s8079_s15  ;;  %v6778_v5 = vmul.f32 %v6770_v24, %v6770_v24  ;;  %v6875_v24 = vld [vmem:[%s12363_s11 + $0x48] sm:$0xff] }
 0xdd6   : > { %v6726_v15 = vpop.permute.xlu1 %6725  ;;  %v7460_v52 = vpack.c.bf16 %v6875_v24, %v6874_v40  ;;  %v6890_v24 = vld [vmem:[%s12363_s11 + $0xc0] sm:$0xff] }
 0xdd7   : > { %v6780_v46 = vadd.f32 %v6778_v5, %v6776_v30  ;;  %v6731_v23 = vadd.f32 %v6726_v15, %v6719_v57  ;;  %v7463_v30 = vpack.c.bf16 %v6877_v61, %v6876_v33 }
 0xdd8   : > { %7461 = vmatpush1.bf16.msra.mxu0 %v7460_v52 }
 0xdd9   : > { %v12114_v34 = vadd.f32 1e-08, %v6780_v46  ;;  %v7701_v55 = vpop.eup %7700  ;;  %7462 = vmatprep.subr.bf16.mxu0 %v8086_v0 }
 0xdda   : > { %v6712_v42 = vpop.permute.xlu1 %6711  ;;  %v5371_v9 = vmul.f32 %v7701_v55, %v12103_v53 }
 0xddb   : > { %7702 = vrsqrt.f32 %v12114_v34  ;;  %v6717_v39 = vadd.f32 %v6712_v42, %v6705_v18  ;;  %vm6792_vm11 = vcmp.eq.f32.partialorder %v12114_v34, inf  ;;  %v6795_v46 = vand.u32 2147483648, %v12114_v34  ;;  %v6883_v18 = vld [vmem:[%s12363_s11 + $0x88] sm:$0xff] }
 0xddc   : > { %v5373_v8 = vsel %vm5372_vm10, %v12103_v53, %v5371_v9  ;;  %v6879_v53 = vld [vmem:[%s12363_s11 + $0x68] sm:$0xff]  ;;  %vm6794_vm12 = vcmp.eq.f32.partialorder %v12114_v34, 0.0  ;;  %7464 = vmatpush1.bf16.msra.mxu0 %v7463_v30 }
 0xddd   : > { %v5376_v42 = vsel %vm5374_vm6, %v5375_v26, %v5373_v8  ;;  %7465 = vmatprep.subr.bf16.mxu0 %v8086_v0  ;;  %v6891_v8 = vld [vmem:[%s12363_s11 + $0xc8] sm:$0xff] }
 0xdde   : > { %v6738_v50 = vpop.permute.xlu1 %6737  ;;  %v7484_v26 = vpack.c.bf16 %v6891_v8, %v6890_v24 }
 0xddf   : > { %v6743_v44 = vadd.f32 %v6738_v50, %v6731_v23  ;;  %v6878_v50 = vld [vmem:[%s12363_s11 + $0x60] sm:$0xff] }
 0xde1   : > { %v6773_v27 = vmul.f32 %v6743_v44, %v6743_v44 }
 0xde2   : > { %v6752_v29 = vpop.permute.xlu1 %6751 }
 0xde3   : > { %v6757_v36 = vadd.f32 %v6752_v29, %v6745_v19  ;;  %v7466_v19 = vpack.c.bf16 %v6879_v53, %v6878_v50 }
 0xde5   : > { %v7703_v37 = vpop.eup %7702  ;;  %7467 = vmatpush1.bf16.msra.mxu0 %v7466_v19 }
 0xde6   : > { %v6791_v1 = vmul.f32 %v7703_v37, %v12114_v34  ;;  %7468 = vmatprep.subr.bf16.mxu0 %v8086_v0  ;;  %v6889_v37 = vld [vmem:[%s12363_s11 + $0xb8] sm:$0xff] }
 0xde8   : > { %v6793_v5 = vsel %vm6792_vm11, %v12114_v34, %v6791_v1 }
 0xde9   : > { %v6796_v29 = vsel %vm6794_vm12, %v6795_v46, %v6793_v5  ;;  %vm5403_vm12 = vcmask 720512  }
 0xe00   : > { %v12098_v41 = vpop.xlane.xlu0 %6574 }
 0xe01   : > { %v6577_v14 = vmul.f32 %v11808_v32, %v12098_v41  ;;  %v12188_v41 = vadd.f32 1e-08, %v12061_v49 }
 0xe03   : > { %v6684_v34 = vadd.f32 %v11955_v31, %v6577_v14  ;;  %7704 = vrsqrt.f32 %v12188_v41 }
 0xe04   : > { %v2538_v51 = vpop.permute.xlu0 %2537 }
 0xe05   : > { %2544 = vst.msk [vmem:[#allocation5 + $0x8] sm:$0xff] %vm2543_vm2, %v2538_v51 }
 0xe08   : > { %v2549_v6 = vpop.permute.xlu0 %2548 }
 0xe09   : > { %2554 = vst.msk [vmem:[#allocation5 + $0x8] sm:$0xff] %vm12868_vm4, %v2549_v6  ;;  %v6771_v6 = vmul.f32 %v6717_v39, %v6717_v39  ;;  %vm12872_vm4 = vcmask 195712  }
 0xe0a   : > { %vm12874_vm11 = vmmov %vm12872_vm4 }
 0xe0c   : > { %v2516_v45 = vpop.permute.xlu0 %2515 }
 0xe0d   : > { %2522 = vst.msk [vmem:[#allocation5] sm:$0xff] %vm2521_vm8, %v2516_v45  ;;  %v6775_v45 = vadd.f32 %v6773_v27, %v6771_v6  ;;  %v7705_v25 = vpop.eup %7704 }
 0xe10   : > { %v6764_v10 = vpop.permute.xlu0 %6763 }
 0xe11   : > { %v6769_v4 = vadd.f32 %v6764_v10, %v6757_v36  ;;  %v6880_v36 = vld [vmem:[%s12363_s11 + $0x70] sm:$0xff] }
 0xe13   : > { %6832 = vrot.lane.b32.xlu0 %v6769_v4, %s8079_s15  ;;  %v6777_v38 = vmul.f32 %v6769_v4, %v6769_v4  ;;  %v6882_v4 = vld [vmem:[%s12363_s11 + $0x80] sm:$0xff] }
 0xe14   : > { %v2559_v11 = vpop.permute.xlu0 %2558  ;;  %v7472_v55 = vpack.c.bf16 %v6883_v18, %v6882_v4 }
 0xe15   : > { %2565 = vst.msk [vmem:[#allocation5 + $0x8] sm:$0xff] %vm2564_vm9, %v2559_v11 }
 0xe17   : > { %6810 = vrot.lane.b32.xlu0 %v6717_v39, %s8082_s21 }
 0xe18   : > { %v3977_v21 = vpop.permute.xlu0 %3976 }
 0xe19   : > { %3982 = vst.msk [vmem:[#allocation5 + $0x8] sm:$0xff] %vm1529_vm7, %v3977_v21 }
 0xe1b   : > { %6821 = vrot.lane.b32.xlu0 %v6743_v44, %s8087_s14  ;;  %v7481_v44 = vpack.c.bf16 %v6889_v37, %v6888_v22 }
 0xe1c   : > { %v2540_v15 = vpop.permute.xlu0 %2539 }
 0xe1d   : > { %2545 = vst.msk [vmem:[#allocation5 + $0x18] sm:$0xff] %vm2543_vm2, %v2540_v15  ;;  %vm3971_vm2 = vcmask 917312   ;;  %v5382_v15 = vand.u32 2147483648, %v12188_v41 }
 0xe1f   : > { %5421 = vrot.lane.b32.xlu0 %v5376_v42, %s8058_s17 }
 0xe20   : > { %v3944_v51 = vpop.permute.xlu0 %3943 }
 0xe21   : > { %v5162_v35 = vpop.xlane.xlu1 %5161 }
 0xe22   : > { %v5164_v20 = vmul.f32 %v11808_v32, %v5162_v35  ;;  %v6779_v32 = vadd.f32 %v6777_v38, %v6775_v45 }
 0xe23   : > { %6844 = vrot.lane.b32.xlu0 %v6796_v29, %s12869_s22 }
 0xe24   : > { %v5271_v63 = vadd.f32 %v11830_v62, %v5164_v20  ;;  %v3987_v13 = vpop.permute.xlu0 %3986  ;;  %v6881_v62 = vld [vmem:[%s12363_s11 + $0x78] sm:$0xff]  ;;  %v12203_v10 = vadd.f32 1e-08, %v6779_v32 }
 0xe25   : > { %3993 = vst.msk [vmem:[#allocation5 + $0x8] sm:$0xff] %vm3992_vm3, %v3987_v13  ;;  %v2527_v56 = vpop.permute.xlu1 %2526  ;;  %v7469_v31 = vpack.c.bf16 %v6881_v62, %v6880_v36 }
 0xe26   : > { %2533 = vst.msk [vmem:[#allocation5] sm:$0xff] %vm2532_vm13, %v2527_v56  ;;  %5434 = vrot.lane.b32.xlu1 %v5271_v63, %s8082_s21  ;;  %7706 = vrsqrt.f32 %v12203_v10  ;;  %vm6785_vm10 = vcmp.eq.f32.partialorder %v12203_v10, inf  ;;  %v6788_v27 = vand.u32 2147483648, %v12203_v10  ;;  %vm6787_vm6 = vcmp.eq.f32.partialorder %v12203_v10, 0.0 }
 0xe27   : > { %6855 = vrot.lane.b32.xlu0 %v6684_v34, %s12870_s30  ;;  %3950 = vst.msk [vmem:[#allocation5] sm:$0xff] %vm3949_vm1, %v3944_v51  ;;  %7470 = vmatpush1.bf16.msra.mxu0 %v7469_v31 }
 0xe28   : > { %v3955_v49 = vpop.permute.xlu0 %3954  ;;  %7471 = vmatprep.subr.bf16.mxu0 %v8086_v0 }
 0xe29   : > { %3961 = vst.msk [vmem:[#allocation5] sm:$0xff] %vm3960_vm5, %v3955_v49  ;;  %v2551_v59 = vpop.permute.xlu1 %2550 }
 0xe2a   : > { %2555 = vst.msk [vmem:[#allocation5 + $0x18] sm:$0xff] %vm12871_vm14, %v2551_v59  ;;  %6801 = vrot.lane.b32.xlu1 %v11842_v58, %s8065_s20  ;;  %v6884_v58 = vld [vmem:[%s12363_s11 + $0x90] sm:$0xff]  ;;  %vm6805_vm14 = vcmask 523648  }
 0xe2b   : > { %7473 = vmatpush1.bf16.msra.mxu0 %v7472_v55  ;;  %v7475_v57 = vpack.c.bf16 %v6885_v12, %v6884_v58 }
 0xe2c   : > { %v2518_v11 = vpop.permute.xlu0 %2517  ;;  %7474 = vmatprep.subr.bf16.mxu0 %v8086_v0 }
 0xe2d   : > { %2523 = vst.msk [vmem:[#allocation5 + $0x10] sm:$0xff] %vm2521_vm8, %v2518_v11  ;;  %v3998_v7 = vpop.permute.xlu1 %3997  ;;  %vm5392_vm8 = vcmask 392448  }
 0xe2e   : > { %4004 = vst.msk [vmem:[#allocation5 + $0x8] sm:$0xff] %vm4003_vm15, %v3998_v7  ;;  %6853 = vrot.lane.b32.xlu1 %v11962_v17, %s12870_s30  ;;  %s12879_s30 = sld [smem:[#allocation117_spill]] }
 0xe2f   : > { %5417 = vst.msk [vmem:[#allocation5 + $0x8] sm:$0xff] %vm12872_vm4, %v12077_v28  ;;  %7476 = vmatpush1.bf16.msra.mxu0 %v7475_v57  ;;  %v6887_v28 = vld [vmem:[%s12363_s11 + $0xa8] sm:$0xff]  ;;  %vm6848_vm4 = vcmask 523712  }
 0xe30   : > { %v3966_v39 = vpop.permute.xlu0 %3965  ;;  %7477 = vmatprep.subr.bf16.mxu0 %v8086_v0  ;;  %v7478_v23 = vpack.c.bf16 %v6887_v28, %v6886_v48  ;;  %v7707_v21 = vpop.eup %7706 }
 0xe31   : > { %3972 = vst.msk [vmem:[#allocation5] sm:$0xff] %vm3971_vm2, %v3966_v39  ;;  %v2561_v17 = vpop.permute.xlu1 %2560  ;;  %v6784_v52 = vmul.f32 %v7707_v21, %v12203_v10 }
 0xe32   : > { %2566 = vst.msk [vmem:[#allocation5 + $0x18] sm:$0xff] %vm2564_vm9, %v2561_v17  ;;  %5410 = vrot.lane.b32.xlu1 %v12029_v47, %s12873_s10  ;;  %v5378_v47 = vmul.f32 %v7705_v25, %v12188_v41  ;;  %vm5381_vm9 = vcmp.eq.f32.partialorder %v12188_v41, 0.0 }
 0xe33   : > { %7479 = vmatpush1.bf16.msra.mxu0 %v7478_v23 }
 0xe34   : > { %v3979_v60 = vpop.permute.xlu0 %3978  ;;  %7480 = vmatprep.subr.bf16.mxu0 %v8086_v0  ;;  %s12307_s25 = scalar_lea.hbm %s12879_s30, %s7225_s24 }
 0xe35   : > { %3983 = vst.msk [vmem:[#allocation5 + $0x18] sm:$0xff] %vm1529_vm7, %v3979_v60  ;;  %v2529_v9 = vpop.permute.xlu1 %2528  ;;  %vm5379_vm7 = vcmp.eq.f32.partialorder %v12188_v41, inf }
 0xe36   : > { %2534 = vst.msk [vmem:[#allocation5 + $0x10] sm:$0xff] %vm2532_vm13, %v2529_v9  ;;  %5397 = vrot.lane.b32.xlu1 %v12034_v3, %s8059_s19  ;;  %v5380_v1 = vsel %vm5379_vm7, %v12188_v41, %v5378_v47  ;;  %vm5438_vm13 = vcmask 622144   ;;  %s7964_s19 = scalar_lea.vmem %s7963_s26, 512 }
 0xe37   : > { %7482 = vmatpush1.bf16.msra.mxu0 %v7481_v44  ;;  %v5383_v42 = vsel %vm5381_vm9, %v5382_v15, %v5380_v1  ;;  %vm6899_vm9 = vcmask 654336  }
 0xe38   : > { %v3989_v40 = vpop.permute.xlu0 %3988  ;;  %7483 = vmatprep.subr.bf16.mxu0 %v8086_v0 }
 0xe39   : > { %3994 = vst.msk [vmem:[#allocation5 + $0x18] sm:$0xff] %vm3992_vm3, %v3989_v40  ;;  %v5387_v3 = vpop.permute.xlu1 %5386  ;;  %vm5427_vm3 = vcmask 458112  }
 0xe3a   : > { %5393 = vst.msk [vmem:[#allocation5] sm:$0xff] %vm5392_vm8, %v5387_v3  ;;  %5408 = vrot.lane.b32.xlu1 %v12067_v54, %s12873_s10  ;;  %v6786_v54 = vsel %vm6785_vm10, %v12203_v10, %v6784_v52  ;;  %v7213_v10 = vld [vmem:[#allocation14] ss:$0 sm:$0xff] }
 0xe3b   : > { %7485 = vmatpush1.bf16.msra.mxu0 %v7484_v26  ;;  %v6789_v0 = vsel %vm6787_vm6, %v6788_v27, %v6786_v54 }
 0xe3c   : > { %v5433_v33 = vpop.permute.xlu0 %5432 }
 0xe3d   : > { %v3946_v61 = vpop.permute.xlu1 %3945 }
 0xe3e   : > { %3951 = vst.msk [vmem:[#allocation5 + $0x10] sm:$0xff] %vm3949_vm1, %v3946_v61  ;;  %5423 = vrot.lane.b32.xlu1 %v5383_v42, %s8058_s17  ;;  %vm12875_vm1 = vcmask 261312   ;;  %s12877_s17 = sld [smem:[#allocation21_spill]] }
 0xe3f   : > { %vm12876_vm7 = vmmov %vm12875_vm1 }
 0xe40   : > { %v4000_v5 = vpop.permute.xlu0 %3999 }
 0xe41   : > { %4005 = vst.msk [vmem:[#allocation5 + $0x18] sm:$0xff] %vm4003_vm15, %v4000_v5  ;;  %v3957_v30 = vpop.permute.xlu1 %3956  ;;  %vm6816_vm15 = vcmask 786112  }
 0xe42   : > { %5418 = vst.msk [vmem:[#allocation5 + $0x18] sm:$0xff] %vm12874_vm11, %v12052_v16  ;;  %6842 = vrot.lane.b32.xlu1 %v6789_v0, %s12869_s22  ;;  %s12878_s22 = sld [smem:[#allocation26_spill]] }
 0xe43   : > { %3962 = vst.msk [vmem:[#allocation5 + $0x10] sm:$0xff] %vm3960_vm5, %v3957_v30  ;;  %vm5414_vm5 = vcmask 982912  }
 0xe44   : > { %v6800_v51 = vpop.permute.xlu0 %6799 }
 0xe45   : > { %v3968_v46 = vpop.permute.xlu1 %3967 }
 0xe46   : > { %3973 = vst.msk [vmem:[#allocation5 + $0x10] sm:$0xff] %vm3971_vm2, %v3968_v46  ;;  %6812 = vrot.lane.b32.xlu1 %v12094_v43, %s8082_s21  ;;  %vm6827_vm2 = vcmask 1048512   ;;  %s541_s21 = sand.u32 1, %s12877_s17  }
 0xe47   : > { %s12310_s18 = scalar_lea.sflag [#allocation8], %s541_s21 }
 0xe48   : > { %v5389_v50 = vpop.permute.xlu0 %5388  ;;  %p12880_p3 = scmp.ne.s32.totalorder %s12878_s22, 0 }
 0xe49   : > { %5394 = vst.msk [vmem:[#allocation5 + $0x10] sm:$0xff] %vm5392_vm8, %v5389_v50  ;;  %vm6859_vm8 = vcmask 654944  }
 0xe4a   : > { %6823 = vrot.lane.b32.xlu1 %v12092_v2, %s8087_s14  ;;  %s7159_s14 = sshll.u32 %s541_s21, 4 }
 0xe4b   : > { %s543_s28 = scalar_lea.vmem [#allocation15], %s7159_s14 }
 0xe4c   : > { %v5400_v53 = vpop.permute.xlu0 %5399  ;;  %s6997_s10 = sshll.u32 %s543_s28, 4  ;;  %s12302_s10 = int_to_ptr.vmem [resolvable:$true] %s6997_s10 }
 0xe4d   : > { %5405 = vst.msk [vmem:[#allocation5 + $0x10] sm:$0xff] %vm5403_vm12, %v5400_v53  ;;  %s7958_s23 = scalar_lea.vmem %s12302_s10, 256  ;;  %p7965_p8 = scmp.lt.s32.totalorder %s12302_s10, %s7963_s26 }
 0xe4e   : > { %p7959_p2 = scmp.ne.s32.totalorder %s12302_s10, %s7958_s23  ;;  %p7966_p11 = scmp.lt.s32.totalorder %s7964_s19, %s7958_s23 }
 0xe50   : > { %v6835_v16 = vpop.permute.xlu0 %6834  ;;  %p7960_p4 = pnand %p7959_p2, %p12880_p3  ;;  %p7967_p13 = por %p7966_p11, %p7965_p8 }
 0xe52   : > { %p7961_p7 = pneg %p7960_p4 }
 0xe54   : > { %p7968_p1 = pnand %p7967_p13, %p7961_p7 }
 0xe85   : > { %v6833_v6 = vpop.permute.xlu0 %6832 }
 0xe89   : > { %v6811_v14 = vpop.permute.xlu0 %6810 }
 0xe8d   : > { %v6822_v38 = vpop.permute.xlu0 %6821 }
 0xe91   : > { %v5422_v35 = vpop.permute.xlu0 %5421 }
 0xe92   : > { %5428 = vst.msk [vmem:[#allocation5 + $0x8] sm:$0xff] %vm5427_vm3, %v5422_v35 }
 0xe93   : > { %5439 = vst.msk [vmem:[#allocation5 + $0x8] sm:$0xff] %vm5438_vm13, %v5433_v33 }
 0xe94   : > { %6838 = vst.msk [vmem:[#allocation5 + $0x8] sm:$0xff] %vm12875_vm1, %v6833_v6 }
 0xe95   : > { %v6845_v63 = vpop.permute.xlu0 %6844 }
 0xe98   : > { %v5435_v43 = vpop.permute.xlu1 %5434 }
 0xe99   : > { %v6856_v41 = vpop.permute.xlu0 %6855 }
 0xe9c   : > { %v6802_v20 = vpop.permute.xlu1 %6801 }
 0xea0   : > { %v6854_v2 = vpop.permute.xlu1 %6853 }
 0xea4   : > { %v5411_v29 = vpop.permute.xlu1 %5410 }
 0xea5   : > { %5416 = vst.msk [vmem:[#allocation5 + $0x10] sm:$0xff] %vm5414_vm5, %v5411_v29 }
 0xea6   : > { %6807 = vst.msk [vmem:[#allocation5 + $0x10] sm:$0xff] %vm6805_vm14, %v6802_v20 }
 0xea8   : > { %v5398_v45 = vpop.permute.xlu1 %5397 }
 0xea9   : > { %5404 = vst.msk [vmem:[#allocation5] sm:$0xff] %vm5403_vm12, %v5398_v45 }
 0xeac   : > { %v5409_v19 = vpop.permute.xlu1 %5408 }
 0xead   : > { %5415 = vst.msk [vmem:[#allocation5] sm:$0xff] %vm5414_vm5, %v5409_v19 }
 0xeae   : > { %6806 = vst.msk [vmem:[#allocation5] sm:$0xff] %vm6805_vm14, %v6800_v51 }
 0xeaf   : > { %6817 = vst.msk [vmem:[#allocation5] sm:$0xff] %vm6816_vm15, %v6811_v14 }
 0xeb0   : > { %v5424_v13 = vpop.permute.xlu1 %5423  ;;  %6828 = vst.msk [vmem:[#allocation5] sm:$0xff] %vm6827_vm2, %v6822_v38 }
 0xeb1   : > { %5429 = vst.msk [vmem:[#allocation5 + $0x18] sm:$0xff] %vm5427_vm3, %v5424_v13 }
 0xeb2   : > { %5440 = vst.msk [vmem:[#allocation5 + $0x18] sm:$0xff] %vm5438_vm13, %v5435_v43 }
 0xeb3   : > { %6839 = vst.msk [vmem:[#allocation5 + $0x18] sm:$0xff] %vm12876_vm7, %v6835_v16 }
 0xeb4   : > { %v6843_v34 = vpop.permute.xlu1 %6842  ;;  %6850 = vst.msk [vmem:[#allocation5 + $0x18] sm:$0xff] %vm6848_vm4, %v6845_v63 }
 0xeb5   : > { %6849 = vst.msk [vmem:[#allocation5 + $0x8] sm:$0xff] %vm6848_vm4, %v6843_v34 }
 0xeb6   : > { %6861 = vst.msk [vmem:[#allocation5 + $0x18] sm:$0xff] %vm6859_vm8, %v6856_v41  ;;  %6860 = vst.msk [vmem:[#allocation5 + $0x8] sm:$0xff] %vm6859_vm8, %v6854_v2 }
 0xeb7   : > { %v6862_v62 = vld [vmem:[#allocation5] sm:$0xff] }
 0xeb8   : > { %v6813_v32 = vpop.permute.xlu1 %6812 }
 0xeb9   : > { %6818 = vst.msk [vmem:[#allocation5 + $0x10] sm:$0xff] %vm6816_vm15, %v6813_v32 }
 0xebc   : > { %v6824_v56 = vpop.permute.xlu1 %6823 }
 0xebd   : > { %6829 = vst.msk [vmem:[#allocation5 + $0x10] sm:$0xff] %vm6827_vm2, %v6824_v56  ;;  %v6863_v36 = vld [vmem:[#allocation5 + $0x8] sm:$0xff]  ;;  %v6865_v31 = vld [vmem:[#allocation5 + $0x18] sm:$0xff] }
 0xebe   : > { %7214 = vmatprep.mubr.msk.f32.mxu0 %vm6899_vm9, %v6863_v36 }
 0xebf   : > { %6971 = vmatmul.mubr.f32.vlgmr.msra.gmra.mrb[4].mxu0 %v6862_v62 }
 0xec0   : > { %7215 = vmatprep.mubr.msk.f32.mxu0 %vm6899_vm9, %v6865_v31 }
 0xec4   : > { %v6864_v49 = vld [vmem:[#allocation5 + $0x10] sm:$0xff] }
 0xec5   : > { %6976 = vmatmul.mubr.f32.gmra.mrb[6].mxu0 %v6864_v49 }
 0xf92   : > { %v6972_v59 = vpop.f32.mrb[4].mxu0 }
 0xf93   : > { %v6973_v4 = vadd.f32 %v7213_v10, %v6972_v59  ;;  %v6974_v18 = vpop.f32.mrb[5].mxu0 }
 0xf95   : > { %6981 = vst.msk [vmem:[%s543_s28] sm:$0xff] %vm595_vm0, %v6973_v4 }
 0xf98   : > { %v6977_v55 = vpop.f32.mrb[6].mxu0 }
 0xf99   : > { %v6978_v11 = vadd.f32 %v7213_v10, %v6977_v55  ;;  %v6979_v7 = vpop.f32.mrb[7].mxu0 }
 0xf9b   : > { %6982 = vst.msk [vmem:[%s543_s28 + $0x8] sm:$0xff] %vm595_vm0, %v6978_v11 }
 0xf9c   : > { %7971 = shalt.err (!%p7968_p1)
}
 0xf9d   : > { %s7972_s16 = scalar_lea.hbm %s12307_s25, 256  ;;  %s7976_s17 = scalar_lea.hbm %s12879_s30, 512 }
 0xf9e   : > { %p7973_p0 = scmp.ne.s32.totalorder %s12307_s25, %s7972_s16  ;;  %p7977_p9 = scmp.lt.u32.totalorder %s12307_s25, %s12879_s30 }
 0xf9f   : > { %p7978_p12 = scmp.lt.u32.totalorder %s7976_s17, %s7972_s16  ;;  %p7980_p2 = scmp.lt.u32.totalorder %s7972_s16, %s12307_s25 }
 0xfa0   : > { %p7974_p6 = pnand %p7973_p0, %p12880_p3 }
 0xfa1   : > { %p7979_p10 = por %p7978_p12, %p7977_p9 }
 0xfa2   : > { %p7975_p5 = pneg %p7974_p6 }
 0xfa3   : > { %p7981_p4 = por %p7980_p2, %p7979_p10 }
 0xfa5   : > { %p7982_p7 = pnand %p7981_p4, %p7975_p5 }
 0xfa7   : > { %7985 = shalt.err (!%p7982_p7)
}
 0xfa8   : > { %s8089_s28 = smov 128  }
 0xfa9   : > { %7506 = dma.vmem_to_hbm [thread:$0]  (%p12880_p3), %s12302_s10, 256, %s12307_s25, %s12310_s18, %s8089_s28, %s8089_s28, %s8079_s15  }
 0xfaa PF: > { %s12881_s24 = sld [smem:[#allocation23_spill]]  ;;  %s12882_s27 = sld [smem:[#allocation20_spill]] }
 0xfab   : > { %s12883_s5 = sld [smem:[#allocation27_spill]] }
 0xfb0   : > { %p7538_p8 = scmp.ge.s32.totalorder %s12881_s24, 2  ;;  %s7012_s23 = sand.u32 1, %s12882_s27  }
 0xfb1   : > { %p12884_p11 = scmp.ne.s32.totalorder %s12883_s5, 0  ;;  %s7013_s29 = scalar_lea.sflag [#allocation8], %s7012_s23 }
 0xfb3   : > { %p7525_p13 = pnand %p7538_p8, %p12884_p11 }
 0xfb5   : > { %8015 = dma.done.wait (!%p7525_p13), %s7013_s29, 256  }
 0xfb6   : > { %8017 = vsyncadd (!%p7525_p13), %s7013_s29, 4294967040  ;;  %s12885_s28 = sld [smem:[#allocation24_spill]]  ;;  %s12886_s25 = sld [smem:[#allocation21_spill]] }
 0xfb7   : > { %s12887_s26 = sld [smem:[#allocation22_spill]]  ;;  %s12888_s27 = sld [smem:[#allocation25_spill]] }
 0xfbc   : > { %p26_p1 = scmp.ge.s32.totalorder %s12885_s28, 4  }
 0xfbe   :  { %28 = sbr.rel (!%p26_p1) target bundleno = 10 (0xa), region = 137 }
 0xfc5   :  { %7018 = vsyncpa [#allocation7], 1 }
 0xfc6   :  { %7020 = vsyncpa [#allocation7 + $0x1], 1 }
 0xfc7   :  { %7021 = vsyncpa [#allocation10], 1 }
 0xfc8   :  { %7022 = vsyncpa [#allocation13], 1 }
 0xfc9   :  { %7023 = vsyncpa [#allocation8], 1 }
 0xfca   :  { %7025 = vsyncpa [#allocation8 + $0x1], 1 }

</bundles_post_ra>
